<compile_context>
chip_gen: v7x
topology: tpu7x:2x2x1
jax: 0.10.0
libtpu: 0.0.40
codegen_flags: <defaults>
</compile_context>

<pallas_src>
import functools

import jax
import jax.numpy as jnp
from jax.experimental import pallas as pl
from jax.experimental.pallas import tpu as pltpu

NEG_SLOPE = 0.2   # PyG GATConv default LeakyReLU negative slope
NEG_INF = -1e30


def gat_fused_kernel(x_ref, adj_ref,
                     w1_ref, asrc1_ref, adst1_ref, b1_ref,
                     w2_ref, asrc2_ref, adst2_ref, b2_ref,
                     out_ref, x1_scratch, *, heads, hidden):
    """Fused GAT forward: conv1 (H heads, concat) -> ELU -> conv2 (1 head)."""
    n = x_ref.shape[0]

    # Additive adjacency bias computed ONCE and reused by both layers (replaces
    # a per-head select against a bool mask and keeps no mask live across heads).
    adj_bias = jnp.where(adj_ref[...] > 0.0, 0.0, NEG_INF)           # [N, N]

    ones_bf = jnp.ones((n, 1), jnp.bfloat16)                          # MXU row-sum col

    # ---- Layer 1: projection for all heads in one MXU matmul -> [N, H*D] ----
    h_all = jnp.dot(x_ref[...], w1_ref[...],
                    preferred_element_type=jnp.float32)               # [N, H*D]

    # Attention projections batched over heads via block-diagonal packed vectors:
    # two K=H*D matmuls on the slab instead of 2*H M=1/K=D matmuls.
    dst_all = jnp.dot(h_all, adst1_ref[...],
                      preferred_element_type=jnp.float32)             # [N, H]
    src_all = jax.lax.dot_general(
        asrc1_ref[...], h_all, (((1,), (1,)), ((), ())),
        preferred_element_type=jnp.float32)                           # [H, N]

    # Cast the projection slab to bf16 once (MXU-native on v5e/v6e/v7x).
    h_all_bf = h_all.astype(jnp.bfloat16)

    for h in range(heads):                                            # unrolled, H small
        lo = h * hidden
        e = dst_all[:, h:h + 1] + src_all[h:h + 1, :]                 # [N, N]
        e = jnp.maximum(e, NEG_SLOPE * e)                             # LeakyReLU
        e = e + adj_bias                                              # mask non-edges
        m = jnp.max(e, axis=-1, keepdims=True)                        # XLU row max
        p = jnp.exp(e - m).astype(jnp.bfloat16)                       # [N, N] probs
        # Softmax row-sum folded onto the MXU (second tiny matmul) rather than an
        # XLU cross-lane reduce; bf16 cast error in p cancels to first order
        # between numerator and denominator.
        num = jnp.dot(p, h_all_bf[:, lo:lo + hidden],
                      preferred_element_type=jnp.float32)             # [N, D]
        den = jnp.dot(p, ones_bf, preferred_element_type=jnp.float32) # [N, 1]
        # Self-loops guarantee den >= 1, so approx reciprocal (EUP, ~free) is safe;
        # WITHOUT self-loops a row's den could be ~0 and this would produce garbage.
        x1_scratch[:, lo:lo + hidden] = num * pl.reciprocal(den, approx=True)

    # Bias + ELU applied once over the full lane-dense [N, H*D] slab (stays in
    # VMEM; no HBM round-trip, no concat, no per-head lane-sparse epilogue).
    x1 = x1_scratch[...] + b1_ref[...]
    # NOTE: jnp.exp(x1) yields inf for large positive x1 in the dead branch of the
    # select; benign (select, not arithmetic) -- do not rewrite into a form where
    # the inf propagates.
    x1 = jnp.where(x1 > 0, x1, jnp.exp(x1) - 1.0)                     # ELU(alpha=1)

    # ---- Layer 2: single head, concat=False ----
    h2 = jnp.dot(x1.astype(jnp.bfloat16), w2_ref[...].astype(jnp.bfloat16),
                 preferred_element_type=jnp.float32)                  # [N, OUT]
    dst2 = jax.lax.dot_general(h2, adst2_ref[...], (((1,), (1,)), ((), ())),
                               preferred_element_type=jnp.float32)    # [N, 1]
    src2 = jax.lax.dot_general(asrc2_ref[...], h2, (((1,), (1,)), ((), ())),
                               preferred_element_type=jnp.float32)    # [1, N]
    e2 = dst2 + src2
    e2 = jnp.maximum(e2, NEG_SLOPE * e2)
    e2 = e2 + adj_bias
    m2 = jnp.max(e2, axis=-1, keepdims=True)
    p2 = jnp.exp(e2 - m2).astype(jnp.bfloat16)
    num2 = jnp.dot(p2, h2.astype(jnp.bfloat16),
                   preferred_element_type=jnp.float32)                # [N, OUT]
    den2 = jnp.dot(p2, ones_bf, preferred_element_type=jnp.float32)   # [N, 1]
    out = num2 * pl.reciprocal(den2, approx=True) + b2_ref[...]
    out_ref[...] = out.astype(out_ref.dtype)


@jax.jit
def gat_forward(x, adj, params):
    """GAT.forward: dropout(p=0, no-op) -> conv1 -> ELU -> dropout -> conv2."""
    n, fin = x.shape
    heads, _, hidden = params["w1"].shape
    out_ch = params["w2"].shape[-1]

    # Pack per-head parameters into lane-dense layouts (tiny one-time relayout):
    #   W1:     [H, Fin, D] -> [Fin, H*D]   (head h occupies columns h*D:(h+1)*D)
    #   a_*1:   [H, 1, D]   -> block-diagonal [H, H*D] / [H*D, H]
    #   b1:     [H, 1, D]   -> [1, H*D]
    w1_all = jnp.transpose(params["w1"], (1, 0, 2)).reshape(fin, heads * hidden)
    eye = jnp.eye(heads, dtype=jnp.float32)
    a_src1 = params["a_src1"][:, 0, :]                                 # [H, D]
    a_dst1 = params["a_dst1"][:, 0, :]                                 # [H, D]
    asrc1_blk = (eye[:, :, None] * a_src1[:, None, :]).reshape(heads, heads * hidden)
    adst1_blk = (eye[:, None, :] * a_dst1[:, :, None]).reshape(heads * hidden, heads)
    b1_packed = params["b1"].reshape(1, heads * hidden)

    w2 = params["w2"][0]           # [H*D, OUT]
    a_src2 = params["a_src2"][0]   # [1, OUT]
    a_dst2 = params["a_dst2"][0]   # [1, OUT]
    b2 = params["b2"][0]           # [1, OUT]

    kernel = functools.partial(gat_fused_kernel, heads=heads, hidden=hidden)
    vmem = lambda: pl.BlockSpec(memory_space=pltpu.MemorySpace.VMEM)

    return pl.pallas_call(
        kernel,
        out_shape=jax.ShapeDtypeStruct((n, out_ch), jnp.float32),
        in_specs=[vmem() for _ in range(10)],
        out_specs=vmem(),
        scratch_shapes=[pltpu.VMEM((n, heads * hidden), jnp.float32)],
    )(x, adj, w1_all, asrc1_blk, adst1_blk, b1_packed,
      w2, a_src2, a_dst2, b2)


# ----------------------------- pure-JAX reference -----------------------------

def gat_conv_ref(x, adj, w, a_src, a_dst, bias, apply_elu):
    h = jnp.einsum("nf,hfd->hnd", x, w)
    src = jnp.sum(h * a_src, axis=-1)                  # [H, N]
    dst = jnp.sum(h * a_dst, axis=-1)                  # [H, N]
    e = dst[:, :, None] + src[:, None, :]              # [H, N, N]
    e = jnp.where(e > 0, e, NEG_SLOPE * e)
    e = jnp.where(adj[None] > 0, e, NEG_INF)
    alpha = jax.nn.softmax(e, axis=-1)
    out = jnp.einsum("hij,hjd->hid", alpha, h) + bias
    if apply_elu:
        out = jnp.where(out > 0, out, jnp.exp(out) - 1.0)
    return out


def gat_forward_ref(x, adj, params):
    n = x.shape[0]
    heads, _, hidden = params["w1"].shape
    h1 = gat_conv_ref(x, adj, params["w1"], params["a_src1"], params["a_dst1"],
                      params["b1"], apply_elu=True)
    x1 = jnp.transpose(h1, (1, 0, 2)).reshape(n, heads * hidden)
    h2 = gat_conv_ref(x1, adj, params["w2"], params["a_src2"], params["a_dst2"],
                      params["b2"], apply_elu=False)
    return h2[0]


def init_params(key, in_channels, hidden_channels, out_channels, heads):
    ks = jax.random.split(key, 8)
    glorot = lambda k, shape, fan_in, fan_out: (
        jax.random.normal(k, shape, jnp.float32)
        * jnp.sqrt(2.0 / (fan_in + fan_out)))
    return {
        # conv1: in -> hidden, H heads, concat=True
        "w1": glorot(ks[0], (heads, in_channels, hidden_channels),
                     in_channels, heads * hidden_channels),
        "a_src1": glorot(ks[1], (heads, 1, hidden_channels), hidden_channels, 1),
        "a_dst1": glorot(ks[2], (heads, 1, hidden_channels), hidden_channels, 1),
        "b1": jnp.zeros((heads, 1, hidden_channels), jnp.float32),
        # conv2: H*hidden -> out, 1 head, concat=False
        "w2": glorot(ks[3], (1, heads * hidden_channels, out_channels),
                     heads * hidden_channels, out_channels),
        "a_src2": glorot(ks[4], (1, 1, out_channels), out_channels, 1),
        "a_dst2": glorot(ks[5], (1, 1, out_channels), out_channels, 1),
        "b2": jnp.zeros((1, 1, out_channels), jnp.float32),
    }


if __name__ == "__main__":
    N, IN_CH, HIDDEN, OUT_CH, HEADS = 128, 16, 8, 4, 8

    key = jax.random.PRNGKey(0)
    kx, kadj, kp = jax.random.split(key, 3)

    x = jax.random.normal(kx, (N, IN_CH), jnp.float32)
    # Random sparse-ish directed graph + self loops (GATConv add_self_loops=True).
    # Self-loops are required: they keep every softmax row denominator >= 1.
    adj = (jax.random.uniform(kadj, (N, N)) < 0.1).astype(jnp.float32)
    adj = jnp.maximum(adj, jnp.eye(N, dtype=jnp.float32))

    params = init_params(kp, IN_CH, HIDDEN, OUT_CH, HEADS)

    # TODO(synk): dropout is a no-op here (p=0.0 / eval mode), so it is omitted.
    out = gat_forward(x, adj, params)
    out = jax.block_until_ready(out)

    ref = gat_forward_ref(x, adj, params)
    assert out.shape == (N, OUT_CH), out.shape
    assert bool(jnp.all(jnp.isfinite(out)))
    # Tolerance loosened vs. a pure-f32 kernel: the aggregation and layer-2
    # projection matmuls take bf16 inputs (f32 accumulation) per the perf review,
    # which shifts the result by O(1e-2) absolute relative to the f32 reference.
    assert jnp.allclose(out, ref, atol=2.5e-2, rtol=2.5e-2), float(
        jnp.max(jnp.abs(out - ref)))

    print("KERNEL_OK")
</pallas_src>

<mosaic_0001>
module attributes {stable_mosaic.version = 11 : i64} {
  func.func @gat_fused_kernel(%arg0: memref<128x16xf32, #tpu.memory_space<vmem>>, %arg1: memref<128x128xf32, #tpu.memory_space<vmem>>, %arg2: memref<16x64xf32, #tpu.memory_space<vmem>>, %arg3: memref<8x64xf32, #tpu.memory_space<vmem>>, %arg4: memref<64x8xf32, #tpu.memory_space<vmem>>, %arg5: memref<1x64xf32, #tpu.memory_space<vmem>>, %arg6: memref<64x4xf32, #tpu.memory_space<vmem>>, %arg7: memref<1x4xf32, #tpu.memory_space<vmem>>, %arg8: memref<1x4xf32, #tpu.memory_space<vmem>>, %arg9: memref<1x4xf32, #tpu.memory_space<vmem>>, %arg10: memref<128x4xf32, #tpu.memory_space<vmem>>, %arg11: memref<128x64xf32, #tpu.memory_space<vmem>>) attributes {dimension_semantics = [], scalar_prefetch = 0 : i64, scratch_operands = 1 : i64, tpu.core_type = #tpu.core_type<tc>} {
    %c0 = arith.constant 0 : index
    %c0_0 = arith.constant 0 : index
    %0 = vector.load %arg1[%c0, %c0_0] : memref<128x128xf32, #tpu.memory_space<vmem>>, vector<128x128xf32>
    %cst = arith.constant 0.000000e+00 : f32
    %1 = vector.broadcast %cst : f32 to vector<128x128xf32>
    %2 = arith.cmpf ogt, %0, %1 : vector<128x128xf32>
    %cst_1 = arith.constant 0.000000e+00 : f32
    %cst_2 = arith.constant -1.000000e+30 : f32
    %3 = vector.broadcast %cst_1 : f32 to vector<128x128xf32>
    %4 = vector.broadcast %cst_2 : f32 to vector<128x128xf32>
    %5 = arith.select %2, %3, %4 : vector<128x128xi1>, vector<128x128xf32>
    %cst_3 = arith.constant 1.000000e+00 : bf16
    %6 = vector.broadcast %cst_3 : bf16 to vector<128x1xbf16>
    %c0_4 = arith.constant 0 : index
    %c0_5 = arith.constant 0 : index
    %7 = vector.load %arg0[%c0_4, %c0_5] : memref<128x16xf32, #tpu.memory_space<vmem>>, vector<128x16xf32>
    %c0_6 = arith.constant 0 : index
    %c0_7 = arith.constant 0 : index
    %8 = vector.load %arg2[%c0_6, %c0_7] : memref<16x64xf32, #tpu.memory_space<vmem>>, vector<16x64xf32>
    %cst_8 = arith.constant dense<0.000000e+00> : vector<128x64xf32>
    %9 = tpu.matmul %7, %8, %cst_8 {dimension_numbers = #tpu.dot_dimension_numbers<[1], [0], [0], [1], [0, 0, 1, 1], [], []>} : vector<128x16xf32>, vector<16x64xf32>, vector<128x64xf32> -> vector<128x64xf32>
    %c0_9 = arith.constant 0 : index
    %c0_10 = arith.constant 0 : index
    %10 = vector.load %arg4[%c0_9, %c0_10] : memref<64x8xf32, #tpu.memory_space<vmem>>, vector<64x8xf32>
    %cst_11 = arith.constant dense<0.000000e+00> : vector<128x8xf32>
    %11 = tpu.matmul %9, %10, %cst_11 {dimension_numbers = #tpu.dot_dimension_numbers<[1], [0], [0], [1], [0, 0, 1, 1], [], []>} : vector<128x64xf32>, vector<64x8xf32>, vector<128x8xf32> -> vector<128x8xf32>
    %c0_12 = arith.constant 0 : index
    %c0_13 = arith.constant 0 : index
    %12 = vector.load %arg3[%c0_12, %c0_13] : memref<8x64xf32, #tpu.memory_space<vmem>>, vector<8x64xf32>
    %cst_14 = arith.constant dense<0.000000e+00> : vector<8x128xf32>
    %13 = tpu.matmul %12, %9, %cst_14 {dimension_numbers = #tpu.dot_dimension_numbers<[1], [1], [0], [0], [0, 0, 1, 0], [], []>} : vector<8x64xf32>, vector<128x64xf32>, vector<8x128xf32> -> vector<8x128xf32>
    %14 = arith.truncf %9 : vector<128x64xf32> to vector<128x64xbf16>
    %15 = vector.extract_strided_slice %11 {offsets = [0, 0], sizes = [128, 1], strides = [1, 1]} : vector<128x8xf32> to vector<128x1xf32>
    %16 = vector.extract_strided_slice %13 {offsets = [0, 0], sizes = [1, 128], strides = [1, 1]} : vector<8x128xf32> to vector<1x128xf32>
    %17 = vector.broadcast %15 : vector<128x1xf32> to vector<128x128xf32>
    %18 = vector.broadcast %16 : vector<1x128xf32> to vector<128x128xf32>
    %19 = arith.addf %17, %18 : vector<128x128xf32>
    %cst_15 = arith.constant 2.000000e-01 : f32
    %20 = vector.broadcast %cst_15 : f32 to vector<128x128xf32>
    %21 = arith.mulf %20, %19 : vector<128x128xf32>
    %22 = arith.maximumf %19, %21 : vector<128x128xf32>
    %23 = arith.addf %22, %5 : vector<128x128xf32>
    %cst_16 = arith.constant dense<0xFF800000> : vector<128xf32>
    %24 = vector.multi_reduction <maximumf>, %23, %cst_16 [1] : vector<128x128xf32> to vector<128xf32>
    %25 = vector.shape_cast %24 : vector<128xf32> to vector<128x1xf32>
    %26 = vector.broadcast %25 : vector<128x1xf32> to vector<128x128xf32>
    %27 = arith.subf %23, %26 : vector<128x128xf32>
    %28 = math.exp %27 : vector<128x128xf32>
    %29 = arith.truncf %28 : vector<128x128xf32> to vector<128x128xbf16>
    %30 = vector.extract_strided_slice %14 {offsets = [0, 0], sizes = [128, 8], strides = [1, 1]} : vector<128x64xbf16> to vector<128x8xbf16>
    %cst_17 = arith.constant dense<0.000000e+00> : vector<128x8xf32>
    %31 = tpu.matmul %29, %30, %cst_17 {dimension_numbers = #tpu.dot_dimension_numbers<[1], [0], [0], [1], [0, 0, 1, 1], [], []>} : vector<128x128xbf16>, vector<128x8xbf16>, vector<128x8xf32> -> vector<128x8xf32>
    %cst_18 = arith.constant dense<0.000000e+00> : vector<128x1xf32>
    %32 = tpu.matmul %29, %6, %cst_18 {dimension_numbers = #tpu.dot_dimension_numbers<[1], [0], [0], [1], [0, 0, 1, 1], [], []>} : vector<128x128xbf16>, vector<128x1xbf16>, vector<128x1xf32> -> vector<128x1xf32>
    %33 = tpu.reciprocal %32 {approx = true} : vector<128x1xf32> -> vector<128x1xf32>
    %34 = vector.broadcast %33 : vector<128x1xf32> to vector<128x8xf32>
    %35 = arith.mulf %31, %34 : vector<128x8xf32>
    %c0_19 = arith.constant 0 : index
    %c0_20 = arith.constant 0 : index
    %36 = vector.load %arg11[%c0_19, %c0_20] : memref<128x64xf32, #tpu.memory_space<vmem>>, vector<128x8xf32>
    tpu.vector_store %arg11[%c0_19, %c0_20], %35 {strides = array<i32>} : memref<128x64xf32, #tpu.memory_space<vmem>>, vector<128x8xf32>,
    %37 = vector.extract_strided_slice %11 {offsets = [0, 1], sizes = [128, 1], strides = [1, 1]} : vector<128x8xf32> to vector<128x1xf32>
    %38 = vector.extract_strided_slice %13 {offsets = [1, 0], sizes = [1, 128], strides = [1, 1]} : vector<8x128xf32> to vector<1x128xf32>
    %39 = vector.broadcast %37 : vector<128x1xf32> to vector<128x128xf32>
    %40 = vector.broadcast %38 : vector<1x128xf32> to vector<128x128xf32>
    %41 = arith.addf %39, %40 : vector<128x128xf32>
    %cst_21 = arith.constant 2.000000e-01 : f32
    %42 = vector.broadcast %cst_21 : f32 to vector<128x128xf32>
    %43 = arith.mulf %42, %41 : vector<128x128xf32>
    %44 = arith.maximumf %41, %43 : vector<128x128xf32>
    %45 = arith.addf %44, %5 : vector<128x128xf32>
    %cst_22 = arith.constant dense<0xFF800000> : vector<128xf32>
    %46 = vector.multi_reduction <maximumf>, %45, %cst_22 [1] : vector<128x128xf32> to vector<128xf32>
    %47 = vector.shape_cast %46 : vector<128xf32> to vector<128x1xf32>
    %48 = vector.broadcast %47 : vector<128x1xf32> to vector<128x128xf32>
    %49 = arith.subf %45, %48 : vector<128x128xf32>
    %50 = math.exp %49 : vector<128x128xf32>
    %51 = arith.truncf %50 : vector<128x128xf32> to vector<128x128xbf16>
    %52 = vector.extract_strided_slice %14 {offsets = [0, 8], sizes = [128, 8], strides = [1, 1]} : vector<128x64xbf16> to vector<128x8xbf16>
    %cst_23 = arith.constant dense<0.000000e+00> : vector<128x8xf32>
    %53 = tpu.matmul %51, %52, %cst_23 {dimension_numbers = #tpu.dot_dimension_numbers<[1], [0], [0], [1], [0, 0, 1, 1], [], []>} : vector<128x128xbf16>, vector<128x8xbf16>, vector<128x8xf32> -> vector<128x8xf32>
    %cst_24 = arith.constant dense<0.000000e+00> : vector<128x1xf32>
    %54 = tpu.matmul %51, %6, %cst_24 {dimension_numbers = #tpu.dot_dimension_numbers<[1], [0], [0], [1], [0, 0, 1, 1], [], []>} : vector<128x128xbf16>, vector<128x1xbf16>, vector<128x1xf32> -> vector<128x1xf32>
    %55 = tpu.reciprocal %54 {approx = true} : vector<128x1xf32> -> vector<128x1xf32>
    %56 = vector.broadcast %55 : vector<128x1xf32> to vector<128x8xf32>
    %57 = arith.mulf %53, %56 : vector<128x8xf32>
    %c0_25 = arith.constant 0 : index
    %c8 = arith.constant 8 : index
    %58 = vector.load %arg11[%c0_25, %c8] : memref<128x64xf32, #tpu.memory_space<vmem>>, vector<128x8xf32>
    tpu.vector_store %arg11[%c0_25, %c8], %57 {strides = array<i32>} : memref<128x64xf32, #tpu.memory_space<vmem>>, vector<128x8xf32>,
    %59 = vector.extract_strided_slice %11 {offsets = [0, 2], sizes = [128, 1], strides = [1, 1]} : vector<128x8xf32> to vector<128x1xf32>
    %60 = vector.extract_strided_slice %13 {offsets = [2, 0], sizes = [1, 128], strides = [1, 1]} : vector<8x128xf32> to vector<1x128xf32>
    %61 = vector.broadcast %59 : vector<128x1xf32> to vector<128x128xf32>
    %62 = vector.broadcast %60 : vector<1x128xf32> to vector<128x128xf32>
    %63 = arith.addf %61, %62 : vector<128x128xf32>
    %cst_26 = arith.constant 2.000000e-01 : f32
    %64 = vector.broadcast %cst_26 : f32 to vector<128x128xf32>
    %65 = arith.mulf %64, %63 : vector<128x128xf32>
    %66 = arith.maximumf %63, %65 : vector<128x128xf32>
    %67 = arith.addf %66, %5 : vector<128x128xf32>
    %cst_27 = arith.constant dense<0xFF800000> : vector<128xf32>
    %68 = vector.multi_reduction <maximumf>, %67, %cst_27 [1] : vector<128x128xf32> to vector<128xf32>
    %69 = vector.shape_cast %68 : vector<128xf32> to vector<128x1xf32>
    %70 = vector.broadcast %69 : vector<128x1xf32> to vector<128x128xf32>
    %71 = arith.subf %67, %70 : vector<128x128xf32>
    %72 = math.exp %71 : vector<128x128xf32>
    %73 = arith.truncf %72 : vector<128x128xf32> to vector<128x128xbf16>
    %74 = vector.extract_strided_slice %14 {offsets = [0, 16], sizes = [128, 8], strides = [1, 1]} : vector<128x64xbf16> to vector<128x8xbf16>
    %cst_28 = arith.constant dense<0.000000e+00> : vector<128x8xf32>
    %75 = tpu.matmul %73, %74, %cst_28 {dimension_numbers = #tpu.dot_dimension_numbers<[1], [0], [0], [1], [0, 0, 1, 1], [], []>} : vector<128x128xbf16>, vector<128x8xbf16>, vector<128x8xf32> -> vector<128x8xf32>
    %cst_29 = arith.constant dense<0.000000e+00> : vector<128x1xf32>
    %76 = tpu.matmul %73, %6, %cst_29 {dimension_numbers = #tpu.dot_dimension_numbers<[1], [0], [0], [1], [0, 0, 1, 1], [], []>} : vector<128x128xbf16>, vector<128x1xbf16>, vector<128x1xf32> -> vector<128x1xf32>
    %77 = tpu.reciprocal %76 {approx = true} : vector<128x1xf32> -> vector<128x1xf32>
    %78 = vector.broadcast %77 : vector<128x1xf32> to vector<128x8xf32>
    %79 = arith.mulf %75, %78 : vector<128x8xf32>
    %c0_30 = arith.constant 0 : index
    %c16 = arith.constant 16 : index
    %80 = vector.load %arg11[%c0_30, %c16] : memref<128x64xf32, #tpu.memory_space<vmem>>, vector<128x8xf32>
    tpu.vector_store %arg11[%c0_30, %c16], %79 {strides = array<i32>} : memref<128x64xf32, #tpu.memory_space<vmem>>, vector<128x8xf32>,
    %81 = vector.extract_strided_slice %11 {offsets = [0, 3], sizes = [128, 1], strides = [1, 1]} : vector<128x8xf32> to vector<128x1xf32>
    %82 = vector.extract_strided_slice %13 {offsets = [3, 0], sizes = [1, 128], strides = [1, 1]} : vector<8x128xf32> to vector<1x128xf32>
    %83 = vector.broadcast %81 : vector<128x1xf32> to vector<128x128xf32>
    %84 = vector.broadcast %82 : vector<1x128xf32> to vector<128x128xf32>
    %85 = arith.addf %83, %84 : vector<128x128xf32>
    %cst_31 = arith.constant 2.000000e-01 : f32
    %86 = vector.broadcast %cst_31 : f32 to vector<128x128xf32>
    %87 = arith.mulf %86, %85 : vector<128x128xf32>
    %88 = arith.maximumf %85, %87 : vector<128x128xf32>
    %89 = arith.addf %88, %5 : vector<128x128xf32>
    %cst_32 = arith.constant dense<0xFF800000> : vector<128xf32>
    %90 = vector.multi_reduction <maximumf>, %89, %cst_32 [1] : vector<128x128xf32> to vector<128xf32>
    %91 = vector.shape_cast %90 : vector<128xf32> to vector<128x1xf32>
    %92 = vector.broadcast %91 : vector<128x1xf32> to vector<128x128xf32>
    %93 = arith.subf %89, %92 : vector<128x128xf32>
    %94 = math.exp %93 : vector<128x128xf32>
    %95 = arith.truncf %94 : vector<128x128xf32> to vector<128x128xbf16>
    %96 = vector.extract_strided_slice %14 {offsets = [0, 24], sizes = [128, 8], strides = [1, 1]} : vector<128x64xbf16> to vector<128x8xbf16>
    %cst_33 = arith.constant dense<0.000000e+00> : vector<128x8xf32>
    %97 = tpu.matmul %95, %96, %cst_33 {dimension_numbers = #tpu.dot_dimension_numbers<[1], [0], [0], [1], [0, 0, 1, 1], [], []>} : vector<128x128xbf16>, vector<128x8xbf16>, vector<128x8xf32> -> vector<128x8xf32>
    %cst_34 = arith.constant dense<0.000000e+00> : vector<128x1xf32>
    %98 = tpu.matmul %95, %6, %cst_34 {dimension_numbers = #tpu.dot_dimension_numbers<[1], [0], [0], [1], [0, 0, 1, 1], [], []>} : vector<128x128xbf16>, vector<128x1xbf16>, vector<128x1xf32> -> vector<128x1xf32>
    %99 = tpu.reciprocal %98 {approx = true} : vector<128x1xf32> -> vector<128x1xf32>
    %100 = vector.broadcast %99 : vector<128x1xf32> to vector<128x8xf32>
    %101 = arith.mulf %97, %100 : vector<128x8xf32>
    %c0_35 = arith.constant 0 : index
    %c24 = arith.constant 24 : index
    %102 = vector.load %arg11[%c0_35, %c24] : memref<128x64xf32, #tpu.memory_space<vmem>>, vector<128x8xf32>
    tpu.vector_store %arg11[%c0_35, %c24], %101 {strides = array<i32>} : memref<128x64xf32, #tpu.memory_space<vmem>>, vector<128x8xf32>,
    %103 = vector.extract_strided_slice %11 {offsets = [0, 4], sizes = [128, 1], strides = [1, 1]} : vector<128x8xf32> to vector<128x1xf32>
    %104 = vector.extract_strided_slice %13 {offsets = [4, 0], sizes = [1, 128], strides = [1, 1]} : vector<8x128xf32> to vector<1x128xf32>
    %105 = vector.broadcast %103 : vector<128x1xf32> to vector<128x128xf32>
    %106 = vector.broadcast %104 : vector<1x128xf32> to vector<128x128xf32>
    %107 = arith.addf %105, %106 : vector<128x128xf32>
    %cst_36 = arith.constant 2.000000e-01 : f32
    %108 = vector.broadcast %cst_36 : f32 to vector<128x128xf32>
    %109 = arith.mulf %108, %107 : vector<128x128xf32>
    %110 = arith.maximumf %107, %109 : vector<128x128xf32>
    %111 = arith.addf %110, %5 : vector<128x128xf32>
    %cst_37 = arith.constant dense<0xFF800000> : vector<128xf32>
    %112 = vector.multi_reduction <maximumf>, %111, %cst_37 [1] : vector<128x128xf32> to vector<128xf32>
    %113 = vector.shape_cast %112 : vector<128xf32> to vector<128x1xf32>
    %114 = vector.broadcast %113 : vector<128x1xf32> to vector<128x128xf32>
    %115 = arith.subf %111, %114 : vector<128x128xf32>
    %116 = math.exp %115 : vector<128x128xf32>
    %117 = arith.truncf %116 : vector<128x128xf32> to vector<128x128xbf16>
    %118 = vector.extract_strided_slice %14 {offsets = [0, 32], sizes = [128, 8], strides = [1, 1]} : vector<128x64xbf16> to vector<128x8xbf16>
    %cst_38 = arith.constant dense<0.000000e+00> : vector<128x8xf32>
    %119 = tpu.matmul %117, %118, %cst_38 {dimension_numbers = #tpu.dot_dimension_numbers<[1], [0], [0], [1], [0, 0, 1, 1], [], []>} : vector<128x128xbf16>, vector<128x8xbf16>, vector<128x8xf32> -> vector<128x8xf32>
    %cst_39 = arith.constant dense<0.000000e+00> : vector<128x1xf32>
    %120 = tpu.matmul %117, %6, %cst_39 {dimension_numbers = #tpu.dot_dimension_numbers<[1], [0], [0], [1], [0, 0, 1, 1], [], []>} : vector<128x128xbf16>, vector<128x1xbf16>, vector<128x1xf32> -> vector<128x1xf32>
    %121 = tpu.reciprocal %120 {approx = true} : vector<128x1xf32> -> vector<128x1xf32>
    %122 = vector.broadcast %121 : vector<128x1xf32> to vector<128x8xf32>
    %123 = arith.mulf %119, %122 : vector<128x8xf32>
    %c0_40 = arith.constant 0 : index
    %c32 = arith.constant 32 : index
    %124 = vector.load %arg11[%c0_40, %c32] : memref<128x64xf32, #tpu.memory_space<vmem>>, vector<128x8xf32>
    tpu.vector_store %arg11[%c0_40, %c32], %123 {strides = array<i32>} : memref<128x64xf32, #tpu.memory_space<vmem>>, vector<128x8xf32>,
    %125 = vector.extract_strided_slice %11 {offsets = [0, 5], sizes = [128, 1], strides = [1, 1]} : vector<128x8xf32> to vector<128x1xf32>
    %126 = vector.extract_strided_slice %13 {offsets = [5, 0], sizes = [1, 128], strides = [1, 1]} : vector<8x128xf32> to vector<1x128xf32>
    %127 = vector.broadcast %125 : vector<128x1xf32> to vector<128x128xf32>
    %128 = vector.broadcast %126 : vector<1x128xf32> to vector<128x128xf32>
    %129 = arith.addf %127, %128 : vector<128x128xf32>
    %cst_41 = arith.constant 2.000000e-01 : f32
    %130 = vector.broadcast %cst_41 : f32 to vector<128x128xf32>
    %131 = arith.mulf %130, %129 : vector<128x128xf32>
    %132 = arith.maximumf %129, %131 : vector<128x128xf32>
    %133 = arith.addf %132, %5 : vector<128x128xf32>
    %cst_42 = arith.constant dense<0xFF800000> : vector<128xf32>
    %134 = vector.multi_reduction <maximumf>, %133, %cst_42 [1] : vector<128x128xf32> to vector<128xf32>
    %135 = vector.shape_cast %134 : vector<128xf32> to vector<128x1xf32>
    %136 = vector.broadcast %135 : vector<128x1xf32> to vector<128x128xf32>
    %137 = arith.subf %133, %136 : vector<128x128xf32>
    %138 = math.exp %137 : vector<128x128xf32>
    %139 = arith.truncf %138 : vector<128x128xf32> to vector<128x128xbf16>
    %140 = vector.extract_strided_slice %14 {offsets = [0, 40], sizes = [128, 8], strides = [1, 1]} : vector<128x64xbf16> to vector<128x8xbf16>
    %cst_43 = arith.constant dense<0.000000e+00> : vector<128x8xf32>
    %141 = tpu.matmul %139, %140, %cst_43 {dimension_numbers = #tpu.dot_dimension_numbers<[1], [0], [0], [1], [0, 0, 1, 1], [], []>} : vector<128x128xbf16>, vector<128x8xbf16>, vector<128x8xf32> -> vector<128x8xf32>
    %cst_44 = arith.constant dense<0.000000e+00> : vector<128x1xf32>
    %142 = tpu.matmul %139, %6, %cst_44 {dimension_numbers = #tpu.dot_dimension_numbers<[1], [0], [0], [1], [0, 0, 1, 1], [], []>} : vector<128x128xbf16>, vector<128x1xbf16>, vector<128x1xf32> -> vector<128x1xf32>
    %143 = tpu.reciprocal %142 {approx = true} : vector<128x1xf32> -> vector<128x1xf32>
    %144 = vector.broadcast %143 : vector<128x1xf32> to vector<128x8xf32>
    %145 = arith.mulf %141, %144 : vector<128x8xf32>
    %c0_45 = arith.constant 0 : index
    %c40 = arith.constant 40 : index
    %146 = vector.load %arg11[%c0_45, %c40] : memref<128x64xf32, #tpu.memory_space<vmem>>, vector<128x8xf32>
    tpu.vector_store %arg11[%c0_45, %c40], %145 {strides = array<i32>} : memref<128x64xf32, #tpu.memory_space<vmem>>, vector<128x8xf32>,
    %147 = vector.extract_strided_slice %11 {offsets = [0, 6], sizes = [128, 1], strides = [1, 1]} : vector<128x8xf32> to vector<128x1xf32>
    %148 = vector.extract_strided_slice %13 {offsets = [6, 0], sizes = [1, 128], strides = [1, 1]} : vector<8x128xf32> to vector<1x128xf32>
    %149 = vector.broadcast %147 : vector<128x1xf32> to vector<128x128xf32>
    %150 = vector.broadcast %148 : vector<1x128xf32> to vector<128x128xf32>
    %151 = arith.addf %149, %150 : vector<128x128xf32>
    %cst_46 = arith.constant 2.000000e-01 : f32
    %152 = vector.broadcast %cst_46 : f32 to vector<128x128xf32>
    %153 = arith.mulf %152, %151 : vector<128x128xf32>
    %154 = arith.maximumf %151, %153 : vector<128x128xf32>
    %155 = arith.addf %154, %5 : vector<128x128xf32>
    %cst_47 = arith.constant dense<0xFF800000> : vector<128xf32>
    %156 = vector.multi_reduction <maximumf>, %155, %cst_47 [1] : vector<128x128xf32> to vector<128xf32>
    %157 = vector.shape_cast %156 : vector<128xf32> to vector<128x1xf32>
    %158 = vector.broadcast %157 : vector<128x1xf32> to vector<128x128xf32>
    %159 = arith.subf %155, %158 : vector<128x128xf32>
    %160 = math.exp %159 : vector<128x128xf32>
    %161 = arith.truncf %160 : vector<128x128xf32> to vector<128x128xbf16>
    %162 = vector.extract_strided_slice %14 {offsets = [0, 48], sizes = [128, 8], strides = [1, 1]} : vector<128x64xbf16> to vector<128x8xbf16>
    %cst_48 = arith.constant dense<0.000000e+00> : vector<128x8xf32>
    %163 = tpu.matmul %161, %162, %cst_48 {dimension_numbers = #tpu.dot_dimension_numbers<[1], [0], [0], [1], [0, 0, 1, 1], [], []>} : vector<128x128xbf16>, vector<128x8xbf16>, vector<128x8xf32> -> vector<128x8xf32>
    %cst_49 = arith.constant dense<0.000000e+00> : vector<128x1xf32>
    %164 = tpu.matmul %161, %6, %cst_49 {dimension_numbers = #tpu.dot_dimension_numbers<[1], [0], [0], [1], [0, 0, 1, 1], [], []>} : vector<128x128xbf16>, vector<128x1xbf16>, vector<128x1xf32> -> vector<128x1xf32>
    %165 = tpu.reciprocal %164 {approx = true} : vector<128x1xf32> -> vector<128x1xf32>
    %166 = vector.broadcast %165 : vector<128x1xf32> to vector<128x8xf32>
    %167 = arith.mulf %163, %166 : vector<128x8xf32>
    %c0_50 = arith.constant 0 : index
    %c48 = arith.constant 48 : index
    %168 = vector.load %arg11[%c0_50, %c48] : memref<128x64xf32, #tpu.memory_space<vmem>>, vector<128x8xf32>
    tpu.vector_store %arg11[%c0_50, %c48], %167 {strides = array<i32>} : memref<128x64xf32, #tpu.memory_space<vmem>>, vector<128x8xf32>,
    %169 = vector.extract_strided_slice %11 {offsets = [0, 7], sizes = [128, 1], strides = [1, 1]} : vector<128x8xf32> to vector<128x1xf32>
    %170 = vector.extract_strided_slice %13 {offsets = [7, 0], sizes = [1, 128], strides = [1, 1]} : vector<8x128xf32> to vector<1x128xf32>
    %171 = vector.broadcast %169 : vector<128x1xf32> to vector<128x128xf32>
    %172 = vector.broadcast %170 : vector<1x128xf32> to vector<128x128xf32>
    %173 = arith.addf %171, %172 : vector<128x128xf32>
    %cst_51 = arith.constant 2.000000e-01 : f32
    %174 = vector.broadcast %cst_51 : f32 to vector<128x128xf32>
    %175 = arith.mulf %174, %173 : vector<128x128xf32>
    %176 = arith.maximumf %173, %175 : vector<128x128xf32>
    %177 = arith.addf %176, %5 : vector<128x128xf32>
    %cst_52 = arith.constant dense<0xFF800000> : vector<128xf32>
    %178 = vector.multi_reduction <maximumf>, %177, %cst_52 [1] : vector<128x128xf32> to vector<128xf32>
    %179 = vector.shape_cast %178 : vector<128xf32> to vector<128x1xf32>
    %180 = vector.broadcast %179 : vector<128x1xf32> to vector<128x128xf32>
    %181 = arith.subf %177, %180 : vector<128x128xf32>
    %182 = math.exp %181 : vector<128x128xf32>
    %183 = arith.truncf %182 : vector<128x128xf32> to vector<128x128xbf16>
    %184 = vector.extract_strided_slice %14 {offsets = [0, 56], sizes = [128, 8], strides = [1, 1]} : vector<128x64xbf16> to vector<128x8xbf16>
    %cst_53 = arith.constant dense<0.000000e+00> : vector<128x8xf32>
    %185 = tpu.matmul %183, %184, %cst_53 {dimension_numbers = #tpu.dot_dimension_numbers<[1], [0], [0], [1], [0, 0, 1, 1], [], []>} : vector<128x128xbf16>, vector<128x8xbf16>, vector<128x8xf32> -> vector<128x8xf32>
    %cst_54 = arith.constant dense<0.000000e+00> : vector<128x1xf32>
    %186 = tpu.matmul %183, %6, %cst_54 {dimension_numbers = #tpu.dot_dimension_numbers<[1], [0], [0], [1], [0, 0, 1, 1], [], []>} : vector<128x128xbf16>, vector<128x1xbf16>, vector<128x1xf32> -> vector<128x1xf32>
    %187 = tpu.reciprocal %186 {approx = true} : vector<128x1xf32> -> vector<128x1xf32>
    %188 = vector.broadcast %187 : vector<128x1xf32> to vector<128x8xf32>
    %189 = arith.mulf %185, %188 : vector<128x8xf32>
    %c0_55 = arith.constant 0 : index
    %c56 = arith.constant 56 : index
    %190 = vector.load %arg11[%c0_55, %c56] : memref<128x64xf32, #tpu.memory_space<vmem>>, vector<128x8xf32>
    tpu.vector_store %arg11[%c0_55, %c56], %189 {strides = array<i32>} : memref<128x64xf32, #tpu.memory_space<vmem>>, vector<128x8xf32>,
    %c0_56 = arith.constant 0 : index
    %c0_57 = arith.constant 0 : index
    %191 = vector.load %arg11[%c0_56, %c0_57] : memref<128x64xf32, #tpu.memory_space<vmem>>, vector<128x64xf32>
    %c0_58 = arith.constant 0 : index
    %c0_59 = arith.constant 0 : index
    %192 = vector.load %arg5[%c0_58, %c0_59] : memref<1x64xf32, #tpu.memory_space<vmem>>, vector<1x64xf32>
    %193 = vector.broadcast %192 : vector<1x64xf32> to vector<128x64xf32>
    %194 = arith.addf %191, %193 : vector<128x64xf32>
    %cst_60 = arith.constant 0.000000e+00 : f32
    %195 = vector.broadcast %cst_60 : f32 to vector<128x64xf32>
    %196 = arith.cmpf ogt, %194, %195 : vector<128x64xf32>
    %197 = math.exp %194 : vector<128x64xf32>
    %cst_61 = arith.constant 1.000000e+00 : f32
    %198 = vector.broadcast %cst_61 : f32 to vector<128x64xf32>
    %199 = arith.subf %197, %198 : vector<128x64xf32>
    %200 = arith.select %196, %194, %199 : vector<128x64xi1>, vector<128x64xf32>
    %201 = arith.truncf %200 : vector<128x64xf32> to vector<128x64xbf16>
    %c0_62 = arith.constant 0 : index
    %c0_63 = arith.constant 0 : index
    %202 = vector.load %arg6[%c0_62, %c0_63] : memref<64x4xf32, #tpu.memory_space<vmem>>, vector<64x4xf32>
    %203 = arith.truncf %202 : vector<64x4xf32> to vector<64x4xbf16>
    %cst_64 = arith.constant dense<0.000000e+00> : vector<128x4xf32>
    %204 = tpu.matmul %201, %203, %cst_64 {dimension_numbers = #tpu.dot_dimension_numbers<[1], [0], [0], [1], [0, 0, 1, 1], [], []>} : vector<128x64xbf16>, vector<64x4xbf16>, vector<128x4xf32> -> vector<128x4xf32>
    %c0_65 = arith.constant 0 : index
    %c0_66 = arith.constant 0 : index
    %205 = vector.load %arg8[%c0_65, %c0_66] : memref<1x4xf32, #tpu.memory_space<vmem>>, vector<1x4xf32>
    %cst_67 = arith.constant dense<0.000000e+00> : vector<128x1xf32>
    %206 = tpu.matmul %204, %205, %cst_67 {dimension_numbers = #tpu.dot_dimension_numbers<[1], [1], [0], [0], [0, 0, 1, 0], [], []>} : vector<128x4xf32>, vector<1x4xf32>, vector<128x1xf32> -> vector<128x1xf32>
    %c0_68 = arith.constant 0 : index
    %c0_69 = arith.constant 0 : index
    %207 = vector.load %arg7[%c0_68, %c0_69] : memref<1x4xf32, #tpu.memory_space<vmem>>, vector<1x4xf32>
    %cst_70 = arith.constant dense<0.000000e+00> : vector<1x128xf32>
    %208 = tpu.matmul %207, %204, %cst_70 {dimension_numbers = #tpu.dot_dimension_numbers<[1], [1], [0], [0], [0, 0, 1, 0], [], []>} : vector<1x4xf32>, vector<128x4xf32>, vector<1x128xf32> -> vector<1x128xf32>
    %209 = vector.broadcast %206 : vector<128x1xf32> to vector<128x128xf32>
    %210 = vector.broadcast %208 : vector<1x128xf32> to vector<128x128xf32>
    %211 = arith.addf %209, %210 : vector<128x128xf32>
    %cst_71 = arith.constant 2.000000e-01 : f32
    %212 = vector.broadcast %cst_71 : f32 to vector<128x128xf32>
    %213 = arith.mulf %212, %211 : vector<128x128xf32>
    %214 = arith.maximumf %211, %213 : vector<128x128xf32>
    %215 = arith.addf %214, %5 : vector<128x128xf32>
    %cst_72 = arith.constant dense<0xFF800000> : vector<128xf32>
    %216 = vector.multi_reduction <maximumf>, %215, %cst_72 [1] : vector<128x128xf32> to vector<128xf32>
    %217 = vector.shape_cast %216 : vector<128xf32> to vector<128x1xf32>
    %218 = vector.broadcast %217 : vector<128x1xf32> to vector<128x128xf32>
    %219 = arith.subf %215, %218 : vector<128x128xf32>
    %220 = math.exp %219 : vector<128x128xf32>
    %221 = arith.truncf %220 : vector<128x128xf32> to vector<128x128xbf16>
    %222 = arith.truncf %204 : vector<128x4xf32> to vector<128x4xbf16>
    %cst_73 = arith.constant dense<0.000000e+00> : vector<128x4xf32>
    %223 = tpu.matmul %221, %222, %cst_73 {dimension_numbers = #tpu.dot_dimension_numbers<[1], [0], [0], [1], [0, 0, 1, 1], [], []>} : vector<128x128xbf16>, vector<128x4xbf16>, vector<128x4xf32> -> vector<128x4xf32>
    %cst_74 = arith.constant dense<0.000000e+00> : vector<128x1xf32>
    %224 = tpu.matmul %221, %6, %cst_74 {dimension_numbers = #tpu.dot_dimension_numbers<[1], [0], [0], [1], [0, 0, 1, 1], [], []>} : vector<128x128xbf16>, vector<128x1xbf16>, vector<128x1xf32> -> vector<128x1xf32>
    %225 = tpu.reciprocal %224 {approx = true} : vector<128x1xf32> -> vector<128x1xf32>
    %226 = vector.broadcast %225 : vector<128x1xf32> to vector<128x4xf32>
    %227 = arith.mulf %223, %226 : vector<128x4xf32>
    %c0_75 = arith.constant 0 : index
    %c0_76 = arith.constant 0 : index
    %228 = vector.load %arg9[%c0_75, %c0_76] : memref<1x4xf32, #tpu.memory_space<vmem>>, vector<1x4xf32>
    %229 = vector.broadcast %228 : vector<1x4xf32> to vector<128x4xf32>
    %230 = arith.addf %227, %229 : vector<128x4xf32>
    %c0_77 = arith.constant 0 : index
    %c0_78 = arith.constant 0 : index
    %231 = vector.load %arg10[%c0_77, %c0_78] : memref<128x4xf32, #tpu.memory_space<vmem>>, vector<128x4xf32>
    tpu.vector_store %arg10[%c0_77, %c0_78], %230 {strides = array<i32>} : memref<128x4xf32, #tpu.memory_space<vmem>>, vector<128x4xf32>,
    return
  }
}

</mosaic_0001>

<bundles_post_ra>
// kernel: gat_forward.1
= control target key start
LH: loop header
LB: loop body
LE: loop exit
PB: predicated region body
PF: predicated region fallthrough
CT: control target
= control target key end

     0   :  { %vm103_vm0 = vcmask 130048   ;;  %v12639_v31 = vmov 0.0|0.0   ;;  %vm8547_vm1 = vmmov 0   ;;  %v12638_v32 = vmov 0.0   ;;  %s8560_s29 = smov 104   ;;  %s8562_s30 = smov 96   ;;  %s12627_s2 = inlined_call_operand.vmem [shape: f32[16,64], index: 2, kind: input, shape index: {}]   ;;  %s12628_s0 = inlined_call_operand.vmem [shape: f32[128,16], index: 0, kind: input, shape index: {}]   ;;  %s12629_s4 = inlined_call_operand.vmem [shape: f32[64,8], index: 4, kind: input, shape index: {}]   ;;  %s12630_s3 = inlined_call_operand.vmem [shape: f32[8,64], index: 3, kind: input, shape index: {}]   ;;  %s12631_s1 = inlined_call_operand.vmem [shape: f32[128,128], index: 1, kind: input, shape index: {}]   ;;  %s12632_s6 = inlined_call_operand.vmem [shape: f32[64,4], index: 6, kind: input, shape index: {}]   ;;  %s12633_s5 = inlined_call_operand.vmem [shape: f32[1,64], index: 5, kind: input, shape index: {}]   ;;  %s12634_s8 = inlined_call_operand.vmem [shape: f32[1,4], index: 8, kind: input, shape index: {}]   ;;  %s12635_s7 = inlined_call_operand.vmem [shape: f32[1,4], index: 7, kind: input, shape index: {}]   ;;  %s12636_s9 = inlined_call_operand.vmem [shape: f32[1,4], index: 9, kind: input, shape index: {}]   ;;  %s12637_s10 = inlined_call_operand.vmem [shape: f32[128,4], index: 10, kind: output, shape index: {}]  }
   0x1   :  { %v101_v0 = vld [vmem:[%s12627_s2] sm:$0xff]  ;;  %v102_v1 = vld [vmem:[%s12627_s2 + $0x8] sm:$0xff]  ;;  %v87_v5 = vld [vmem:[%s12628_s0 + $0x10] sm:$0xff]  ;;  %vm305_vm2 = vcmask 523264   ;;  %v12647_v37 = vmov 1   ;;  %v12656_v41 = vmov 0  }
   0x2   :  { %v85_v2 = vld [vmem:[%s12628_s0] sm:$0xff]  ;;  %v7739_v3 = vpack.c.bf16 %v102_v1, %v101_v0  ;;  %v86_v4 = vld [vmem:[%s12628_s0 + $0x8] sm:$0xff]  ;;  %v299_v8 = vld [vmem:[%s12629_s4 + $0x10] sm:$0xff]  ;;  %7851 = vset.pattern.permute.xlu1 %v12647_v37  ;;  %7850 = vset.pattern.permute.xlu0 %v12656_v41  ;;  %v12652_v0 = vmov 3   ;;  %v12641_v1 = vmov 2   ;;  %s8563_s11 = smov 88  }
   0x3   :  { %7005 = vmatprep.mubr.msk.f32.mxu0 %vm103_vm0, %v85_v2  ;;  %v297_v6 = vld [vmem:[%s12629_s4] sm:$0xff]  ;;  %v298_v7 = vld [vmem:[%s12629_s4 + $0x8] sm:$0xff]  ;;  %v300_v10 = vld [vmem:[%s12629_s4 + $0x18] sm:$0xff]  ;;  %s8564_s12 = smov 80   ;;  %s8565_s13 = smov 72  }
   0x4   :  { %7740 = vmatprep.subr.bf16.mxu0 %v7739_v3  ;;  %v7743_v9 = vpack.c.bf16 %v298_v7, %v297_v6  ;;  %v88_v11 = vld [vmem:[%s12628_s0 + $0x18] sm:$0xff]  ;;  %v7747_v12 = vpack.c.bf16 %v300_v10, %v299_v8  ;;  %v301_v13 = vld [vmem:[%s12629_s4 + $0x20] sm:$0xff]  ;;  %v302_v14 = vld [vmem:[%s12629_s4 + $0x28] sm:$0xff]  ;;  %s8566_s14 = smov 8   ;;  %s8567_s15 = smov 16  }
   0x5   :  { %7742 = vmatpush3.bf16.msra.mxu0 %v7739_v3  ;;  %v89_v15 = vld [vmem:[%s12628_s0 + $0x20] sm:$0xff]  ;;  %v7751_v16 = vpack.c.bf16 %v302_v14, %v301_v13  ;;  %v90_v17 = vld [vmem:[%s12628_s0 + $0x28] sm:$0xff]  ;;  %v303_v18 = vld [vmem:[%s12629_s4 + $0x30] sm:$0xff]  ;;  %s8568_s16 = smov 24   ;;  %s8569_s17 = smov 32  }
   0x6   :  { %7744 = vmatprep.subr.bf16.mxu1 %v7743_v9  ;;  %v304_v19 = vld [vmem:[%s12629_s4 + $0x38] sm:$0xff]  ;;  %v91_v20 = vld [vmem:[%s12628_s0 + $0x30] sm:$0xff]  ;;  %v93_v23 = vld [vmem:[%s12628_s0 + $0x40] sm:$0xff]  ;;  %7759 = vmatprep.subr.bf16.mxu0 %v12639_v31  ;;  %s8570_s18 = smov 40   ;;  %s8571_s19 = smov 48  }
   0x7   :  { %7746 = vmatpush3.bf16.msra.mxu1 %v7743_v9  ;;  %v7755_v21 = vpack.c.bf16 %v304_v19, %v303_v18  ;;  %v92_v22 = vld [vmem:[%s12628_s0 + $0x38] sm:$0xff]  ;;  %v94_v24 = vld [vmem:[%s12628_s0 + $0x48] sm:$0xff]  ;;  %v95_v25 = vld [vmem:[%s12628_s0 + $0x50] sm:$0xff]  ;;  %s8572_s20 = smov 56  }
   0x8   :  { %7006 = vmatmul.mubr.msk.f32.vlgmr.msra.gmra.mrb[0].mxu0 %vm103_vm0, %v86_v4  ;;  %7748 = vmatprep.subr.bf16.mxu1 %v7747_v12  ;;  %v96_v26 = vld [vmem:[%s12628_s0 + $0x58] sm:$0xff]  ;;  %v97_v27 = vld [vmem:[%s12628_s0 + $0x60] sm:$0xff]  ;;  %v98_v28 = vld [vmem:[%s12628_s0 + $0x68] sm:$0xff] }
   0x9   :  { %7008 = vmatprep.mubr.msk.f32.mxu0 %vm103_vm0, %v87_v5  ;;  %v99_v29 = vld [vmem:[%s12628_s0 + $0x70] sm:$0xff]  ;;  %v100_v30 = vld [vmem:[%s12628_s0 + $0x78] sm:$0xff]  ;;  %vm8727_vm3 = vmpackc.low %vm305_vm2, %vm305_vm2  ;;  %s8550_s0 = smov 120   ;;  %v12643_v5 = vmov 4  }
   0xa   :  { %v499_v60 = vld [vmem:[%s12630_s3] sm:$0xff] }
   0xb   :  { %7750 = vmatpush3.bf16.msra.mxu1 %v7747_v12 }
   0xc   :  { %7009 = vmatmul.mubr.msk.f32.gmra.mrb[2].mxu0 %vm103_vm0, %v88_v11  ;;  %7752 = vmatprep.subr.bf16.mxu1 %v7751_v16 }
   0xd   :  { %7011 = vmatprep.mubr.msk.f32.mxu0 %vm103_vm0, %v89_v15 }
   0xf   :  { %7754 = vmatpush3.bf16.msra.mxu1 %v7751_v16  ;;  %v661_v16 = vlaneseq }
  0x10   :  { %7012 = vmatmul.mubr.msk.f32.gmra.mrb[4].mxu0 %vm103_vm0, %v90_v17  ;;  %7756 = vmatprep.subr.bf16.mxu1 %v7755_v21 }
  0x11   :  { %7014 = vmatprep.mubr.msk.f32.mxu0 %vm103_vm0, %v91_v20  ;;  %v8912_v17 = vshrl.u32 %v661_v16, 7 }
  0x13   :  { %7758 = vmatpush3.bf16.msra.mxu1 %v7755_v21  ;;  %12872 = vst [vmem:[#allocation27_spill] sm:$0xff] %v8912_v17  ;;  %v2476_v18 = vsub.s32 3, %v8912_v17  ;;  %v3107_v19 = vsub.s32 4, %v8912_v17  ;;  %v3738_v20 = vsub.s32 5, %v8912_v17  ;;  %v4369_v21 = vsub.s32 6, %v8912_v17 }
  0x14   :  { %7015 = vmatmul.mubr.msk.f32.gmra.mrb[6].mxu0 %vm103_vm0, %v92_v22  ;;  %v5000_v22 = vsub.s32 7, %v8912_v17 }
  0x15   :  { %7017 = vmatprep.mubr.msk.f32.mxu0 %vm103_vm0, %v93_v23 }
  0x18   :  { %7018 = vmatmul.mubr.msk.f32.gmra.mrb[8].mxu0 %vm103_vm0, %v94_v24 }
  0x19   :  { %7020 = vmatprep.mubr.msk.f32.mxu0 %vm103_vm0, %v95_v25 }
  0x1c   :  { %7021 = vmatmul.mubr.msk.f32.gmra.mrb[10].mxu0 %vm103_vm0, %v96_v26 }
  0x1d   :  { %7023 = vmatprep.mubr.msk.f32.mxu0 %vm103_vm0, %v97_v27 }
  0x20   :  { %7024 = vmatmul.mubr.msk.f32.gmra.mrb[12].mxu0 %vm103_vm0, %v98_v28 }
  0x21   :  { %7026 = vmatprep.mubr.msk.f32.mxu0 %vm103_vm0, %v99_v29 }
  0x24   :  { %7027 = vmatmul.mubr.msk.f32.gmra.mrb[14].mxu0 %vm103_vm0, %v100_v30 }
  0x25   :  { %7101 = vmatprep.mubr.msk.f32.mxu0 %vm8547_vm1, %v12638_v32 }
  0xdb   :  { %v7007_v33 = vpop.f32.mrb[0].mxu0 }
  0xdc   :  { %v218_v34 = vpop.f32.mrb[1].mxu0 }
  0xdd   :  { %v8731_v36 = vpack.c.bf16 %v7007_v33, %v218_v34  ;;  %7045 = vmatprep.mubr.msk.f32.mxu1 %vm305_vm2, %v218_v34 }
  0xde   :  { %7046 = vmatmul.mubr.msk.f32.vlgmr.msra.gmra.mrb[0].mxu1 %vm305_vm2, %v7007_v33 }
  0xdf   :  { %12848 = vst [vmem:[#allocation3_spill] sm:$0xff] %v8731_v36  ;;  %1368 = vrot.lane.b32.xlu0 %v8731_v36, %s8550_s0  ;;  %7762 = vmatpush3.bf16.xpose.msk.msra.mxu0 %vm8727_vm3, %v8731_v36  ;;  %v7010_v38 = vpop.f32.mrb[2].mxu0 }
  0xe0   :  { %7104 = vmatprep.subr.bf16.mxu1 %v8731_v36  ;;  %v228_v39 = vpop.f32.mrb[3].mxu0  ;;  %7763 = vmatprep.subr.bf16.mxu0 %v12639_v31 }
  0xe1   :  { %7105 = vmatpush3.bf16.msra.mxu1 %v8731_v36  ;;  %v8744_v40 = vpack.c.bf16 %v7010_v38, %v228_v39  ;;  %7048 = vmatprep.mubr.msk.f32.mxu1 %vm305_vm2, %v228_v39 }
  0xe2   :  { %7049 = vmatmul.mubr.msk.f32.gmra.mrb[2].mxu1 %vm305_vm2, %v7010_v38 }
  0xe3   :  { %12849 = vst [vmem:[#allocation4_spill] sm:$0xff] %v8744_v40  ;;  %7106 = vmatprep.subr.bf16.mxu1 %v8744_v40  ;;  %1370 = vrot.lane.b32.xlu1 %v8744_v40, %s8550_s0  ;;  %v7013_v42 = vpop.f32.mrb[4].mxu0 }
  0xe4   :  { %v238_v43 = vpop.f32.mrb[5].mxu0 }
  0xe5   :  { %7107 = vmatpush3.bf16.msra.mxu1 %v8744_v40  ;;  %v8753_v44 = vpack.c.bf16 %v7013_v42, %v238_v43  ;;  %7051 = vmatprep.mubr.msk.f32.mxu1 %vm305_vm2, %v238_v43 }
  0xe6   :  { %7052 = vmatmul.mubr.msk.f32.gmra.mrb[4].mxu1 %vm305_vm2, %v7013_v42 }
  0xe7   :  { %12850 = vst [vmem:[#allocation5_spill] sm:$0xff] %v8753_v44  ;;  %7766 = vmatpush3.bf16.xpose.msk.msra.mxu0 %vm8727_vm3, %v8744_v40  ;;  %7108 = vmatprep.subr.bf16.mxu1 %v8753_v44  ;;  %v7016_v45 = vpop.f32.mrb[6].mxu0 }
  0xe8   :  { %7767 = vmatprep.subr.bf16.mxu0 %v12639_v31  ;;  %1372 = vrot.lane.b32.xlu1 %v8753_v44, %s8550_s0  ;;  %v248_v46 = vpop.f32.mrb[7].mxu0 }
  0xe9   :  { %7109 = vmatpush3.bf16.msra.mxu1 %v8753_v44  ;;  %v8765_v47 = vpack.c.bf16 %v7016_v45, %v248_v46  ;;  %7054 = vmatprep.mubr.msk.f32.mxu1 %vm305_vm2, %v248_v46 }
  0xea   :  { %7055 = vmatmul.mubr.msk.f32.gmra.mrb[6].mxu1 %vm305_vm2, %v7016_v45 }
  0xeb   :  { %12851 = vst [vmem:[#allocation6_spill] sm:$0xff] %v8765_v47  ;;  %7110 = vmatprep.subr.bf16.mxu1 %v8765_v47  ;;  %1374 = vrot.lane.b32.xlu0 %v8765_v47, %s8550_s0  ;;  %v7019_v48 = vpop.f32.mrb[8].mxu0 }
  0xec   :  { %v258_v49 = vpop.f32.mrb[9].mxu0 }
  0xed   :  { %7111 = vmatpush3.bf16.msra.mxu1 %v8765_v47  ;;  %v8773_v50 = vpack.c.bf16 %v7019_v48, %v258_v49  ;;  %7057 = vmatprep.mubr.msk.f32.mxu1 %vm305_vm2, %v258_v49 }
  0xee   :  { %7058 = vmatmul.mubr.msk.f32.gmra.mrb[8].mxu1 %vm305_vm2, %v7019_v48 }
  0xef   :  { %12852 = vst [vmem:[#allocation7_spill] sm:$0xff] %v8773_v50  ;;  %7770 = vmatpush3.bf16.xpose.msk.msra.mxu0 %vm8727_vm3, %v8753_v44  ;;  %v7022_v51 = vpop.f32.mrb[10].mxu0  ;;  %7112 = vmatprep.subr.bf16.mxu1 %v8773_v50 }
  0xf0   :  { %7771 = vmatprep.subr.bf16.mxu0 %v12639_v31  ;;  %v268_v52 = vpop.f32.mrb[11].mxu0  ;;  %1376 = vrot.lane.b32.xlu1 %v8773_v50, %s8550_s0 }
  0xf1   :  { %v8784_v53 = vpack.c.bf16 %v7022_v51, %v268_v52  ;;  %7113 = vmatpush3.bf16.msra.mxu1 %v8773_v50  ;;  %7060 = vmatprep.mubr.msk.f32.mxu1 %vm305_vm2, %v268_v52 }
  0xf2   :  { %7061 = vmatmul.mubr.msk.f32.gmra.mrb[10].mxu1 %vm305_vm2, %v7022_v51 }
  0xf3   :  { %12853 = vst [vmem:[#allocation8_spill] sm:$0xff] %v8784_v53  ;;  %v7025_v54 = vpop.f32.mrb[12].mxu0  ;;  %7114 = vmatprep.subr.bf16.mxu1 %v8784_v53  ;;  %1378 = vrot.lane.b32.xlu0 %v8784_v53, %s8550_s0 }
  0xf4   :  { %v278_v55 = vpop.f32.mrb[13].mxu0 }
  0xf5   :  { %v8792_v56 = vpack.c.bf16 %v7025_v54, %v278_v55  ;;  %7115 = vmatpush3.bf16.msra.mxu1 %v8784_v53  ;;  %7063 = vmatprep.mubr.msk.f32.mxu1 %vm305_vm2, %v278_v55 }
  0xf6   :  { %7064 = vmatmul.mubr.msk.f32.gmra.mrb[12].mxu1 %vm305_vm2, %v7025_v54 }
  0xf7   :  { %12854 = vst [vmem:[#allocation9_spill] sm:$0xff] %v8792_v56  ;;  %7774 = vmatpush3.bf16.xpose.msk.msra.mxu0 %vm8727_vm3, %v8765_v47  ;;  %v7028_v57 = vpop.f32.mrb[14].mxu0  ;;  %7116 = vmatprep.subr.bf16.mxu1 %v8792_v56 }
  0xf8   :  { %7775 = vmatprep.subr.bf16.mxu0 %v12639_v31  ;;  %v288_v58 = vpop.f32.mrb[15].mxu0  ;;  %1380 = vrot.lane.b32.xlu1 %v8792_v56, %s8550_s0 }
  0xf9   :  { %v8804_v59 = vpack.c.bf16 %v7028_v57, %v288_v58  ;;  %7117 = vmatpush3.bf16.msra.mxu1 %v8792_v56  ;;  %7066 = vmatprep.mubr.msk.f32.mxu1 %vm305_vm2, %v288_v58 }
  0xfa   :  { %7067 = vmatmul.mubr.msk.f32.gmra.mrb[14].mxu1 %vm305_vm2, %v7028_v57 }
  0xfb   :  { %12855 = vst [vmem:[#allocation10_spill] sm:$0xff] %v8804_v59  ;;  %7118 = vmatprep.subr.bf16.mxu1 %v8804_v59  ;;  %1382 = vrot.lane.b32.xlu0 %v8804_v59, %s8550_s0 }
  0xfd   :  { %7119 = vmatpush3.bf16.msra.mxu1 %v8804_v59 }
  0xff   :  { %7778 = vmatpush3.bf16.xpose.msk.msra.mxu0 %vm8727_vm3, %v8773_v50 }
 0x100   :  { %7779 = vmatprep.subr.bf16.mxu0 %v12639_v31 }
 0x107   :  { %7782 = vmatpush3.bf16.xpose.msk.msra.mxu0 %vm8727_vm3, %v8784_v53 }
 0x108   :  { %7783 = vmatprep.subr.bf16.mxu0 %v12639_v31 }
 0x10f   :  { %7786 = vmatpush3.bf16.xpose.msk.msra.mxu0 %vm8727_vm3, %v8792_v56 }
 0x110   :  { %7787 = vmatprep.subr.bf16.mxu0 %v12639_v31 }
 0x117   :  { %7790 = vmatpush3.bf16.xpose.msk.msra.mxu0 %vm8727_vm3, %v8804_v59  ;;  %v12890_v59 = vmov 4  }
 0x11e   :  { %7102 = vmatmul.mubr.msk.f32.vlgmr.msra.gmra.mrb[16].mxu0 %vm305_vm2, %v499_v60 }
 0x151   :  { %v8978_v30 = vpop.permute.xlu0 %1368 }
 0x152   :  { %12877 = vst [vmem:[#allocation32_spill] sm:$0xff] %v8978_v30 }
 0x155   :  { %v8980_v33 = vpop.permute.xlu1 %1370 }
 0x156   :  { %12878 = vst [vmem:[#allocation33_spill] sm:$0xff] %v8980_v33 }
 0x15a   :  { %v8984_v34 = vpop.permute.xlu1 %1372 }
 0x15b   :  { %12879 = vst [vmem:[#allocation34_spill] sm:$0xff] %v8984_v34 }
 0x15d   :  { %v8986_v35 = vpop.permute.xlu0 %1374 }
 0x15e   :  { %12880 = vst [vmem:[#allocation35_spill] sm:$0xff] %v8986_v35  ;;  %v12894_v35 = vmov 3  }
 0x162   :  { %v8990_v38 = vpop.permute.xlu1 %1376 }
 0x163   :  { %12881 = vst [vmem:[#allocation36_spill] sm:$0xff] %v8990_v38 }
 0x165   :  { %v8992_v39 = vpop.permute.xlu0 %1378 }
 0x166   :  { %12882 = vst [vmem:[#allocation37_spill] sm:$0xff] %v8992_v39 }
 0x16a   :  { %v8998_v42 = vpop.permute.xlu1 %1380 }
 0x16b   :  { %12883 = vst [vmem:[#allocation38_spill] sm:$0xff] %v8998_v42 }
 0x16d   :  { %v9000_v43 = vpop.permute.xlu0 %1382 }
 0x16e   :  { %12884 = vst [vmem:[#allocation39_spill] sm:$0xff] %v9000_v43  ;;  %v12673_v43 = vsub.s32 0, %v8912_v17 }
 0x1b1   :  { %v8832_v61 = vpop.f32.mrb[0].mxu1 }
 0x1b2   :  { %12856 = vst [vmem:[#allocation11_spill] sm:$0xff] %v8832_v61  ;;  %v8834_v62 = vpop.f32.mrb[1].mxu1  ;;  %1145 = vperm.xlu1 %7851, %v8832_v61   ;;  %588 = vperm.xlu0 %7850, %v8832_v61  }
 0x1b3   :  { %12857 = vst [vmem:[#allocation12_spill] sm:$0xff] %v8834_v62 }
 0x1b5   :  { %v8838_v63 = vpop.f32.mrb[2].mxu1 }
 0x1b6   :  { %12858 = vst [vmem:[#allocation13_spill] sm:$0xff] %v8838_v63  ;;  %7853 = vset.pattern.permute.xlu1 %v12652_v0  ;;  %7852 = vset.pattern.permute.xlu0 %v12641_v1  ;;  %v8842_v2 = vpop.f32.mrb[3].mxu1 }
 0x1b7   :  { %12859 = vst [vmem:[#allocation14_spill] sm:$0xff] %v8842_v2  ;;  %2415 = vperm.xlu1 %7853, %v8832_v61   ;;  %1784 = vperm.xlu0 %7852, %v8832_v61  }
 0x1b9   :  { %v8846_v3 = vpop.f32.mrb[4].mxu1 }
 0x1ba   :  { %12860 = vst [vmem:[#allocation15_spill] sm:$0xff] %v8846_v3  ;;  %v8848_v4 = vpop.f32.mrb[5].mxu1 }
 0x1bb   :  { %12861 = vst [vmem:[#allocation16_spill] sm:$0xff] %v8848_v4  ;;  %7857 = vset.pattern.permute.xlu1 %v12641_v1  ;;  %7854 = vset.pattern.permute.xlu0 %v12643_v5 }
 0x1bc   :  { %1780 = vperm.xlu1 %7857, %v8834_v62   ;;  %3046 = vperm.xlu0 %7854, %v8832_v61  }
 0x1bd   :  { %v8854_v6 = vpop.f32.mrb[6].mxu1 }
 0x1be   :  { %12862 = vst [vmem:[#allocation17_spill] sm:$0xff] %v8854_v6  ;;  %v8856_v7 = vpop.f32.mrb[7].mxu1 }
 0x1bf   :  { %12863 = vst [vmem:[#allocation18_spill] sm:$0xff] %v8856_v7 }
 0x1c0   :  { %7859 = vset.pattern.permute.xlu1 %v12643_v5  ;;  %7855 = vset.pattern.permute.xlu0 %v12656_v41 }
 0x1c1   :  { %3042 = vperm.xlu1 %7859, %v8834_v62   ;;  %583 = vperm.xlu0 %7855, %v8834_v62   ;;  %v8862_v8 = vpop.f32.mrb[8].mxu1 }
 0x1c2   :  { %12864 = vst [vmem:[#allocation19_spill] sm:$0xff] %v8862_v8  ;;  %v8864_v9 = vpop.f32.mrb[9].mxu1 }
 0x1c3   :  { %12865 = vst [vmem:[#allocation20_spill] sm:$0xff] %v8864_v9 }
 0x1c5   :  { %7860 = vset.pattern.permute.xlu1 %v12656_v41  ;;  %7856 = vset.pattern.permute.xlu0 %v12647_v37  ;;  %v8868_v10 = vpop.f32.mrb[10].mxu1 }
 0x1c6   :  { %12866 = vst [vmem:[#allocation21_spill] sm:$0xff] %v8868_v10  ;;  %598 = vperm.xlu1 %7860, %v8838_v63   ;;  %1141 = vperm.xlu0 %7856, %v8834_v62   ;;  %v8872_v11 = vpop.f32.mrb[11].mxu1 }
 0x1c7   :  { %12867 = vst [vmem:[#allocation22_spill] sm:$0xff] %v8872_v11 }
 0x1c9   :  { %v8874_v12 = vpop.f32.mrb[12].mxu1 }
 0x1ca   :  { %12868 = vst [vmem:[#allocation23_spill] sm:$0xff] %v8874_v12  ;;  %7862 = vset.pattern.permute.xlu1 %v12641_v1  ;;  %7858 = vset.pattern.permute.xlu0 %v12652_v0  ;;  %v8878_v13 = vpop.f32.mrb[13].mxu1 }
 0x1cb   :  { %12869 = vst [vmem:[#allocation24_spill] sm:$0xff] %v8878_v13  ;;  %1792 = vperm.xlu1 %7862, %v8838_v63   ;;  %2411 = vperm.xlu0 %7858, %v8834_v62  }
 0x1cd   :  { %v8890_v14 = vpop.f32.mrb[14].mxu1 }
 0x1ce   :  { %12870 = vst [vmem:[#allocation25_spill] sm:$0xff] %v8890_v14  ;;  %v8900_v15 = vpop.f32.mrb[15].mxu1 }
 0x1cf   :  { %7863 = vset.pattern.permute.xlu1 %v12652_v0  ;;  %7861 = vset.pattern.permute.xlu0 %v12647_v37  ;;  %12871 = vst [vmem:[#allocation26_spill] sm:$0xff] %v8900_v15 }
 0x1d0   :  { %2423 = vperm.xlu1 %7863, %v8838_v63   ;;  %1153 = vperm.xlu0 %7861, %v8838_v63  }
 0x1d4   :  { %7864 = vset.pattern.permute.xlu1 %v12643_v5  ;;  %7868 = vset.pattern.permute.xlu0 %v12652_v0 }
 0x1d5   :  { %3054 = vperm.xlu1 %7864, %v8838_v63   ;;  %2419 = vperm.xlu0 %7868, %v8842_v2  }
 0x1d9   :  { %7865 = vset.pattern.permute.xlu1 %v12656_v41  ;;  %7871 = vset.pattern.permute.xlu0 %v12647_v37 }
 0x1da   :  { %593 = vperm.xlu1 %7865, %v8842_v2   ;;  %1161 = vperm.xlu0 %7871, %v8846_v3  }
 0x1de   :  { %7866 = vset.pattern.permute.xlu1 %v12647_v37  ;;  %7873 = vset.pattern.permute.xlu0 %v12652_v0 }
 0x1df   :  { %1149 = vperm.xlu1 %7866, %v8842_v2   ;;  %2431 = vperm.xlu0 %7873, %v8846_v3  }
 0x1e3   :  { %7867 = vset.pattern.permute.xlu1 %v12641_v1  ;;  %7875 = vset.pattern.permute.xlu0 %v12656_v41 }
 0x1e4   :  { %1788 = vperm.xlu1 %7867, %v8842_v2   ;;  %603 = vperm.xlu0 %7875, %v8848_v4  }
 0x1e8   :  { %7869 = vset.pattern.permute.xlu1 %v12643_v5  ;;  %7877 = vset.pattern.permute.xlu0 %v12641_v1 }
 0x1e9   :  { %3050 = vperm.xlu1 %7869, %v8842_v2   ;;  %1796 = vperm.xlu0 %7877, %v8848_v4  }
 0x1ed   :  { %7870 = vset.pattern.permute.xlu1 %v12656_v41  ;;  %7879 = vset.pattern.permute.xlu0 %v12643_v5 }
 0x1ee   :  { %608 = vperm.xlu1 %7870, %v8846_v3   ;;  %3058 = vperm.xlu0 %7879, %v8848_v4  }
 0x1f1   :  { %v8921_v23 = vpop.f32.mrb[16].mxu0 }
 0x1f2   :  { %7872 = vset.pattern.permute.xlu1 %v12641_v1  ;;  %7881 = vset.pattern.permute.xlu0 %v12647_v37  ;;  %v7103_v24 = vpop.f32.mrb[17].mxu0  ;;  %v8928_v25 = vrot.slane %v8921_v23, %v2476_v18  ;;  %v8931_v26 = vrot.slane %v8921_v23, %v3107_v19  ;;  %v8934_v27 = vrot.slane %v8921_v23, %v3738_v20 }
 0x1f3   :  { %1800 = vperm.xlu1 %7872, %v8846_v3   ;;  %1169 = vperm.xlu0 %7881, %v8854_v6   ;;  %v8937_v28 = vrot.slane %v8921_v23, %v4369_v21  ;;  %v8940_v29 = vrot.slane %v8921_v23, %v5000_v22  ;;  %v9134_v38 = vrot.slane %v8921_v23, %v12673_v43 }
 0x1f4   :  { %12873 = vst [vmem:[#allocation28_spill] sm:$0xff] %v8931_v26  ;;  %12874 = vst [vmem:[#allocation29_spill] sm:$0xff] %v8934_v27 }
 0x1f5   :  { %12875 = vst [vmem:[#allocation30_spill] sm:$0xff] %v8937_v28  ;;  %12876 = vst [vmem:[#allocation31_spill] sm:$0xff] %v8940_v29  ;;  %v12888_v29 = vmov 2  }
 0x1f7   :  { %7874 = vset.pattern.permute.xlu1 %v12643_v5  ;;  %7883 = vset.pattern.permute.xlu0 %v12652_v0 }
 0x1f8   :  { %3062 = vperm.xlu1 %7874, %v8846_v3   ;;  %2439 = vperm.xlu0 %7883, %v8854_v6  }
 0x1fc   :  { %7876 = vset.pattern.permute.xlu1 %v12647_v37  ;;  %7885 = vset.pattern.permute.xlu0 %v12656_v41 }
 0x1fd   :  { %1157 = vperm.xlu1 %7876, %v8848_v4   ;;  %613 = vperm.xlu0 %7885, %v8856_v7  }
 0x201   :  { %7878 = vset.pattern.permute.xlu1 %v12652_v0  ;;  %7887 = vset.pattern.permute.xlu0 %v12641_v1 }
 0x202   :  { %2427 = vperm.xlu1 %7878, %v8848_v4   ;;  %1804 = vperm.xlu0 %7887, %v8856_v7  }
 0x206   :  { %7880 = vset.pattern.permute.xlu1 %v12656_v41  ;;  %7889 = vset.pattern.permute.xlu0 %v12643_v5 }
 0x207   :  { %618 = vperm.xlu1 %7880, %v8854_v6   ;;  %3066 = vperm.xlu0 %7889, %v8856_v7  }
 0x20b   :  { %7882 = vset.pattern.permute.xlu1 %v12641_v1  ;;  %7891 = vset.pattern.permute.xlu0 %v12647_v37 }
 0x20c   :  { %1808 = vperm.xlu1 %7882, %v8854_v6   ;;  %1177 = vperm.xlu0 %7891, %v8862_v8  }
 0x210   :  { %7884 = vset.pattern.permute.xlu1 %v12643_v5  ;;  %7893 = vset.pattern.permute.xlu0 %v12652_v0 }
 0x211   :  { %3070 = vperm.xlu1 %7884, %v8854_v6   ;;  %2447 = vperm.xlu0 %7893, %v8862_v8  }
 0x215   :  { %7886 = vset.pattern.permute.xlu1 %v12647_v37  ;;  %7895 = vset.pattern.permute.xlu0 %v12656_v41 }
 0x216   :  { %1165 = vperm.xlu1 %7886, %v8856_v7   ;;  %623 = vperm.xlu0 %7895, %v8864_v9  }
 0x21a   :  { %7888 = vset.pattern.permute.xlu1 %v12652_v0  ;;  %7897 = vset.pattern.permute.xlu0 %v12641_v1 }
 0x21b   :  { %2435 = vperm.xlu1 %7888, %v8856_v7   ;;  %1812 = vperm.xlu0 %7897, %v8864_v9  }
 0x21f   :  { %7890 = vset.pattern.permute.xlu1 %v12656_v41  ;;  %7899 = vset.pattern.permute.xlu0 %v12643_v5 }
 0x220   :  { %628 = vperm.xlu1 %7890, %v8862_v8   ;;  %3074 = vperm.xlu0 %7899, %v8864_v9  }
 0x224   :  { %7892 = vset.pattern.permute.xlu1 %v12641_v1  ;;  %7901 = vset.pattern.permute.xlu0 %v12647_v37 }
 0x225   :  { %1816 = vperm.xlu1 %7892, %v8862_v8   ;;  %1185 = vperm.xlu0 %7901, %v8868_v10  }
 0x229   :  { %7894 = vset.pattern.permute.xlu1 %v12643_v5  ;;  %7903 = vset.pattern.permute.xlu0 %v12652_v0 }
 0x22a   :  { %3078 = vperm.xlu1 %7894, %v8862_v8   ;;  %2455 = vperm.xlu0 %7903, %v8868_v10  }
 0x22e   :  { %7896 = vset.pattern.permute.xlu1 %v12647_v37  ;;  %7905 = vset.pattern.permute.xlu0 %v12656_v41 }
 0x22f   :  { %1173 = vperm.xlu1 %7896, %v8864_v9   ;;  %633 = vperm.xlu0 %7905, %v8872_v11  }
 0x231   :  { %v9006_v45 = vpop.permute.xlu1 %1145  ;;  %v9008_v46 = vpop.permute.xlu0 %588 }
 0x233   :  { %7898 = vset.pattern.permute.xlu1 %v12652_v0  ;;  %7907 = vset.pattern.permute.xlu0 %v12641_v1 }
 0x234   :  { %2443 = vperm.xlu1 %7898, %v8864_v9   ;;  %1820 = vperm.xlu0 %7907, %v8872_v11  }
 0x236   :  { %v9014_v48 = vpop.permute.xlu1 %2415  ;;  %v9016_v49 = vpop.permute.xlu0 %1784 }
 0x238   :  { %7900 = vset.pattern.permute.xlu1 %v12656_v41  ;;  %7909 = vset.pattern.permute.xlu0 %v12643_v5 }
 0x239   :  { %638 = vperm.xlu1 %7900, %v8868_v10   ;;  %3082 = vperm.xlu0 %7909, %v8872_v11  }
 0x23b   :  { %v9022_v51 = vpop.permute.xlu1 %1780  ;;  %v9024_v52 = vpop.permute.xlu0 %3046 }
 0x23c   :  { %12885 = vst [vmem:[#allocation40_spill] sm:$0xff] %v9024_v52 }
 0x23d   :  { %7902 = vset.pattern.permute.xlu1 %v12641_v1  ;;  %7911 = vset.pattern.permute.xlu0 %v12647_v37 }
 0x23e   :  { %1824 = vperm.xlu1 %7902, %v8868_v10   ;;  %1193 = vperm.xlu0 %7911, %v8874_v12  }
 0x240   :  { %v9030_v54 = vpop.permute.xlu1 %3042  ;;  %v9032_v55 = vpop.permute.xlu0 %583 }
 0x241   :  { %12886 = vst [vmem:[#allocation41_spill] sm:$0xff] %v9030_v54  ;;  %v665_v34 = vadd.f32 %v9134_v38, %v9032_v55 }
 0x242   :  { %7904 = vset.pattern.permute.xlu1 %v12643_v5  ;;  %7913 = vset.pattern.permute.xlu0 %v12652_v0 }
 0x243   :  { %3086 = vperm.xlu1 %7904, %v8868_v10   ;;  %2463 = vperm.xlu0 %7913, %v8874_v12  }
 0x245   :  { %v9038_v57 = vpop.permute.xlu1 %598  ;;  %v9040_v58 = vpop.permute.xlu0 %1141 }
 0x247   :  { %7906 = vset.pattern.permute.xlu1 %v12647_v37  ;;  %7915 = vset.pattern.permute.xlu0 %v12656_v41 }
 0x248   :  { %1181 = vperm.xlu1 %7906, %v8872_v11   ;;  %643 = vperm.xlu0 %7915, %v8878_v13  }
 0x24a   :  { %v9046_v60 = vpop.permute.xlu1 %1792  ;;  %v9048_v16 = vpop.permute.xlu0 %2411 }
 0x24c   :  { %7908 = vset.pattern.permute.xlu1 %v12652_v0  ;;  %7917 = vset.pattern.permute.xlu0 %v12641_v1 }
 0x24d   :  { %2451 = vperm.xlu1 %7908, %v8872_v11   ;;  %1828 = vperm.xlu0 %7917, %v8878_v13  }
 0x24f   :  { %v9054_v18 = vpop.permute.xlu1 %2423  ;;  %v9056_v19 = vpop.permute.xlu0 %1153 }
 0x251   :  { %7910 = vset.pattern.permute.xlu1 %v12656_v41  ;;  %7919 = vset.pattern.permute.xlu0 %v12643_v5 }
 0x252   :  { %648 = vperm.xlu1 %7910, %v8874_v12   ;;  %3090 = vperm.xlu0 %7919, %v8878_v13  }
 0x254   :  { %v9062_v20 = vpop.permute.xlu1 %3054  ;;  %v9064_v21 = vpop.permute.xlu0 %2419 }
 0x255   :  { %12887 = vst [vmem:[#allocation42_spill] sm:$0xff] %v9062_v20 }
 0x256   :  { %7912 = vset.pattern.permute.xlu1 %v12641_v1  ;;  %7921 = vset.pattern.permute.xlu0 %v12647_v37 }
 0x257   :  { %1832 = vperm.xlu1 %7912, %v8874_v12   ;;  %1201 = vperm.xlu0 %7921, %v8890_v14  }
 0x259   :  { %v9070_v22 = vpop.permute.xlu1 %593  ;;  %v9072_v24 = vpop.permute.xlu0 %1161 }
 0x25b   :  { %7914 = vset.pattern.permute.xlu1 %v12643_v5  ;;  %7923 = vset.pattern.permute.xlu0 %v12652_v0 }
 0x25c   :  { %3094 = vperm.xlu1 %7914, %v8874_v12   ;;  %2471 = vperm.xlu0 %7923, %v8890_v14  }
 0x25e   :  { %v9078_v32 = vpop.permute.xlu1 %1149  ;;  %v9080_v31 = vpop.permute.xlu0 %2431 }
 0x260   :  { %7916 = vset.pattern.permute.xlu1 %v12647_v37  ;;  %7925 = vset.pattern.permute.xlu0 %v12656_v41 }
 0x261   :  { %1189 = vperm.xlu1 %7916, %v8878_v13   ;;  %653 = vperm.xlu0 %7925, %v8900_v15  }
 0x263   :  { %v9086_v1 = vpop.permute.xlu1 %1788  ;;  %v9088_v5 = vpop.permute.xlu0 %603 }
 0x265   :  { %7918 = vset.pattern.permute.xlu1 %v12652_v0  ;;  %7927 = vset.pattern.permute.xlu0 %v12888_v29 }
 0x266   :  { %2459 = vperm.xlu1 %7918, %v8878_v13   ;;  %1836 = vperm.xlu0 %7927, %v8900_v15  }
 0x268   :  { %v9094_v28 = vpop.permute.xlu1 %3050  ;;  %v9096_v37 = vpop.permute.xlu0 %1796 }
 0x269   :  { %12889 = vst [vmem:[#allocation43_spill] sm:$0xff] %v9094_v28  ;;  %v12677_v28 = vmov -1e+30  }
 0x26a   :  { %7920 = vset.pattern.permute.xlu1 %v12656_v41  ;;  %7929 = vset.pattern.permute.xlu0 %v12890_v59  ;;  %v1206_v41 = vsub.s32 1, %v8912_v17 }
 0x26b   :  { %658 = vperm.xlu1 %7920, %v8890_v14   ;;  %3098 = vperm.xlu0 %7929, %v8900_v15  }
 0x26c   :  { %v9120_v47 = vrot.slane %v8921_v23, %v1206_v41  ;;  %v1845_v41 = vsub.s32 2, %v8912_v17  ;;  %v681_v17 = vmul.f32 0.2, %v665_v34 }
 0x26d   :  { %v9102_v56 = vpop.permute.xlu1 %608  ;;  %v9104_v0 = vpop.permute.xlu0 %3058 }
 0x26e   :  { %12891 = vst [vmem:[#allocation44_spill] sm:$0xff] %v9104_v0  ;;  %v1209_v42 = vadd.f32 %v9120_v47, %v9006_v45  ;;  %v9149_v43 = vrot.slane %v8921_v23, %v1845_v41  ;;  %v37_v0 = vld [vmem:[%s12631_s1] sm:$0xff]  ;;  %v668_v41 = vadd.f32 %v9134_v38, %v9038_v57  ;;  %v667_v57 = vadd.f32 %v9134_v38, %v9070_v22  ;;  %v39_v22 = vld [vmem:[%s12631_s1 + $0x10] sm:$0xff] }
 0x26f   :  { %7922 = vset.pattern.permute.xlu1 %v12888_v29  ;;  %v12893_v29 = vmov 1   ;;  %vm53_vm5 = vcmp.gt.f32.partialorder %v37_v0, 0.0  ;;  %v40_v0 = vld [vmem:[%s12631_s1 + $0x18] sm:$0xff]  ;;  %vm55_vm7 = vcmp.gt.f32.partialorder %v39_v22, 0.0  ;;  %v670_v12 = vadd.f32 %v9134_v38, %v9102_v56 }
 0x270   :  { %1840 = vperm.xlu1 %7922, %v8890_v14   ;;  %v1225_v45 = vmul.f32 0.2, %v1209_v42  ;;  %vm56_vm6 = vcmp.gt.f32.partialorder %v40_v0, 0.0 }
 0x271   :  { %v686_v8 = vmul.f32 0.2, %v670_v12 }
 0x272   :  { %v9108_v50 = vpop.permute.xlu1 %1800  ;;  %v9110_v27 = vpop.permute.xlu0 %1169  ;;  %v1241_v36 = vmax.f32 %v1209_v42, %v1225_v45  ;;  %v697_v42 = vmax.f32 %v665_v34, %v681_v17  ;;  %v9172_v45 = vsel %vm53_vm5, 0.0, %v12677_v28  ;;  %v683_v34 = vmul.f32 0.2, %v667_v57 }
 0x273   :  { %12898 = vst [vmem:[#allocation49_spill] sm:$0xff] %v9172_v45 }
 0x274   :  { %7924 = vset.pattern.permute.xlu1 %v12890_v59 }
 0x275   :  { %3102 = vperm.xlu1 %7924, %v8890_v14  }
 0x277   :  { %v9115_v44 = vpop.permute.xlu1 %3062  ;;  %v9117_v53 = vpop.permute.xlu0 %2439 }
 0x278   :  { %12892 = vst [vmem:[#allocation45_spill] sm:$0xff] %v9115_v44 }
 0x279   :  { %7926 = vset.pattern.permute.xlu1 %v12893_v29  ;;  %v38_v29 = vld [vmem:[%s12631_s1 + $0x8] sm:$0xff] }
 0x27a   :  { %1197 = vperm.xlu1 %7926, %v8900_v15   ;;  %vm54_vm4 = vcmp.gt.f32.partialorder %v38_v29, 0.0 }
 0x27b   :  { %v9157_v55 = vsel %vm54_vm4, 0.0, %v12677_v28  ;;  %v1210_v28 = vadd.f32 %v9120_v47, %v9078_v32  ;;  %v1849_v32 = vadd.f32 %v9149_v43, %v9086_v1 }
 0x27c   :  { %v9127_v39 = vpop.permute.xlu1 %1157  ;;  %v9129_v59 = vpop.permute.xlu0 %613  ;;  %12895 = vst [vmem:[#allocation46_spill] sm:$0xff] %v9157_v55 }
 0x27d   :  { %v1865_v22 = vmul.f32 0.2, %v1849_v32  ;;  %v1212_v6 = vadd.f32 %v9120_v47, %v9127_v39  ;;  %v1851_v39 = vadd.f32 %v9149_v43, %v9096_v37 }
 0x27e   :  { %7928 = vset.pattern.permute.xlu1 %v12894_v35  ;;  %v1847_v35 = vadd.f32 %v9149_v43, %v9022_v51  ;;  %v9166_v51 = vadd.f32 %v1241_v36, %v9157_v55  ;;  %v9182_v36 = vadd.f32 %v697_v42, %v9172_v45  ;;  %v1226_v42 = vmul.f32 0.2, %v1210_v28 }
 0x27f   :  { %2467 = vperm.xlu1 %7928, %v8900_v15  }
 0x280   :  { %v1863_v23 = vmul.f32 0.2, %v1847_v35  ;;  %12897 = vst [vmem:[#allocation48_spill] sm:$0xff] %v9166_v51 }
 0x281   :  { %v9144_v40 = vpop.permute.xlu1 %2427  ;;  %v9146_v33 = vpop.permute.xlu0 %1804 }
 0x282   :  { %v1879_v17 = vmax.f32 %v1847_v35, %v1863_v23  ;;  %v12900_v35 = vmov -1e+30  }
 0x283   :  { %v9198_v23 = vsel %vm56_vm6, 0.0, %v12900_v35  ;;  %v9212_v14 = vsel %vm55_vm7, 0.0, %v12900_v35  ;;  %vm1123_vm6 = vcmask 64512   ;;  %vm2393_vm7 = vcmask 195712  }
 0x284   :  { %v9190_v26 = vadd.f32 %v1879_v17, %v9172_v45  ;;  %12901 = vst [vmem:[#allocation51_spill] sm:$0xff] %v9198_v23  ;;  %v699_v17 = vmax.f32 %v667_v57, %v683_v34  ;;  %12902 = vst [vmem:[#allocation52_spill] sm:$0xff] %v9212_v14 }
 0x286   :  { %v9159_v44 = vpop.permute.xlu1 %618  ;;  %v9161_v54 = vpop.permute.xlu0 %3066  ;;  %v9217_v1 = vadd.f32 %v699_v17, %v9212_v14  ;;  %v1881_v17 = vmax.f32 %v1849_v32, %v1865_v22  ;;  %v702_v32 = vmax.f32 %v670_v12, %v686_v8  ;;  %v1228_v22 = vmul.f32 0.2, %v1212_v6 }
 0x287   :  { %12896 = vst [vmem:[#allocation47_spill] sm:$0xff] %v9161_v54  ;;  %v684_v54 = vmul.f32 0.2, %v668_v41  ;;  %v1867_v12 = vmul.f32 0.2, %v1851_v39 }
 0x289   :  { %v700_v30 = vmax.f32 %v668_v41, %v684_v54  ;;  %v666_v54 = vadd.f32 %v9134_v38, %v9008_v46  ;;  %v1848_v46 = vadd.f32 %v9149_v43, %v9016_v49  ;;  %v1208_v49 = vadd.f32 %v9120_v47, %v9040_v58  ;;  %v41_v58 = vld [vmem:[%s12631_s1 + $0x20] sm:$0xff] }
 0x28a   :  { %1274 = vmax.xlane.f32.xlu0 %v9166_v51  ;;  %vm57_vm9 = vcmp.gt.f32.partialorder %v41_v58, 0.0 }
 0x28b   :  { %v9169_v29 = vpop.permute.xlu1 %1808  ;;  %v9174_v20 = vpop.permute.xlu0 %1177  ;;  %v9204_v0 = vadd.f32 %v700_v30, %v9198_v23  ;;  %v1242_v30 = vmax.f32 %v1210_v28, %v1226_v42  ;;  %v682_v57 = vmul.f32 0.2, %v666_v54  ;;  %v42_v28 = vld [vmem:[%s12631_s1 + $0x28] sm:$0xff]  ;;  %v1864_v42 = vmul.f32 0.2, %v1848_v46 }
 0x28c   :  { %vm58_vm8 = vcmp.gt.f32.partialorder %v42_v28, 0.0 }
 0x28d   :  { %v9229_v56 = vadd.f32 %v1242_v30, %v9212_v14  ;;  %v698_v15 = vmax.f32 %v666_v54, %v682_v57  ;;  %v9244_v30 = vadd.f32 %v1881_v17, %v9212_v14  ;;  %v8556_v54 = vmov 5  }
 0x28e   :  { %729 = vmax.xlane.f32.xlu0 %v9182_v36  ;;  %7930 = vset.pattern.permute.xlu1 %v8556_v54  ;;  %v1224_v57 = vmul.f32 0.2, %v1208_v49  ;;  %v1880_v37 = vmax.f32 %v1848_v46, %v1864_v42  ;;  %v9257_v8 = vsel %vm58_vm8, 0.0, %v12900_v35  ;;  %v1244_v17 = vmax.f32 %v1212_v6, %v1228_v22 }
 0x28f   :  { %12903 = vst [vmem:[#allocation53_spill] sm:$0xff] %v9229_v56  ;;  %12905 = vst [vmem:[#allocation55_spill] sm:$0xff] %v9244_v30  ;;  %7931 = vset.pattern.permute.xlu0 %v8556_v54  ;;  %v9252_v28 = vadd.f32 %v698_v15, %v9157_v55  ;;  %v672_v54 = vadd.f32 %v9134_v38, %v9159_v44  ;;  %v9266_v15 = vadd.f32 %v702_v32, %v9257_v8  ;;  %vm3024_vm8 = vcmask 261312  }
 0x290   :  { %v9187_v51 = vpop.permute.xlu1 %3070  ;;  %v9192_v52 = vpop.permute.xlu0 %2447  ;;  %12906 = vst [vmem:[#allocation56_spill] sm:$0xff] %v9257_v8  ;;  %v1850_v46 = vadd.f32 %v9149_v43, %v9046_v60  ;;  %v1240_v58 = vmax.f32 %v1208_v49, %v1224_v57  ;;  %v9276_v44 = vsel %vm57_vm9, 0.0, %v12900_v35  ;;  %v1883_v6 = vmax.f32 %v1851_v39, %v1867_v12  ;;  %v44_v60 = vld [vmem:[%s12631_s1 + $0x38] sm:$0xff] }
 0x291   :  { %12899 = vst [vmem:[#allocation50_spill] sm:$0xff] %v9187_v51  ;;  %12907 = vst [vmem:[#allocation57_spill] sm:$0xff] %v9266_v15  ;;  %v688_v22 = vmul.f32 0.2, %v672_v54  ;;  %v9280_v63 = vadd.f32 %v1244_v17, %v9276_v44  ;;  %v1213_v57 = vadd.f32 %v9120_v47, %v9072_v24  ;;  %vm60_vm10 = vcmp.gt.f32.partialorder %v44_v60, 0.0  ;;  %v43_v24 = vld [vmem:[%s12631_s1 + $0x30] sm:$0xff] }
 0x292   :  { %1911 = vmax.xlane.f32.xlu0 %v9190_v26  ;;  %12909 = vst [vmem:[#allocation59_spill] sm:$0xff] %v9276_v44  ;;  %v9292_v39 = vadd.f32 %v1240_v58, %v9172_v45  ;;  %v9299_v17 = vadd.f32 %v1883_v6, %v9276_v44  ;;  %vm59_vm11 = vcmp.gt.f32.partialorder %v43_v24, 0.0  ;;  %vm3655_vm9 = vcmask 326912  }
 0x293   :  { %12910 = vst [vmem:[#allocation60_spill] sm:$0xff] %v9280_v63  ;;  %v704_v12 = vmax.f32 %v672_v54, %v688_v22  ;;  %v1229_v58 = vmul.f32 0.2, %v1213_v57 }
 0x294   :  { %12913 = vst [vmem:[#allocation63_spill] sm:$0xff] %v9292_v39  ;;  %12914 = vst [vmem:[#allocation64_spill] sm:$0xff] %v9299_v17 }
 0x295   :  { %v1166_v41 = vpop.permute.xlu1 %1165  ;;  %v9208_v51 = vpop.permute.xlu0 %623  ;;  %v1245_v22 = vmax.f32 %v1213_v57, %v1229_v58 }
 0x296   :  { %735 = vmax.xlane.f32.xlu0 %v9204_v0  ;;  %v1214_v32 = vadd.f32 %v9120_v47, %v1166_v41  ;;  %v1853_v41 = vadd.f32 %v9149_v43, %v9146_v33  ;;  %v9314_v33 = vsel %vm60_vm10, 0.0, %v12900_v35  ;;  %vm4286_vm10 = vcmask 392512  }
 0x297   :  { %12916 = vst [vmem:[#allocation66_spill] sm:$0xff] %v9314_v33 }
 0x298   :  { %v1869_v54 = vmul.f32 0.2, %v1853_v41 }
 0x29a   :  { %v9221_v34 = vpop.permute.xlu1 %2435  ;;  %733 = vmax.xlane.f32.xlu0 %v9217_v1  ;;  %v9224_v10 = vpop.permute.xlu0 %1812 }
 0x29e   :  { %1276 = vmax.xlane.f32.xlu0 %v9229_v56 }
 0x29f   :  { %v9237_v3 = vpop.permute.xlu1 %628  ;;  %v9239_v13 = vpop.permute.xlu0 %3074 }
 0x2a0   :  { %12904 = vst [vmem:[#allocation54_spill] sm:$0xff] %v9239_v13  ;;  %v1211_v13 = vadd.f32 %v9120_v47, %v9056_v19  ;;  %v674_v6 = vadd.f32 %v9134_v38, %v9237_v3  ;;  %v9333_v3 = vsel %vm59_vm11, 0.0, %v12900_v35  ;;  %vm4917_vm11 = vcmask 458112  }
 0x2a1   :  { %12919 = vst [vmem:[#allocation69_spill] sm:$0xff] %v9333_v3 }
 0x2a2   :  { %1915 = vmax.xlane.f32.xlu0 %v9244_v30  ;;  %v1227_v42 = vmul.f32 0.2, %v1211_v13  ;;  %v9271_v30 = vadd.f32 %v1880_v37, %v9157_v55  ;;  %v1866_v37 = vmul.f32 0.2, %v1850_v46  ;;  %v690_v57 = vmul.f32 0.2, %v674_v6 }
 0x2a3   :  { %731 = vmax.xlane.f32.xlu1 %v9252_v28 }
 0x2a4   :  { %v9261_v56 = vpop.permute.xlu1 %1816  ;;  %v9263_v19 = vpop.permute.xlu0 %1185  ;;  %12908 = vst [vmem:[#allocation58_spill] sm:$0xff] %v9271_v30  ;;  %v1243_v49 = vmax.f32 %v1211_v13, %v1227_v42  ;;  %v1230_v13 = vmul.f32 0.2, %v1214_v32  ;;  %v1882_v42 = vmax.f32 %v1850_v46, %v1866_v37  ;;  %v669_v37 = vadd.f32 %v9134_v38, %v9088_v5 }
 0x2a6   :  { %739 = vmax.xlane.f32.xlu0 %v9266_v15  ;;  %v1246_v46 = vmax.f32 %v1214_v32, %v1230_v13  ;;  %v1885_v32 = vmax.f32 %v1853_v41, %v1869_v54  ;;  %v46_v13 = vld [vmem:[%s12631_s1 + $0x48] sm:$0xff]  ;;  %v1855_v41 = vadd.f32 %v9149_v43, %v9224_v10 }
 0x2a7   :  { %1913 = vmax.xlane.f32.xlu1 %v9271_v30  ;;  %vm62_vm12 = vcmp.gt.f32.partialorder %v46_v13, 0.0  ;;  %v1854_v13 = vadd.f32 %v9149_v43, %v9169_v29  ;;  %v671_v29 = vadd.f32 %v9134_v38, %v9129_v59 }
 0x2a8   :  { %v9337_v5 = vadd.f32 %v1246_v46, %v9333_v3  ;;  %v9367_v10 = vsel %vm62_vm12, 0.0, %v12900_v35  ;;  %vm5548_vm12 = vcmask 523712  }
 0x2a9   :  { %v9287_v15 = vpop.permute.xlu1 %3078  ;;  %v9289_v30 = vpop.permute.xlu0 %2455  ;;  %12925 = vst [vmem:[#allocation75_spill] sm:$0xff] %v9367_v10  ;;  %v687_v59 = vmul.f32 0.2, %v671_v29 }
 0x2aa   :  { %12911 = vst [vmem:[#allocation61_spill] sm:$0xff] %v9287_v15  ;;  %12912 = vst [vmem:[#allocation62_spill] sm:$0xff] %v9289_v30  ;;  %1280 = vmax.xlane.f32.xlu0 %v9280_v63  ;;  %v1852_v63 = vadd.f32 %v9149_v43, %v9108_v50  ;;  %v9319_v50 = vadd.f32 %v704_v12, %v9314_v33  ;;  %v1215_v30 = vadd.f32 %v9120_v47, %v9110_v27  ;;  %v45_v27 = vld [vmem:[%s12631_s1 + $0x40] sm:$0xff] }
 0x2ab   :  { %1272 = vmax.xlane.f32.xlu1 %v9292_v39  ;;  %v9307_v39 = vadd.f32 %v1243_v49, %v9198_v23  ;;  %12920 = vst [vmem:[#allocation70_spill] sm:$0xff] %v9337_v5  ;;  %vm61_vm13 = vcmp.gt.f32.partialorder %v45_v27, 0.0  ;;  %v1217_v27 = vadd.f32 %v9120_v47, %v9174_v20 }
 0x2ac   :  { %12917 = vst [vmem:[#allocation67_spill] sm:$0xff] %v9319_v50  ;;  %v1868_v49 = vmul.f32 0.2, %v1852_v63 }
 0x2ad   :  { %12915 = vst [vmem:[#allocation65_spill] sm:$0xff] %v9307_v39 }
 0x2ae   :  { %v1174_v60 = vpop.permute.xlu1 %1173  ;;  %v9309_v15 = vpop.permute.xlu0 %633  ;;  %1919 = vmax.xlane.f32.xlu0 %v9299_v17  ;;  %v9324_v17 = vadd.f32 %v1882_v42, %v9198_v23  ;;  %v685_v42 = vmul.f32 0.2, %v669_v37  ;;  %v1884_v58 = vmax.f32 %v1852_v63, %v1868_v49  ;;  %v9354_v63 = vadd.f32 %v1885_v32, %v9333_v3 }
 0x2af   :  { %1278 = vmax.xlane.f32.xlu1 %v9307_v39  ;;  %v1216_v12 = vadd.f32 %v9120_v47, %v1174_v60  ;;  %v706_v60 = vmax.f32 %v674_v6, %v690_v57  ;;  %v1231_v49 = vmul.f32 0.2, %v1215_v30  ;;  %v1871_v6 = vmul.f32 0.2, %v1855_v41 }
 0x2b0   :  { %12918 = vst [vmem:[#allocation68_spill] sm:$0xff] %v9324_v17  ;;  %12923 = vst [vmem:[#allocation73_spill] sm:$0xff] %v9354_v63 }
 0x2b1   :  { %v1232_v54 = vmul.f32 0.2, %v1216_v12 }
 0x2b2   :  { %743 = vmax.xlane.f32.xlu0 %v9319_v50 }
 0x2b3   :  { %v9327_v39 = vpop.permute.xlu1 %2443  ;;  %v9329_v24 = vpop.permute.xlu0 %1820  ;;  %1917 = vmax.xlane.f32.xlu1 %v9324_v17  ;;  %v9345_v17 = vadd.f32 %v1245_v22, %v9257_v8  ;;  %v701_v22 = vmax.f32 %v669_v37, %v685_v42  ;;  %v1248_v32 = vmax.f32 %v1216_v12, %v1232_v54  ;;  %v9371_v37 = vadd.f32 %v706_v60, %v9367_v10 }
 0x2b4   :  { %v1247_v42 = vmax.f32 %v1215_v30, %v1231_v49  ;;  %v9383_v12 = vsel %vm61_vm13, 0.0, %v12900_v35  ;;  %v1887_v60 = vmax.f32 %v1855_v41, %v1871_v6  ;;  %v48_v49 = vld [vmem:[%s12631_s1 + $0x58] sm:$0xff]  ;;  %v12715_v41 = vmov 1065369472  }
 0x2b5   :  { %12921 = vst [vmem:[#allocation71_spill] sm:$0xff] %v9345_v17  ;;  %12926 = vst [vmem:[#allocation76_spill] sm:$0xff] %v9371_v37  ;;  %v9386_v30 = vadd.f32 %v1248_v32, %v9383_v12  ;;  %7136 = vmatprep.subr.bf16.mxu1 %v12715_v41  ;;  %vm64_vm14 = vcmp.gt.f32.partialorder %v48_v49, 0.0  ;;  %v703_v6 = vmax.f32 %v671_v29, %v687_v59  ;;  %v1233_v32 = vmul.f32 0.2, %v1217_v27 }
 0x2b6   :  { %1284 = vmax.xlane.f32.xlu0 %v9337_v5  ;;  %v9362_v5 = vadd.f32 %v1884_v58, %v9257_v8  ;;  %v1870_v58 = vmul.f32 0.2, %v1854_v13  ;;  %12927 = vst [vmem:[#allocation77_spill] sm:$0xff] %v9383_v12  ;;  %v9404_v20 = vadd.f32 %v1887_v60, %v9383_v12  ;;  %v1857_v41 = vadd.f32 %v9149_v43, %v9329_v24 }
 0x2b7   :  { %1282 = vmax.xlane.f32.xlu1 %v9345_v17  ;;  %12928 = vst [vmem:[#allocation78_spill] sm:$0xff] %v9386_v30  ;;  %v9419_v29 = vsel %vm64_vm14, 0.0, %v12900_v35  ;;  %v1249_v59 = vmax.f32 %v1217_v27, %v1233_v32  ;;  %v9428_v49 = vadd.f32 %v703_v6, %v9333_v3  ;;  %v1219_v6 = vadd.f32 %v9120_v47, %v9263_v19 }
 0x2b8   :  { %v639_v46 = vpop.permute.xlu1 %638  ;;  %v9351_v50 = vpop.permute.xlu0 %3082  ;;  %12924 = vst [vmem:[#allocation74_spill] sm:$0xff] %v9362_v5  ;;  %12932 = vst [vmem:[#allocation82_spill] sm:$0xff] %v9404_v20 }
 0x2b9   :  { %12922 = vst [vmem:[#allocation72_spill] sm:$0xff] %v9351_v50  ;;  %v676_v57 = vadd.f32 %v9134_v38, %v639_v46  ;;  %v1886_v46 = vmax.f32 %v1854_v13, %v1870_v58  ;;  %12934 = vst [vmem:[#allocation84_spill] sm:$0xff] %v9419_v29  ;;  %v9442_v32 = vadd.f32 %v1249_v59, %v9367_v10 }
 0x2ba   :  { %1923 = vmax.xlane.f32.xlu0 %v9354_v63  ;;  %12936 = vst [vmem:[#allocation86_spill] sm:$0xff] %v9428_v49 }
 0x2bb   :  { %1921 = vmax.xlane.f32.xlu1 %v9362_v5  ;;  %v9378_v5 = vadd.f32 %v701_v22, %v9276_v44  ;;  %v692_v54 = vmul.f32 0.2, %v676_v57  ;;  %v9391_v22 = vadd.f32 %v1247_v42, %v9314_v33  ;;  %v1856_v42 = vadd.f32 %v9149_v43, %v9261_v56  ;;  %12938 = vst [vmem:[#allocation88_spill] sm:$0xff] %v9442_v32 }
 0x2bc   :  { %v9409_v58 = vadd.f32 %v1886_v46, %v9314_v33  ;;  %v673_v46 = vadd.f32 %v9134_v38, %v9208_v51 }
 0x2bd   :  { %v1825_v50 = vpop.permute.xlu1 %1824  ;;  %v9375_v63 = vpop.permute.xlu0 %1193  ;;  %12929 = vst [vmem:[#allocation79_spill] sm:$0xff] %v9391_v22  ;;  %v708_v13 = vmax.f32 %v676_v57, %v692_v54  ;;  %v1872_v24 = vmul.f32 0.2, %v1856_v42 }
 0x2be   :  { %747 = vmax.xlane.f32.xlu0 %v9371_v37  ;;  %12933 = vst [vmem:[#allocation83_spill] sm:$0xff] %v9409_v58  ;;  %v689_v27 = vmul.f32 0.2, %v673_v46 }
 0x2bf   :  { %737 = vmax.xlane.f32.xlu1 %v9378_v5  ;;  %v9423_v54 = vadd.f32 %v708_v13, %v9419_v29  ;;  %v1888_v51 = vmax.f32 %v1856_v42, %v1872_v24 }
 0x2c1   :  { %12935 = vst [vmem:[#allocation85_spill] sm:$0xff] %v9423_v54  ;;  %v9453_v19 = vadd.f32 %v1888_v51, %v9367_v10 }
 0x2c2   :  { %v9396_v17 = vpop.permute.xlu1 %3086  ;;  %v9398_v37 = vpop.permute.xlu0 %2463  ;;  %1288 = vmax.xlane.f32.xlu0 %v9386_v30 }
 0x2c3   :  { %12930 = vst [vmem:[#allocation80_spill] sm:$0xff] %v9396_v17  ;;  %12931 = vst [vmem:[#allocation81_spill] sm:$0xff] %v9398_v37  ;;  %1286 = vmax.xlane.f32.xlu1 %v9391_v22  ;;  %v47_v17 = vld [vmem:[%s12631_s1 + $0x50] sm:$0xff]  ;;  %v1858_v37 = vadd.f32 %v9149_v43, %v1825_v50 }
 0x2c4   :  { %vm63_vm15 = vcmp.gt.f32.partialorder %v47_v17, 0.0  ;;  %12941 = vst [vmem:[#allocation91_spill] sm:$0xff] %v9453_v19 }
 0x2c5   :  { %v9437_v17 = vsel %vm63_vm15, 0.0, %v12900_v35  ;;  %v1874_v24 = vmul.f32 0.2, %v1858_v37 }
 0x2c6   :  { %1927 = vmax.xlane.f32.xlu0 %v9404_v20  ;;  %v1873_v20 = vmul.f32 0.2, %v1857_v41  ;;  %12937 = vst [vmem:[#allocation87_spill] sm:$0xff] %v9437_v17 }
 0x2c7   :  { %v1182_v57 = vpop.permute.xlu1 %1181  ;;  %v644_v60 = vpop.permute.xlu0 %643  ;;  %1925 = vmax.xlane.f32.xlu1 %v9409_v58 }
 0x2c8   :  { %v1218_v56 = vadd.f32 %v9120_v47, %v1182_v57  ;;  %v1889_v22 = vmax.f32 %v1857_v41, %v1873_v20  ;;  %v50_v41 = vld [vmem:[%s12631_s1 + $0x68] sm:$0xff] }
 0x2c9   :  { %vm66_vm0 = vcmp.gt.f32.partialorder %v50_v41, 0.0  ;;  %v1221_v41 = vadd.f32 %v9120_v47, %v9375_v63  ;;  %v677_v63 = vadd.f32 %v9134_v38, %v644_v60 }
 0x2ca   :  { %v1234_v30 = vmul.f32 0.2, %v1218_v56  ;;  %751 = vmax.xlane.f32.xlu0 %v9423_v54 }
 0x2cb   :  { %741 = vmax.xlane.f32.xlu1 %v9428_v49 }
 0x2cc   :  { %v1250_v58 = vmax.f32 %v1218_v56, %v1234_v30  ;;  %v9432_v57 = vpop.permute.xlu1 %2451  ;;  %v9434_v13 = vpop.permute.xlu0 %1828  ;;  %v705_v30 = vmax.f32 %v673_v46, %v689_v27  ;;  %v1235_v56 = vmul.f32 0.2, %v1219_v6  ;;  %v675_v46 = vadd.f32 %v9134_v38, %v9309_v15 }
 0x2ce   :  { %v9445_v54 = vadd.f32 %v1250_v58, %v9437_v17  ;;  %v9460_v58 = vadd.f32 %v1889_v22, %v9437_v17  ;;  %v1251_v50 = vmax.f32 %v1219_v6, %v1235_v56  ;;  %v9467_v27 = vadd.f32 %v705_v30, %v9383_v12 }
 0x2cf   :  { %1290 = vmax.xlane.f32.xlu1 %v9442_v32  ;;  %v9473_v22 = vsel %vm66_vm0, 0.0, %v12900_v35  ;;  %v691_v15 = vmul.f32 0.2, %v675_v46  ;;  %v1890_v56 = vmax.f32 %v1858_v37, %v1874_v24  ;;  %v49_v24 = vld [vmem:[%s12631_s1 + $0x60] sm:$0xff] }
 0x2d0   :  { %12939 = vst [vmem:[#allocation89_spill] sm:$0xff] %v9445_v54  ;;  %1292 = vmax.xlane.f32.xlu0 %v9445_v54  ;;  %12942 = vst [vmem:[#allocation92_spill] sm:$0xff] %v9460_v58  ;;  %v9481_v30 = vadd.f32 %v1251_v50, %v9419_v29  ;;  %vm65_vm3 = vcmp.gt.f32.partialorder %v49_v24, 0.0 }
 0x2d1   :  { %v649_v49 = vpop.permute.xlu1 %648  ;;  %v9450_v42 = vpop.permute.xlu0 %3090  ;;  %12943 = vst [vmem:[#allocation93_spill] sm:$0xff] %v9473_v22 }
 0x2d2   :  { %12940 = vst [vmem:[#allocation90_spill] sm:$0xff] %v9450_v42  ;;  %v678_v20 = vadd.f32 %v9134_v38, %v649_v49  ;;  %12945 = vst [vmem:[#allocation95_spill] sm:$0xff] %v9481_v30 }
 0x2d3   :  { %1929 = vmax.xlane.f32.xlu1 %v9453_v19  ;;  %v707_v19 = vmax.f32 %v675_v46, %v691_v15 }
 0x2d4   :  { %v694_v59 = vmul.f32 0.2, %v678_v20  ;;  %1931 = vmax.xlane.f32.xlu0 %v9460_v58 }
 0x2d5   :  { %v9500_v46 = vadd.f32 %v707_v19, %v9437_v17  ;;  %v9513_v19 = vsel %vm65_vm3, 0.0, %v12900_v35 }
 0x2d6   :  { %v710_v51 = vmax.f32 %v678_v20, %v694_v59  ;;  %v9469_v42 = vpop.permute.xlu1 %1832  ;;  %v1202_v49 = vpop.permute.xlu0 %1201  ;;  %v1237_v59 = vmul.f32 0.2, %v1221_v41  ;;  %12950 = vst [vmem:[#allocation100_spill] sm:$0xff] %v9513_v19 }
 0x2d7   :  { %745 = vmax.xlane.f32.xlu1 %v9467_v27  ;;  %v1223_v54 = vadd.f32 %v9120_v47, %v1202_v49  ;;  %12948 = vst [vmem:[#allocation98_spill] sm:$0xff] %v9500_v46 }
 0x2d8   :  { %v9478_v6 = vadd.f32 %v710_v51, %v9473_v22  ;;  %v9491_v51 = vadd.f32 %v1890_v56, %v9419_v29  ;;  %v1253_v37 = vmax.f32 %v1221_v41, %v1237_v59  ;;  %v52_v56 = vld [vmem:[%s12631_s1 + $0x78] sm:$0xff] }
 0x2d9   :  { %vm68_vm4 = vcmp.gt.f32.partialorder %v52_v56, 0.0 }
 0x2da   :  { %12944 = vst [vmem:[#allocation94_spill] sm:$0xff] %v9478_v6  ;;  %755 = vmax.xlane.f32.xlu0 %v9478_v6  ;;  %12947 = vst [vmem:[#allocation97_spill] sm:$0xff] %v9491_v51  ;;  %v9504_v41 = vadd.f32 %v1253_v37, %v9473_v22  ;;  %v1859_v37 = vadd.f32 %v9149_v43, %v9434_v13 }
 0x2db   :  { %v9484_v20 = vpop.permute.xlu1 %3094  ;;  %1294 = vmax.xlane.f32.xlu1 %v9481_v30  ;;  %v9487_v58 = vpop.permute.xlu0 %2471 }
 0x2dc   :  { %12946 = vst [vmem:[#allocation96_spill] sm:$0xff] %v9484_v20  ;;  %v693_v20 = vmul.f32 0.2, %v677_v63  ;;  %12949 = vst [vmem:[#allocation99_spill] sm:$0xff] %v9504_v41  ;;  %v1875_v13 = vmul.f32 0.2, %v1859_v37 }
 0x2de   :  { %v709_v59 = vmax.f32 %v677_v63, %v693_v20 }
 0x2df   :  { %1933 = vmax.xlane.f32.xlu1 %v9491_v51  ;;  %v1239_v51 = vmul.f32 0.2, %v1223_v54 }
 0x2e0   :  { %v1190_v50 = vpop.permute.xlu1 %1189  ;;  %v654_v60 = vpop.permute.xlu0 %653 }
 0x2e1   :  { %v1220_v30 = vadd.f32 %v9120_v47, %v1190_v50  ;;  %v679_v50 = vadd.f32 %v9134_v38, %v654_v60  ;;  %v1255_v20 = vmax.f32 %v1223_v54, %v1239_v51  ;;  %v9526_v60 = vadd.f32 %v709_v59, %v9513_v19 }
 0x2e3   :  { %v1236_v15 = vmul.f32 0.2, %v1220_v30  ;;  %749 = vmax.xlane.f32.xlu1 %v9500_v46  ;;  %v695_v63 = vmul.f32 0.2, %v679_v50 }
 0x2e5   :  { %v1252_v49 = vmax.f32 %v1220_v30, %v1236_v15  ;;  %v9510_v32 = vpop.permute.xlu1 %2459  ;;  %v51_v30 = vld [vmem:[%s12631_s1 + $0x70] sm:$0xff]  ;;  %v1837_v15 = vpop.permute.xlu0 %1836  ;;  %v711_v6 = vmax.f32 %v679_v50, %v695_v63  ;;  %s8559_s1 = smov 112  }
 0x2e6   :  { %vm67_vm5 = vcmp.gt.f32.partialorder %v51_v30, 0.0  ;;  %v1861_v54 = vadd.f32 %v9149_v43, %v1837_v15  ;;  %v2480_v15 = vadd.f32 %v8928_v25, %v9064_v21 }
 0x2e7   :  { %1298 = vmax.xlane.f32.xlu1 %v9504_v41  ;;  %v9517_v24 = vadd.f32 %v1252_v49, %v9513_v19  ;;  %v9529_v49 = vsel %vm68_vm4, 0.0, %v12900_v35  ;;  %v9538_v59 = vsel %vm67_vm5, 0.0, %v12900_v35 }
 0x2e8   :  { %12952 = vst [vmem:[#allocation102_spill] sm:$0xff] %v9529_v49  ;;  %12954 = vst [vmem:[#allocation104_spill] sm:$0xff] %v9538_v59  ;;  %v1877_v30 = vmul.f32 0.2, %v1861_v54  ;;  %v9547_v63 = vadd.f32 %v711_v6, %v9538_v59  ;;  %v1860_v6 = vadd.f32 %v9149_v43, %v9469_v42  ;;  %v2484_v42 = vadd.f32 %v8928_v25, %v9221_v34 }
 0x2e9   :  { %12951 = vst [vmem:[#allocation101_spill] sm:$0xff] %v9517_v24  ;;  %1296 = vmax.xlane.f32.xlu0 %v9517_v24  ;;  %v9535_v24 = vadd.f32 %v1255_v20, %v9529_v49 }
 0x2ea   :  { %v659_v41 = vpop.permute.xlu1 %658 }
 0x2eb   :  { %v680_v56 = vadd.f32 %v9134_v38, %v659_v41  ;;  %753 = vmax.xlane.f32.xlu1 %v9526_v60  ;;  %12953 = vst [vmem:[#allocation103_spill] sm:$0xff] %v9535_v24  ;;  %v2478_v38 = vadd.f32 %v8928_v25, %v9048_v16  ;;  %v1891_v41 = vmax.f32 %v1859_v37, %v1875_v13  ;;  %v2496_v37 = vmul.f32 0.2, %v2480_v15 }
 0x2ec   :  { %v2482_v13 = vadd.f32 %v8928_v25, %v9144_v40 }
 0x2ed   :  { %v696_v51 = vmul.f32 0.2, %v680_v56  ;;  %v2494_v20 = vmul.f32 0.2, %v2478_v38  ;;  %v9556_v16 = vadd.f32 %v1891_v41, %v9513_v19 }
 0x2ef   :  { %v712_v46 = vmax.f32 %v680_v56, %v696_v51  ;;  %v1841_v29 = vpop.permute.xlu1 %1840  ;;  %1302 = vmax.xlane.f32.xlu1 %v9535_v24  ;;  %v1893_v56 = vmax.f32 %v1861_v54, %v1877_v30  ;;  %12956 = vst [vmem:[#allocation106_spill] sm:$0xff] %v9556_v16  ;;  %v1876_v54 = vmul.f32 0.2, %v1860_v6  ;;  %v2498_v24 = vmul.f32 0.2, %v2482_v13 }
 0x2f0   :  { %v1862_v41 = vadd.f32 %v9149_v43, %v1841_v29  ;;  %v2500_v29 = vmul.f32 0.2, %v2484_v42 }
 0x2f1   :  { %v9544_v50 = vadd.f32 %v712_v46, %v9529_v49  ;;  %v2510_v46 = vmax.f32 %v2478_v38, %v2494_v20  ;;  %v1892_v20 = vmax.f32 %v1860_v6, %v1876_v54  ;;  %v2514_v43 = vmax.f32 %v2482_v13, %v2498_v24 }
 0x2f2   :  { %v2516_v24 = vmax.f32 %v2484_v42, %v2500_v29  ;;  %v2483_v54 = vadd.f32 %v8928_v25, %v9080_v31  ;;  %v2487_v29 = vadd.f32 %v8928_v25, %v9192_v52 }
 0x2f3   :  { %759 = vmax.xlane.f32.xlu0 %v9544_v50  ;;  %757 = vmax.xlane.f32.xlu1 %v9547_v63  ;;  %v9572_v38 = vadd.f32 %v2510_v46, %v9172_v45 }
 0x2f4   :  { %v9551_v35 = vpop.permute.xlu1 %3102 }
 0x2f5   :  { %12955 = vst [vmem:[#allocation105_spill] sm:$0xff] %v9551_v35  ;;  %v9564_v35 = vadd.f32 %v1893_v56, %v9538_v59  ;;  %12958 = vst [vmem:[#allocation108_spill] sm:$0xff] %v9572_v38  ;;  %v1878_v56 = vmul.f32 0.2, %v1862_v41 }
 0x2f7   :  { %1935 = vmax.xlane.f32.xlu1 %v9556_v16  ;;  %12957 = vst [vmem:[#allocation107_spill] sm:$0xff] %v9564_v35  ;;  %v2512_v16 = vmax.f32 %v2480_v15, %v2496_v37  ;;  %v2486_v15 = vadd.f32 %v8928_v25, %v9327_v39  ;;  %v1894_v6 = vmax.f32 %v1862_v41, %v1878_v56 }
 0x2f8   :  { %v9590_v37 = vadd.f32 %v1892_v20, %v9473_v22 }
 0x2f9   :  { %v1198_v51 = vpop.permute.xlu1 %1197  ;;  %v9583_v34 = vadd.f32 %v2512_v16, %v9212_v14  ;;  %v2502_v13 = vmul.f32 0.2, %v2486_v15 }
 0x2fa   :  { %v1222_v21 = vadd.f32 %v9120_v47, %v1198_v51  ;;  %v2479_v47 = vadd.f32 %v8928_v25, %v9014_v48  ;;  %v2481_v48 = vadd.f32 %v8928_v25, %v9054_v18  ;;  %12961 = vst [vmem:[#allocation111_spill] sm:$0xff] %v9590_v37  ;;  %v9600_v18 = vadd.f32 %v1894_v6, %v9529_v49 }
 0x2fb   :  { %1939 = vmax.xlane.f32.xlu1 %v9564_v35  ;;  %12960 = vst [vmem:[#allocation110_spill] sm:$0xff] %v9583_v34  ;;  %v2518_v41 = vmax.f32 %v2486_v15, %v2502_v13  ;;  %v12982_v35 = vld [vmem:[#allocation19_spill] sm:$0xff] }
 0x2fc   :  { %v1238_v30 = vmul.f32 0.2, %v1222_v21  ;;  %v2495_v46 = vmul.f32 0.2, %v2479_v47  ;;  %v2497_v16 = vmul.f32 0.2, %v2481_v48 }
 0x2fd   :  { %12963 = vst [vmem:[#allocation113_spill] sm:$0xff] %v9600_v18  ;;  %v9613_v31 = vadd.f32 %v2518_v41, %v9383_v12 }
 0x2fe   :  { %v1254_v40 = vmax.f32 %v1222_v21, %v1238_v30  ;;  %v9593_v21 = vadd.f32 %v2514_v43, %v9276_v44  ;;  %v2511_v39 = vmax.f32 %v2479_v47, %v2495_v46  ;;  %v9603_v30 = vadd.f32 %v2516_v24, %v9333_v3 }
 0x2ff   :  { %2542 = vmax.xlane.f32.xlu1 %v9572_v38  ;;  %v2513_v42 = vmax.f32 %v2481_v48, %v2497_v16  ;;  %v2485_v47 = vadd.f32 %v8928_v25, %v9117_v53  ;;  %12966 = vst [vmem:[#allocation116_spill] sm:$0xff] %v9613_v31  ;;  %v9623_v53 = vpop.permute.xlu0 %3098  ;;  %v2503_v48 = vmul.f32 0.2, %v2487_v29 }
 0x300   :  { %v9578_v51 = vadd.f32 %v1254_v40, %v9538_v59  ;;  %12962 = vst [vmem:[#allocation112_spill] sm:$0xff] %v9593_v21  ;;  %12964 = vst [vmem:[#allocation114_spill] sm:$0xff] %v9603_v30  ;;  %v2499_v40 = vmul.f32 0.2, %v2483_v54  ;;  %v9610_v20 = vadd.f32 %v2511_v39, %v9157_v55 }
 0x301   :  { %v2501_v43 = vmul.f32 0.2, %v2485_v47  ;;  %v9620_v15 = vadd.f32 %v2513_v42, %v9198_v23  ;;  %12968 = vst [vmem:[#allocation118_spill] sm:$0xff] %v9623_v53  ;;  %v2519_v13 = vmax.f32 %v2487_v29, %v2503_v48 }
 0x302   :  { %12959 = vst [vmem:[#allocation109_spill] sm:$0xff] %v9578_v51  ;;  %1300 = vmax.xlane.f32.xlu0 %v9578_v51  ;;  %12965 = vst [vmem:[#allocation115_spill] sm:$0xff] %v9610_v20  ;;  %v2515_v56 = vmax.f32 %v2483_v54, %v2499_v40  ;;  %v13003_v51 = vld [vmem:[#allocation42_spill] sm:$0xff] }
 0x303   :  { %2546 = vmax.xlane.f32.xlu1 %v9583_v34  ;;  %12967 = vst [vmem:[#allocation117_spill] sm:$0xff] %v9620_v15  ;;  %v2517_v46 = vmax.f32 %v2485_v47, %v2501_v43  ;;  %v9636_v16 = vadd.f32 %v2519_v13, %v9367_v10 }
 0x304   :  { %v9626_v6 = vadd.f32 %v2515_v56, %v9257_v8  ;;  %v9645_v56 = vpop.permute.xlu1 %2467 }
 0x305   :  { %v9632_v39 = vadd.f32 %v2517_v46, %v9314_v33  ;;  %12971 = vst [vmem:[#allocation121_spill] sm:$0xff] %v9636_v16 }
 0x306   :  { %1937 = vmax.xlane.f32.xlu0 %v9590_v37  ;;  %12969 = vst [vmem:[#allocation119_spill] sm:$0xff] %v9626_v6  ;;  %v12988_v37 = vld [vmem:[#allocation23_spill] sm:$0xff] }
 0x307   :  { %2550 = vmax.xlane.f32.xlu1 %v9593_v21  ;;  %12970 = vst [vmem:[#allocation120_spill] sm:$0xff] %v9632_v39 }
 0x30a   :  { %1941 = vmax.xlane.f32.xlu0 %v9600_v18  ;;  %v12986_v18 = vld [vmem:[#allocation21_spill] sm:$0xff] }
 0x30b   :  { %2554 = vmax.xlane.f32.xlu1 %v9603_v30 }
 0x30e   :  { %2544 = vmax.xlane.f32.xlu0 %v9610_v20 }
 0x30f   :  { %2558 = vmax.xlane.f32.xlu1 %v9613_v31 }
 0x312   :  { %2548 = vmax.xlane.f32.xlu0 %v9620_v15  ;;  %v12981_v15 = vmov 1065369472  }
 0x316   :  { %2552 = vmax.xlane.f32.xlu0 %v9626_v6 }
 0x317   :  { %v9629_v24 = vpop.xlane.xlu0 %1274 }
 0x31a   :  { %2556 = vmax.xlane.f32.xlu0 %v9632_v39 }
 0x31b   :  { %v730_v52 = vpop.xlane.xlu0 %729 }
 0x31c   :  { %v761_v40 = vsub.f32 %v9182_v36, %v730_v52 }
 0x31e   :  { %2560 = vmax.xlane.f32.xlu0 %v9636_v16  ;;  %v777_v46 = vmul.f32 1.442695, %v761_v40  ;;  %v12975_v40 = vld [vmem:[#allocation24_spill] sm:$0xff] }
 0x31f   :  { %v1912_v54 = vpop.xlane.xlu0 %1911 }
 0x320   :  { %3677 = vperm.xlu1 %7930, %v8832_v61   ;;  %v1943_v13 = vsub.f32 %v9190_v26, %v1912_v54  ;;  %7938 = vpow2.f32 %v777_v46 }
 0x323   :  { %v736_v41 = vpop.xlane.xlu0 %735 }
 0x324   :  { %3681 = vperm.xlu1 %7930, %v8842_v2   ;;  %v764_v29 = vsub.f32 %v9204_v0, %v736_v41  ;;  %v12973_v0 = vld [vmem:[#allocation58_spill] sm:$0xff] }
 0x326   :  { %v783_v52 = vmul.f32 1.442695, %v764_v29  ;;  %v12977_v29 = vld [vmem:[#allocation15_spill] sm:$0xff] }
 0x327   :  { %v734_v42 = vpop.xlane.xlu0 %733 }
 0x328   :  { %3689 = vperm.xlu1 %7930, %v8848_v4   ;;  %v763_v43 = vsub.f32 %v9217_v1, %v734_v42  ;;  %v1959_v1 = vmul.f32 1.442695, %v1943_v13 }
 0x32a   :  { %v781_v31 = vmul.f32 1.442695, %v763_v43  ;;  %v7939_v46 = vpop.eup %7938 }
 0x32b   :  { %v9643_v47 = vpop.xlane.xlu0 %1276 }
 0x32c   :  { %3697 = vperm.xlu1 %7930, %v8856_v7   ;;  %7940 = vpow2.f32 %v781_v31 }
 0x32f   :  { %v9650_v48 = vpop.xlane.xlu0 %1915 }
 0x330   :  { %12972 = vst [vmem:[#allocation122_spill] sm:$0xff] %v9650_v48  ;;  %v732_v30 = vpop.xlane.xlu1 %731  ;;  %3705 = vperm.xlu1 %7930, %v8864_v9  }
 0x331   :  { %v762_v36 = vsub.f32 %v9252_v28, %v732_v30  ;;  %v12974_v30 = vld [vmem:[#allocation13_spill] sm:$0xff] }
 0x333   :  { %v779_v16 = vmul.f32 1.442695, %v762_v36  ;;  %v740_v39 = vpop.xlane.xlu0 %739 }
 0x334   :  { %v1914_v42 = vpop.xlane.xlu1 %1913  ;;  %3673 = vperm.xlu0 %7931, %v8834_v62   ;;  %3713 = vperm.xlu1 %7930, %v8872_v11  }
 0x335   :  { %7942 = vpow2.f32 %v779_v16  ;;  %v1944_v26 = vsub.f32 %v12973_v0, %v1914_v42  ;;  %v12978_v16 = vld [vmem:[#allocation26_spill] sm:$0xff]  ;;  %v12980_v0 = vld [vmem:[#allocation17_spill] sm:$0xff] }
 0x336   :  { %7944 = vpow2.f32 %v783_v52  ;;  %v7941_v13 = vpop.eup %7940 }
 0x337   :  { %v1961_v54 = vmul.f32 1.442695, %v1944_v26  ;;  %v9658_v41 = vpop.xlane.xlu0 %1280  ;;  %7946 = vpow2.f32 %v1959_v1 }
 0x338   :  { %v9660_v28 = vpop.xlane.xlu1 %1272  ;;  %3685 = vperm.xlu0 %7931, %v12974_v30   ;;  %3721 = vperm.xlu1 %7930, %v12975_v40  }
 0x339   :  { %7948 = vpow2.f32 %v1961_v54  ;;  %v8558_v54 = vmov 6  }
 0x33b   :  { %v9664_v31 = vpop.xlane.xlu0 %1919 }
 0x33c   :  { %12976 = vst [vmem:[#allocation58_spill] sm:$0xff] %v9664_v31  ;;  %v9666_v43 = vpop.xlane.xlu1 %1278  ;;  %3693 = vperm.xlu0 %7931, %v12977_v29   ;;  %3729 = vperm.xlu1 %7930, %v12978_v16   ;;  %v12989_v16 = vld [vmem:[#allocation25_spill] sm:$0xff] }
 0x33f   :  { %v7943_v36 = vpop.eup %7942  ;;  %v744_v52 = vpop.xlane.xlu0 %743 }
 0x340   :  { %v7945_v1 = vpop.eup %7944  ;;  %v9670_v42 = vpop.xlane.xlu1 %1917  ;;  %3701 = vperm.xlu0 %7931, %v12980_v0   ;;  %v9673_v26 = vpack.c.bf16 %v7943_v36, %v7939_v46  ;;  %7933 = vset.pattern.permute.xlu1 %v8558_v54 }
 0x341   :  { %12979 = vst [vmem:[#allocation123_spill] sm:$0xff] %v9670_v42  ;;  %v9675_v21 = vpack.c.bf16 %v7945_v1, %v7941_v13  ;;  %v7947_v34 = vpop.eup %7946  ;;  %v12984_v13 = vld [vmem:[#allocation57_spill] sm:$0xff] }
 0x342   :  { %7120 = vmatprep.mubr.bf16.mxu1 %v9673_v26  ;;  %v766_v36 = vsub.f32 %v12984_v13, %v740_v39 }
 0x343   :  { %v7949_v6 = vpop.eup %7948  ;;  %7121 = vmatmul.mubr.bf16.vlgmr.msra.gmra.mrb[16].mxu1 %v9675_v21  ;;  %v9685_v46 = vpop.xlane.xlu0 %1284 }
 0x344   :  { %7137 = vmatpush3.bf16.msra.mxu1 %v12981_v15  ;;  %v9680_v38 = vpop.xlane.xlu1 %1282  ;;  %3709 = vperm.xlu0 %7931, %v12982_v35   ;;  %v9683_v20 = vpack.c.bf16 %v7949_v6, %v7947_v34  ;;  %v787_v34 = vmul.f32 1.442695, %v766_v36  ;;  %v2488_v36 = vadd.f32 %v8928_v25, %v9432_v57  ;;  %v12992_v57 = vld [vmem:[#allocation86_spill] sm:$0xff] }
 0x345   :  { %7138 = vmatprep.subr.bf16.mxu1 %v12981_v15 }
 0x346   :  { %12983 = vst [vmem:[#allocation124_spill] sm:$0xff] %v9683_v20  ;;  %7248 = vmatprep.mubr.bf16.mxu0 %v9683_v20  ;;  %7950 = vpow2.f32 %v787_v34  ;;  %v2490_v34 = vadd.f32 %v8928_v25, %v9510_v32 }
 0x347   :  { %v9695_v53 = vpop.xlane.xlu0 %1923 }
 0x348   :  { %7139 = vmatpush3.bf16.msra.mxu1 %v12981_v15  ;;  %v9691_v1 = vpop.xlane.xlu1 %1921  ;;  %3717 = vperm.xlu0 %7931, %v12986_v18   ;;  %12987 = vst [vmem:[#allocation125_spill] sm:$0xff] %v9695_v53  ;;  %v12990_v53 = vld [vmem:[#allocation67_spill] sm:$0xff] }
 0x349   :  { %12985 = vst [vmem:[#allocation57_spill] sm:$0xff] %v9691_v1  ;;  %7140 = vmatprep.subr.bf16.mxu1 %v12981_v15  ;;  %v2506_v1 = vmul.f32 0.2, %v2490_v34 }
 0x34b   :  { %v748_v31 = vpop.xlane.xlu0 %747 }
 0x34c   :  { %7141 = vmatpush3.bf16.msra.mxu1 %v12981_v15  ;;  %v738_v6 = vpop.xlane.xlu1 %737  ;;  %3725 = vperm.xlu0 %7931, %v12988_v37   ;;  %v768_v37 = vsub.f32 %v12990_v53, %v744_v52  ;;  %v12993_v52 = vld [vmem:[#allocation81_spill] sm:$0xff] }
 0x34d   :  { %v765_v20 = vsub.f32 %v9378_v5, %v738_v6  ;;  %7142 = vmatprep.subr.bf16.mxu1 %v12981_v15 }
 0x34f   :  { %v785_v39 = vmul.f32 1.442695, %v765_v20  ;;  %v2504_v20 = vmul.f32 0.2, %v2488_v36  ;;  %v9715_v6 = vpop.xlane.xlu0 %1288 }
 0x350   :  { %7143 = vmatpush3.bf16.msra.mxu1 %v12981_v15  ;;  %v9702_v13 = vpop.xlane.xlu1 %1286  ;;  %3733 = vperm.xlu0 %7931, %v12989_v16   ;;  %v7951_v53 = vpop.eup %7950 }
 0x351   :  { %7952 = vpow2.f32 %v785_v39  ;;  %7144 = vmatprep.subr.bf16.mxu1 %v12981_v15  ;;  %v791_v39 = vmul.f32 1.442695, %v768_v37 }
 0x353   :  { %7954 = vpow2.f32 %v791_v39  ;;  %v9727_v7 = vpop.xlane.xlu0 %1927 }
 0x354   :  { %7145 = vmatpush3.bf16.msra.mxu1 %v12981_v15  ;;  %v9710_v5 = vpop.xlane.xlu1 %1925  ;;  %7932 = vset.pattern.permute.xlu0 %v8558_v54  ;;  %v2491_v54 = vadd.f32 %v8928_v25, %v12993_v52  ;;  %12994 = vst [vmem:[#allocation86_spill] sm:$0xff] %v9727_v7  ;;  %v12999_v52 = vld [vmem:[#allocation32_spill] sm:$0xff] }
 0x355   :  { %12991 = vst [vmem:[#allocation67_spill] sm:$0xff] %v9710_v5  ;;  %7146 = vmatprep.subr.bf16.mxu1 %v12981_v15  ;;  %v2520_v5 = vmax.f32 %v2488_v36, %v2504_v20  ;;  %v2522_v36 = vmax.f32 %v2490_v34, %v2506_v1  ;;  %v12996_v20 = vld [vmem:[#allocation76_spill] sm:$0xff] }
 0x356   :  { %v770_v39 = vsub.f32 %v12996_v20, %v748_v31  ;;  %v13001_v1 = vld [vmem:[#allocation28_spill] sm:$0xff] }
 0x357   :  { %v752_v31 = vpop.xlane.xlu0 %751 }
 0x358   :  { %7147 = vmatpush3.bf16.msra.mxu1 %v12981_v15  ;;  %v742_v11 = vpop.xlane.xlu1 %741  ;;  %v795_v20 = vmul.f32 1.442695, %v770_v39 }
 0x359   :  { %v767_v48 = vsub.f32 %v12992_v57, %v742_v11  ;;  %7148 = vmatprep.subr.bf16.mxu1 %v12981_v15  ;;  %v2507_v11 = vmul.f32 0.2, %v2491_v54  ;;  %v2493_v57 = vadd.f32 %v8928_v25, %v9487_v58  ;;  %v13000_v58 = vld [vmem:[#allocation40_spill] sm:$0xff] }
 0x35a   :  { %v3110_v34 = vadd.f32 %v13001_v1, %v13000_v58 }
 0x35b   :  { %v7953_v42 = vpop.eup %7952  ;;  %v789_v9 = vmul.f32 1.442695, %v767_v48  ;;  %v9734_v48 = vadd.f32 %v2520_v5, %v9437_v17  ;;  %v2523_v7 = vmax.f32 %v2491_v54, %v2507_v11  ;;  %v2509_v4 = vmul.f32 0.2, %v2493_v57 }
 0x35c   :  { %7149 = vmatpush3.bf16.msra.mxu1 %v12981_v15  ;;  %v9723_v32 = vpop.xlane.xlu1 %1290  ;;  %v9725_v37 = vpack.c.bf16 %v7951_v53, %v7953_v42  ;;  %v9747_v5 = vadd.f32 %v2522_v36, %v9513_v19  ;;  %v3126_v61 = vmul.f32 0.2, %v3110_v34  ;;  %v3112_v54 = vadd.f32 %v13001_v1, %v13003_v51 }
 0x35d   :  { %7956 = vpow2.f32 %v789_v9  ;;  %7150 = vmatprep.subr.bf16.mxu1 %v12981_v15  ;;  %12995 = vst [vmem:[#allocation81_spill] sm:$0xff] %v9734_v48  ;;  %v12998_v9 = vld [vmem:[#allocation62_spill] sm:$0xff]  ;;  %v7955_v30 = vpop.eup %7954  ;;  %v2525_v11 = vmax.f32 %v2493_v57, %v2509_v4  ;;  %v9756_v36 = vadd.f32 %v2523_v7, %v9473_v22  ;;  %v9758_v39 = vpop.xlane.xlu0 %1292 }
 0x35e   :  { %7124 = vmatprep.mubr.bf16.mxu1 %v9725_v37  ;;  %v2489_v53 = vadd.f32 %v8928_v25, %v12998_v9  ;;  %13002 = vst [vmem:[#allocation62_spill] sm:$0xff] %v9747_v5  ;;  %7958 = vpow2.f32 %v795_v20  ;;  %v3142_v4 = vmax.f32 %v3110_v34, %v3126_v61  ;;  %v3128_v7 = vmul.f32 0.2, %v3112_v54  ;;  %v13008_v20 = vld [vmem:[#allocation85_spill] sm:$0xff] }
 0x35f   :  { %13004 = vst [vmem:[#allocation32_spill] sm:$0xff] %v9756_v36  ;;  %v772_v22 = vsub.f32 %v13008_v20, %v752_v31 }
 0x360   :  { %7151 = vmatpush3.bf16.msra.mxu1 %v12981_v15  ;;  %v9738_v42 = vpop.xlane.xlu1 %1929  ;;  %2562 = vmax.xlane.f32.xlu1 %v9734_v48  ;;  %v2492_v48 = vadd.f32 %v8928_v25, %v9645_v56  ;;  %v13006_v56 = vld [vmem:[#allocation45_spill] sm:$0xff]  ;;  %v9787_v31 = vadd.f32 %v3142_v4, %v9157_v55 }
 0x361   :  { %12997 = vst [vmem:[#allocation76_spill] sm:$0xff] %v9738_v42  ;;  %7168 = vmatprep.subr.bf16.mxu1 %v12999_v52  ;;  %v2505_v42 = vmul.f32 0.2, %v2489_v53  ;;  %v3114_v57 = vadd.f32 %v13001_v1, %v13006_v56 }
 0x362   :  { %v2508_v51 = vmul.f32 0.2, %v2492_v48  ;;  %13015 = vst [vmem:[#allocation45_spill] sm:$0xff] %v9787_v31 }
 0x363   :  { %v3130_v56 = vmul.f32 0.2, %v3114_v57 }
 0x364   :  { %v746_v17 = vpop.xlane.xlu1 %745  ;;  %2566 = vmax.xlane.f32.xlu1 %v9747_v5  ;;  %v13005_v5 = vld [vmem:[#allocation41_spill] sm:$0xff]  ;;  %v2524_v61 = vmax.f32 %v2492_v48, %v2508_v51  ;;  %v13016_v51 = vld [vmem:[#allocation44_spill] sm:$0xff] }
 0x365   :  { %v769_v9 = vsub.f32 %v9467_v27, %v746_v17  ;;  %v3109_v12 = vadd.f32 %v13001_v1, %v13005_v5  ;;  %v2521_v27 = vmax.f32 %v2489_v53, %v2505_v42  ;;  %v9779_v42 = vpop.xlane.xlu0 %1931  ;;  %v13012_v53 = vld [vmem:[#allocation84_spill] sm:$0xff]  ;;  %v3146_v4 = vmax.f32 %v3114_v57, %v3130_v56 }
 0x366   :  { %13011 = vst [vmem:[#allocation42_spill] sm:$0xff] %v9779_v42  ;;  %v9795_v42 = vadd.f32 %v2524_v61, %v9538_v59 }
 0x367   :  { %v7957_v58 = vpop.eup %7956  ;;  %v793_v19 = vmul.f32 1.442695, %v769_v9  ;;  %v9771_v9 = vadd.f32 %v2525_v11, %v9529_v49  ;;  %v3125_v5 = vmul.f32 0.2, %v3109_v12  ;;  %v9782_v34 = vadd.f32 %v2521_v27, %v13012_v53  ;;  %v13014_v11 = vld [vmem:[#allocation50_spill] sm:$0xff] }
 0x368   :  { %v9762_v25 = vpop.xlane.xlu1 %1294  ;;  %2568 = vmax.xlane.f32.xlu1 %v9756_v36  ;;  %v9765_v17 = vpack.c.bf16 %v7955_v30, %v7957_v58  ;;  %v13010_v30 = vld [vmem:[#allocation43_spill] sm:$0xff]  ;;  %v3144_v58 = vmax.f32 %v3112_v54, %v3128_v7  ;;  %v3116_v49 = vadd.f32 %v13001_v1, %v13014_v11  ;;  %v3113_v27 = vadd.f32 %v13001_v1, %v13016_v51  ;;  %v13017_v54 = vld [vmem:[#allocation98_spill] sm:$0xff]  ;;  %v7959_v11 = vpop.eup %7958 }
 0x369   :  { %7960 = vpow2.f32 %v793_v19  ;;  %13007 = vst [vmem:[#allocation40_spill] sm:$0xff] %v9771_v9  ;;  %v3111_v19 = vadd.f32 %v13001_v1, %v13010_v30  ;;  %13013 = vst [vmem:[#allocation41_spill] sm:$0xff] %v9782_v34  ;;  %v3141_v20 = vmax.f32 %v3109_v12, %v3125_v5  ;;  %v756_v30 = vpop.xlane.xlu0 %755  ;;  %v13019_v51 = vld [vmem:[#allocation94_spill] sm:$0xff] }
 0x36a   :  { %7125 = vmatmul.mubr.bf16.gmra.mrb[20].mxu1 %v9765_v17  ;;  %v3132_v55 = vmul.f32 0.2, %v3116_v49  ;;  %v3129_v56 = vmul.f32 0.2, %v3113_v27 }
 0x36b   :  { %v3127_v48 = vmul.f32 0.2, %v3111_v19  ;;  %v9810_v57 = vadd.f32 %v3141_v20, %v9172_v45 }
 0x36c   :  { %v9774_v15 = vpop.xlane.xlu1 %1933  ;;  %2572 = vmax.xlane.f32.xlu1 %v9771_v9  ;;  %v799_v9 = vmul.f32 1.442695, %v772_v22  ;;  %v9800_v22 = vadd.f32 %v3144_v58, %v9198_v23  ;;  %v13020_v58 = vld [vmem:[#allocation47_spill] sm:$0xff]  ;;  %v3145_v20 = vmax.f32 %v3113_v27, %v3129_v56 }
 0x36d   :  { %13009 = vst [vmem:[#allocation28_spill] sm:$0xff] %v9774_v15  ;;  %v13018_v15 = vld [vmem:[#allocation61_spill] sm:$0xff] }
 0x36e   :  { %v3118_v12 = vadd.f32 %v13001_v1, %v13018_v15  ;;  %7962 = vpow2.f32 %v799_v9  ;;  %v3143_v15 = vmax.f32 %v3111_v19, %v3127_v48  ;;  %v9816_v9 = vadd.f32 %v3146_v4, %v9257_v8 }
 0x36f   :  { %2564 = vmax.xlane.f32.xlu0 %v9782_v34  ;;  %v774_v34 = vsub.f32 %v13019_v51, %v756_v30 }
 0x370   :  { %v750_v36 = vpop.xlane.xlu1 %749  ;;  %3175 = vmax.xlane.f32.xlu1 %v9787_v31  ;;  %v3134_v23 = vmul.f32 0.2, %v3118_v12 }
 0x371   :  { %v771_v7 = vsub.f32 %v13017_v54, %v750_v36  ;;  %v3115_v54 = vadd.f32 %v13001_v1, %v13020_v58  ;;  %v803_v30 = vmul.f32 1.442695, %v774_v34 }
 0x373   :  { %v7961_v5 = vpop.eup %7960  ;;  %v797_v31 = vmul.f32 1.442695, %v771_v7  ;;  %2570 = vmax.xlane.f32.xlu0 %v9795_v42  ;;  %v3148_v7 = vmax.f32 %v3116_v49, %v3132_v55  ;;  %v3131_v19 = vmul.f32 0.2, %v3115_v54  ;;  %v3150_v55 = vmax.f32 %v3118_v12, %v3134_v23 }
 0x374   :  { %v9804_v36 = vpop.xlane.xlu1 %1298  ;;  %3179 = vmax.xlane.f32.xlu1 %v9800_v22  ;;  %v9807_v61 = vpack.c.bf16 %v7959_v11, %v7961_v5  ;;  %v9822_v5 = vadd.f32 %v3143_v15, %v9212_v14 }
 0x375   :  { %7964 = vpow2.f32 %v797_v31  ;;  %v9825_v49 = vadd.f32 %v3148_v7, %v9314_v33  ;;  %v3147_v27 = vmax.f32 %v3115_v54, %v3131_v19  ;;  %v9837_v23 = vadd.f32 %v3150_v55, %v9367_v10 }
 0x376   :  { %7128 = vmatprep.mubr.bf16.mxu1 %v9807_v61  ;;  %7966 = vpow2.f32 %v803_v30  ;;  %v9828_v4 = vpop.xlane.xlu0 %1296 }
 0x377   :  { %3173 = vmax.xlane.f32.xlu0 %v9810_v57  ;;  %v9844_v30 = vadd.f32 %v3147_v27, %v9333_v3  ;;  %v13022_v27 = vld [vmem:[#allocation63_spill] sm:$0xff] }
 0x378   :  { %v754_v11 = vpop.xlane.xlu1 %753  ;;  %3183 = vmax.xlane.f32.xlu1 %v9816_v9  ;;  %v7963_v51 = vpop.eup %7962 }
 0x379   :  { %v773_v48 = vsub.f32 %v9526_v60, %v754_v11  ;;  %v9834_v60 = vadd.f32 %v3145_v20, %v9276_v44 }
 0x37b   :  { %v801_v31 = vmul.f32 1.442695, %v773_v48  ;;  %3177 = vmax.xlane.f32.xlu0 %v9822_v5 }
 0x37c   :  { %v9830_v34 = vpop.xlane.xlu1 %1302  ;;  %3187 = vmax.xlane.f32.xlu1 %v9825_v49 }
 0x37d   :  { %7968 = vpow2.f32 %v801_v31 }
 0x37f   :  { %v7965_v12 = vpop.eup %7964  ;;  %3181 = vmax.xlane.f32.xlu0 %v9834_v60 }
 0x380   :  { %v758_v15 = vpop.xlane.xlu1 %757  ;;  %3191 = vmax.xlane.f32.xlu1 %v9837_v23  ;;  %v760_v56 = vpop.xlane.xlu0 %759  ;;  %v814_v58 = vpack.c.bf16 %v7963_v51, %v7965_v12  ;;  %v1304_v12 = vsub.f32 %v13022_v27, %v9660_v28 }
 0x381   :  { %v775_v7 = vsub.f32 %v9547_v63, %v758_v15  ;;  %v776_v54 = vsub.f32 %v9544_v50, %v760_v56  ;;  %v7967_v19 = vpop.eup %7966  ;;  %v13021_v50 = vld [vmem:[#allocation3_spill] sm:$0xff]  ;;  %v13023_v15 = vld [vmem:[#allocation33_spill] sm:$0xff]  ;;  %v13025_v56 = vld [vmem:[#allocation48_spill] sm:$0xff] }
 0x382   :  { %7129 = vmatmul.mubr.bf16.gmra.mrb[24].mxu1 %v814_v58 }
 0x383   :  { %v805_v11 = vmul.f32 1.442695, %v775_v7  ;;  %v807_v20 = vmul.f32 1.442695, %v776_v54  ;;  %3185 = vmax.xlane.f32.xlu0 %v9844_v30  ;;  %v1305_v7 = vsub.f32 %v13025_v56, %v9629_v24  ;;  %v13028_v24 = vld [vmem:[#allocation71_spill] sm:$0xff] }
 0x384   :  { %v13033_v56 = vld [vmem:[#allocation79_spill] sm:$0xff] }
 0x385   :  { %7970 = vpow2.f32 %v805_v11  ;;  %v1322_v28 = vmul.f32 1.442695, %v1305_v7  ;;  %v1311_v7 = vsub.f32 %v13033_v56, %v9702_v13 }
 0x386   :  { %7972 = vpow2.f32 %v807_v20  ;;  %v1309_v20 = vsub.f32 %v13028_v24, %v9680_v38  ;;  %v13032_v38 = vld [vmem:[#allocation36_spill] sm:$0xff]  ;;  %v13037_v24 = vld [vmem:[#allocation54_spill] sm:$0xff] }
 0x387   :  { %v7969_v48 = vpop.eup %7968  ;;  %v3117_v13 = vadd.f32 %v13001_v1, %v13037_v24 }
 0x388   :  { %v815_v55 = vpack.c.bf16 %v7967_v19, %v7969_v48  ;;  %v13029_v19 = vld [vmem:[#allocation35_spill] sm:$0xff]  ;;  %v13030_v48 = vld [vmem:[#allocation53_spill] sm:$0xff] }
 0x38a   :  { %7132 = vmatprep.mubr.bf16.mxu1 %v815_v55 }
 0x38f   :  { %v7971_v31 = vpop.eup %7970  ;;  %v9867_v54 = vpop.xlane.xlu0 %1300 }
 0x390   :  { %v7973_v51 = vpop.eup %7972 }
 0x391   :  { %4304 = vperm.xlu1 %7933, %v8834_v62   ;;  %v9848_v63 = vpack.c.bf16 %v7973_v51, %v7971_v31  ;;  %v1306_v31 = vsub.f32 %v13030_v48, %v9643_v47  ;;  %v1334_v48 = vmul.f32 1.442695, %v1311_v7 }
 0x393   :  { %7133 = vmatmul.mubr.bf16.gmra.mrb[28].mxu1 %v9848_v63  ;;  %v9882_v51 = vpop.xlane.xlu0 %1937 }
 0x394   :  { %7152 = vmatprep.mubr.bf16.mxu1 %v9673_v26  ;;  %v13024_v26 = vld [vmem:[#allocation4_spill] sm:$0xff] }
 0x395   :  { %4312 = vperm.xlu1 %7933, %v8842_v2  }
 0x399   :  { %1999 = vrot.lane.b32.xlu0 %v13021_v50, %s8559_s1  ;;  %4324 = vperm.xlu1 %7933, %v12977_v29   ;;  %v13063_v29 = vld [vmem:[#allocation122_spill] sm:$0xff] }
 0x39b   :  { %7153 = vmatmul.mubr.bf16.vlgmr.msra.gmra.mrb[32].mxu1 %v9675_v21  ;;  %v1320_v21 = vmul.f32 1.442695, %v1304_v12  ;;  %v9888_v12 = vpop.xlane.xlu1 %1935 }
 0x39c   :  { %7169 = vmatpush3.bf16.msra.mxu1 %v12999_v52  ;;  %7156 = vmatprep.mubr.bf16.mxu1 %v9725_v37  ;;  %v13026_v52 = vld [vmem:[#allocation34_spill] sm:$0xff]  ;;  %v13027_v37 = vld [vmem:[#allocation65_spill] sm:$0xff] }
 0x39d   :  { %7170 = vmatprep.subr.bf16.mxu1 %v13023_v15  ;;  %2001 = vrot.lane.b32.xlu0 %v13024_v26, %s8559_s1  ;;  %v1307_v11 = vsub.f32 %v13027_v37, %v9666_v43  ;;  %7974 = vpow2.f32 %v1320_v21  ;;  %v13031_v43 = vld [vmem:[#allocation60_spill] sm:$0xff]  ;;  %v9894_v21 = vpop.xlane.xlu0 %1941  ;;  %v13036_v37 = vld [vmem:[#allocation70_spill] sm:$0xff] }
 0x39e   :  { %4332 = vperm.xlu1 %7933, %v12980_v0   ;;  %7976 = vpow2.f32 %v1322_v28  ;;  %v13035_v28 = vld [vmem:[#allocation37_spill] sm:$0xff] }
 0x39f   :  { %v1326_v27 = vmul.f32 1.442695, %v1307_v11  ;;  %v1310_v11 = vsub.f32 %v13036_v37, %v9685_v46 }
 0x3a0   :  { %7171 = vmatpush3.bf16.msra.mxu1 %v13023_v15  ;;  %v1324_v15 = vmul.f32 1.442695, %v1306_v31 }
 0x3a1   :  { %7172 = vmatprep.subr.bf16.mxu1 %v13026_v52  ;;  %7978 = vpow2.f32 %v1326_v27  ;;  %v1332_v46 = vmul.f32 1.442695, %v1310_v11 }
 0x3a2   :  { %4340 = vperm.xlu1 %7933, %v12982_v35   ;;  %v13061_v35 = vld [vmem:[#allocation74_spill] sm:$0xff] }
 0x3a3   :  { %7157 = vmatmul.mubr.bf16.gmra.mrb[36].mxu1 %v9765_v17  ;;  %v1308_v17 = vsub.f32 %v13031_v43, %v9658_v41  ;;  %v13034_v41 = vld [vmem:[#allocation88_spill] sm:$0xff]  ;;  %v13039_v43 = vld [vmem:[#allocation38_spill] sm:$0xff] }
 0x3a4   :  { %7173 = vmatpush3.bf16.msra.mxu1 %v13026_v52  ;;  %7160 = vmatprep.mubr.bf16.mxu1 %v9807_v61  ;;  %v1330_v61 = vmul.f32 1.442695, %v1309_v20  ;;  %v1313_v52 = vsub.f32 %v13034_v41, %v9723_v32  ;;  %v13038_v20 = vld [vmem:[#allocation78_spill] sm:$0xff]  ;;  %v13042_v41 = vld [vmem:[#allocation39_spill] sm:$0xff] }
 0x3a5   :  { %7174 = vmatprep.subr.bf16.mxu1 %v13029_v19  ;;  %v1328_v47 = vmul.f32 1.442695, %v1308_v17  ;;  %v9911_v17 = vpop.xlane.xlu0 %2544 }
 0x3a6   :  { %4348 = vperm.xlu1 %7933, %v12986_v18   ;;  %7980 = vpow2.f32 %v1330_v61  ;;  %v1338_v31 = vmul.f32 1.442695, %v1313_v52  ;;  %v3133_v61 = vmul.f32 0.2, %v3117_v13 }
 0x3a7   :  { %7982 = vpow2.f32 %v1324_v15 }
 0x3a8   :  { %7175 = vmatpush3.bf16.msra.mxu1 %v13029_v19  ;;  %7984 = vpow2.f32 %v1328_v47  ;;  %v9907_v19 = vpop.xlane.xlu1 %1939  ;;  %v13041_v47 = vld [vmem:[#allocation101_spill] sm:$0xff]  ;;  %v3149_v11 = vmax.f32 %v3117_v13, %v3133_v61 }
 0x3a9   :  { %7176 = vmatprep.subr.bf16.mxu1 %v13032_v38  ;;  %7986 = vpow2.f32 %v1334_v48  ;;  %v1316_v56 = vsub.f32 %v13041_v47, %v9828_v4  ;;  %v13048_v47 = vld [vmem:[#allocation103_spill] sm:$0xff] }
 0x3aa   :  { %4352 = vperm.xlu1 %7933, %v12975_v40   ;;  %7988 = vpow2.f32 %v1338_v31  ;;  %v13045_v31 = vmov 1065369472  }
 0x3ab   :  { %7161 = vmatmul.mubr.bf16.gmra.mrb[40].mxu1 %v814_v58  ;;  %v7975_v58 = vpop.eup %7974  ;;  %7990 = vpow2.f32 %v1332_v46  ;;  %v1344_v48 = vmul.f32 1.442695, %v1316_v56  ;;  %v1319_v56 = vsub.f32 %v13048_v47, %v9830_v34 }
 0x3ac   :  { %7177 = vmatpush3.bf16.msra.mxu1 %v13032_v38  ;;  %7164 = vmatprep.mubr.bf16.mxu1 %v815_v55  ;;  %v1312_v55 = vsub.f32 %v13038_v20, %v9715_v6  ;;  %v7977_v32 = vpop.eup %7976  ;;  %v13040_v6 = vld [vmem:[#allocation95_spill] sm:$0xff]  ;;  %v9922_v7 = vpop.xlane.xlu1 %2542 }
 0x3ad   :  { %7178 = vmatprep.subr.bf16.mxu1 %v13035_v28  ;;  %v9913_v27 = vpack.c.bf16 %v7977_v32, %v7975_v58  ;;  %v1315_v15 = vsub.f32 %v13040_v6, %v9762_v25  ;;  %v7979_v52 = vpop.eup %7978  ;;  %v13044_v25 = vld [vmem:[#allocation99_spill] sm:$0xff] }
 0x3ae   :  { %4364 = vperm.xlu1 %7933, %v12989_v16   ;;  %v1336_v38 = vmul.f32 1.442695, %v1312_v55  ;;  %v1317_v58 = vsub.f32 %v13044_v25, %v9804_v36  ;;  %v9929_v55 = vpop.xlane.xlu0 %2548  ;;  %v13046_v36 = vld [vmem:[#allocation77_spill] sm:$0xff]  ;;  %v1350_v25 = vmul.f32 1.442695, %v1319_v56  ;;  %v13059_v16 = vld [vmem:[#allocation68_spill] sm:$0xff] }
 0x3af   :  { %v1342_v20 = vmul.f32 1.442695, %v1315_v15  ;;  %v9941_v61 = vadd.f32 %v3149_v11, %v13046_v36 }
 0x3b0   :  { %7179 = vmatpush3.bf16.msra.mxu1 %v13035_v28  ;;  %v7981_v37 = vpop.eup %7980  ;;  %7992 = vpow2.f32 %v1336_v38  ;;  %v1346_v13 = vmul.f32 1.442695, %v1317_v58  ;;  %v9937_v46 = vpop.xlane.xlu1 %2546  ;;  %v13047_v38 = vld [vmem:[#allocation109_spill] sm:$0xff] }
 0x3b1   :  { %7180 = vmatprep.subr.bf16.mxu1 %v13039_v43  ;;  %v7983_v24 = vpop.eup %7982  ;;  %7994 = vpow2.f32 %v1342_v20  ;;  %v1318_v6 = vsub.f32 %v13047_v38, %v9867_v54 }
 0x3b2   :  { %v7985_v4 = vpop.eup %7984  ;;  %v9932_v32 = vpack.c.bf16 %v7979_v52, %v7983_v24  ;;  %7996 = vpow2.f32 %v1344_v48  ;;  %v13049_v24 = vld [vmem:[#allocation80_spill] sm:$0xff] }
 0x3b3   :  { %7165 = vmatmul.mubr.bf16.gmra.mrb[44].mxu1 %v9848_v63  ;;  %v13043_v63 = vld [vmem:[#allocation89_spill] sm:$0xff]  ;;  %v7987_v15 = vpop.eup %7986  ;;  %v1348_v54 = vmul.f32 1.442695, %v1318_v6  ;;  %v3120_v34 = vadd.f32 %v13001_v1, %v13049_v24 }
 0x3b4   :  { %7181 = vmatpush3.bf16.msra.mxu1 %v13039_v43  ;;  %7184 = vmatprep.mubr.bf16.mxu1 %v9913_v27  ;;  %v1314_v28 = vsub.f32 %v13043_v63, %v9758_v39  ;;  %v9935_v39 = vpack.c.bf16 %v7981_v37, %v7985_v4  ;;  %v7989_v52 = vpop.eup %7988  ;;  %v9954_v37 = vpop.xlane.xlu1 %2550 }
 0x3b5   :  { %7182 = vmatprep.subr.bf16.mxu1 %v13042_v41  ;;  %v7991_v63 = vpop.eup %7990  ;;  %v3136_v38 = vmul.f32 0.2, %v3120_v34 }
 0x3b6   :  { %v1340_v43 = vmul.f32 1.442695, %v1314_v28  ;;  %v1355_v11 = vpack.c.bf16 %v7987_v15, %v7991_v63 }
 0x3b8   :  { %7183 = vmatpush3.bf16.msra.mxu1 %v13042_v41  ;;  %7998 = vpow2.f32 %v1340_v43  ;;  %v9951_v41 = vpop.xlane.xlu0 %2552  ;;  %v9963_v43 = vpop.xlane.xlu1 %2554 }
 0x3b9   :  { %7200 = vmatprep.subr.bf16.mxu1 %v13045_v31  ;;  %8000 = vpow2.f32 %v1346_v13 }
 0x3ba   :  { %v7993_v28 = vpop.eup %7992  ;;  %8002 = vpow2.f32 %v1348_v54 }
 0x3bb   :  { %7185 = vmatmul.mubr.bf16.vlgmr.msra.gmra.mrb[48].mxu1 %v9932_v32  ;;  %v1356_v58 = vpack.c.bf16 %v7989_v52, %v7993_v28  ;;  %v7995_v4 = vpop.eup %7994  ;;  %8004 = vpow2.f32 %v1350_v25  ;;  %v3152_v52 = vmax.f32 %v3120_v34, %v3136_v38  ;;  %v13051_v38 = vld [vmem:[#allocation13_spill] sm:$0xff] }
 0x3bc   :  { %7188 = vmatprep.mubr.bf16.mxu1 %v9935_v39  ;;  %7201 = vmatpush3.bf16.msra.mxu1 %v13045_v31  ;;  %v9959_v20 = vpop.xlane.xlu0 %2556  ;;  %v7997_v48 = vpop.eup %7996 }
 0x3bd   :  { %3189 = vmax.xlane.f32.xlu0 %v9941_v61  ;;  %7202 = vmatprep.subr.bf16.mxu1 %v13045_v31  ;;  %v9970_v63 = vpop.xlane.xlu1 %2558  ;;  %v9977_v24 = vadd.f32 %v3152_v52, %v13012_v53 }
 0x3c0   :  { %7203 = vmatpush3.bf16.msra.mxu1 %v13045_v31  ;;  %v9967_v47 = vpop.xlane.xlu0 %2560 }
 0x3c1   :  { %7204 = vmatprep.subr.bf16.mxu1 %v13045_v31  ;;  %v9983_v34 = vpop.permute.xlu1 %3677 }
 0x3c2   :  { %v7999_v13 = vpop.eup %7998 }
 0x3c3   :  { %7189 = vmatmul.mubr.bf16.gmra.mrb[52].mxu1 %v1355_v11  ;;  %v8001_v6 = vpop.eup %8000  ;;  %v1357_v15 = vpack.c.bf16 %v7995_v4, %v7999_v13 }
 0x3c4   :  { %7192 = vmatprep.mubr.bf16.mxu1 %v1356_v58  ;;  %7205 = vmatpush3.bf16.msra.mxu1 %v13045_v31  ;;  %v1358_v56 = vpack.c.bf16 %v8001_v6, %v7997_v48  ;;  %v8003_v54 = vpop.eup %8002  ;;  %v9973_v28 = vpop.permute.xlu0 %3673  ;;  %v13050_v48 = vld [vmem:[#allocation11_spill] sm:$0xff] }
 0x3c5   :  { %7206 = vmatprep.subr.bf16.mxu1 %v13045_v31  ;;  %v8005_v25 = vpop.eup %8004  ;;  %v9994_v6 = vpop.permute.xlu1 %3681 }
 0x3c6   :  { %v9979_v4 = vpack.c.bf16 %v8005_v25, %v8003_v54  ;;  %v13053_v54 = vld [vmem:[#allocation16_spill] sm:$0xff]  ;;  %v13054_v25 = vld [vmem:[#allocation18_spill] sm:$0xff] }
 0x3c8   :  { %7207 = vmatpush3.bf16.msra.mxu1 %v13045_v31  ;;  %v9987_v13 = vpop.permute.xlu0 %3685 }
 0x3c9   :  { %7208 = vmatprep.subr.bf16.mxu1 %v13045_v31 }
 0x3cb   :  { %7193 = vmatmul.mubr.bf16.gmra.mrb[56].mxu1 %v1357_v15 }
 0x3cc   :  { %7196 = vmatprep.mubr.bf16.mxu1 %v1358_v56  ;;  %7209 = vmatpush3.bf16.msra.mxu1 %v13045_v31  ;;  %v9997_v52 = vpop.permute.xlu0 %3693 }
 0x3cd   :  { %7210 = vmatprep.subr.bf16.mxu1 %v13045_v31  ;;  %13052 = vst [vmem:[#allocation85_spill] sm:$0xff] %v9997_v52 }
 0x3d0   :  { %7211 = vmatpush3.bf16.msra.mxu1 %v13045_v31  ;;  %v10007_v2 = vpop.permute.xlu0 %3701 }
 0x3d1   :  { %7212 = vmatprep.subr.bf16.mxu1 %v13045_v31  ;;  %13055 = vst [vmem:[#allocation43_spill] sm:$0xff] %v10007_v2 }
 0x3d2   :  { %3195 = vmax.xlane.f32.xlu1 %v9977_v24 }
 0x3d3   :  { %4308 = vperm.xlu0 %7932, %v13050_v48   ;;  %7197 = vmatmul.mubr.bf16.gmra.mrb[60].mxu1 %v9979_v4  ;;  %v13056_v48 = vld [vmem:[#allocation6_spill] sm:$0xff] }
 0x3d4   :  { %7213 = vmatpush3.bf16.msra.mxu1 %v13045_v31  ;;  %7216 = vmatprep.mubr.bf16.mxu1 %v9913_v27  ;;  %v10004_v27 = vpop.permute.xlu1 %3689  ;;  %v10021_v0 = vpop.permute.xlu0 %3709 }
 0x3d5   :  { %7214 = vmatprep.subr.bf16.mxu1 %v13045_v31  ;;  %13062 = vst [vmem:[#allocation50_spill] sm:$0xff] %v10021_v0 }
 0x3d7   :  { %4316 = vperm.xlu0 %7932, %v13051_v38   ;;  %v13067_v38 = vld [vmem:[#allocation64_spill] sm:$0xff] }
 0x3d8   :  { %7215 = vmatpush3.bf16.msra.mxu1 %v13045_v31  ;;  %v10016_v18 = vpop.permute.xlu1 %3697  ;;  %v10034_v50 = vpop.permute.xlu0 %3717 }
 0x3d9   :  { %7264 = vmatprep.subr.bf16.mxu1 %v13045_v31 }
 0x3db   :  { %4320 = vperm.xlu0 %7932, %v13053_v54   ;;  %7217 = vmatmul.mubr.bf16.vlgmr.msra.gmra.mrb[64].mxu1 %v9932_v32  ;;  %v13057_v32 = vld [vmem:[#allocation20_spill] sm:$0xff] }
 0x3dc   :  { %7220 = vmatprep.mubr.bf16.mxu1 %v9935_v39  ;;  %7265 = vmatpush3.bf16.msra.mxu1 %v13045_v31  ;;  %v13058_v39 = vld [vmem:[#allocation123_spill] sm:$0xff] }
 0x3dd   :  { %7266 = vmatprep.subr.bf16.mxu1 %v13045_v31  ;;  %v1946_v40 = vsub.f32 %v13059_v16, %v13058_v39 }
 0x3df   :  { %4328 = vperm.xlu0 %7932, %v13054_v25   ;;  %v13060_v25 = vld [vmem:[#allocation57_spill] sm:$0xff]  ;;  %v1965_v39 = vmul.f32 1.442695, %v1946_v40  ;;  %v13072_v40 = vld [vmem:[#allocation91_spill] sm:$0xff] }
 0x3e0   :  { %7267 = vmatpush3.bf16.msra.mxu1 %v13045_v31  ;;  %v1948_v10 = vsub.f32 %v13061_v35, %v13060_v25  ;;  %v10031_v35 = vpop.permute.xlu1 %3705  ;;  %v13068_v25 = vld [vmem:[#allocation23_spill] sm:$0xff] }
 0x3e1   :  { %7268 = vmatprep.subr.bf16.mxu1 %v13045_v31  ;;  %8006 = vpow2.f32 %v1965_v39  ;;  %v13077_v39 = vld [vmem:[#allocation82_spill] sm:$0xff] }
 0x3e3   :  { %2005 = vrot.lane.b32.xlu1 %v13056_v48, %s8559_s1  ;;  %4336 = vperm.xlu0 %7932, %v13057_v32   ;;  %v13064_v48 = vld [vmem:[#allocation55_spill] sm:$0xff]  ;;  %v13065_v32 = vld [vmem:[#allocation22_spill] sm:$0xff] }
 0x3e4   :  { %7221 = vmatmul.mubr.bf16.gmra.mrb[68].mxu1 %v1355_v11  ;;  %v1945_v54 = vsub.f32 %v13064_v48, %v13063_v29  ;;  %v13066_v11 = vld [vmem:[#allocation58_spill] sm:$0xff]  ;;  %v13069_v29 = vld [vmem:[#allocation67_spill] sm:$0xff] }
 0x3e5   :  { %7224 = vmatprep.mubr.bf16.mxu1 %v1356_v58  ;;  %7269 = vmatpush3.bf16.msra.mxu1 %v13045_v31  ;;  %v1947_v16 = vsub.f32 %v13067_v38, %v13066_v11  ;;  %v1969_v58 = vmul.f32 1.442695, %v1948_v10  ;;  %v13070_v48 = vld [vmem:[#allocation83_spill] sm:$0xff]  ;;  %v13071_v10 = vld [vmem:[#allocation76_spill] sm:$0xff]  ;;  %v13074_v11 = vld [vmem:[#allocation73_spill] sm:$0xff] }
 0x3e6   :  { %7270 = vmatprep.subr.bf16.mxu1 %v13045_v31  ;;  %v1963_v62 = vmul.f32 1.442695, %v1945_v54  ;;  %v1952_v38 = vsub.f32 %v13072_v40, %v13071_v10  ;;  %v13073_v54 = vld [vmem:[#allocation125_spill] sm:$0xff]  ;;  %v13080_v40 = vld [vmem:[#allocation28_spill] sm:$0xff] }
 0x3e7   :  { %4344 = vperm.xlu0 %7932, %v13065_v32   ;;  %v1967_v0 = vmul.f32 1.442695, %v1947_v16  ;;  %v1950_v32 = vsub.f32 %v13070_v48, %v13069_v29  ;;  %8008 = vpow2.f32 %v1969_v58  ;;  %v1949_v16 = vsub.f32 %v13074_v11, %v13073_v54  ;;  %v10050_v48 = vpop.permute.xlu0 %3725  ;;  %v13083_v11 = vld [vmem:[#allocation111_spill] sm:$0xff] }
 0x3e8   :  { %8010 = vpow2.f32 %v1963_v62  ;;  %v1977_v58 = vmul.f32 1.442695, %v1952_v38  ;;  %13079 = vst [vmem:[#allocation98_spill] sm:$0xff] %v10050_v48  ;;  %v1956_v38 = vsub.f32 %v13083_v11, %v9882_v51 }
 0x3e9   :  { %7271 = vmatpush3.bf16.msra.mxu1 %v13045_v31  ;;  %8012 = vpow2.f32 %v1967_v0  ;;  %v1973_v29 = vmul.f32 1.442695, %v1950_v32  ;;  %v1971_v62 = vmul.f32 1.442695, %v1949_v16  ;;  %v13081_v0 = vld [vmem:[#allocation97_spill] sm:$0xff]  ;;  %v13082_v32 = vld [vmem:[#allocation124_spill] sm:$0xff] }
 0x3ea   :  { %7272 = vmatprep.subr.bf16.mxu1 %v13045_v31  ;;  %v1954_v54 = vsub.f32 %v13081_v0, %v13080_v40  ;;  %v13084_v16 = vld [vmem:[#allocation42_spill] sm:$0xff]  ;;  %v1985_v48 = vmul.f32 1.442695, %v1956_v38 }
 0x3eb   :  { %4356 = vperm.xlu0 %7932, %v13068_v25   ;;  %v13075_v25 = vld [vmem:[#allocation26_spill] sm:$0xff]  ;;  %8014 = vpow2.f32 %v1973_v29 }
 0x3ec   :  { %7225 = vmatmul.mubr.bf16.gmra.mrb[72].mxu1 %v1357_v15  ;;  %v13076_v15 = vld [vmem:[#allocation86_spill] sm:$0xff]  ;;  %8016 = vpow2.f32 %v1977_v58  ;;  %v1981_v11 = vmul.f32 1.442695, %v1954_v54 }
 0x3ed   :  { %7228 = vmatprep.mubr.bf16.mxu1 %v1358_v56  ;;  %7273 = vmatpush3.bf16.msra.mxu1 %v13045_v31  ;;  %v1951_v33 = vsub.f32 %v13077_v39, %v13076_v15  ;;  %v10047_v56 = vpop.permute.xlu1 %3713  ;;  %v8007_v15 = vpop.eup %8006  ;;  %8018 = vpow2.f32 %v1971_v62  ;;  %v13086_v40 = vld [vmem:[#allocation106_spill] sm:$0xff] }
 0x3ee   :  { %7274 = vmatprep.subr.bf16.mxu1 %v13045_v31  ;;  %13078 = vst [vmem:[#allocation44_spill] sm:$0xff] %v10047_v56  ;;  %v1955_v0 = vsub.f32 %v13086_v40, %v9888_v12 }
 0x3ef   :  { %4360 = vperm.xlu0 %7932, %v13075_v25   ;;  %v1975_v10 = vmul.f32 1.442695, %v1951_v33  ;;  %v13085_v33 = vld [vmem:[#allocation92_spill] sm:$0xff]  ;;  %v10067_v25 = vpop.permute.xlu0 %3733 }
 0x3f0   :  { %v1953_v39 = vsub.f32 %v13085_v33, %v13084_v16  ;;  %13087 = vst [vmem:[#allocation61_spill] sm:$0xff] %v10067_v25  ;;  %v1983_v33 = vmul.f32 1.442695, %v1955_v0  ;;  %v13091_v25 = vld [vmem:[#allocation118_spill] sm:$0xff] }
 0x3f1   :  { %7275 = vmatpush3.bf16.msra.mxu1 %v13045_v31  ;;  %v8009_v29 = vpop.eup %8008  ;;  %8020 = vpow2.f32 %v1975_v10  ;;  %v3123_v54 = vadd.f32 %v13001_v1, %v13091_v25  ;;  %v13094_v25 = vld [vmem:[#allocation107_spill] sm:$0xff] }
 0x3f2   :  { %7276 = vmatprep.subr.bf16.mxu1 %v13045_v31  ;;  %v8011_v58 = vpop.eup %8010  ;;  %v1979_v16 = vmul.f32 1.442695, %v1953_v39  ;;  %8022 = vpow2.f32 %v1981_v11  ;;  %v13093_v39 = vld [vmem:[#allocation115_spill] sm:$0xff] }
 0x3f3   :  { %v8013_v62 = vpop.eup %8012  ;;  %v10072_v56 = vpack.c.bf16 %v8007_v15, %v8011_v58  ;;  %8024 = vpow2.f32 %v1985_v48  ;;  %v1957_v58 = vsub.f32 %v13094_v25, %v9907_v19 }
 0x3f4   :  { %7229 = vmatmul.mubr.bf16.gmra.mrb[76].mxu1 %v9979_v4  ;;  %v10063_v4 = vpop.permute.xlu1 %3721  ;;  %v10075_v10 = vpack.c.bf16 %v8009_v29, %v8013_v62  ;;  %v2575_v29 = vsub.f32 %v13093_v39, %v9911_v17  ;;  %8026 = vpow2.f32 %v1979_v16  ;;  %v13095_v62 = vld [vmem:[#allocation72_spill] sm:$0xff]  ;;  %v3139_v17 = vmul.f32 0.2, %v3123_v54 }
 0x3f5   :  { %7277 = vmatpush3.bf16.msra.mxu1 %v13045_v31  ;;  %7280 = vmatprep.mubr.bf16.mxu1 %v13082_v32  ;;  %v13088_v32 = vld [vmem:[#allocation90_spill] sm:$0xff]  ;;  %13089 = vst [vmem:[#allocation94_spill] sm:$0xff] %v10072_v56  ;;  %v8015_v0 = vpop.eup %8014  ;;  %8028 = vpow2.f32 %v1983_v33  ;;  %v1987_v33 = vmul.f32 1.442695, %v1957_v58  ;;  %v13100_v58 = vld [vmem:[#allocation119_spill] sm:$0xff] }
 0x3f6   :  { %7278 = vmatprep.subr.bf16.mxu1 %v13045_v31  ;;  %v3121_v51 = vadd.f32 %v13001_v1, %v13088_v32  ;;  %13090 = vst [vmem:[#allocation47_spill] sm:$0xff] %v10075_v10  ;;  %v13092_v32 = vld [vmem:[#allocation113_spill] sm:$0xff]  ;;  %v8017_v11 = vpop.eup %8016  ;;  %v2592_v19 = vmul.f32 1.442695, %v2575_v29  ;;  %v13099_v29 = vld [vmem:[#allocation100_spill] sm:$0xff] }
 0x3f7   :  { %v1958_v38 = vsub.f32 %v13092_v32, %v9894_v21  ;;  %v3119_v21 = vadd.f32 %v13001_v1, %v13095_v62  ;;  %v13096_v32 = vld [vmem:[#allocation108_spill] sm:$0xff]  ;;  %v8019_v48 = vpop.eup %8018 }
 0x3f8   :  { %v3137_v40 = vmul.f32 0.2, %v3121_v51  ;;  %v10084_v15 = vpop.permute.xlu1 %3729  ;;  %v10102_v25 = vpack.c.bf16 %v8015_v0, %v8019_v48 }
 0x3f9   :  { %7279 = vmatpush3.bf16.msra.mxu1 %v13045_v31  ;;  %v1989_v39 = vmul.f32 1.442695, %v1958_v38  ;;  %v13098_v38 = vld [vmem:[#allocation117_spill] sm:$0xff] }
 0x3fa   :  { %7328 = vmatprep.subr.bf16.mxu1 %v13045_v31  ;;  %v3153_v8 = vmax.f32 %v3121_v51, %v3137_v40  ;;  %v3155_v40 = vmax.f32 %v3123_v54, %v3139_v17  ;;  %v2577_v52 = vsub.f32 %v13098_v38, %v9929_v55  ;;  %v13101_v54 = vld [vmem:[#allocation110_spill] sm:$0xff] }
 0x3fb   :  { %v8021_v16 = vpop.eup %8020  ;;  %8030 = vpow2.f32 %v1989_v39  ;;  %v2576_v48 = vsub.f32 %v13101_v54, %v9937_v46 }
 0x3fc   :  { %7281 = vmatmul.mubr.bf16.vlgmr.msra.gmra.mrb[80].mxu1 %v10072_v56  ;;  %v10078_v12 = vpop.xlane.xlu0 %2564  ;;  %v10099_v2 = vpop.xlane.xlu1 %2562  ;;  %v10105_v62 = vpack.c.bf16 %v8017_v11, %v8021_v16  ;;  %v10115_v0 = vadd.f32 %v3153_v8, %v13099_v29  ;;  %8032 = vpow2.f32 %v2592_v19  ;;  %v13102_v8 = vld [vmem:[#allocation112_spill] sm:$0xff]  ;;  %v2596_v38 = vmul.f32 1.442695, %v2577_v52 }
 0x3fd   :  { %7284 = vmatprep.mubr.bf16.mxu1 %v10075_v10  ;;  %7329 = vmatpush3.bf16.msra.mxu1 %v13045_v31  ;;  %v2574_v10 = vsub.f32 %v13096_v32, %v9922_v7  ;;  %v3135_v7 = vmul.f32 0.2, %v3119_v21  ;;  %v8023_v11 = vpop.eup %8022  ;;  %8034 = vpow2.f32 %v1987_v33  ;;  %v2578_v16 = vsub.f32 %v13102_v8, %v9954_v37 }
 0x3fe   :  { %7330 = vmatprep.subr.bf16.mxu1 %v13045_v31  ;;  %13097 = vst [vmem:[#allocation63_spill] sm:$0xff] %v10105_v62  ;;  %v8025_v55 = vpop.eup %8024  ;;  %v10131_v33 = vadd.f32 %v3155_v40, %v9538_v59  ;;  %v13106_v40 = vld [vmem:[#allocation120_spill] sm:$0xff] }
 0x3ff   :  { %v2590_v32 = vmul.f32 1.442695, %v2574_v10  ;;  %v2579_v10 = vsub.f32 %v13100_v58, %v9951_v41  ;;  %v3151_v39 = vmax.f32 %v3119_v21, %v3135_v7  ;;  %v8027_v41 = vpop.eup %8026  ;;  %v2594_v21 = vmul.f32 1.442695, %v2576_v48  ;;  %v13107_v48 = vld [vmem:[#allocation121_spill] sm:$0xff] }
 0x400   :  { %v10097_v56 = vpop.xlane.xlu0 %2570  ;;  %v10122_v17 = vpop.xlane.xlu1 %2566  ;;  %v10133_v54 = vpack.c.bf16 %v8023_v11, %v8027_v41  ;;  %v2598_v37 = vmul.f32 1.442695, %v2578_v16 }
 0x401   :  { %7331 = vmatpush3.bf16.msra.mxu1 %v13045_v31  ;;  %8036 = vpow2.f32 %v2590_v32  ;;  %v8029_v46 = vpop.eup %8028  ;;  %v2600_v58 = vmul.f32 1.442695, %v2579_v10  ;;  %v13105_v32 = vld [vmem:[#allocation87_spill] sm:$0xff]  ;;  %v2581_v10 = vsub.f32 %v13106_v40, %v9959_v20  ;;  %v13109_v20 = vld [vmem:[#allocation116_spill] sm:$0xff] }
 0x402   :  { %7332 = vmatprep.subr.bf16.mxu1 %v13045_v31  ;;  %13103 = vst [vmem:[#allocation33_spill] sm:$0xff] %v10133_v54  ;;  %v10137_v7 = vpack.c.bf16 %v8025_v55, %v8029_v46  ;;  %v10143_v8 = vadd.f32 %v3151_v39, %v13105_v32  ;;  %8038 = vpow2.f32 %v2596_v38  ;;  %v2583_v55 = vsub.f32 %v13107_v48, %v9967_v47  ;;  %v13108_v39 = vld [vmem:[#allocation114_spill] sm:$0xff] }
 0x403   :  { %8040 = vpow2.f32 %v2600_v58  ;;  %v2580_v41 = vsub.f32 %v13108_v39, %v9963_v43  ;;  %v2582_v46 = vsub.f32 %v13109_v20, %v9970_v63  ;;  %v13110_v39 = vld [vmem:[#allocation41_spill] sm:$0xff] }
 0x404   :  { %7285 = vmatmul.mubr.bf16.gmra.mrb[84].mxu1 %v10102_v25  ;;  %v10108_v51 = vpop.xlane.xlu0 %3173  ;;  %13104 = vst [vmem:[#allocation4_spill] sm:$0xff] %v10137_v7  ;;  %v2569_v11 = vpop.xlane.xlu1 %2568  ;;  %8042 = vpow2.f32 %v2594_v21  ;;  %v2608_v48 = vmul.f32 1.442695, %v2583_v55  ;;  %v13111_v55 = vld [vmem:[#allocation32_spill] sm:$0xff]  ;;  %v13113_v20 = vld [vmem:[#allocation81_spill] sm:$0xff] }
 0x405   :  { %7288 = vmatprep.mubr.bf16.mxu1 %v10105_v62  ;;  %7333 = vmatpush3.bf16.msra.mxu1 %v13045_v31  ;;  %v8031_v16 = vpop.eup %8030  ;;  %8044 = vpow2.f32 %v2598_v37  ;;  %v2602_v21 = vmul.f32 1.442695, %v2580_v41  ;;  %v2606_v37 = vmul.f32 1.442695, %v2582_v46 }
 0x406   :  { %7334 = vmatprep.subr.bf16.mxu1 %v13045_v31  ;;  %v8033_v38 = vpop.eup %8032 }
 0x407   :  { %3197 = vmax.xlane.f32.xlu1 %v10115_v0  ;;  %v8035_v58 = vpop.eup %8034 }
 0x408   :  { %v10127_v19 = vpop.xlane.xlu0 %3177  ;;  %v2573_v62 = vpop.xlane.xlu1 %2572 }
 0x409   :  { %7335 = vmatpush3.bf16.msra.mxu1 %v13045_v31 }
 0x40a   :  { %7336 = vmatprep.subr.bf16.mxu1 %v13045_v31 }
 0x40b   :  { %3201 = vmax.xlane.f32.xlu1 %v10131_v33  ;;  %v8037_v47 = vpop.eup %8036 }
 0x40c   :  { %7289 = vmatmul.mubr.bf16.gmra.mrb[88].mxu1 %v10133_v54  ;;  %v10140_v52 = vpop.xlane.xlu0 %3181  ;;  %v10160_v54 = vpack.c.bf16 %v8031_v16, %v8035_v58  ;;  %v10163_v43 = vpack.c.bf16 %v8033_v38, %v8037_v47  ;;  %v2587_v16 = vsub.f32 %v13111_v55, %v2569_v11  ;;  %v8039_v38 = vpop.eup %8038  ;;  %v13115_v58 = vld [vmem:[#allocation62_spill] sm:$0xff] }
 0x40d   :  { %7292 = vmatprep.mubr.bf16.mxu1 %v10137_v7  ;;  %7337 = vmatpush3.bf16.msra.mxu1 %v13045_v31  ;;  %v2604_v7 = vmul.f32 1.442695, %v2581_v10  ;;  %v2585_v10 = vsub.f32 %v13110_v39, %v10078_v12  ;;  %v8041_v12 = vpop.eup %8040  ;;  %v2586_v47 = vsub.f32 %v13115_v58, %v10122_v17 }
 0x40e   :  { %3193 = vmax.xlane.f32.xlu0 %v10143_v8  ;;  %7338 = vmatprep.subr.bf16.mxu1 %v13045_v31  ;;  %v8043_v39 = vpop.eup %8042 }
 0x40f   :  { %8046 = vpow2.f32 %v2604_v7  ;;  %v2584_v7 = vsub.f32 %v13113_v20, %v10099_v2  ;;  %v2612_v55 = vmul.f32 1.442695, %v2585_v10  ;;  %v8045_v2 = vpop.eup %8044  ;;  %v10185_v20 = vpack.c.bf16 %v8039_v38, %v8043_v39  ;;  %v13120_v10 = vld [vmem:[#allocation8_spill] sm:$0xff]  ;;  %v13122_v39 = vld [vmem:[#allocation45_spill] sm:$0xff] }
 0x410   :  { %v10157_v40 = vpop.xlane.xlu0 %3185  ;;  %8048 = vpow2.f32 %v2608_v48  ;;  %v10188_v17 = vpack.c.bf16 %v8041_v12, %v8045_v2  ;;  %v2614_v58 = vmul.f32 1.442695, %v2586_v47 }
 0x411   :  { %7339 = vmatpush3.bf16.msra.mxu1 %v13045_v31  ;;  %8050 = vpow2.f32 %v2602_v21  ;;  %13118 = vst [vmem:[#allocation35_spill] sm:$0xff] %v10185_v20 }
 0x412   :  { %7340 = vmatprep.subr.bf16.mxu1 %v13045_v31  ;;  %8052 = vpow2.f32 %v2606_v37  ;;  %v2610_v37 = vmul.f32 1.442695, %v2584_v7  ;;  %13119 = vst [vmem:[#allocation53_spill] sm:$0xff] %v10188_v17  ;;  %v13121_v7 = vld [vmem:[#allocation40_spill] sm:$0xff] }
 0x413   :  { %8054 = vpow2.f32 %v2612_v55  ;;  %v2589_v12 = vsub.f32 %v13121_v7, %v2573_v62  ;;  %v13125_v62 = vld [vmem:[#allocation5_spill] sm:$0xff] }
 0x414   :  { %7293 = vmatmul.mubr.bf16.gmra.mrb[92].mxu1 %v10160_v54  ;;  %v2000_v63 = vpop.permute.xlu0 %1999 }
 0x415   :  { %7341 = vmatpush3.bf16.msra.mxu1 %v13045_v31  ;;  %7344 = vmatprep.mubr.bf16.mxu1 %v10163_v43 }
 0x416   :  { %7232 = vmatprep.subr.bf16.mxu0 %v2000_v63  ;;  %v10171_v41 = vpop.f32.mrb[16].mxu1  ;;  %7342 = vmatprep.subr.bf16.mxu1 %v13045_v31 }
 0x417   :  { %13112 = vst [vmem:[#allocation48_spill] sm:$0xff] %v10171_v41  ;;  %7233 = vmatpush3.bf16.msra.mxu0 %v2000_v63  ;;  %v10176_v46 = vpop.f32.mrb[17].mxu1  ;;  %v3176_v41 = vpop.xlane.xlu1 %3175  ;;  %v2616_v63 = vmul.f32 1.442695, %v2587_v16  ;;  %v3205_v16 = vsub.f32 %v9810_v57, %v10108_v51  ;;  %v2620_v57 = vmul.f32 1.442695, %v2589_v12 }
 0x418   :  { %13114 = vst [vmem:[#allocation34_spill] sm:$0xff] %v10176_v46  ;;  %v10180_v48 = vpop.f32.mrb[18].mxu1  ;;  %v2002_v11 = vpop.permute.xlu0 %2001  ;;  %v3206_v55 = vsub.f32 %v13122_v39, %v3176_v41 }
 0x419   :  { %13116 = vst [vmem:[#allocation65_spill] sm:$0xff] %v10180_v48  ;;  %7343 = vmatpush3.bf16.msra.mxu1 %v13045_v31  ;;  %v10183_v21 = vpop.f32.mrb[19].mxu1  ;;  %7234 = vmatprep.subr.bf16.mxu0 %v2002_v11  ;;  %8056 = vpow2.f32 %v2616_v63  ;;  %v8047_v38 = vpop.eup %8046  ;;  %v3221_v63 = vmul.f32 1.442695, %v3205_v16 }
 0x41a   :  { %13117 = vst [vmem:[#allocation71_spill] sm:$0xff] %v10183_v21  ;;  %7392 = vmatprep.subr.bf16.mxu1 %v13045_v31  ;;  %v2588_v21 = vsub.f32 %v9795_v42, %v10097_v56  ;;  %8058 = vpow2.f32 %v2610_v37  ;;  %v3223_v37 = vmul.f32 1.442695, %v3206_v55 }
 0x41b   :  { %7235 = vmatpush3.bf16.msra.mxu0 %v2002_v11  ;;  %v3180_v47 = vpop.xlane.xlu1 %3179  ;;  %v8049_v11 = vpop.eup %8048  ;;  %8060 = vpow2.f32 %v2614_v58  ;;  %v3209_v58 = vsub.f32 %v9834_v60, %v10140_v52 }
 0x41c   :  { %7345 = vmatmul.mubr.bf16.vlgmr.msra.gmra.mrb[96].mxu1 %v10185_v20  ;;  %2009 = vrot.lane.b32.xlu1 %v13120_v10, %s8559_s1  ;;  %v8051_v42 = vpop.eup %8050  ;;  %v2618_v56 = vmul.f32 1.442695, %v2588_v21  ;;  %v3207_v21 = vsub.f32 %v9822_v5, %v10127_v19 }
 0x41d   :  { %7348 = vmatprep.mubr.bf16.mxu1 %v10188_v17  ;;  %7393 = vmatpush3.bf16.msra.mxu1 %v13045_v31  ;;  %v8053_v2 = vpop.eup %8052  ;;  %v10203_v48 = vpack.c.bf16 %v8047_v38, %v8051_v42  ;;  %v3208_v38 = vsub.f32 %v9800_v22, %v3180_v47  ;;  %v3229_v39 = vmul.f32 1.442695, %v3209_v58  ;;  %v3211_v22 = vsub.f32 %v9844_v30, %v10157_v40  ;;  %v13128_v30 = vld [vmem:[#allocation29_spill] sm:$0xff] }
 0x41e   :  { %7394 = vmatprep.subr.bf16.mxu1 %v13045_v31  ;;  %v10206_v51 = vpack.c.bf16 %v8049_v11, %v8053_v2  ;;  %8062 = vpow2.f32 %v2618_v56  ;;  %v8055_v16 = vpop.eup %8054  ;;  %v3225_v5 = vmul.f32 1.442695, %v3207_v21  ;;  %v3740_v40 = vadd.f32 %v13128_v30, %v9973_v28 }
 0x41f   :  { %13123 = vst [vmem:[#allocation60_spill] sm:$0xff] %v10203_v48  ;;  %v3184_v41 = vpop.xlane.xlu1 %3183  ;;  %8064 = vpow2.f32 %v3221_v63  ;;  %v3227_v60 = vmul.f32 1.442695, %v3208_v38  ;;  %v3743_v28 = vadd.f32 %v13128_v30, %v9987_v13 }
 0x420   :  { %13124 = vst [vmem:[#allocation36_spill] sm:$0xff] %v10206_v51  ;;  %8066 = vpow2.f32 %v2620_v57  ;;  %v3210_v12 = vsub.f32 %v9816_v9, %v3184_v41  ;;  %v3233_v57 = vmul.f32 1.442695, %v3211_v22  ;;  %v3756_v38 = vmul.f32 0.2, %v3740_v40 }
 0x421   :  { %7395 = vmatpush3.bf16.msra.mxu1 %v13045_v31  ;;  %8068 = vpow2.f32 %v3223_v37  ;;  %v3759_v22 = vmul.f32 0.2, %v3743_v28 }
 0x422   :  { %7396 = vmatprep.subr.bf16.mxu1 %v13045_v31  ;;  %v3231_v42 = vmul.f32 1.442695, %v3210_v12  ;;  %8070 = vpow2.f32 %v3225_v5 }
 0x423   :  { %v8057_v7 = vpop.eup %8056  ;;  %v3188_v56 = vpop.xlane.xlu1 %3187  ;;  %8072 = vpow2.f32 %v3229_v39 }
 0x424   :  { %7349 = vmatmul.mubr.bf16.gmra.mrb[100].mxu1 %v10203_v48  ;;  %2003 = vrot.lane.b32.xlu0 %v13125_v62, %s8559_s1  ;;  %v8059_v11 = vpop.eup %8058  ;;  %8074 = vpow2.f32 %v3227_v60  ;;  %v3212_v47 = vsub.f32 %v9825_v49, %v3188_v56  ;;  %v13131_v49 = vld [vmem:[#allocation96_spill] sm:$0xff]  ;;  %v3772_v56 = vmax.f32 %v3740_v40, %v3756_v38 }
 0x425   :  { %7352 = vmatprep.mubr.bf16.mxu1 %v10206_v51  ;;  %7397 = vmatpush3.bf16.msra.mxu1 %v13045_v31  ;;  %v8061_v19 = vpop.eup %8060  ;;  %v10221_v55 = vpack.c.bf16 %v8055_v16, %v8059_v11  ;;  %8076 = vpow2.f32 %v3231_v42  ;;  %v3122_v16 = vadd.f32 %v13001_v1, %v13131_v49  ;;  %v3744_v42 = vadd.f32 %v13128_v30, %v10004_v27 }
 0x426   :  { %7398 = vmatprep.subr.bf16.mxu1 %v13045_v31  ;;  %v10224_v52 = vpack.c.bf16 %v8057_v7, %v8061_v19  ;;  %v3235_v21 = vmul.f32 1.442695, %v3212_v47  ;;  %8078 = vpow2.f32 %v3233_v57  ;;  %v13132_v19 = vld [vmem:[#allocation105_spill] sm:$0xff]  ;;  %v3746_v27 = vadd.f32 %v13128_v30, %v10016_v18 }
 0x427   :  { %13126 = vst [vmem:[#allocation79_spill] sm:$0xff] %v10221_v55  ;;  %v3138_v5 = vmul.f32 0.2, %v3122_v16  ;;  %v3124_v39 = vadd.f32 %v13001_v1, %v13132_v19  ;;  %v3775_v57 = vmax.f32 %v3743_v28, %v3759_v22  ;;  %v10269_v40 = vadd.f32 %v3772_v56, %v9172_v45  ;;  %v13141_v19 = vld [vmem:[#allocation51_spill] sm:$0xff]  ;;  %v3192_v56 = vpop.xlane.xlu1 %3191 }
 0x428   :  { %13127 = vst [vmem:[#allocation88_spill] sm:$0xff] %v10224_v52  ;;  %v8063_v9 = vpop.eup %8062  ;;  %8080 = vpow2.f32 %v3235_v21  ;;  %v3762_v28 = vmul.f32 0.2, %v3746_v27 }
 0x429   :  { %7399 = vmatpush3.bf16.msra.mxu1 %v13045_v31  ;;  %v8065_v2 = vpop.eup %8064  ;;  %v3154_v47 = vmax.f32 %v3122_v16, %v3138_v5 }
 0x42a   :  { %7400 = vmatprep.subr.bf16.mxu1 %v13045_v31  ;;  %v8067_v63 = vpop.eup %8066 }
 0x42b   :  { %v8069_v37 = vpop.eup %8068  ;;  %v10236_v41 = vpack.c.bf16 %v8067_v63, %v8063_v9  ;;  %v3760_v63 = vmul.f32 0.2, %v3744_v42 }
 0x42c   :  { %7353 = vmatmul.mubr.bf16.gmra.mrb[104].mxu1 %v10221_v55  ;;  %v10239_v58 = vpack.c.bf16 %v8069_v37, %v8065_v2  ;;  %v8071_v7 = vpop.eup %8070  ;;  %v3140_v2 = vmul.f32 0.2, %v3124_v39  ;;  %v13178_v55 = vld [vmem:[#allocation9_spill] sm:$0xff] }
 0x42d   :  { %7356 = vmatprep.mubr.bf16.mxu1 %v10224_v52  ;;  %7401 = vmatpush3.bf16.msra.mxu1 %v13045_v31  ;;  %13129 = vst [vmem:[#allocation37_spill] sm:$0xff] %v10236_v41  ;;  %v8073_v12 = vpop.eup %8072  ;;  %v3776_v18 = vmax.f32 %v3744_v42, %v3760_v63  ;;  %v3778_v42 = vmax.f32 %v3746_v27, %v3762_v28 }
 0x42e   :  { %7402 = vmatprep.subr.bf16.mxu1 %v13045_v31  ;;  %13130 = vst [vmem:[#allocation70_spill] sm:$0xff] %v10239_v58  ;;  %v8075_v11 = vpop.eup %8074 }
 0x42f   :  { %v8077_v60 = vpop.eup %8076  ;;  %v10254_v9 = vpack.c.bf16 %v8075_v11, %v8071_v7  ;;  %v3156_v7 = vmax.f32 %v3124_v39, %v3140_v2  ;;  %v13142_v39 = vld [vmem:[#allocation102_spill] sm:$0xff]  ;;  %v10296_v2 = vadd.f32 %v3776_v18, %v9276_v44 }
 0x430   :  { %v10257_v13 = vpack.c.bf16 %v8077_v60, %v8073_v12  ;;  %v8079_v21 = vpop.eup %8078  ;;  %v13139_v12 = vld [vmem:[#allocation93_spill] sm:$0xff]  ;;  %v10284_v60 = vadd.f32 %v3775_v57, %v13141_v19 }
 0x431   :  { %7403 = vmatpush3.bf16.msra.mxu1 %v13045_v31  ;;  %13133 = vst [vmem:[#allocation54_spill] sm:$0xff] %v10254_v9  ;;  %v10278_v11 = vadd.f32 %v3154_v47, %v13139_v12  ;;  %v10291_v22 = vadd.f32 %v3156_v7, %v13142_v39  ;;  %v3214_v47 = vsub.f32 %v9837_v23, %v3192_v56 }
 0x432   :  { %7404 = vmatprep.subr.bf16.mxu1 %v13045_v31  ;;  %13134 = vst [vmem:[#allocation78_spill] sm:$0xff] %v10257_v13  ;;  %v8081_v38 = vpop.eup %8080 }
 0x433   :  { %v10281_v5 = vpack.c.bf16 %v8081_v38, %v8079_v21  ;;  %v3239_v63 = vmul.f32 1.442695, %v3214_v47  ;;  %v10303_v21 = vadd.f32 %v3778_v42, %v9333_v3  ;;  %v13148_v47 = vld [vmem:[#allocation7_spill] sm:$0xff] }
 0x434   :  { %7357 = vmatmul.mubr.bf16.gmra.mrb[108].mxu1 %v10236_v41 }
 0x435   :  { %7405 = vmatpush3.bf16.msra.mxu1 %v13045_v31  ;;  %7408 = vmatprep.mubr.bf16.mxu1 %v10239_v58  ;;  %13140 = vst [vmem:[#allocation89_spill] sm:$0xff] %v10281_v5  ;;  %8082 = vpow2.f32 %v3239_v63  ;;  %v8561_v63 = vmov 7  }
 0x436   :  { %7406 = vmatprep.subr.bf16.mxu1 %v13045_v31  ;;  %7934 = vset.pattern.permute.xlu1 %v8561_v63 }
 0x437   :  { %7935 = vset.pattern.permute.xlu0 %v8561_v63 }
 0x439   :  { %7407 = vmatpush3.bf16.msra.mxu1 %v13045_v31 }
 0x43a   :  { %7456 = vmatprep.subr.bf16.mxu1 %v13045_v31 }
 0x43c   :  { %7409 = vmatmul.mubr.bf16.vlgmr.msra.gmra.mrb[112].mxu1 %v10254_v9 }
 0x43d   :  { %7412 = vmatprep.mubr.bf16.mxu1 %v10257_v13  ;;  %v10261_v1 = vpop.f32.mrb[20].mxu1  ;;  %7457 = vmatpush3.bf16.msra.mxu1 %v13045_v31 }
 0x43e   :  { %13135 = vst [vmem:[#allocation38_spill] sm:$0xff] %v10261_v1  ;;  %v10266_v37 = vpop.f32.mrb[21].mxu1  ;;  %7458 = vmatprep.subr.bf16.mxu1 %v13045_v31  ;;  %v3741_v1 = vadd.f32 %v13128_v30, %v9983_v34 }
 0x43f   :  { %13136 = vst [vmem:[#allocation95_spill] sm:$0xff] %v10266_v37  ;;  %v10272_v49 = vpop.f32.mrb[22].mxu1  ;;  %v8083_v18 = vpop.eup %8082 }
 0x440   :  { %13137 = vst [vmem:[#allocation101_spill] sm:$0xff] %v10272_v49  ;;  %3804 = vmax.xlane.f32.xlu1 %v10269_v40  ;;  %v10275_v16 = vpop.f32.mrb[23].mxu1  ;;  %v3751_v49 = vadd.f32 %v13128_v30, %v10034_v50 }
 0x441   :  { %13138 = vst [vmem:[#allocation39_spill] sm:$0xff] %v10275_v16  ;;  %7459 = vmatpush3.bf16.msra.mxu1 %v13045_v31 }
 0x442   :  { %7460 = vmatprep.subr.bf16.mxu1 %v13045_v31 }
 0x443   :  { %3199 = vmax.xlane.f32.xlu0 %v10278_v11 }
 0x444   :  { %7413 = vmatmul.mubr.bf16.gmra.mrb[116].mxu1 %v10281_v5  ;;  %3810 = vmax.xlane.f32.xlu1 %v10284_v60 }
 0x445   :  { %7461 = vmatpush3.bf16.msra.mxu1 %v13045_v31 }
 0x446   :  { %7462 = vmatprep.subr.bf16.mxu1 %v13045_v31 }
 0x447   :  { %3203 = vmax.xlane.f32.xlu0 %v10291_v22 }
 0x448   :  { %3812 = vmax.xlane.f32.xlu1 %v10296_v2 }
 0x449   :  { %7463 = vmatpush3.bf16.msra.mxu1 %v13045_v31 }
 0x44a   :  { %v3190_v57 = vpop.xlane.xlu0 %3189  ;;  %7464 = vmatprep.subr.bf16.mxu1 %v13045_v31 }
 0x44b   :  { %v3213_v23 = vsub.f32 %v9941_v61, %v3190_v57  ;;  %v10331_v57 = vpop.permute.xlu1 %4304 }
 0x44c   :  { %3816 = vmax.xlane.f32.xlu1 %v10303_v21 }
 0x44d   :  { %v3237_v27 = vmul.f32 1.442695, %v3213_v23  ;;  %7465 = vmatpush3.bf16.msra.mxu1 %v13045_v31 }
 0x44e   :  { %7466 = vmatprep.subr.bf16.mxu1 %v13045_v31 }
 0x44f   :  { %8084 = vpow2.f32 %v3237_v27 }
 0x451   :  { %7467 = vmatpush3.bf16.msra.mxu1 %v13045_v31 }
 0x452   :  { %7468 = vmatprep.subr.bf16.mxu1 %v13045_v31 }
 0x455   :  { %v10312_v38 = vpop.f32.mrb[24].mxu1  ;;  %7469 = vmatpush3.bf16.msra.mxu1 %v13045_v31 }
 0x456   :  { %13143 = vst [vmem:[#allocation99_spill] sm:$0xff] %v10312_v38  ;;  %v10315_v7 = vpop.f32.mrb[25].mxu1  ;;  %7470 = vmatprep.subr.bf16.mxu1 %v13045_v31  ;;  %v10341_v38 = vpop.permute.xlu1 %4312 }
 0x457   :  { %13144 = vst [vmem:[#allocation109_spill] sm:$0xff] %v10315_v7  ;;  %v10318_v61 = vpop.f32.mrb[26].mxu1  ;;  %v10343_v7 = vpop.permute.xlu0 %4308 }
 0x458   :  { %13145 = vst [vmem:[#allocation103_spill] sm:$0xff] %v10318_v61  ;;  %v10320_v28 = vpop.f32.mrb[27].mxu1 }
 0x459   :  { %13146 = vst [vmem:[#allocation80_spill] sm:$0xff] %v10320_v28  ;;  %v8085_v56 = vpop.eup %8084  ;;  %7471 = vmatpush3.bf16.msra.mxu1 %v13045_v31 }
 0x45a   :  { %v10323_v42 = vpack.c.bf16 %v8083_v18, %v8085_v56  ;;  %7520 = vmatprep.subr.bf16.mxu1 %v13045_v31  ;;  %v10357_v5 = vpop.permute.xlu1 %4324 }
 0x45b   :  { %v10361_v61 = vpop.permute.xlu0 %4316 }
 0x45c   :  { %13147 = vst [vmem:[#allocation123_spill] sm:$0xff] %v10323_v42  ;;  %7416 = vmatprep.mubr.bf16.mxu1 %v10323_v42 }
 0x45d   :  { %2007 = vrot.lane.b32.xlu0 %v13148_v47, %s8559_s1  ;;  %2632 = vrot.lane.b32.xlu1 %v13024_v26, %s8560_s29 }
 0x45e   :  { %v10369_v16 = vpop.permute.xlu1 %4332 }
 0x45f   :  { %13159 = vst [vmem:[#allocation91_spill] sm:$0xff] %v10369_v16  ;;  %v10373_v46 = vpop.permute.xlu0 %4320 }
 0x462   :  { %v10383_v50 = vpop.permute.xlu1 %4340 }
 0x463   :  { %13163 = vst [vmem:[#allocation86_spill] sm:$0xff] %v10383_v50 }
 0x466   :  { %v10333_v23 = vpop.f32.mrb[28].mxu1 }
 0x467   :  { %13149 = vst [vmem:[#allocation68_spill] sm:$0xff] %v10333_v23  ;;  %v10335_v27 = vpop.f32.mrb[29].mxu1 }
 0x468   :  { %13150 = vst [vmem:[#allocation57_spill] sm:$0xff] %v10335_v27  ;;  %v10337_v18 = vpop.f32.mrb[30].mxu1  ;;  %v3757_v27 = vmul.f32 0.2, %v3741_v1 }
 0x469   :  { %13151 = vst [vmem:[#allocation74_spill] sm:$0xff] %v10337_v18  ;;  %v10339_v56 = vpop.f32.mrb[31].mxu1  ;;  %v3742_v18 = vadd.f32 %v13128_v30, %v9994_v6 }
 0x46a   :  { %13152 = vst [vmem:[#allocation122_spill] sm:$0xff] %v10339_v56  ;;  %v3748_v56 = vadd.f32 %v13128_v30, %v10031_v35  ;;  %v3773_v34 = vmax.f32 %v3741_v1, %v3757_v27 }
 0x46b   :  { %v3758_v13 = vmul.f32 0.2, %v3742_v18 }
 0x46c   :  { %v3764_v28 = vmul.f32 0.2, %v3748_v56 }
 0x46d   :  { %v3774_v35 = vmax.f32 %v3742_v18, %v3758_v13  ;;  %v3754_v13 = vadd.f32 %v13128_v30, %v10084_v15 }
 0x46e   :  { %v10347_v37 = vpop.f32.mrb[32].mxu1  ;;  %v3780_v27 = vmax.f32 %v3748_v56, %v3764_v28 }
 0x46f   :  { %13153 = vst [vmem:[#allocation55_spill] sm:$0xff] %v10347_v37  ;;  %v10349_v63 = vpop.f32.mrb[33].mxu1  ;;  %v13162_v37 = vld [vmem:[#allocation46_spill] sm:$0xff] }
 0x470   :  { %13154 = vst [vmem:[#allocation58_spill] sm:$0xff] %v10349_v63  ;;  %v10351_v42 = vpop.f32.mrb[34].mxu1  ;;  %v10378_v1 = vadd.f32 %v3773_v34, %v13162_v37  ;;  %v3767_v63 = vmul.f32 0.2, %v3751_v49  ;;  %v10392_v34 = vpop.permute.xlu0 %4328 }
 0x471   :  { %13155 = vst [vmem:[#allocation64_spill] sm:$0xff] %v10351_v42  ;;  %v10353_v23 = vpop.f32.mrb[35].mxu1 }
 0x472   :  { %13156 = vst [vmem:[#allocation67_spill] sm:$0xff] %v10353_v23  ;;  %v3783_v18 = vmax.f32 %v3751_v49, %v3767_v63  ;;  %v10408_v49 = vpop.permute.xlu1 %4348 }
 0x474   :  { %v10406_v15 = vadd.f32 %v3783_v18, %v13012_v53  ;;  %v10410_v63 = vpop.permute.xlu0 %4336 }
 0x476   :  { %v10363_v9 = vpop.f32.mrb[36].mxu1 }
 0x477   :  { %13157 = vst [vmem:[#allocation83_spill] sm:$0xff] %v10363_v9  ;;  %v10367_v23 = vpop.f32.mrb[37].mxu1  ;;  %v3752_v9 = vadd.f32 %v13128_v30, %v10063_v4  ;;  %v10397_v4 = vadd.f32 %v3780_v27, %v13046_v36 }
 0x478   :  { %13158 = vst [vmem:[#allocation76_spill] sm:$0xff] %v10367_v23  ;;  %v10371_v6 = vpop.f32.mrb[38].mxu1  ;;  %v10427_v18 = vpop.permute.xlu0 %4344 }
 0x479   :  { %13160 = vst [vmem:[#allocation125_spill] sm:$0xff] %v10371_v6  ;;  %v10375_v42 = vpop.f32.mrb[39].mxu1  ;;  %v10388_v6 = vadd.f32 %v3774_v35, %v9212_v14  ;;  %v3768_v58 = vmul.f32 0.2, %v3752_v9  ;;  %13172 = vst [vmem:[#allocation90_spill] sm:$0xff] %v10427_v18 }
 0x47a   :  { %13161 = vst [vmem:[#allocation73_spill] sm:$0xff] %v10375_v42  ;;  %v3770_v42 = vmul.f32 0.2, %v3754_v13 }
 0x47b   :  { %v3784_v35 = vmax.f32 %v3752_v9, %v3768_v58  ;;  %v10425_v9 = vpop.permute.xlu1 %4352 }
 0x47c   :  { %3806 = vmax.xlane.f32.xlu0 %v10378_v1 }
 0x47e   :  { %v10385_v23 = vpop.f32.mrb[40].mxu1 }
 0x47f   :  { %13164 = vst [vmem:[#allocation82_spill] sm:$0xff] %v10385_v23  ;;  %v10394_v28 = vpop.f32.mrb[41].mxu1 }
 0x480   :  { %13165 = vst [vmem:[#allocation28_spill] sm:$0xff] %v10394_v28  ;;  %3808 = vmax.xlane.f32.xlu0 %v10388_v6  ;;  %v10400_v56 = vpop.f32.mrb[42].mxu1  ;;  %v3786_v28 = vmax.f32 %v3754_v13, %v3770_v42 }
 0x481   :  { %13166 = vst [vmem:[#allocation97_spill] sm:$0xff] %v10400_v56  ;;  %v10402_v23 = vpop.f32.mrb[43].mxu1  ;;  %3820 = vmax.xlane.f32.xlu1 %v10397_v4  ;;  %v10418_v56 = vadd.f32 %v3784_v35, %v13099_v29  ;;  %v10437_v35 = vpop.permute.xlu1 %4364 }
 0x482   :  { %13167 = vst [vmem:[#allocation124_spill] sm:$0xff] %v10402_v23  ;;  %v10430_v52 = vadd.f32 %v3786_v28, %v9538_v59 }
 0x485   :  { %3826 = vmax.xlane.f32.xlu1 %v10406_v15 }
 0x486   :  { %v10413_v27 = vpop.f32.mrb[44].mxu1 }
 0x487   :  { %13168 = vst [vmem:[#allocation111_spill] sm:$0xff] %v10413_v27  ;;  %v10415_v41 = vpop.f32.mrb[45].mxu1 }
 0x488   :  { %13169 = vst [vmem:[#allocation42_spill] sm:$0xff] %v10415_v41  ;;  %v10420_v23 = vpop.f32.mrb[46].mxu1  ;;  %v10441_v41 = vpop.permute.xlu0 %4356 }
 0x489   :  { %13170 = vst [vmem:[#allocation92_spill] sm:$0xff] %v10420_v23  ;;  %v10422_v58 = vpop.f32.mrb[47].mxu1  ;;  %3828 = vmax.xlane.f32.xlu1 %v10418_v56  ;;  %13176 = vst [vmem:[#allocation107_spill] sm:$0xff] %v10441_v41 }
 0x48a   :  { %13171 = vst [vmem:[#allocation106_spill] sm:$0xff] %v10422_v58  ;;  %v3196_v58 = vpop.xlane.xlu1 %3195 }
 0x48b   :  { %v3216_v59 = vsub.f32 %v9977_v24, %v3196_v58 }
 0x48c   :  { %v10450_v18 = vpop.permute.xlu0 %4360 }
 0x48d   :  { %3832 = vmax.xlane.f32.xlu1 %v10430_v52  ;;  %13180 = vst [vmem:[#allocation117_spill] sm:$0xff] %v10450_v18 }
 0x48e   :  { %v10433_v42 = vpop.f32.mrb[48].mxu1 }
 0x48f   :  { %13173 = vst [vmem:[#allocation118_spill] sm:$0xff] %v10433_v42  ;;  %v10435_v13 = vpop.f32.mrb[49].mxu1 }
 0x490   :  { %13174 = vst [vmem:[#allocation113_spill] sm:$0xff] %v10435_v13  ;;  %v10439_v27 = vpop.f32.mrb[50].mxu1 }
 0x491   :  { %13175 = vst [vmem:[#allocation115_spill] sm:$0xff] %v10439_v27  ;;  %v10443_v23 = vpop.f32.mrb[51].mxu1  ;;  %v13184_v27 = vld [vmem:[#allocation10_spill] sm:$0xff] }
 0x492   :  { %13177 = vst [vmem:[#allocation72_spill] sm:$0xff] %v10443_v23  ;;  %v3243_v23 = vmul.f32 1.442695, %v3216_v59 }
 0x494   :  { %8086 = vpow2.f32 %v3243_v23 }
 0x496   :  { %2011 = vrot.lane.b32.xlu0 %v13178_v55, %s8559_s1  ;;  %v10447_v28 = vpop.f32.mrb[52].mxu1 }
 0x497   :  { %13179 = vst [vmem:[#allocation108_spill] sm:$0xff] %v10447_v28  ;;  %v10452_v42 = vpop.f32.mrb[53].mxu1  ;;  %v2006_v28 = vpop.permute.xlu1 %2005 }
 0x498   :  { %13181 = vst [vmem:[#allocation119_spill] sm:$0xff] %v10452_v42  ;;  %v10454_v13 = vpop.f32.mrb[54].mxu1 }
 0x499   :  { %13182 = vst [vmem:[#allocation110_spill] sm:$0xff] %v10454_v13  ;;  %v10456_v50 = vpop.f32.mrb[55].mxu1 }
 0x49a   :  { %13183 = vst [vmem:[#allocation112_spill] sm:$0xff] %v10456_v50  ;;  %2013 = vrot.lane.b32.xlu0 %v13184_v27, %s8559_s1 }
 0x49b   :  { %v3194_v41 = vpop.xlane.xlu0 %3193 }
 0x49c   :  { %v3215_v51 = vsub.f32 %v10143_v8, %v3194_v41 }
 0x49e   :  { %v3241_v48 = vmul.f32 1.442695, %v3215_v51  ;;  %v10461_v17 = vpop.f32.mrb[56].mxu1  ;;  %2640 = vrot.lane.b32.xlu1 %v13120_v10, %s8560_s29  ;;  %v8087_v41 = vpop.eup %8086 }
 0x49f   :  { %13185 = vst [vmem:[#allocation120_spill] sm:$0xff] %v10461_v17  ;;  %v10465_v24 = vpop.f32.mrb[57].mxu1  ;;  %v2004_v58 = vpop.permute.xlu0 %2003 }
 0x4a0   :  { %13186 = vst [vmem:[#allocation121_spill] sm:$0xff] %v10465_v24  ;;  %8088 = vpow2.f32 %v3241_v48  ;;  %v10467_v13 = vpop.f32.mrb[58].mxu1  ;;  %7236 = vmatprep.subr.bf16.mxu0 %v2004_v58  ;;  %v13193_v48 = vld [vmem:[#allocation85_spill] sm:$0xff] }
 0x4a1   :  { %13187 = vst [vmem:[#allocation114_spill] sm:$0xff] %v10467_v13  ;;  %v10469_v50 = vpop.f32.mrb[59].mxu1  ;;  %7237 = vmatpush3.bf16.msra.mxu0 %v2004_v58  ;;  %v3745_v13 = vadd.f32 %v13128_v30, %v13193_v48  ;;  %v13200_v48 = vld [vmem:[#allocation30_spill] sm:$0xff] }
 0x4a2   :  { %13188 = vst [vmem:[#allocation116_spill] sm:$0xff] %v10469_v50  ;;  %7238 = vmatprep.subr.bf16.mxu0 %v2006_v28  ;;  %v13196_v50 = vld [vmem:[#allocation43_spill] sm:$0xff] }
 0x4a5   :  { %7239 = vmatpush3.bf16.msra.mxu0 %v2006_v28  ;;  %v3761_v28 = vmul.f32 0.2, %v3745_v13 }
 0x4a6   :  { %v10471_v59 = vpop.f32.mrb[60].mxu1 }
 0x4a7   :  { %13189 = vst [vmem:[#allocation41_spill] sm:$0xff] %v10471_v59  ;;  %v10473_v8 = vpop.f32.mrb[61].mxu1  ;;  %v3747_v59 = vadd.f32 %v13128_v30, %v13196_v50  ;;  %v4374_v50 = vadd.f32 %v13200_v48, %v10361_v61 }
 0x4a8   :  { %13190 = vst [vmem:[#allocation32_spill] sm:$0xff] %v10473_v8  ;;  %v10475_v51 = vpop.f32.mrb[62].mxu1 }
 0x4a9   :  { %13191 = vst [vmem:[#allocation81_spill] sm:$0xff] %v10475_v51  ;;  %v10477_v23 = vpop.f32.mrb[63].mxu1  ;;  %v3763_v18 = vmul.f32 0.2, %v3747_v59 }
 0x4aa   :  { %13192 = vst [vmem:[#allocation62_spill] sm:$0xff] %v10477_v23  ;;  %v8089_v17 = vpop.eup %8088  ;;  %v3777_v23 = vmax.f32 %v3745_v13, %v3761_v28  ;;  %v13206_v28 = vld [vmem:[#allocation66_spill] sm:$0xff] }
 0x4ab   :  { %v10481_v24 = vpack.c.bf16 %v8087_v41, %v8089_v17  ;;  %v4371_v17 = vadd.f32 %v13200_v48, %v10331_v57  ;;  %v3779_v41 = vmax.f32 %v3747_v59, %v3763_v18  ;;  %v4390_v59 = vmul.f32 0.2, %v4374_v50 }
 0x4ad   :  { %13194 = vst [vmem:[#allocation8_spill] sm:$0xff] %v10481_v24  ;;  %7417 = vmatmul.mubr.bf16.gmra.mrb[120].mxu1 %v10481_v24  ;;  %v13202_v24 = vld [vmem:[#allocation56_spill] sm:$0xff]  ;;  %v4387_v16 = vmul.f32 0.2, %v4371_v17  ;;  %v10511_v57 = vadd.f32 %v3779_v41, %v13206_v28  ;;  %v4406_v61 = vmax.f32 %v4374_v50, %v4390_v59 }
 0x4ae   :  { %v10484_v58 = vpop.f32.mrb[64].mxu1 }
 0x4af   :  { %13195 = vst [vmem:[#allocation40_spill] sm:$0xff] %v10484_v58  ;;  %v10488_v8 = vpop.f32.mrb[65].mxu1  ;;  %v10499_v58 = vadd.f32 %v3777_v23, %v13202_v24  ;;  %v4403_v18 = vmax.f32 %v4371_v17, %v4387_v16  ;;  %v4375_v23 = vadd.f32 %v13200_v48, %v10373_v46  ;;  %v10529_v46 = vadd.f32 %v4406_v61, %v13141_v19  ;;  %v3198_v17 = vpop.xlane.xlu1 %3197 }
 0x4b0   :  { %13197 = vst [vmem:[#allocation45_spill] sm:$0xff] %v10488_v8  ;;  %v10490_v51 = vpop.f32.mrb[66].mxu1 }
 0x4b1   :  { %13198 = vst [vmem:[#allocation5_spill] sm:$0xff] %v10490_v51  ;;  %v10492_v42 = vpop.f32.mrb[67].mxu1  ;;  %13211 = vst [vmem:[#allocation126_spill] sm:$0xff] %v10529_v46 }
 0x4b2   :  { %13199 = vst [vmem:[#allocation29_spill] sm:$0xff] %v10492_v42 }
 0x4b7   :  { %v10496_v20 = vpop.f32.mrb[68].mxu1 }
 0x4b8   :  { %13201 = vst [vmem:[#allocation96_spill] sm:$0xff] %v10496_v20  ;;  %v10503_v8 = vpop.f32.mrb[69].mxu1 }
 0x4b9   :  { %13203 = vst [vmem:[#allocation105_spill] sm:$0xff] %v10503_v8  ;;  %v10505_v51 = vpop.f32.mrb[70].mxu1  ;;  %3814 = vmax.xlane.f32.xlu0 %v10499_v58  ;;  %v4391_v8 = vmul.f32 0.2, %v4375_v23 }
 0x4ba   :  { %13204 = vst [vmem:[#allocation7_spill] sm:$0xff] %v10505_v51  ;;  %v10508_v13 = vpop.f32.mrb[71].mxu1  ;;  %v10521_v51 = vadd.f32 %v4403_v18, %v9172_v45 }
 0x4bb   :  { %13205 = vst [vmem:[#allocation9_spill] sm:$0xff] %v10508_v13  ;;  %v4407_v16 = vmax.f32 %v4375_v23, %v4391_v8  ;;  %v3217_v8 = vsub.f32 %v10115_v0, %v3198_v17  ;;  %v3202_v23 = vpop.xlane.xlu1 %3201 }
 0x4bd   :  { %3818 = vmax.xlane.f32.xlu0 %v10511_v57  ;;  %v10537_v18 = vadd.f32 %v4407_v16, %v9276_v44 }
 0x4bf   :  { %v10516_v20 = vpop.f32.mrb[72].mxu1  ;;  %13214 = vst [vmem:[#allocation129_spill] sm:$0xff] %v10537_v18 }
 0x4c0   :  { %13207 = vst [vmem:[#allocation10_spill] sm:$0xff] %v10516_v20  ;;  %v10518_v42 = vpop.f32.mrb[73].mxu1 }
 0x4c1   :  { %13208 = vst [vmem:[#allocation85_spill] sm:$0xff] %v10518_v42  ;;  %v10523_v13 = vpop.f32.mrb[74].mxu1  ;;  %v3219_v42 = vsub.f32 %v10131_v33, %v3202_v23 }
 0x4c2   :  { %13209 = vst [vmem:[#allocation43_spill] sm:$0xff] %v10523_v13  ;;  %v10525_v41 = vpop.f32.mrb[75].mxu1  ;;  %4435 = vmax.xlane.f32.xlu1 %v10521_v51 }
 0x4c3   :  { %13210 = vst [vmem:[#allocation30_spill] sm:$0xff] %v10525_v41  ;;  %v3245_v41 = vmul.f32 1.442695, %v3217_v8  ;;  %v3249_v0 = vmul.f32 1.442695, %v3219_v42  ;;  %v13226_v42 = vld [vmem:[#allocation12_spill] sm:$0xff] }
 0x4c5   :  { %8090 = vpow2.f32 %v3245_v41 }
 0x4c6   :  { %4441 = vmax.xlane.f32.xlu1 %v10529_v46 }
 0x4c7   :  { %v10532_v50 = vpop.f32.mrb[76].mxu1 }
 0x4c8   :  { %13212 = vst [vmem:[#allocation127_spill] sm:$0xff] %v10532_v50  ;;  %v10534_v59 = vpop.f32.mrb[77].mxu1 }
 0x4c9   :  { %13213 = vst [vmem:[#allocation128_spill] sm:$0xff] %v10534_v59  ;;  %v10539_v20 = vpop.f32.mrb[78].mxu1 }
 0x4ca   :  { %13215 = vst [vmem:[#allocation130_spill] sm:$0xff] %v10539_v20  ;;  %v10541_v13 = vpop.f32.mrb[79].mxu1  ;;  %4443 = vmax.xlane.f32.xlu1 %v10537_v18  ;;  %v13221_v18 = vld [vmem:[#allocation3_spill] sm:$0xff] }
 0x4cb   :  { %13216 = vst [vmem:[#allocation131_spill] sm:$0xff] %v10541_v13 }
 0x4cf   :  { %v10545_v61 = vpop.f32.mrb[80].mxu1 }
 0x4d0   :  { %13217 = vst [vmem:[#allocation132_spill] sm:$0xff] %v10545_v61  ;;  %v10548_v50 = vpop.f32.mrb[81].mxu1  ;;  %v3200_v59 = vpop.xlane.xlu0 %3199 }
 0x4d1   :  { %13218 = vst [vmem:[#allocation133_spill] sm:$0xff] %v10548_v50  ;;  %v10550_v46 = vpop.f32.mrb[82].mxu1  ;;  %v3218_v16 = vsub.f32 %v10278_v11, %v3200_v59  ;;  %v2010_v59 = vpop.permute.xlu1 %2009 }
 0x4d2   :  { %13219 = vst [vmem:[#allocation134_spill] sm:$0xff] %v10550_v46  ;;  %v10553_v20 = vpop.f32.mrb[83].mxu1  ;;  %v13246_v46 = vld [vmem:[#allocation75_spill] sm:$0xff] }
 0x4d3   :  { %13220 = vst [vmem:[#allocation135_spill] sm:$0xff] %v10553_v20  ;;  %v3247_v13 = vmul.f32 1.442695, %v3218_v16  ;;  %2630 = vrot.lane.b32.xlu0 %v13221_v18, %s8560_s29 }
 0x4d4   :  { %v3204_v17 = vpop.xlane.xlu0 %3203 }
 0x4d5   :  { %8092 = vpow2.f32 %v3247_v13  ;;  %v3220_v8 = vsub.f32 %v10291_v22, %v3204_v17  ;;  %v8091_v13 = vpop.eup %8090 }
 0x4d6   :  { %8094 = vpow2.f32 %v3249_v0  ;;  %v13228_v0 = vld [vmem:[#allocation13_spill] sm:$0xff] }
 0x4d7   :  { %v3251_v33 = vmul.f32 1.442695, %v3220_v8  ;;  %v10558_v23 = vpop.f32.mrb[84].mxu1 }
 0x4d8   :  { %13222 = vst [vmem:[#allocation3_spill] sm:$0xff] %v10558_v23  ;;  %v10560_v61 = vpop.f32.mrb[85].mxu1  ;;  %v2008_v50 = vpop.permute.xlu0 %2007 }
 0x4d9   :  { %13223 = vst [vmem:[#allocation136_spill] sm:$0xff] %v10560_v61  ;;  %8096 = vpow2.f32 %v3251_v33  ;;  %v10562_v11 = vpop.f32.mrb[86].mxu1  ;;  %7240 = vmatprep.subr.bf16.mxu0 %v2008_v50 }
 0x4da   :  { %13224 = vst [vmem:[#allocation137_spill] sm:$0xff] %v10562_v11  ;;  %v10564_v16 = vpop.f32.mrb[87].mxu1  ;;  %7241 = vmatpush3.bf16.msra.mxu0 %v2008_v50 }
 0x4db   :  { %13225 = vst [vmem:[#allocation138_spill] sm:$0xff] %v10564_v16  ;;  %4935 = vperm.xlu1 %7934, %v13226_v42   ;;  %7242 = vmatprep.subr.bf16.mxu0 %v2010_v59  ;;  %v13233_v42 = vld [vmem:[#allocation16_spill] sm:$0xff] }
 0x4de   :  { %7243 = vmatpush3.bf16.msra.mxu0 %v2010_v59  ;;  %v13234_v59 = vld [vmem:[#allocation50_spill] sm:$0xff] }
 0x4df   :  { %v8093_v22 = vpop.eup %8092  ;;  %v10567_v41 = vpop.f32.mrb[88].mxu1  ;;  %4947 = vperm.xlu1 %7934, %v13228_v0   ;;  %v3749_v16 = vadd.f32 %v13128_v30, %v13234_v59 }
 0x4e0   :  { %13227 = vst [vmem:[#allocation12_spill] sm:$0xff] %v10567_v41  ;;  %v10570_v17 = vpop.f32.mrb[89].mxu1  ;;  %v10572_v8 = vpack.c.bf16 %v8093_v22, %v8091_v13  ;;  %v8095_v11 = vpop.eup %8094  ;;  %v13237_v13 = vld [vmem:[#allocation15_spill] sm:$0xff]  ;;  %v13238_v22 = vld [vmem:[#allocation44_spill] sm:$0xff] }
 0x4e1   :  { %13229 = vst [vmem:[#allocation13_spill] sm:$0xff] %v10570_v17  ;;  %v10574_v33 = vpop.f32.mrb[90].mxu1 }
 0x4e2   :  { %13230 = vst [vmem:[#allocation139_spill] sm:$0xff] %v10572_v8  ;;  %13231 = vst [vmem:[#allocation140_spill] sm:$0xff] %v10574_v33  ;;  %v10576_v23 = vpop.f32.mrb[91].mxu1  ;;  %7420 = vmatprep.mubr.bf16.mxu1 %v10572_v8  ;;  %v3750_v33 = vadd.f32 %v13128_v30, %v13238_v22  ;;  %v13242_v8 = vld [vmem:[#allocation17_spill] sm:$0xff] }
 0x4e3   :  { %13232 = vst [vmem:[#allocation141_spill] sm:$0xff] %v10576_v23  ;;  %v8097_v50 = vpop.eup %8096  ;;  %4951 = vperm.xlu1 %7934, %v13233_v42   ;;  %v3765_v23 = vmul.f32 0.2, %v3749_v16 }
 0x4e4   :  { %v10582_v41 = vpack.c.bf16 %v8097_v50, %v8095_v11  ;;  %v3766_v11 = vmul.f32 0.2, %v3750_v33 }
 0x4e5   :  { %v3781_v50 = vmax.f32 %v3749_v16, %v3765_v23 }
 0x4e6   :  { %13235 = vst [vmem:[#allocation16_spill] sm:$0xff] %v10582_v41  ;;  %7421 = vmatmul.mubr.bf16.gmra.mrb[124].mxu1 %v10582_v41  ;;  %v13244_v41 = vld [vmem:[#allocation20_spill] sm:$0xff] }
 0x4e7   :  { %v10585_v0 = vpop.f32.mrb[92].mxu1  ;;  %4955 = vperm.xlu1 %7934, %v13237_v13   ;;  %v10603_v22 = vadd.f32 %v3781_v50, %v13246_v46  ;;  %v13255_v50 = vld [vmem:[#allocation24_spill] sm:$0xff] }
 0x4e8   :  { %13236 = vst [vmem:[#allocation50_spill] sm:$0xff] %v10585_v0  ;;  %v10590_v17 = vpop.f32.mrb[93].mxu1  ;;  %v3782_v0 = vmax.f32 %v3750_v33, %v3766_v11 }
 0x4e9   :  { %13239 = vst [vmem:[#allocation15_spill] sm:$0xff] %v10590_v17  ;;  %v10592_v61 = vpop.f32.mrb[94].mxu1 }
 0x4ea   :  { %13240 = vst [vmem:[#allocation44_spill] sm:$0xff] %v10592_v61  ;;  %v10594_v42 = vpop.f32.mrb[95].mxu1  ;;  %v13249_v61 = vld [vmem:[#allocation19_spill] sm:$0xff]  ;;  %v10612_v23 = vadd.f32 %v3782_v0, %v13105_v32  ;;  %v3805_v0 = vpop.xlane.xlu1 %3804 }
 0x4eb   :  { %13241 = vst [vmem:[#allocation142_spill] sm:$0xff] %v10594_v42  ;;  %4963 = vperm.xlu1 %7934, %v13242_v8  }
 0x4ef   :  { %v10597_v59 = vpop.f32.mrb[96].mxu1  ;;  %4967 = vperm.xlu1 %7934, %v13244_v41   ;;  %v13251_v41 = vld [vmem:[#allocation21_spill] sm:$0xff] }
 0x4f0   :  { %13243 = vst [vmem:[#allocation17_spill] sm:$0xff] %v10597_v59  ;;  %v10600_v13 = vpop.f32.mrb[97].mxu1 }
 0x4f1   :  { %13245 = vst [vmem:[#allocation20_spill] sm:$0xff] %v10600_v13  ;;  %v10605_v20 = vpop.f32.mrb[98].mxu1 }
 0x4f2   :  { %13247 = vst [vmem:[#allocation143_spill] sm:$0xff] %v10605_v20  ;;  %v10607_v17 = vpop.f32.mrb[99].mxu1  ;;  %3822 = vmax.xlane.f32.xlu0 %v10603_v22 }
 0x4f3   :  { %13248 = vst [vmem:[#allocation144_spill] sm:$0xff] %v10607_v17  ;;  %4971 = vperm.xlu1 %7934, %v13249_v61   ;;  %v13257_v61 = vld [vmem:[#allocation23_spill] sm:$0xff] }
 0x4f6   :  { %3824 = vmax.xlane.f32.xlu0 %v10612_v23 }
 0x4f7   :  { %v10615_v16 = vpop.f32.mrb[100].mxu1  ;;  %4979 = vperm.xlu1 %7934, %v13251_v41   ;;  %v13261_v41 = vld [vmem:[#allocation25_spill] sm:$0xff] }
 0x4f8   :  { %13250 = vst [vmem:[#allocation19_spill] sm:$0xff] %v10615_v16  ;;  %v10618_v8 = vpop.f32.mrb[101].mxu1 }
 0x4f9   :  { %13252 = vst [vmem:[#allocation21_spill] sm:$0xff] %v10618_v8  ;;  %v10620_v33 = vpop.f32.mrb[102].mxu1  ;;  %v3836_v8 = vsub.f32 %v10269_v40, %v3805_v0 }
 0x4fa   :  { %13253 = vst [vmem:[#allocation145_spill] sm:$0xff] %v10620_v33  ;;  %v10622_v11 = vpop.f32.mrb[103].mxu1  ;;  %v3811_v33 = vpop.xlane.xlu1 %3810 }
 0x4fb   :  { %13254 = vst [vmem:[#allocation146_spill] sm:$0xff] %v10622_v11  ;;  %4983 = vperm.xlu1 %7934, %v13255_v50   ;;  %v13263_v11 = vmov 0  }
 0x4ff   :  { %v10625_v42 = vpop.f32.mrb[104].mxu1  ;;  %4987 = vperm.xlu1 %7934, %v13257_v61   ;;  %v3839_v61 = vsub.f32 %v10284_v60, %v3811_v33 }
 0x500   :  { %13256 = vst [vmem:[#allocation24_spill] sm:$0xff] %v10625_v42  ;;  %v10628_v59 = vpop.f32.mrb[105].mxu1  ;;  %v3852_v42 = vmul.f32 1.442695, %v3836_v8 }
 0x501   :  { %13258 = vst [vmem:[#allocation23_spill] sm:$0xff] %v10628_v59  ;;  %v10630_v13 = vpop.f32.mrb[106].mxu1  ;;  %v3858_v40 = vmul.f32 1.442695, %v3839_v61 }
 0x502   :  { %13259 = vst [vmem:[#allocation147_spill] sm:$0xff] %v10630_v13  ;;  %v10632_v16 = vpop.f32.mrb[107].mxu1  ;;  %8098 = vpow2.f32 %v3852_v42 }
 0x503   :  { %13260 = vst [vmem:[#allocation148_spill] sm:$0xff] %v10632_v16  ;;  %4995 = vperm.xlu1 %7934, %v13261_v41  }
 0x507   :  { %v10636_v20 = vpop.f32.mrb[108].mxu1  ;;  %7937 = vset.pattern.permute.xlu1 %v13263_v11 }
 0x508   :  { %13262 = vst [vmem:[#allocation25_spill] sm:$0xff] %v10636_v20  ;;  %v10639_v50 = vpop.f32.mrb[109].mxu1 }
 0x509   :  { %13264 = vst [vmem:[#allocation149_spill] sm:$0xff] %v10639_v50  ;;  %v10642_v17 = vpop.f32.mrb[110].mxu1  ;;  %v3807_v59 = vpop.xlane.xlu0 %3806  ;;  %v13274_v50 = vld [vmem:[#allocation94_spill] sm:$0xff] }
 0x50a   :  { %13265 = vst [vmem:[#allocation150_spill] sm:$0xff] %v10642_v17  ;;  %v10644_v13 = vpop.f32.mrb[111].mxu1  ;;  %v3837_v16 = vsub.f32 %v10378_v1, %v3807_v59  ;;  %v13269_v17 = vld [vmem:[#allocation6_spill] sm:$0xff] }
 0x50b   :  { %13266 = vst [vmem:[#allocation151_spill] sm:$0xff] %v10644_v13 }
 0x50c   :  { %v3854_v41 = vmul.f32 1.442695, %v3837_v16  ;;  %2634 = vrot.lane.b32.xlu0 %v13125_v62, %s8560_s29 }
 0x50d   :  { %v3809_v0 = vpop.xlane.xlu0 %3808 }
 0x50e   :  { %8100 = vpow2.f32 %v3854_v41  ;;  %v3838_v20 = vsub.f32 %v10388_v6, %v3809_v0  ;;  %v8099_v6 = vpop.eup %8098 }
 0x50f   :  { %v10650_v8 = vpop.f32.mrb[112].mxu1  ;;  %8102 = vpow2.f32 %v3858_v40  ;;  %v4377_v40 = vadd.f32 %v13200_v48, %v10392_v34  ;;  %v13276_v34 = vld [vmem:[#allocation98_spill] sm:$0xff] }
 0x510   :  { %13267 = vst [vmem:[#allocation152_spill] sm:$0xff] %v10650_v8  ;;  %v3856_v60 = vmul.f32 1.442695, %v3838_v20  ;;  %v10652_v33 = vpop.f32.mrb[113].mxu1  ;;  %2636 = vrot.lane.b32.xlu0 %v13269_v17, %s8560_s29  ;;  %v13275_v8 = vld [vmem:[#allocation47_spill] sm:$0xff] }
 0x511   :  { %13268 = vst [vmem:[#allocation153_spill] sm:$0xff] %v10652_v33  ;;  %v10656_v1 = vpop.f32.mrb[114].mxu1  ;;  %v2012_v59 = vpop.permute.xlu0 %2011 }
 0x512   :  { %8104 = vpow2.f32 %v3856_v60  ;;  %v10658_v16 = vpop.f32.mrb[115].mxu1  ;;  %7244 = vmatprep.subr.bf16.mxu0 %v2012_v59 }
 0x513   :  { %7245 = vmatpush3.bf16.msra.mxu0 %v2012_v59 }
 0x515   :  { %v2014_v42 = vpop.permute.xlu0 %2013 }
 0x516   :  { %7246 = vmatprep.subr.bf16.mxu0 %v2014_v42 }
 0x517   :  { %v10660_v61 = vpop.f32.mrb[116].mxu1  ;;  %7247 = vmatpush3.bf16.msra.mxu0 %v2014_v42 }
 0x518   :  { %13270 = vst [vmem:[#allocation6_spill] sm:$0xff] %v10660_v61  ;;  %v8101_v20 = vpop.eup %8100  ;;  %v10662_v41 = vpop.f32.mrb[117].mxu1  ;;  %v4393_v61 = vmul.f32 0.2, %v4377_v40 }
 0x519   :  { %13271 = vst [vmem:[#allocation154_spill] sm:$0xff] %v10662_v41  ;;  %v10666_v0 = vpop.f32.mrb[118].mxu1  ;;  %v10668_v13 = vpack.c.bf16 %v8101_v20, %v8099_v6  ;;  %v8103_v59 = vpop.eup %8102  ;;  %v3753_v6 = vadd.f32 %v13128_v30, %v13276_v34  ;;  %v13280_v34 = vld [vmem:[#allocation4_spill] sm:$0xff] }
 0x51a   :  { %13272 = vst [vmem:[#allocation155_spill] sm:$0xff] %v10666_v0  ;;  %v10670_v60 = vpop.f32.mrb[119].mxu1  ;;  %7249 = vmatmul.mubr.bf16.vlgmr.msra.gmra.mrb[20].mxu0 %v13274_v50  ;;  %v4409_v20 = vmax.f32 %v4377_v40, %v4393_v61  ;;  %v13277_v50 = vld [vmem:[#allocation63_spill] sm:$0xff]  ;;  %v13278_v0 = vld [vmem:[#allocation61_spill] sm:$0xff] }
 0x51b   :  { %13273 = vst [vmem:[#allocation156_spill] sm:$0xff] %v10670_v60  ;;  %7252 = vmatprep.mubr.bf16.mxu0 %v13275_v8  ;;  %7472 = vmatprep.mubr.bf16.mxu1 %v10668_v13  ;;  %v3769_v8 = vmul.f32 0.2, %v3753_v6 }
 0x51c   :  { %v8105_v42 = vpop.eup %8104 }
 0x51d   :  { %v10675_v33 = vpack.c.bf16 %v8103_v59, %v8105_v42  ;;  %v3755_v59 = vadd.f32 %v13128_v30, %v13278_v0  ;;  %v10688_v42 = vadd.f32 %v4409_v20, %v9333_v3  ;;  %v3785_v61 = vmax.f32 %v3753_v6, %v3769_v8  ;;  %v3813_v20 = vpop.xlane.xlu1 %3812 }
 0x51f   :  { %7473 = vmatmul.mubr.bf16.vlgmr.msra.gmra.mrb[128].mxu1 %v10675_v33  ;;  %v3771_v40 = vmul.f32 0.2, %v3755_v59  ;;  %v10698_v0 = vadd.f32 %v3785_v61, %v13139_v12 }
 0x520   :  { %7521 = vmatpush3.bf16.msra.mxu1 %v13045_v31 }
 0x521   :  { %7522 = vmatprep.subr.bf16.mxu1 %v13045_v31  ;;  %v3787_v30 = vmax.f32 %v3755_v59, %v3771_v40 }
 0x522   :  { %7253 = vmatmul.mubr.bf16.gmra.mrb[24].mxu0 %v10102_v25  ;;  %v13279_v25 = vld [vmem:[#allocation33_spill] sm:$0xff] }
 0x523   :  { %7256 = vmatprep.mubr.bf16.mxu0 %v13277_v50  ;;  %v10704_v6 = vadd.f32 %v3787_v30, %v13142_v39 }
 0x524   :  { %7523 = vmatpush3.bf16.msra.mxu1 %v13045_v31 }
 0x525   :  { %7524 = vmatprep.subr.bf16.mxu1 %v13045_v31 }
 0x527   :  { %4447 = vmax.xlane.f32.xlu1 %v10688_v42 }
 0x528   :  { %7525 = vmatpush3.bf16.msra.mxu1 %v13045_v31 }
 0x529   :  { %7526 = vmatprep.subr.bf16.mxu1 %v13045_v31 }
 0x52a   :  { %7257 = vmatmul.mubr.bf16.gmra.mrb[28].mxu0 %v13279_v25 }
 0x52b   :  { %7260 = vmatprep.mubr.bf16.mxu0 %v13280_v34 }
 0x52c   :  { %7527 = vmatpush3.bf16.msra.mxu1 %v13045_v31 }
 0x52d   :  { %7528 = vmatprep.subr.bf16.mxu1 %v13045_v31 }
 0x52f   :  { %3830 = vmax.xlane.f32.xlu0 %v10698_v0 }
 0x530   :  { %7529 = vmatpush3.bf16.msra.mxu1 %v13045_v31 }
 0x531   :  { %7530 = vmatprep.subr.bf16.mxu1 %v13045_v31 }
 0x532   :  { %7261 = vmatmul.mubr.bf16.gmra.mrb[32].mxu0 %v10160_v54  ;;  %v3840_v54 = vsub.f32 %v10296_v2, %v3813_v20  ;;  %v4379_v2 = vadd.f32 %v13200_v48, %v10410_v63 }
 0x533   :  { %3834 = vmax.xlane.f32.xlu0 %v10704_v6  ;;  %7312 = vmatprep.mubr.bf16.mxu0 %v10163_v43  ;;  %v3817_v43 = vpop.xlane.xlu1 %3816 }
 0x534   :  { %7531 = vmatpush3.bf16.msra.mxu1 %v13045_v31  ;;  %v3860_v50 = vmul.f32 1.442695, %v3840_v54  ;;  %v3842_v8 = vsub.f32 %v10303_v21, %v3817_v43  ;;  %v4395_v54 = vmul.f32 0.2, %v4379_v2 }
 0x535   :  { %7532 = vmatprep.subr.bf16.mxu1 %v13045_v31 }
 0x536   :  { %8106 = vpow2.f32 %v3860_v50  ;;  %v3864_v25 = vmul.f32 1.442695, %v3842_v8 }
 0x537   :  { %v2633_v21 = vpop.permute.xlu1 %2632 }
 0x538   :  { %3263 = vrot.lane.b32.xlu1 %v13024_v26, %s8562_s30  ;;  %7533 = vmatpush3.bf16.msra.mxu1 %v13045_v31 }
 0x539   :  { %7534 = vmatprep.subr.bf16.mxu1 %v13045_v31 }
 0x53c   :  { %7535 = vmatpush3.bf16.msra.mxu1 %v13045_v31 }
 0x53d   :  { %7584 = vmatprep.subr.bf16.mxu1 %v13045_v31 }
 0x540   :  { %v8107_v43 = vpop.eup %8106 }
 0x546   :  { %v3815_v59 = vpop.xlane.xlu0 %3814 }
 0x547   :  { %v3841_v61 = vsub.f32 %v10499_v58, %v3815_v59  ;;  %v4382_v58 = vadd.f32 %v13200_v48, %v10408_v49 }
 0x549   :  { %v3862_v40 = vmul.f32 1.442695, %v3841_v61  ;;  %2638 = vrot.lane.b32.xlu0 %v13148_v47, %s8560_s29  ;;  %v4398_v8 = vmul.f32 0.2, %v4382_v58 }
 0x54a   :  { %v3819_v34 = vpop.xlane.xlu0 %3818 }
 0x54b   :  { %8108 = vpow2.f32 %v3862_v40  ;;  %v3843_v30 = vsub.f32 %v10511_v57, %v3819_v34  ;;  %v4411_v57 = vmax.f32 %v4379_v2, %v4395_v54  ;;  %v4372_v40 = vadd.f32 %v13200_v48, %v10343_v7 }
 0x54c   :  { %8110 = vpow2.f32 %v3864_v25  ;;  %v4373_v34 = vadd.f32 %v13200_v48, %v10341_v38  ;;  %v3821_v38 = vpop.xlane.xlu1 %3820 }
 0x54d   :  { %v3866_v60 = vmul.f32 1.442695, %v3843_v30  ;;  %v10734_v25 = vadd.f32 %v4411_v57, %v13046_v36  ;;  %v4388_v30 = vmul.f32 0.2, %v4372_v40 }
 0x54e   :  { %v2631_v20 = vpop.permute.xlu0 %2630 }
 0x54f   :  { %8112 = vpow2.f32 %v3866_v60  ;;  %7296 = vmatprep.subr.bf16.mxu0 %v2631_v20  ;;  %v4414_v60 = vmax.f32 %v4382_v58, %v4398_v8  ;;  %v4404_v7 = vmax.f32 %v4372_v40, %v4388_v30 }
 0x550   :  { %7297 = vmatpush3.bf16.msra.mxu0 %v2631_v20  ;;  %v4389_v20 = vmul.f32 0.2, %v4373_v34 }
 0x551   :  { %7298 = vmatprep.subr.bf16.mxu0 %v2633_v21  ;;  %v10743_v2 = vadd.f32 %v4414_v60, %v13012_v53  ;;  %v10747_v58 = vadd.f32 %v4404_v7, %v13162_v37 }
 0x554   :  { %7299 = vmatpush3.bf16.msra.mxu0 %v2633_v21  ;;  %v4405_v21 = vmax.f32 %v4373_v34, %v4389_v20 }
 0x555   :  { %v8109_v50 = vpop.eup %8108 }
 0x556   :  { %v10728_v59 = vpack.c.bf16 %v8109_v50, %v8107_v43  ;;  %v8111_v61 = vpop.eup %8110  ;;  %v10751_v54 = vadd.f32 %v4405_v21, %v9212_v14  ;;  %v3844_v43 = vsub.f32 %v10397_v4, %v3821_v38  ;;  %v3827_v50 = vpop.xlane.xlu1 %3826 }
 0x558   :  { %7476 = vmatprep.mubr.bf16.mxu1 %v10728_v59  ;;  %v3868_v8 = vmul.f32 1.442695, %v3844_v43 }
 0x559   :  { %v8113_v63 = vpop.eup %8112 }
 0x55a   :  { %v10736_v49 = vpack.c.bf16 %v8113_v63, %v8111_v61  ;;  %v3847_v61 = vsub.f32 %v10406_v15, %v3827_v50  ;;  %8114 = vpow2.f32 %v3868_v8  ;;  %v4386_v50 = vadd.f32 %v13200_v48, %v10437_v35 }
 0x55b   :  { %v4376_v35 = vadd.f32 %v13200_v48, %v10357_v5 }
 0x55c   :  { %13281 = vst [vmem:[#allocation94_spill] sm:$0xff] %v10736_v49  ;;  %4451 = vmax.xlane.f32.xlu1 %v10734_v25  ;;  %7477 = vmatmul.mubr.bf16.gmra.mrb[132].mxu1 %v10736_v49  ;;  %v3874_v4 = vmul.f32 1.442695, %v3847_v61 }
 0x560   :  { %4457 = vmax.xlane.f32.xlu1 %v10743_v2 }
 0x568   :  { %4437 = vmax.xlane.f32.xlu0 %v10747_v58 }
 0x56c   :  { %4439 = vmax.xlane.f32.xlu0 %v10751_v54 }
 0x571   :  { %3267 = vrot.lane.b32.xlu1 %v13269_v17, %s8562_s30 }
 0x57f   :  { %v3823_v57 = vpop.xlane.xlu0 %3822 }
 0x580   :  { %v3845_v63 = vsub.f32 %v10603_v22, %v3823_v57  ;;  %v10759_v60 = vpop.f32.mrb[120].mxu1  ;;  %v4383_v22 = vadd.f32 %v13200_v48, %v10425_v9  ;;  %v8115_v57 = vpop.eup %8114 }
 0x581   :  { %13282 = vst [vmem:[#allocation47_spill] sm:$0xff] %v10759_v60  ;;  %v10761_v40 = vpop.f32.mrb[121].mxu1 }
 0x582   :  { %13283 = vst [vmem:[#allocation98_spill] sm:$0xff] %v10761_v40  ;;  %v3870_v34 = vmul.f32 1.442695, %v3845_v63  ;;  %2642 = vrot.lane.b32.xlu0 %v13178_v55, %s8560_s29  ;;  %v10765_v30 = vpop.f32.mrb[122].mxu1  ;;  %v4399_v43 = vmul.f32 0.2, %v4383_v22 }
 0x583   :  { %13284 = vst [vmem:[#allocation63_spill] sm:$0xff] %v10765_v30  ;;  %v10767_v20 = vpop.f32.mrb[123].mxu1  ;;  %v3825_v7 = vpop.xlane.xlu0 %3824  ;;  %v4402_v63 = vmul.f32 0.2, %v4386_v50 }
 0x584   :  { %13285 = vst [vmem:[#allocation61_spill] sm:$0xff] %v10767_v20  ;;  %8116 = vpow2.f32 %v3870_v34  ;;  %v3846_v15 = vsub.f32 %v10612_v23, %v3825_v7  ;;  %v4415_v61 = vmax.f32 %v4383_v22, %v4399_v43  ;;  %v4392_v43 = vmul.f32 0.2, %v4376_v35 }
 0x585   :  { %8118 = vpow2.f32 %v3874_v4  ;;  %v4418_v7 = vmax.f32 %v4386_v50, %v4402_v63 }
 0x586   :  { %2644 = vrot.lane.b32.xlu0 %v13184_v27, %s8560_s29  ;;  %v3872_v21 = vmul.f32 1.442695, %v3846_v15  ;;  %v10780_v15 = vadd.f32 %v4415_v61, %v13099_v29  ;;  %v4408_v50 = vmax.f32 %v4376_v35, %v4392_v43  ;;  %v13290_v43 = vld [vmem:[#allocation11_spill] sm:$0xff] }
 0x587   :  { %v2635_v38 = vpop.permute.xlu0 %2634  ;;  %v10789_v22 = vadd.f32 %v4418_v7, %v13142_v39 }
 0x588   :  { %8120 = vpow2.f32 %v3872_v21  ;;  %7300 = vmatprep.subr.bf16.mxu0 %v2635_v38 }
 0x589   :  { %7301 = vmatpush3.bf16.msra.mxu0 %v2635_v38  ;;  %v3829_v38 = vpop.xlane.xlu1 %3828 }
 0x58b   :  { %v2637_v8 = vpop.permute.xlu0 %2636 }
 0x58c   :  { %7302 = vmatprep.subr.bf16.mxu0 %v2637_v8 }
 0x58d   :  { %7303 = vmatpush3.bf16.msra.mxu0 %v2637_v8  ;;  %v3833_v8 = vpop.xlane.xlu1 %3832 }
 0x58e   :  { %v8117_v23 = vpop.eup %8116  ;;  %v3850_v60 = vsub.f32 %v10430_v52, %v3833_v8 }
 0x58f   :  { %v10776_v34 = vpack.c.bf16 %v8117_v23, %v8115_v57  ;;  %v8119_v9 = vpop.eup %8118  ;;  %v10793_v57 = vadd.f32 %v4408_v50, %v13202_v24 }
 0x591   :  { %13286 = vst [vmem:[#allocation33_spill] sm:$0xff] %v10776_v34  ;;  %7480 = vmatprep.mubr.bf16.mxu1 %v10776_v34  ;;  %v2641_v23 = vpop.permute.xlu1 %2640  ;;  %v13293_v34 = vld [vmem:[#allocation14_spill] sm:$0xff] }
 0x592   :  { %v8121_v4 = vpop.eup %8120 }
 0x593   :  { %v10782_v21 = vpack.c.bf16 %v8119_v9, %v8121_v4  ;;  %v3848_v9 = vsub.f32 %v10418_v56, %v3829_v38  ;;  %v3880_v56 = vmul.f32 1.442695, %v3850_v60  ;;  %v13294_v38 = vld [vmem:[#allocation31_spill] sm:$0xff] }
 0x595   :  { %13287 = vst [vmem:[#allocation4_spill] sm:$0xff] %v10782_v21  ;;  %4459 = vmax.xlane.f32.xlu1 %v10780_v15  ;;  %7481 = vmatmul.mubr.bf16.gmra.mrb[136].mxu1 %v10782_v21  ;;  %v10796_v61 = vpop.xlane.xlu1 %4435  ;;  %v3876_v30 = vmul.f32 1.442695, %v3848_v9 }
 0x597   :  { %8122 = vpow2.f32 %v3876_v30 }
 0x599   :  { %4465 = vmax.xlane.f32.xlu1 %v10789_v22  ;;  %v10800_v5 = vpop.xlane.xlu1 %4441 }
 0x59d   :  { %v10802_v63 = vpop.xlane.xlu1 %4443 }
 0x5a1   :  { %v4936_v35 = vpop.permute.xlu1 %4935  ;;  %v8123_v30 = vpop.eup %8122 }
 0x5a5   :  { %4445 = vmax.xlane.f32.xlu0 %v10793_v57  ;;  %v4948_v49 = vpop.permute.xlu1 %4947 }
 0x5a6   :  { %v5005_v8 = vadd.f32 %v13294_v38, %v4948_v49 }
 0x5aa   :  { %3271 = vrot.lane.b32.xlu1 %v13120_v10, %s8562_s30 }
 0x5b9   :  { %v10805_v4 = vpop.f32.mrb[124].mxu1 }
 0x5ba   :  { %13288 = vst [vmem:[#allocation157_spill] sm:$0xff] %v10805_v4  ;;  %v10807_v7 = vpop.f32.mrb[125].mxu1  ;;  %v5002_v4 = vadd.f32 %v13294_v38, %v4936_v35 }
 0x5bb   :  { %13289 = vst [vmem:[#allocation158_spill] sm:$0xff] %v10807_v7  ;;  %4939 = vperm.xlu0 %7935, %v13290_v43   ;;  %v10810_v50 = vpop.f32.mrb[126].mxu1 }
 0x5bc   :  { %13291 = vst [vmem:[#allocation11_spill] sm:$0xff] %v10810_v50  ;;  %v10813_v20 = vpop.f32.mrb[127].mxu1  ;;  %v3831_v40 = vpop.xlane.xlu0 %3830  ;;  %v13295_v50 = vld [vmem:[#allocation18_spill] sm:$0xff]  ;;  %v5018_v52 = vmul.f32 0.2, %v5002_v4 }
 0x5bd   :  { %13292 = vst [vmem:[#allocation159_spill] sm:$0xff] %v10813_v20  ;;  %v3849_v41 = vsub.f32 %v10698_v0, %v3831_v40  ;;  %v5021_v40 = vmul.f32 0.2, %v5005_v8 }
 0x5be   :  { %v5034_v60 = vmax.f32 %v5002_v4, %v5018_v52 }
 0x5bf   :  { %v3878_v21 = vmul.f32 1.442695, %v3849_v41  ;;  %4943 = vperm.xlu0 %7935, %v13293_v34   ;;  %v13296_v41 = vld [vmem:[#allocation22_spill] sm:$0xff] }
 0x5c0   :  { %v3835_v7 = vpop.xlane.xlu0 %3834 }
 0x5c1   :  { %8124 = vpow2.f32 %v3878_v21  ;;  %v3851_v43 = vsub.f32 %v10704_v6, %v3835_v7  ;;  %v13297_v6 = vld [vmem:[#allocation26_spill] sm:$0xff]  ;;  %v5037_v21 = vmax.f32 %v5005_v8, %v5021_v40  ;;  %v10824_v7 = vadd.f32 %v5034_v60, %v9172_v45  ;;  %v4952_v40 = vpop.permute.xlu1 %4951 }
 0x5c2   :  { %8126 = vpow2.f32 %v3880_v56  ;;  %v13300_v56 = vld [vmem:[#allocation91_spill] sm:$0xff] }
 0x5c3   :  { %v3882_v9 = vmul.f32 1.442695, %v3851_v43  ;;  %4959 = vperm.xlu0 %7935, %v13295_v50   ;;  %v10832_v4 = vadd.f32 %v5037_v21, %v13141_v19  ;;  %v4378_v43 = vadd.f32 %v13200_v48, %v13300_v56 }
 0x5c4   :  { %v2639_v0 = vpop.permute.xlu0 %2638 }
 0x5c5   :  { %8128 = vpow2.f32 %v3882_v9  ;;  %7304 = vmatprep.subr.bf16.mxu0 %v2639_v0  ;;  %v4394_v9 = vmul.f32 0.2, %v4378_v43  ;;  %v10872_v45 = vpop.permute.xlu1 %4955 }
 0x5c6   :  { %7305 = vmatpush3.bf16.msra.mxu0 %v2639_v0 }
 0x5c7   :  { %4975 = vperm.xlu0 %7935, %v13296_v41   ;;  %7306 = vmatprep.subr.bf16.mxu0 %v2641_v23  ;;  %v4410_v52 = vmax.f32 %v4378_v43, %v4394_v9  ;;  %v13308_v43 = vld [vmem:[#allocation126_spill] sm:$0xff] }
 0x5c8   :  { %v4470_v9 = vsub.f32 %v13308_v43, %v10800_v5  ;;  %v5006_v5 = vadd.f32 %v13294_v38, %v4952_v40 }
 0x5c9   :  { %v4964_v43 = vpop.permute.xlu1 %4963 }
 0x5ca   :  { %7307 = vmatpush3.bf16.msra.mxu0 %v2641_v23 }
 0x5cb   :  { %v8125_v34 = vpop.eup %8124  ;;  %4991 = vperm.xlu0 %7935, %v13297_v6  }
 0x5cc   :  { %v10826_v35 = vpack.c.bf16 %v8125_v34, %v8123_v30  ;;  %v8127_v49 = vpop.eup %8126  ;;  %v4467_v30 = vsub.f32 %v10521_v51, %v10796_v61 }
 0x5ce   :  { %13298 = vst [vmem:[#allocation14_spill] sm:$0xff] %v10826_v35  ;;  %5066 = vmax.xlane.f32.xlu1 %v10824_v7  ;;  %7484 = vmatprep.mubr.bf16.mxu1 %v10826_v35  ;;  %v4483_v56 = vmul.f32 1.442695, %v4467_v30 }
 0x5cf   :  { %v8129_v50 = vpop.eup %8128  ;;  %7936 = vset.pattern.permute.xlu0 %v13263_v11  ;;  %v10845_v11 = vadd.f32 %v4410_v52, %v13206_v28 }
 0x5d0   :  { %v10834_v23 = vpack.c.bf16 %v8129_v50, %v8127_v49  ;;  %8130 = vpow2.f32 %v4483_v56 }
 0x5d2   :  { %13299 = vst [vmem:[#allocation31_spill] sm:$0xff] %v10834_v23  ;;  %5072 = vmax.xlane.f32.xlu1 %v10832_v4  ;;  %7485 = vmatmul.mubr.bf16.gmra.mrb[140].mxu1 %v10834_v23 }
 0x5da   :  { %v8131_v56 = vpop.eup %8130 }
 0x5e3   :  { %3275 = vrot.lane.b32.xlu1 %v13184_v27, %s8562_s30 }
 0x5e7   :  { %3892 = vrot.lane.b32.xlu1 %v13221_v18, %s8563_s11 }
 0x5ea   :  { %4449 = vmax.xlane.f32.xlu0 %v10845_v11 }
 0x5ed   :  { %v10848_v8 = vpop.f32.mrb[20].mxu0 }
 0x5ee   :  { %13301 = vst [vmem:[#allocation18_spill] sm:$0xff] %v10848_v8  ;;  %v10850_v0 = vpop.f32.mrb[21].mxu0 }
 0x5ef   :  { %13302 = vst [vmem:[#allocation22_spill] sm:$0xff] %v10850_v0  ;;  %v10852_v41 = vpop.f32.mrb[22].mxu0 }
 0x5f0   :  { %13303 = vst [vmem:[#allocation26_spill] sm:$0xff] %v10852_v41  ;;  %v10854_v60 = vpop.f32.mrb[23].mxu0 }
 0x5f1   :  { %13304 = vst [vmem:[#allocation91_spill] sm:$0xff] %v10854_v60 }
 0x5f2   :  { %v10858_v34 = vpop.f32.mrb[128].mxu1 }
 0x5f3   :  { %13305 = vst [vmem:[#allocation160_spill] sm:$0xff] %v10858_v34  ;;  %v10860_v6 = vpop.f32.mrb[129].mxu1 }
 0x5f4   :  { %13306 = vst [vmem:[#allocation161_spill] sm:$0xff] %v10860_v6  ;;  %v10862_v21 = vpop.f32.mrb[130].mxu1 }
 0x5f5   :  { %v10864_v49 = vpop.f32.mrb[24].mxu0  ;;  %v10866_v50 = vpop.f32.mrb[131].mxu1 }
 0x5f6   :  { %13307 = vst [vmem:[#allocation162_spill] sm:$0xff] %v10864_v49  ;;  %v4438_v52 = vpop.xlane.xlu0 %4437  ;;  %v10870_v19 = vpop.f32.mrb[25].mxu0  ;;  %v4489_v49 = vmul.f32 1.442695, %v4470_v9 }
 0x5f7   :  { %13309 = vst [vmem:[#allocation126_spill] sm:$0xff] %v10870_v19  ;;  %v4468_v51 = vsub.f32 %v10747_v58, %v4438_v52  ;;  %v10875_v61 = vpop.f32.mrb[26].mxu0 }
 0x5f8   :  { %13310 = vst [vmem:[#allocation163_spill] sm:$0xff] %v10875_v61  ;;  %v10877_v41 = vpop.f32.mrb[27].mxu0 }
 0x5f9   :  { %13311 = vst [vmem:[#allocation164_spill] sm:$0xff] %v10877_v41  ;;  %v4485_v8 = vmul.f32 1.442695, %v4468_v51 }
 0x5fa   :  { %v4440_v60 = vpop.xlane.xlu0 %4439 }
 0x5fb   :  { %8132 = vpow2.f32 %v4485_v8  ;;  %v4469_v30 = vsub.f32 %v10751_v54, %v4440_v60  ;;  %v5022_v54 = vmul.f32 0.2, %v5006_v5  ;;  %v5009_v60 = vadd.f32 %v13294_v38, %v4964_v43 }
 0x5fc   :  { %8134 = vpow2.f32 %v4489_v49 }
 0x5fd   :  { %v4487_v0 = vmul.f32 1.442695, %v4469_v30  ;;  %v10881_v19 = vpop.f32.mrb[28].mxu0  ;;  %v5038_v9 = vmax.f32 %v5006_v5, %v5022_v54  ;;  %v5025_v51 = vmul.f32 0.2, %v5009_v60 }
 0x5fe   :  { %13312 = vst [vmem:[#allocation165_spill] sm:$0xff] %v10881_v19  ;;  %v2643_v20 = vpop.permute.xlu0 %2642  ;;  %v10883_v58 = vpop.f32.mrb[29].mxu0 }
 0x5ff   :  { %13313 = vst [vmem:[#allocation166_spill] sm:$0xff] %v10883_v58  ;;  %8136 = vpow2.f32 %v4487_v0  ;;  %7308 = vmatprep.subr.bf16.mxu0 %v2643_v20  ;;  %v10885_v52 = vpop.f32.mrb[30].mxu0  ;;  %v13321_v58 = vld [vmem:[#allocation53_spill] sm:$0xff]  ;;  %v5041_v5 = vmax.f32 %v5009_v60, %v5025_v51  ;;  %v10906_v54 = vadd.f32 %v5038_v9, %v9276_v44  ;;  %v13325_v60 = vld [vmem:[#allocation36_spill] sm:$0xff]  ;;  %v13327_v9 = vld [vmem:[#allocation90_spill] sm:$0xff] }
 0x600   :  { %13314 = vst [vmem:[#allocation167_spill] sm:$0xff] %v10885_v52  ;;  %7309 = vmatpush3.bf16.msra.mxu0 %v2643_v20  ;;  %3261 = vrot.lane.b32.xlu0 %v13221_v18, %s8562_s30  ;;  %v10889_v8 = vpop.f32.mrb[31].mxu0  ;;  %v13319_v52 = vld [vmem:[#allocation35_spill] sm:$0xff]  ;;  %v4381_v51 = vadd.f32 %v13200_v48, %v13327_v9  ;;  %v13330_v9 = vld [vmem:[#allocation37_spill] sm:$0xff] }
 0x601   :  { %13315 = vst [vmem:[#allocation168_spill] sm:$0xff] %v10889_v8 }
 0x602   :  { %v2645_v40 = vpop.permute.xlu0 %2644 }
 0x603   :  { %7310 = vmatprep.subr.bf16.mxu0 %v2645_v40 }
 0x604   :  { %7311 = vmatpush3.bf16.msra.mxu0 %v2645_v40 }
 0x605   :  { %v8133_v49 = vpop.eup %8132  ;;  %v10892_v0 = vpop.f32.mrb[32].mxu0 }
 0x606   :  { %13316 = vst [vmem:[#allocation169_spill] sm:$0xff] %v10892_v0  ;;  %v10894_v30 = vpop.f32.mrb[33].mxu0  ;;  %v10896_v20 = vpack.c.bf16 %v8133_v49, %v8131_v56  ;;  %v8135_v8 = vpop.eup %8134  ;;  %v13326_v56 = vld [vmem:[#allocation86_spill] sm:$0xff] }
 0x607   :  { %13317 = vst [vmem:[#allocation170_spill] sm:$0xff] %v10894_v30  ;;  %7313 = vmatmul.mubr.bf16.vlgmr.msra.gmra.mrb[36].mxu0 %v13319_v52  ;;  %v10899_v19 = vpop.f32.mrb[34].mxu0  ;;  %v10913_v52 = vadd.f32 %v5041_v5, %v13206_v28  ;;  %v13329_v5 = vld [vmem:[#allocation88_spill] sm:$0xff] }
 0x608   :  { %13318 = vst [vmem:[#allocation171_spill] sm:$0xff] %v10896_v20  ;;  %13320 = vst [vmem:[#allocation35_spill] sm:$0xff] %v10899_v19  ;;  %7316 = vmatprep.mubr.bf16.mxu0 %v13321_v58  ;;  %7536 = vmatprep.mubr.bf16.mxu1 %v10896_v20  ;;  %v10903_v43 = vpop.f32.mrb[35].mxu0  ;;  %v13324_v58 = vld [vmem:[#allocation60_spill] sm:$0xff] }
 0x609   :  { %13322 = vst [vmem:[#allocation53_spill] sm:$0xff] %v10903_v43  ;;  %v8137_v40 = vpop.eup %8136 }
 0x60a   :  { %v10908_v0 = vpack.c.bf16 %v8135_v8, %v8137_v40  ;;  %v4380_v8 = vadd.f32 %v13200_v48, %v13326_v56  ;;  %v13328_v40 = vld [vmem:[#allocation79_spill] sm:$0xff] }
 0x60b   :  { %5074 = vmax.xlane.f32.xlu1 %v10906_v54 }
 0x60c   :  { %13323 = vst [vmem:[#allocation172_spill] sm:$0xff] %v10908_v0  ;;  %7537 = vmatmul.mubr.bf16.vlgmr.msra.gmra.mrb[144].mxu1 %v10908_v0  ;;  %v4396_v49 = vmul.f32 0.2, %v4380_v8 }
 0x60d   :  { %7585 = vmatpush3.bf16.msra.mxu1 %v13045_v31 }
 0x60e   :  { %7586 = vmatprep.subr.bf16.mxu1 %v13045_v31 }
 0x60f   :  { %7317 = vmatmul.mubr.bf16.gmra.mrb[40].mxu0 %v13324_v58  ;;  %5080 = vmax.xlane.f32.xlu1 %v10913_v52  ;;  %v4412_v58 = vmax.f32 %v4380_v8, %v4396_v49  ;;  %v13332_v49 = vmov 0.0|0.0  }
 0x610   :  { %7320 = vmatprep.mubr.bf16.mxu0 %v13325_v60  ;;  %v4397_v60 = vmul.f32 0.2, %v4381_v51 }
 0x611   :  { %7587 = vmatpush3.bf16.msra.mxu1 %v13045_v31  ;;  %v10933_v28 = vadd.f32 %v4412_v58, %v13246_v46  ;;  %v4968_v58 = vpop.permute.xlu1 %4967 }
 0x612   :  { %7588 = vmatprep.subr.bf16.mxu1 %v13045_v31  ;;  %v4413_v56 = vmax.f32 %v4381_v51, %v4397_v60  ;;  %v13333_v51 = vld [vmem:[#allocation129_spill] sm:$0xff] }
 0x614   :  { %v10943_v8 = vadd.f32 %v4413_v56, %v13105_v32 }
 0x615   :  { %7589 = vmatpush3.bf16.msra.mxu1 %v13045_v31  ;;  %v10965_v30 = vpop.permute.xlu1 %4971 }
 0x616   :  { %7590 = vmatprep.subr.bf16.mxu1 %v13045_v31 }
 0x617   :  { %7321 = vmatmul.mubr.bf16.gmra.mrb[44].mxu0 %v13328_v40  ;;  %v13331_v40 = vld [vmem:[#allocation70_spill] sm:$0xff] }
 0x618   :  { %7324 = vmatprep.mubr.bf16.mxu0 %v13329_v5  ;;  %v4471_v5 = vsub.f32 %v13333_v51, %v10802_v63  ;;  %v5010_v63 = vadd.f32 %v13294_v38, %v4968_v58 }
 0x619   :  { %7591 = vmatpush3.bf16.msra.mxu1 %v13045_v31  ;;  %v4980_v51 = vpop.permute.xlu1 %4979 }
 0x61a   :  { %7592 = vmatprep.subr.bf16.mxu1 %v13045_v31  ;;  %v5013_v61 = vadd.f32 %v13294_v38, %v4980_v51 }
 0x61d   :  { %7593 = vmatpush3.bf16.msra.mxu1 %v13045_v31 }
 0x61e   :  { %7594 = vmatprep.subr.bf16.mxu1 %v13045_v31 }
 0x61f   :  { %7325 = vmatmul.mubr.bf16.gmra.mrb[48].mxu0 %v13330_v9  ;;  %4453 = vmax.xlane.f32.xlu0 %v10933_v28 }
 0x620   :  { %7376 = vmatprep.mubr.bf16.mxu0 %v13331_v40  ;;  %3898 = vrot.lane.b32.xlu1 %v13269_v17, %s8563_s11  ;;  %v4491_v40 = vmul.f32 1.442695, %v4471_v5 }
 0x621   :  { %7595 = vmatpush3.bf16.msra.mxu1 %v13045_v31 }
 0x622   :  { %7596 = vmatprep.subr.bf16.mxu1 %v13045_v31  ;;  %8138 = vpow2.f32 %v4491_v40  ;;  %v13340_v40 = vld [vmem:[#allocation117_spill] sm:$0xff] }
 0x623   :  { %4455 = vmax.xlane.f32.xlu0 %v10943_v8 }
 0x624   :  { %3900 = vrot.lane.b32.xlu1 %v13148_v47, %s8563_s11 }
 0x625   :  { %7597 = vmatpush3.bf16.msra.mxu1 %v13045_v31 }
 0x626   :  { %7598 = vmatprep.subr.bf16.mxu1 %v13045_v31 }
 0x629   :  { %7599 = vmatpush3.bf16.msra.mxu1 %v13045_v31 }
 0x62a   :  { %7791 = vmatprep.subr.bf16.mxu1 %v13332_v49  ;;  %v5026_v49 = vmul.f32 0.2, %v5010_v63 }
 0x62c   :  { %v8139_v5 = vpop.eup %8138 }
 0x62f   :  { %v10956_v60 = vpop.f32.mrb[132].mxu1 }
 0x630   :  { %13334 = vst [vmem:[#allocation60_spill] sm:$0xff] %v10956_v60  ;;  %v10958_v56 = vpop.f32.mrb[133].mxu1  ;;  %v5029_v60 = vmul.f32 0.2, %v5013_v61 }
 0x631   :  { %13335 = vst [vmem:[#allocation36_spill] sm:$0xff] %v10958_v56  ;;  %v10960_v9 = vpop.f32.mrb[134].mxu1 }
 0x632   :  { %13336 = vst [vmem:[#allocation86_spill] sm:$0xff] %v10960_v9  ;;  %v10962_v44 = vpop.f32.mrb[135].mxu1  ;;  %v4446_v19 = vpop.xlane.xlu0 %4445  ;;  %v5042_v9 = vmax.f32 %v5010_v63, %v5026_v49 }
 0x633   :  { %13337 = vst [vmem:[#allocation90_spill] sm:$0xff] %v10962_v44  ;;  %v4472_v43 = vsub.f32 %v10793_v57, %v4446_v19  ;;  %v5045_v19 = vmax.f32 %v5013_v61, %v5029_v60  ;;  %v13339_v57 = vld [vmem:[#allocation107_spill] sm:$0xff] }
 0x635   :  { %v4493_v31 = vmul.f32 1.442695, %v4472_v43  ;;  %v4384_v43 = vadd.f32 %v13200_v48, %v13339_v57  ;;  %v10981_v58 = vadd.f32 %v5045_v19, %v13012_v53  ;;  %v4984_v19 = vpop.permute.xlu1 %4983 }
 0x636   :  { %v5014_v0 = vadd.f32 %v13294_v38, %v4984_v19 }
 0x637   :  { %8140 = vpow2.f32 %v4493_v31  ;;  %v10975_v31 = vadd.f32 %v5042_v9, %v13046_v36  ;;  %v4400_v49 = vmul.f32 0.2, %v4384_v43  ;;  %v13341_v9 = vld [vmem:[#allocation104_spill] sm:$0xff] }
 0x638   :  { %v5030_v23 = vmul.f32 0.2, %v5014_v0 }
 0x639   :  { %3265 = vrot.lane.b32.xlu0 %v13125_v62, %s8562_s30  ;;  %v4416_v63 = vmax.f32 %v4384_v43, %v4400_v49 }
 0x63a   :  { %v4940_v57 = vpop.permute.xlu0 %4939 }
 0x63b   :  { %v10987_v60 = vadd.f32 %v4416_v63, %v13139_v12 }
 0x63e   :  { %v4944_v53 = vpop.permute.xlu0 %4943 }
 0x641   :  { %v8141_v41 = vpop.eup %8140 }
 0x642   :  { %v10971_v44 = vpack.c.bf16 %v8141_v41, %v8139_v5  ;;  %v4385_v41 = vadd.f32 %v13200_v48, %v13340_v40  ;;  %v10998_v48 = vpop.permute.xlu1 %4987  ;;  %v11000_v43 = vpop.permute.xlu0 %4959 }
 0x644   :  { %13338 = vst [vmem:[#allocation79_spill] sm:$0xff] %v10971_v44  ;;  %7540 = vmatprep.mubr.bf16.mxu1 %v10971_v44  ;;  %v4401_v51 = vmul.f32 0.2, %v4385_v41 }
 0x646   :  { %v4417_v61 = vmax.f32 %v4385_v41, %v4401_v51  ;;  %v4996_v63 = vpop.permute.xlu1 %4995 }
 0x648   :  { %5082 = vmax.xlane.f32.xlu1 %v10975_v31  ;;  %v10991_v5 = vadd.f32 %v4417_v61, %v13341_v9  ;;  %v11010_v61 = vpop.permute.xlu0 %4975 }
 0x64a   :  { %v4448_v36 = vpop.xlane.xlu1 %4447 }
 0x64b   :  { %v4473_v56 = vsub.f32 %v10688_v42, %v4448_v36  ;;  %v5046_v36 = vmax.f32 %v5014_v0, %v5030_v23  ;;  %v13346_v0 = vld [vmem:[#allocation58_spill] sm:$0xff] }
 0x64c   :  { %5088 = vmax.xlane.f32.xlu1 %v10981_v58  ;;  %v11015_v44 = vpop.permute.xlu0 %4991 }
 0x64d   :  { %v11022_v19 = vadd.f32 %v5046_v36, %v13099_v29  ;;  %v13357_v29 = vld [vmem:[#allocation92_spill] sm:$0xff] }
 0x64e   :  { %v3264_v34 = vpop.permute.xlu1 %3263 }
 0x658   :  { %4461 = vmax.xlane.f32.xlu0 %v10987_v60 }
 0x65c   :  { %4463 = vmax.xlane.f32.xlu0 %v10991_v5 }
 0x65d   :  { %3906 = vrot.lane.b32.xlu1 %v13184_v27, %s8563_s11 }
 0x661   :  { %4523 = vrot.lane.b32.xlu1 %v13221_v18, %s8564_s12 }
 0x668   :  { %v11002_v49 = vpop.f32.mrb[136].mxu1 }
 0x669   :  { %13342 = vst [vmem:[#allocation88_spill] sm:$0xff] %v11002_v49  ;;  %v11004_v40 = vpop.f32.mrb[137].mxu1  ;;  %v4495_v49 = vmul.f32 1.442695, %v4473_v56  ;;  %v5003_v56 = vadd.f32 %v13294_v38, %v4940_v57 }
 0x66a   :  { %13343 = vst [vmem:[#allocation37_spill] sm:$0xff] %v11004_v40  ;;  %v11006_v41 = vpop.f32.mrb[138].mxu1 }
 0x66b   :  { %13344 = vst [vmem:[#allocation70_spill] sm:$0xff] %v11006_v41  ;;  %v11008_v51 = vpop.f32.mrb[139].mxu1  ;;  %8142 = vpow2.f32 %v4495_v49  ;;  %v5019_v49 = vmul.f32 0.2, %v5003_v56 }
 0x66c   :  { %13345 = vst [vmem:[#allocation129_spill] sm:$0xff] %v11008_v51  ;;  %v5017_v51 = vadd.f32 %v13294_v38, %v4996_v63 }
 0x66d   :  { %v5035_v23 = vmax.f32 %v5003_v56, %v5019_v49  ;;  %v13351_v49 = vld [vmem:[#allocation124_spill] sm:$0xff] }
 0x66e   :  { %v5033_v42 = vmul.f32 0.2, %v5017_v51 }
 0x66f   :  { %v11035_v63 = vadd.f32 %v5035_v23, %v13162_v37 }
 0x670   :  { %v5049_v6 = vmax.f32 %v5017_v51, %v5033_v42  ;;  %v13348_v51 = vld [vmem:[#allocation64_spill] sm:$0xff]  ;;  %v13349_v42 = vld [vmem:[#allocation73_spill] sm:$0xff] }
 0x672   :  { %3269 = vrot.lane.b32.xlu0 %v13148_v47, %s8562_s30 }
 0x677   :  { %v4450_v20 = vpop.xlane.xlu0 %4449 }
 0x678   :  { %v4474_v40 = vsub.f32 %v10845_v11, %v4450_v20  ;;  %v8143_v11 = vpop.eup %8142 }
 0x67a   :  { %v4497_v41 = vmul.f32 1.442695, %v4474_v40  ;;  %v5004_v40 = vadd.f32 %v13294_v38, %v4944_v53  ;;  %v13347_v53 = vld [vmem:[#allocation55_spill] sm:$0xff] }
 0x67b   :  { %v3262_v35 = vpop.permute.xlu0 %3261 }
 0x67c   :  { %8144 = vpow2.f32 %v4497_v41  ;;  %7360 = vmatprep.subr.bf16.mxu0 %v3262_v35  ;;  %v11027_v41 = vadd.f32 %v5049_v6, %v13142_v39 }
 0x67d   :  { %7361 = vmatpush3.bf16.msra.mxu0 %v3262_v35  ;;  %8146 = vrcp.f32 %v13346_v0 }
 0x67e   :  { %7362 = vmatprep.subr.bf16.mxu0 %v3264_v34  ;;  %8148 = vrcp.f32 %v13347_v53 }
 0x67f   :  { %8150 = vrcp.f32 %v13348_v51 }
 0x680   :  { %8152 = vrcp.f32 %v13349_v42 }
 0x681   :  { %7363 = vmatpush3.bf16.msra.mxu0 %v3264_v34  ;;  %v5020_v34 = vmul.f32 0.2, %v5004_v40 }
 0x683   :  { %v5036_v57 = vmax.f32 %v5004_v40, %v5020_v34  ;;  %v4452_v40 = vpop.xlane.xlu1 %4451 }
 0x684   :  { %v4475_v51 = vsub.f32 %v10734_v25, %v4452_v40 }
 0x685   :  { %5090 = vmax.xlane.f32.xlu1 %v11022_v19  ;;  %v11040_v6 = vadd.f32 %v5036_v57, %v9212_v14  ;;  %v13353_v57 = vld [vmem:[#allocation97_spill] sm:$0xff] }
 0x686   :  { %v8145_v20 = vpop.eup %8144 }
 0x687   :  { %v11029_v35 = vpack.c.bf16 %v8145_v20, %v8143_v11  ;;  %v8147_v36 = vpop.eup %8146  ;;  %v13350_v11 = vld [vmem:[#allocation125_spill] sm:$0xff] }
 0x688   :  { %v8149_v56 = vpop.eup %8148  ;;  %8154 = vrcp.f32 %v13350_v11  ;;  %v13356_v11 = vld [vmem:[#allocation106_spill] sm:$0xff] }
 0x689   :  { %5096 = vmax.xlane.f32.xlu1 %v11027_v41  ;;  %7541 = vmatmul.mubr.bf16.gmra.mrb[148].mxu1 %v11029_v35  ;;  %v8151_v20 = vpop.eup %8150  ;;  %8156 = vrcp.f32 %v13351_v49 }
 0x68a   :  { %v8153_v23 = vpop.eup %8152  ;;  %8158 = vrcp.f32 %v13353_v57 }
 0x68b   :  { %8160 = vrcp.f32 %v13356_v11 }
 0x68c   :  { %8162 = vrcp.f32 %v13357_v29 }
 0x691   :  { %5068 = vmax.xlane.f32.xlu0 %v11035_v63 }
 0x692   :  { %v8155_v42 = vpop.eup %8154 }
 0x693   :  { %v8157_v39 = vpop.eup %8156 }
 0x694   :  { %v8159_v11 = vpop.eup %8158 }
 0x695   :  { %5070 = vmax.xlane.f32.xlu0 %v11040_v6  ;;  %v8161_v14 = vpop.eup %8160 }
 0x696   :  { %v8163_v29 = vpop.eup %8162 }
 0x69a   :  { %1029 = vperm.xlu1 %7937, %v8147_v36  }
 0x69e   :  { %1039 = vperm.xlu1 %7937, %v8149_v56   ;;  %v4458_v56 = vpop.xlane.xlu1 %4457 }
 0x69f   :  { %v4478_v49 = vsub.f32 %v10743_v2, %v4458_v56 }
 0x6a1   :  { %v4505_v40 = vmul.f32 1.442695, %v4478_v49 }
 0x6a2   :  { %1044 = vperm.xlu1 %7937, %v8151_v20   ;;  %v4499_v20 = vmul.f32 1.442695, %v4475_v51 }
 0x6a4   :  { %8164 = vpow2.f32 %v4499_v20 }
 0x6a5   :  { %v11047_v34 = vpop.f32.mrb[140].mxu1 }
 0x6a6   :  { %13352 = vst [vmem:[#allocation107_spill] sm:$0xff] %v11047_v34  ;;  %1054 = vperm.xlu1 %7937, %v8153_v23   ;;  %v11049_v0 = vpop.f32.mrb[141].mxu1 }
 0x6a7   :  { %v11052_v53 = vpop.f32.mrb[142].mxu1 }
 0x6a8   :  { %13354 = vst [vmem:[#allocation117_spill] sm:$0xff] %v11052_v53  ;;  %v11055_v36 = vpop.f32.mrb[143].mxu1 }
 0x6a9   :  { %13355 = vst [vmem:[#allocation58_spill] sm:$0xff] %v11055_v36 }
 0x6aa   :  { %1064 = vperm.xlu1 %7937, %v8155_v42  }
 0x6ab   :  { %3273 = vrot.lane.b32.xlu0 %v13178_v55, %s8562_s30 }
 0x6ac   :  { %v4454_v23 = vpop.xlane.xlu0 %4453 }
 0x6ad   :  { %v4476_v57 = vsub.f32 %v10933_v28, %v4454_v23 }
 0x6ae   :  { %1074 = vperm.xlu1 %7937, %v8157_v39   ;;  %v3268_v39 = vpop.permute.xlu1 %3267  ;;  %v8165_v28 = vpop.eup %8164 }
 0x6af   :  { %v4501_v25 = vmul.f32 1.442695, %v4476_v57  ;;  %3894 = vrot.lane.b32.xlu0 %v13024_v26, %s8563_s11 }
 0x6b0   :  { %v4456_v42 = vpop.xlane.xlu0 %4455 }
 0x6b1   :  { %8166 = vpow2.f32 %v4501_v25  ;;  %v4477_v51 = vsub.f32 %v10943_v8, %v4456_v42  ;;  %v5008_v42 = vadd.f32 %v13294_v38, %v11000_v43  ;;  %v13358_v43 = vld [vmem:[#allocation45_spill] sm:$0xff] }
 0x6b2   :  { %1084 = vperm.xlu1 %7937, %v8159_v11   ;;  %8168 = vpow2.f32 %v4505_v40  ;;  %v4460_v57 = vpop.xlane.xlu1 %4459 }
 0x6b3   :  { %v4503_v2 = vmul.f32 1.442695, %v4477_v51 }
 0x6b4   :  { %v3266_v56 = vpop.permute.xlu0 %3265 }
 0x6b5   :  { %8170 = vpow2.f32 %v4503_v2  ;;  %7364 = vmatprep.subr.bf16.mxu0 %v3266_v56  ;;  %v5024_v2 = vmul.f32 0.2, %v5008_v42 }
 0x6b6   :  { %1094 = vperm.xlu1 %7937, %v8161_v14   ;;  %7365 = vmatpush3.bf16.msra.mxu0 %v3266_v56  ;;  %v5007_v14 = vadd.f32 %v13294_v38, %v10872_v45  ;;  %v4466_v11 = vpop.xlane.xlu1 %4465  ;;  %8172 = vrcp.f32 %v13358_v43  ;;  %v13366_v43 = vld [vmem:[#allocation134_spill] sm:$0xff] }
 0x6b7   :  { %7366 = vmatprep.subr.bf16.mxu0 %v3268_v39  ;;  %v5040_v56 = vmax.f32 %v5008_v42, %v5024_v2  ;;  %v4482_v53 = vsub.f32 %v10789_v22, %v4466_v11 }
 0x6b8   :  { %v5023_v40 = vmul.f32 0.2, %v5007_v14 }
 0x6ba   :  { %1104 = vperm.xlu1 %7937, %v8163_v29   ;;  %7367 = vmatpush3.bf16.msra.mxu0 %v3268_v39  ;;  %v5039_v51 = vmax.f32 %v5007_v14, %v5023_v40  ;;  %v11084_v45 = vpop.permute.xlu1 %3271  ;;  %v13362_v40 = vld [vmem:[#allocation135_spill] sm:$0xff] }
 0x6bb   :  { %v8167_v20 = vpop.eup %8166 }
 0x6bc   :  { %v11066_v49 = vpack.c.bf16 %v8167_v20, %v8165_v28  ;;  %v8169_v23 = vpop.eup %8168  ;;  %v11087_v39 = vadd.f32 %v5039_v51, %v13202_v24  ;;  %v11096_v28 = vadd.f32 %v5040_v56, %v9333_v3 }
 0x6be   :  { %4529 = vrot.lane.b32.xlu1 %v13269_v17, %s8564_s12  ;;  %7544 = vmatprep.mubr.bf16.mxu1 %v11066_v49  ;;  %v11093_v29 = vpop.xlane.xlu1 %5066 }
 0x6bf   :  { %v8171_v8 = vpop.eup %8170 }
 0x6c0   :  { %v11073_v25 = vpack.c.bf16 %v8169_v23, %v8171_v8  ;;  %v13360_v23 = vld [vmem:[#allocation5_spill] sm:$0xff]  ;;  %v8173_v8 = vpop.eup %8172 }
 0x6c2   :  { %4531 = vrot.lane.b32.xlu1 %v13148_v47, %s8564_s12  ;;  %7545 = vmatmul.mubr.bf16.gmra.mrb[152].mxu1 %v11073_v25  ;;  %v11102_v20 = vpop.xlane.xlu1 %5072 }
 0x6c6   :  { %4535 = vrot.lane.b32.xlu1 %v13178_v55, %s8564_s12  ;;  %v11110_v42 = vpop.permute.xlu1 %3275 }
 0x6ca   :  { %5154 = vrot.lane.b32.xlu1 %v13221_v18, %s8565_s13  ;;  %v13359_v18 = vld [vmem:[#allocation40_spill] sm:$0xff] }
 0x6cb   :  { %8174 = vrcp.f32 %v13359_v18 }
 0x6cc   :  { %8176 = vrcp.f32 %v13360_v23 }
 0x6cd   :  { %8178 = vrcp.f32 %v13362_v40  ;;  %v11124_v40 = vpop.permute.xlu1 %3892 }
 0x6ce   :  { %5158 = vrot.lane.b32.xlu1 %v13125_v62, %s8565_s13  ;;  %5076 = vmax.xlane.f32.xlu0 %v11087_v39  ;;  %8180 = vrcp.f32 %v13366_v43 }
 0x6d2   :  { %5162 = vrot.lane.b32.xlu1 %v13148_v47, %s8565_s13  ;;  %5078 = vmax.xlane.f32.xlu0 %v11096_v28 }
 0x6d5   :  { %v8175_v2 = vpop.eup %8174 }
 0x6d6   :  { %5166 = vrot.lane.b32.xlu1 %v13178_v55, %s8565_s13  ;;  %v8177_v3 = vpop.eup %8176 }
 0x6da   :  { %v11107_v14 = vpop.f32.mrb[36].mxu0  ;;  %1604 = vperm.xlu1 %7937, %v8173_v8   ;;  %v4479_v8 = vsub.f32 %v10780_v15, %v4460_v57  ;;  %v11138_v57 = vpop.xlane.xlu1 %5074 }
 0x6db   :  { %13361 = vst [vmem:[#allocation55_spill] sm:$0xff] %v11107_v14  ;;  %v11112_v47 = vpop.f32.mrb[37].mxu0  ;;  %v13368_v14 = vld [vmem:[#allocation144_spill] sm:$0xff] }
 0x6dc   :  { %13363 = vst [vmem:[#allocation64_spill] sm:$0xff] %v11112_v47  ;;  %v11114_v51 = vpop.f32.mrb[38].mxu0  ;;  %8182 = vrcp.f32 %v13368_v14  ;;  %v4507_v47 = vmul.f32 1.442695, %v4479_v8 }
 0x6dd   :  { %13364 = vst [vmem:[#allocation73_spill] sm:$0xff] %v11114_v51  ;;  %v11116_v56 = vpop.f32.mrb[39].mxu0 }
 0x6de   :  { %13365 = vst [vmem:[#allocation125_spill] sm:$0xff] %v11116_v56  ;;  %1614 = vperm.xlu1 %7937, %v8175_v2   ;;  %v8179_v56 = vpop.eup %8178 }
 0x6df   :  { %v11119_v18 = vpop.f32.mrb[144].mxu1  ;;  %v8181_v14 = vpop.eup %8180 }
 0x6e0   :  { %v11121_v23 = vpop.f32.mrb[145].mxu1 }
 0x6e1   :  { %v11126_v24 = vpop.f32.mrb[146].mxu1 }
 0x6e2   :  { %v11128_v37 = vpop.f32.mrb[40].mxu0  ;;  %v4681_v51 = vpop.f32.mrb[147].mxu1  ;;  %1619 = vperm.xlu1 %7937, %v8177_v3  }
 0x6e3   :  { %13367 = vst [vmem:[#allocation124_spill] sm:$0xff] %v11128_v37  ;;  %v11131_v2 = vpop.f32.mrb[41].mxu0  ;;  %v13371_v37 = vld [vmem:[#allocation143_spill] sm:$0xff] }
 0x6e4   :  { %v11133_v43 = vpop.f32.mrb[42].mxu0  ;;  %8184 = vrcp.f32 %v13371_v37 }
 0x6e5   :  { %13369 = vst [vmem:[#allocation97_spill] sm:$0xff] %v11133_v43  ;;  %v11136_v34 = vpop.f32.mrb[43].mxu0  ;;  %v4462_v15 = vpop.xlane.xlu0 %4461  ;;  %8186 = vpow2.f32 %v4507_v47  ;;  %v4513_v43 = vmul.f32 1.442695, %v4482_v53 }
 0x6e6   :  { %13370 = vst [vmem:[#allocation106_spill] sm:$0xff] %v11136_v34  ;;  %v4480_v36 = vsub.f32 %v10987_v60, %v4462_v15  ;;  %2240 = vperm.xlu1 %7937, %v8179_v56   ;;  %v11150_v56 = vpop.xlane.xlu1 %5080  ;;  %v8183_v53 = vpop.eup %8182 }
 0x6e8   :  { %v4509_v3 = vmul.f32 1.442695, %v4480_v36  ;;  %3896 = vrot.lane.b32.xlu0 %v13125_v62, %s8563_s11 }
 0x6e9   :  { %v4464_v8 = vpop.xlane.xlu0 %4463 }
 0x6ea   :  { %8188 = vpow2.f32 %v4509_v3  ;;  %v11144_v22 = vpop.f32.mrb[44].mxu0  ;;  %v4481_v11 = vsub.f32 %v10991_v5, %v4464_v8  ;;  %2250 = vperm.xlu1 %7937, %v8181_v14   ;;  %v11160_v5 = vpop.permute.xlu1 %3898 }
 0x6eb   :  { %13372 = vst [vmem:[#allocation92_spill] sm:$0xff] %v11144_v22  ;;  %8190 = vrcp.f32 %v10658_v16  ;;  %v11148_v60 = vpop.f32.mrb[45].mxu0 }
 0x6ec   :  { %13373 = vst [vmem:[#allocation45_spill] sm:$0xff] %v11148_v60  ;;  %v4511_v37 = vmul.f32 1.442695, %v4481_v11  ;;  %v11152_v36 = vpop.f32.mrb[46].mxu0  ;;  %3902 = vrot.lane.b32.xlu0 %v13120_v10, %s8563_s11  ;;  %8192 = vpow2.f32 %v4513_v43 }
 0x6ed   :  { %13374 = vst [vmem:[#allocation40_spill] sm:$0xff] %v11152_v36  ;;  %v11156_v47 = vpop.f32.mrb[47].mxu0  ;;  %v3270_v15 = vpop.permute.xlu0 %3269 }
 0x6ee   :  { %13375 = vst [vmem:[#allocation5_spill] sm:$0xff] %v11156_v47  ;;  %8194 = vpow2.f32 %v4511_v37  ;;  %2871 = vperm.xlu1 %7937, %v8183_v53   ;;  %7368 = vmatprep.subr.bf16.mxu0 %v3270_v15  ;;  %v8185_v16 = vpop.eup %8184 }
 0x6ef   :  { %8196 = vrcp.f32 %v10656_v1  ;;  %7369 = vmatpush3.bf16.msra.mxu0 %v3270_v15  ;;  %v8187_v14 = vpop.eup %8186 }
 0x6f0   :  { %7370 = vmatprep.subr.bf16.mxu0 %v11084_v45  ;;  %8198 = vrcp.f32 %v10866_v50  ;;  %v11176_v50 = vpop.permute.xlu1 %3900 }
 0x6f1   :  { %8200 = vrcp.f32 %v10862_v21 }
 0x6f2   :  { %v11162_v3 = vpop.f32.mrb[48].mxu0  ;;  %2881 = vperm.xlu1 %7937, %v8185_v16   ;;  %8202 = vrcp.f32 %v4681_v51 }
 0x6f3   :  { %13376 = vst [vmem:[#allocation135_spill] sm:$0xff] %v11162_v3  ;;  %v11165_v43 = vpop.f32.mrb[49].mxu0  ;;  %7371 = vmatpush3.bf16.msra.mxu0 %v11084_v45  ;;  %8204 = vrcp.f32 %v11126_v24 }
 0x6f4   :  { %13377 = vst [vmem:[#allocation134_spill] sm:$0xff] %v11165_v43  ;;  %v8189_v8 = vpop.eup %8188  ;;  %v11168_v11 = vpop.f32.mrb[50].mxu0 }
 0x6f5   :  { %13378 = vst [vmem:[#allocation144_spill] sm:$0xff] %v11168_v11  ;;  %v8191_v1 = vpop.eup %8190  ;;  %v11170_v37 = vpop.f32.mrb[51].mxu0  ;;  %v11172_v53 = vpack.c.bf16 %v8189_v8, %v8187_v14  ;;  %v5011_v8 = vadd.f32 %v13294_v38, %v10965_v30  ;;  %v5012_v11 = vadd.f32 %v13294_v38, %v11010_v61 }
 0x6f6   :  { %13379 = vst [vmem:[#allocation143_spill] sm:$0xff] %v11170_v37  ;;  %3502 = vperm.xlu1 %7937, %v8191_v1   ;;  %v8193_v15 = vpop.eup %8192  ;;  %v11181_v45 = vpop.xlane.xlu1 %5082 }
 0x6f7   :  { %7548 = vmatprep.mubr.bf16.mxu1 %v11172_v53  ;;  %v5027_v1 = vmul.f32 0.2, %v5011_v8 }
 0x6f8   :  { %v8195_v16 = vpop.eup %8194 }
 0x6f9   :  { %v8197_v3 = vpop.eup %8196  ;;  %v11178_v43 = vpack.c.bf16 %v8193_v15, %v8195_v16  ;;  %v5028_v16 = vmul.f32 0.2, %v5012_v11 }
 0x6fa   :  { %3512 = vperm.xlu1 %7937, %v8197_v3   ;;  %v8199_v14 = vpop.eup %8198  ;;  %v11188_v15 = vpop.xlane.xlu1 %5088  ;;  %v5043_v3 = vmax.f32 %v5011_v8, %v5027_v1  ;;  %v13380_v1 = vld [vmem:[#allocation34_spill] sm:$0xff] }
 0x6fb   :  { %7549 = vmatmul.mubr.bf16.gmra.mrb[156].mxu1 %v11178_v43  ;;  %v8201_v21 = vpop.eup %8200  ;;  %v5044_v22 = vmax.f32 %v5012_v11, %v5028_v16  ;;  %v5098_v11 = vsub.f32 %v10824_v7, %v11093_v29 }
 0x6fc   :  { %v8203_v51 = vpop.eup %8202  ;;  %v11193_v30 = vadd.f32 %v5043_v3, %v13246_v46 }
 0x6fd   :  { %v8205_v36 = vpop.eup %8204  ;;  %v11197_v24 = vadd.f32 %v5044_v22, %v13105_v32  ;;  %v5101_v22 = vsub.f32 %v10832_v4, %v11102_v20  ;;  %v13381_v32 = vld [vmem:[#allocation48_spill] sm:$0xff] }
 0x6fe   :  { %4133 = vperm.xlu1 %7937, %v8199_v14   ;;  %v11190_v37 = vpop.permute.xlu1 %3906 }
 0x6ff   :  { %v5120_v7 = vmul.f32 1.442695, %v5101_v22  ;;  %v13385_v22 = vld [vmem:[#allocation80_spill] sm:$0xff] }
 0x702   :  { %4143 = vperm.xlu1 %7937, %v8201_v21   ;;  %v11199_v61 = vpop.permute.xlu1 %4523 }
 0x706   :  { %4764 = vperm.xlu1 %7937, %v8203_v51   ;;  %v5114_v51 = vmul.f32 1.442695, %v5098_v11 }
 0x708   :  { %8206 = vpow2.f32 %v5114_v51 }
 0x70a   :  { %4774 = vperm.xlu1 %7937, %v8205_v36  }
 0x70b   :  { %5084 = vmax.xlane.f32.xlu0 %v11193_v30 }
 0x70f   :  { %5086 = vmax.xlane.f32.xlu0 %v11197_v24 }
 0x712   :  { %v11202_v14 = vpop.xlane.xlu1 %5090 }
 0x716   :  { %v11204_v8 = vpop.xlane.xlu1 %5096 }
 0x71a   :  { %v1030_v21 = vpop.permute.xlu1 %1029 }
 0x71b   :  { %v1107_v36 = vmul.f32 %v1030_v21, %v13380_v1  ;;  %v13382_v21 = vld [vmem:[#allocation65_spill] sm:$0xff] }
 0x71d   :  { %1124 = vst.msk [vmem:[#allocation2] sm:$0xff] %vm1123_vm6, %v1107_v36 }
 0x71e   :  { %v1040_v3 = vpop.permute.xlu1 %1039  ;;  %v5069_v16 = vpop.xlane.xlu0 %5068 }
 0x71f   :  { %v1109_v46 = vmul.f32 %v13381_v32, %v1040_v3  ;;  %v5099_v47 = vsub.f32 %v11035_v63, %v5069_v16  ;;  %v13386_v16 = vld [vmem:[#allocation54_spill] sm:$0xff] }
 0x721   :  { %1126 = vst.msk [vmem:[#allocation2 + $0x10] sm:$0xff] %vm1123_vm6, %v1109_v46  ;;  %v5116_v60 = vmul.f32 1.442695, %v5099_v47  ;;  %v13383_v46 = vld [vmem:[#allocation39_spill] sm:$0xff]  ;;  %v8207_v47 = vpop.eup %8206 }
 0x722   :  { %v1045_v29 = vpop.permute.xlu1 %1044  ;;  %v5071_v34 = vpop.xlane.xlu0 %5070 }
 0x723   :  { %8208 = vpow2.f32 %v5116_v60  ;;  %v1110_v1 = vmul.f32 %v13382_v21, %v1045_v29  ;;  %v5100_v11 = vsub.f32 %v11040_v6, %v5071_v34  ;;  %v13384_v34 = vld [vmem:[#allocation101_spill] sm:$0xff]  ;;  %v13387_v21 = vld [vmem:[#allocation78_spill] sm:$0xff] }
 0x724   :  { %8210 = vpow2.f32 %v5120_v7 }
 0x725   :  { %1127 = vst.msk [vmem:[#allocation2 + $0x18] sm:$0xff] %vm1123_vm6, %v1110_v1  ;;  %v5118_v4 = vmul.f32 1.442695, %v5100_v11  ;;  %3904 = vrot.lane.b32.xlu0 %v13178_v55, %s8563_s11 }
 0x726   :  { %v1055_v32 = vpop.permute.xlu1 %1054  ;;  %v3274_v63 = vpop.permute.xlu0 %3273 }
 0x727   :  { %8212 = vpow2.f32 %v5118_v4  ;;  %v1112_v20 = vmul.f32 %v1055_v32, %v13383_v46  ;;  %7372 = vmatprep.subr.bf16.mxu0 %v3274_v63  ;;  %v13388_v4 = vld [vmem:[#allocation103_spill] sm:$0xff]  ;;  %v13389_v46 = vld [vmem:[#allocation122_spill] sm:$0xff] }
 0x728   :  { %7373 = vmatpush3.bf16.msra.mxu0 %v3274_v63 }
 0x729   :  { %1129 = vst.msk [vmem:[#allocation2 + $0x28] sm:$0xff] %vm1123_vm6, %v1112_v20  ;;  %4525 = vrot.lane.b32.xlu0 %v13024_v26, %s8564_s12  ;;  %7374 = vmatprep.subr.bf16.mxu0 %v11110_v42 }
 0x72a   :  { %v1065_v6 = vpop.permute.xlu1 %1064  ;;  %v3895_v29 = vpop.permute.xlu0 %3894 }
 0x72b   :  { %v1114_v60 = vmul.f32 %v13384_v34, %v1065_v6  ;;  %v13391_v6 = vld [vmem:[#allocation123_spill] sm:$0xff]  ;;  %v5015_v34 = vadd.f32 %v13294_v38, %v10998_v48  ;;  %v13395_v48 = vld [vmem:[#allocation16_spill] sm:$0xff] }
 0x72c   :  { %7375 = vmatpush3.bf16.msra.mxu0 %v11110_v42 }
 0x72d   :  { %v8209_v55 = vpop.eup %8208  ;;  %1131 = vst.msk [vmem:[#allocation2 + $0x38] sm:$0xff] %vm1123_vm6, %v1114_v60  ;;  %7424 = vmatprep.subr.bf16.mxu0 %v11124_v40 }
 0x72e   :  { %v1075_v36 = vpop.permute.xlu1 %1074  ;;  %v11229_v51 = vpack.c.bf16 %v8209_v55, %v8207_v47  ;;  %v8211_v7 = vpop.eup %8210  ;;  %v13392_v47 = vld [vmem:[#allocation74_spill] sm:$0xff] }
 0x72f   :  { %v1116_v3 = vmul.f32 %v1075_v36, %v13385_v22  ;;  %7377 = vmatmul.mubr.bf16.vlgmr.msra.gmra.mrb[52].mxu0 %v13386_v16  ;;  %v5031_v36 = vmul.f32 0.2, %v5015_v34  ;;  %v5016_v22 = vadd.f32 %v13294_v38, %v11015_v44  ;;  %v13394_v16 = vld [vmem:[#allocation139_spill] sm:$0xff]  ;;  %v5102_v38 = vsub.f32 %v10906_v54, %v11138_v57 }
 0x730   :  { %7380 = vmatprep.mubr.bf16.mxu0 %v13387_v21  ;;  %7425 = vmatpush3.bf16.msra.mxu0 %v11124_v40  ;;  %v13390_v40 = vld [vmem:[#allocation89_spill] sm:$0xff]  ;;  %v13396_v44 = vld [vmem:[#allocation67_spill] sm:$0xff] }
 0x731   :  { %v8213_v1 = vpop.eup %8212  ;;  %1133 = vst.msk [vmem:[#allocation2 + $0x48] sm:$0xff] %vm1123_vm6, %v1116_v3  ;;  %7600 = vmatprep.mubr.bf16.mxu1 %v11229_v51  ;;  %7426 = vmatprep.subr.bf16.mxu0 %v3895_v29  ;;  %v13393_v3 = vld [vmem:[#allocation8_spill] sm:$0xff]  ;;  %8214 = vrcp.f32 %v13396_v44 }
 0x732   :  { %v1085_v42 = vpop.permute.xlu1 %1084  ;;  %v11237_v11 = vpack.c.bf16 %v8211_v7, %v8213_v1  ;;  %v5047_v7 = vmax.f32 %v5015_v34, %v5031_v36 }
 0x733   :  { %v1118_v32 = vmul.f32 %v13388_v4, %v1085_v42  ;;  %v13397_v4 = vld [vmem:[#allocation76_spill] sm:$0xff] }
 0x734   :  { %7427 = vmatpush3.bf16.msra.mxu0 %v3895_v29  ;;  %7601 = vmatmul.mubr.bf16.vlgmr.msra.gmra.mrb[160].mxu1 %v11237_v11  ;;  %v5032_v29 = vmul.f32 0.2, %v5016_v22  ;;  %v11255_v1 = vadd.f32 %v5047_v7, %v13139_v12  ;;  %8216 = vrcp.f32 %v13397_v4 }
 0x735   :  { %1135 = vst.msk [vmem:[#allocation2 + $0x58] sm:$0xff] %vm1123_vm6, %v1118_v32  ;;  %v5122_v32 = vmul.f32 1.442695, %v5102_v38 }
 0x736   :  { %v1095_v63 = vpop.permute.xlu1 %1094  ;;  %v5048_v21 = vmax.f32 %v5016_v22, %v5032_v29  ;;  %v13401_v29 = vld [vmem:[#allocation42_spill] sm:$0xff] }
 0x737   :  { %v1120_v20 = vmul.f32 %v1095_v63, %v13389_v46  ;;  %7381 = vmatmul.mubr.bf16.gmra.mrb[56].mxu0 %v13390_v40  ;;  %v5105_v63 = vsub.f32 %v10913_v52, %v11150_v56 }
 0x738   :  { %7384 = vmatprep.mubr.bf16.mxu0 %v13391_v6  ;;  %v11261_v42 = vadd.f32 %v5048_v21, %v13341_v9  ;;  %v13398_v6 = vld [vmem:[#allocation83_spill] sm:$0xff]  ;;  %v13490_v9 = vld [vmem:[#allocation130_spill] sm:$0xff] }
 0x739   :  { %1137 = vst.msk [vmem:[#allocation2 + $0x68] sm:$0xff] %vm1123_vm6, %v1120_v20  ;;  %8218 = vrcp.f32 %v13398_v6  ;;  %v5128_v54 = vmul.f32 1.442695, %v5105_v63  ;;  %v13404_v6 = vld [vmem:[#allocation133_spill] sm:$0xff] }
 0x73a   :  { %v1105_v60 = vpop.permute.xlu1 %1104  ;;  %8220 = vpow2.f32 %v5122_v32  ;;  %v13402_v32 = vld [vmem:[#allocation111_spill] sm:$0xff] }
 0x73b   :  { %v1122_v55 = vmul.f32 %v13392_v47, %v1105_v60  ;;  %v8215_v56 = vpop.eup %8214 }
 0x73d   :  { %1139 = vst.msk [vmem:[#allocation2 + $0x78] sm:$0xff] %vm1123_vm6, %v1122_v55  ;;  %v13399_v55 = vld [vmem:[#allocation28_spill] sm:$0xff] }
 0x73e   :  { %v8217_v22 = vpop.eup %8216 }
 0x73f   :  { %7385 = vmatmul.mubr.bf16.gmra.mrb[60].mxu0 %v13393_v3  ;;  %v13400_v3 = vld [vmem:[#allocation82_spill] sm:$0xff] }
 0x740   :  { %7388 = vmatprep.mubr.bf16.mxu0 %v13394_v16 }
 0x743   :  { %v8219_v16 = vpop.eup %8218 }
 0x744   :  { %v8221_v7 = vpop.eup %8220 }
 0x747   :  { %7389 = vmatmul.mubr.bf16.gmra.mrb[64].mxu0 %v13395_v48 }
 0x748   :  { %5092 = vmax.xlane.f32.xlu0 %v11255_v1  ;;  %7440 = vmatprep.mubr.bf16.mxu0 %v10668_v13 }
 0x74c   :  { %5094 = vmax.xlane.f32.xlu0 %v11261_v42 }
 0x75b   :  { %v5077_v46 = vpop.xlane.xlu0 %5076 }
 0x75c   :  { %v5103_v20 = vsub.f32 %v11087_v39, %v5077_v46  ;;  %v11271_v13 = vpop.f32.mrb[148].mxu1 }
 0x75d   :  { %v11273_v40 = vpop.f32.mrb[149].mxu1 }
 0x75e   :  { %v5124_v34 = vmul.f32 1.442695, %v5103_v20  ;;  %v11276_v60 = vpop.f32.mrb[150].mxu1 }
 0x75f   :  { %v11278_v57 = vpop.f32.mrb[151].mxu1  ;;  %v5079_v47 = vpop.xlane.xlu0 %5078 }
 0x760   :  { %8222 = vpow2.f32 %v5124_v34  ;;  %v5104_v52 = vsub.f32 %v11096_v28, %v5079_v47 }
 0x761   :  { %8224 = vrcp.f32 %v13399_v55 }
 0x762   :  { %v5126_v39 = vmul.f32 1.442695, %v5104_v52  ;;  %1034 = vperm.xlu0 %7936, %v8215_v56   ;;  %8226 = vpow2.f32 %v5128_v54 }
 0x763   :  { %v3897_v36 = vpop.permute.xlu0 %3896 }
 0x764   :  { %8228 = vpow2.f32 %v5126_v39  ;;  %7428 = vmatprep.subr.bf16.mxu0 %v3897_v36 }
 0x765   :  { %7429 = vmatpush3.bf16.msra.mxu0 %v3897_v36  ;;  %8230 = vrcp.f32 %v13400_v3 }
 0x766   :  { %1049 = vperm.xlu0 %7936, %v8217_v22   ;;  %7430 = vmatprep.subr.bf16.mxu0 %v11160_v5  ;;  %8232 = vrcp.f32 %v13401_v29 }
 0x767   :  { %v3903_v38 = vpop.permute.xlu0 %3902  ;;  %8234 = vrcp.f32 %v13402_v32 }
 0x769   :  { %7431 = vmatpush3.bf16.msra.mxu0 %v11160_v5 }
 0x76a   :  { %v8223_v28 = vpop.eup %8222  ;;  %1059 = vperm.xlu0 %7936, %v8219_v16   ;;  %7432 = vmatprep.subr.bf16.mxu0 %v11176_v50  ;;  %v13407_v16 = vld [vmem:[#allocation17_spill] sm:$0xff] }
 0x76b   :  { %v11287_v21 = vpack.c.bf16 %v8223_v28, %v8221_v7  ;;  %v8225_v48 = vpop.eup %8224 }
 0x76c   :  { %v8227_v44 = vpop.eup %8226 }
 0x76d   :  { %7433 = vmatpush3.bf16.msra.mxu0 %v11176_v50  ;;  %7604 = vmatprep.mubr.bf16.mxu1 %v11287_v21  ;;  %v13403_v50 = vld [vmem:[#allocation29_spill] sm:$0xff] }
 0x76e   :  { %v8229_v4 = vpop.eup %8228  ;;  %1069 = vperm.xlu0 %7936, %v8225_v48   ;;  %7434 = vmatprep.subr.bf16.mxu0 %v3903_v38  ;;  %8236 = vrcp.f32 %v13403_v50  ;;  %v13409_v48 = vld [vmem:[#allocation152_spill] sm:$0xff] }
 0x76f   :  { %v11292_v5 = vpack.c.bf16 %v8227_v44, %v8229_v4  ;;  %v8231_v63 = vpop.eup %8230  ;;  %8238 = vrcp.f32 %v13404_v6  ;;  %v13413_v6 = vld [vmem:[#allocation33_spill] sm:$0xff] }
 0x770   :  { %v8233_v46 = vpop.eup %8232 }
 0x771   :  { %7435 = vmatpush3.bf16.msra.mxu0 %v3903_v38  ;;  %7605 = vmatmul.mubr.bf16.gmra.mrb[164].mxu1 %v11292_v5  ;;  %v8235_v20 = vpop.eup %8234 }
 0x772   :  { %1079 = vperm.xlu0 %7936, %v8231_v63   ;;  %v13410_v63 = vld [vmem:[#allocation161_spill] sm:$0xff] }
 0x776   :  { %1089 = vperm.xlu0 %7936, %v8233_v46  }
 0x778   :  { %v8237_v55 = vpop.eup %8236 }
 0x779   :  { %v8239_v22 = vpop.eup %8238 }
 0x77a   :  { %1099 = vperm.xlu0 %7936, %v8235_v20  }
 0x77e   :  { %4527 = vrot.lane.b32.xlu0 %v13125_v62, %s8564_s12  ;;  %v5106_v62 = vsub.f32 %v10975_v31, %v11181_v45  ;;  %v13406_v45 = vld [vmem:[#allocation20_spill] sm:$0xff] }
 0x780   :  { %v5130_v47 = vmul.f32 1.442695, %v5106_v62 }
 0x782   :  { %4533 = vrot.lane.b32.xlu0 %v13120_v10, %s8564_s12 }
 0x786   :  { %4537 = vrot.lane.b32.xlu0 %v13184_v27, %s8564_s12 }
 0x78a   :  { %5156 = vrot.lane.b32.xlu0 %v13024_v26, %s8565_s13  ;;  %v13405_v26 = vld [vmem:[#allocation132_spill] sm:$0xff] }
 0x78b   :  { %8240 = vrcp.f32 %v13405_v26  ;;  %v13414_v26 = vld [vmem:[#allocation4_spill] sm:$0xff] }
 0x78c   :  { %8242 = vrcp.f32 %v13406_v45 }
 0x78d   :  { %8244 = vpow2.f32 %v5130_v47  ;;  %v13415_v47 = vld [vmem:[#allocation14_spill] sm:$0xff] }
 0x78e   :  { %5160 = vrot.lane.b32.xlu0 %v13269_v17, %s8565_s13 }
 0x792   :  { %5164 = vrot.lane.b32.xlu0 %v13120_v10, %s8565_s13  ;;  %v5109_v10 = vsub.f32 %v10981_v58, %v11188_v15 }
 0x794   :  { %v5136_v39 = vmul.f32 1.442695, %v5109_v10 }
 0x795   :  { %v11311_v34 = vpop.f32.mrb[152].mxu1  ;;  %v8241_v7 = vpop.eup %8240 }
 0x796   :  { %5168 = vrot.lane.b32.xlu0 %v13184_v27, %s8565_s13  ;;  %v11315_v54 = vpop.f32.mrb[153].mxu1  ;;  %v8243_v28 = vpop.eup %8242 }
 0x797   :  { %v11318_v17 = vpop.f32.mrb[154].mxu1  ;;  %v8245_v29 = vpop.eup %8244 }
 0x798   :  { %v11322_v52 = vpop.f32.mrb[155].mxu1  ;;  %v5085_v56 = vpop.xlane.xlu0 %5084 }
 0x799   :  { %v5107_v31 = vsub.f32 %v11193_v30, %v5085_v56  ;;  %v13408_v30 = vld [vmem:[#allocation153_spill] sm:$0xff] }
 0x79a   :  { %1609 = vperm.xlu0 %7936, %v8237_v55   ;;  %v13416_v55 = vld [vmem:[#allocation31_spill] sm:$0xff] }
 0x79b   :  { %v5132_v27 = vmul.f32 1.442695, %v5107_v31  ;;  %v13417_v31 = vld [vmem:[#allocation171_spill] sm:$0xff] }
 0x79c   :  { %v5087_v36 = vpop.xlane.xlu0 %5086 }
 0x79d   :  { %8246 = vpow2.f32 %v5132_v27  ;;  %v5108_v3 = vsub.f32 %v11197_v24, %v5087_v36 }
 0x79e   :  { %2235 = vperm.xlu0 %7936, %v8239_v22   ;;  %8248 = vrcp.f32 %v13407_v16  ;;  %v5113_v22 = vsub.f32 %v11027_v41, %v11204_v8 }
 0x79f   :  { %v5134_v58 = vmul.f32 1.442695, %v5108_v3  ;;  %8250 = vpow2.f32 %v5136_v39 }
 0x7a0   :  { %v3905_v15 = vpop.permute.xlu0 %3904 }
 0x7a1   :  { %8252 = vpow2.f32 %v5134_v58  ;;  %7436 = vmatprep.subr.bf16.mxu0 %v3905_v15 }
 0x7a2   :  { %2245 = vperm.xlu0 %7936, %v8241_v7   ;;  %7437 = vmatpush3.bf16.msra.mxu0 %v3905_v15  ;;  %8254 = vrcp.f32 %v13408_v30  ;;  %v5144_v15 = vmul.f32 1.442695, %v5113_v22 }
 0x7a3   :  { %7438 = vmatprep.subr.bf16.mxu0 %v11190_v37  ;;  %8256 = vrcp.f32 %v13409_v48 }
 0x7a4   :  { %8258 = vrcp.f32 %v13410_v63  ;;  %v4526_v46 = vpop.permute.xlu0 %4525 }
 0x7a6   :  { %2866 = vperm.xlu0 %7936, %v8243_v28   ;;  %7439 = vmatpush3.bf16.msra.mxu0 %v11190_v37 }
 0x7a7   :  { %v8247_v24 = vpop.eup %8246  ;;  %7488 = vmatprep.subr.bf16.mxu0 %v11199_v61 }
 0x7a8   :  { %v11333_v44 = vpack.c.bf16 %v8247_v24, %v8245_v29  ;;  %v8249_v38 = vpop.eup %8248 }
 0x7a9   :  { %7441 = vmatmul.mubr.bf16.vlgmr.msra.gmra.mrb[68].mxu0 %v10675_v33  ;;  %v8251_v4 = vpop.eup %8250  ;;  %v13411_v33 = vld [vmem:[#allocation160_spill] sm:$0xff] }
 0x7aa   :  { %2876 = vperm.xlu0 %7936, %v8249_v38   ;;  %7444 = vmatprep.mubr.bf16.mxu0 %v10728_v59  ;;  %8260 = vrcp.f32 %v13411_v33  ;;  %v13412_v59 = vld [vmem:[#allocation94_spill] sm:$0xff]  ;;  %v13421_v33 = vmov 0.0  }
 0x7ab   :  { %v8253_v32 = vpop.eup %8252  ;;  %7489 = vmatpush3.bf16.msra.mxu0 %v11199_v61  ;;  %7608 = vmatprep.mubr.bf16.mxu1 %v11333_v44  ;;  %8262 = vrcp.f32 %v11121_v23 }
 0x7ac   :  { %7490 = vmatprep.subr.bf16.mxu0 %v4526_v46  ;;  %v11340_v37 = vpack.c.bf16 %v8251_v4, %v8253_v32  ;;  %v8255_v20 = vpop.eup %8254  ;;  %8264 = vrcp.f32 %v11119_v18  ;;  %v5110_v18 = vsub.f32 %v11022_v19, %v11202_v14  ;;  %v13418_v14 = vld [vmem:[#allocation71_spill] sm:$0xff] }
 0x7ad   :  { %v8257_v50 = vpop.eup %8256 }
 0x7ae   :  { %3497 = vperm.xlu0 %7936, %v8255_v20   ;;  %7609 = vmatmul.mubr.bf16.gmra.mrb[168].mxu1 %v11340_v37  ;;  %v8259_v61 = vpop.eup %8258  ;;  %v5138_v36 = vmul.f32 1.442695, %v5110_v18 }
 0x7af   :  { %7491 = vmatpush3.bf16.msra.mxu0 %v4526_v46  ;;  %v13420_v46 = vld [vmem:[#allocation38_spill] sm:$0xff] }
 0x7b0   :  { %8266 = vpow2.f32 %v5138_v36  ;;  %v4530_v36 = vpop.permute.xlu1 %4529 }
 0x7b1   :  { %7445 = vmatmul.mubr.bf16.gmra.mrb[72].mxu0 %v13412_v59  ;;  %v13422_v59 = vld [vmem:[#allocation109_spill] sm:$0xff] }
 0x7b2   :  { %3507 = vperm.xlu0 %7936, %v8257_v50   ;;  %7448 = vmatprep.mubr.bf16.mxu0 %v13413_v6 }
 0x7b4   :  { %v8261_v62 = vpop.eup %8260 }
 0x7b5   :  { %v8263_v10 = vpop.eup %8262 }
 0x7b6   :  { %4128 = vperm.xlu0 %7936, %v8259_v61   ;;  %v8265_v56 = vpop.eup %8264 }
 0x7b9   :  { %7449 = vmatmul.mubr.bf16.gmra.mrb[76].mxu0 %v13414_v26 }
 0x7ba   :  { %4138 = vperm.xlu0 %7936, %v8261_v62   ;;  %7452 = vmatprep.mubr.bf16.mxu0 %v13415_v47  ;;  %v8267_v24 = vpop.eup %8266  ;;  %v13423_v62 = vld [vmem:[#allocation99_spill] sm:$0xff] }
 0x7be   :  { %4759 = vperm.xlu0 %7936, %v8263_v10   ;;  %v13424_v10 = vld [vmem:[#allocation57_spill] sm:$0xff] }
 0x7c1   :  { %7453 = vmatmul.mubr.bf16.gmra.mrb[80].mxu0 %v13416_v55 }
 0x7c2   :  { %4769 = vperm.xlu0 %7936, %v8265_v56   ;;  %7504 = vmatprep.mubr.bf16.mxu0 %v13417_v31  ;;  %v13425_v31 = vld [vmem:[#allocation68_spill] sm:$0xff] }
 0x7ce   :  { %v11352_v45 = vpop.f32.mrb[156].mxu1 }
 0x7cf   :  { %v11354_v23 = vpop.f32.mrb[157].mxu1 }
 0x7d0   :  { %v11356_v27 = vpop.f32.mrb[158].mxu1 }
 0x7d1   :  { %v11360_v39 = vpop.f32.mrb[159].mxu1 }
 0x7d5   :  { %v5093_v3 = vpop.xlane.xlu0 %5092 }
 0x7d6   :  { %v5111_v16 = vsub.f32 %v11255_v1, %v5093_v3  ;;  %v13419_v1 = vld [vmem:[#allocation95_spill] sm:$0xff] }
 0x7d8   :  { %v5140_v58 = vmul.f32 1.442695, %v5111_v16  ;;  %v4532_v16 = vpop.permute.xlu1 %4531 }
 0x7d9   :  { %v5095_v7 = vpop.xlane.xlu0 %5094 }
 0x7da   :  { %8268 = vpow2.f32 %v5140_v58  ;;  %v5112_v30 = vsub.f32 %v11261_v42, %v5095_v7 }
 0x7db   :  { %8270 = vpow2.f32 %v5144_v15 }
 0x7dc   :  { %v5142_v28 = vmul.f32 1.442695, %v5112_v30 }
 0x7de   :  { %8272 = vpow2.f32 %v5142_v28 }
 0x7e1   :  { %v1035_v19 = vpop.permute.xlu0 %1034 }
 0x7e2   :  { %v1108_v29 = vmul.f32 %v1035_v19, %v13418_v14 }
 0x7e4   :  { %v8269_v48 = vpop.eup %8268  ;;  %1125 = vst.msk [vmem:[#allocation2 + $0x8] sm:$0xff] %vm1123_vm6, %v1108_v29 }
 0x7e5   :  { %v1050_v41 = vpop.permute.xlu0 %1049  ;;  %v11368_v8 = vpack.c.bf16 %v8269_v48, %v8267_v24  ;;  %v8271_v4 = vpop.eup %8270 }
 0x7e6   :  { %v1111_v38 = vmul.f32 %v1050_v41, %v13419_v1  ;;  %v4536_v48 = vpop.permute.xlu1 %4535 }
 0x7e7   :  { %7612 = vmatprep.mubr.bf16.mxu1 %v11368_v8 }
 0x7e8   :  { %v8273_v32 = vpop.eup %8272  ;;  %1128 = vst.msk [vmem:[#allocation2 + $0x20] sm:$0xff] %vm1123_vm6, %v1111_v38 }
 0x7e9   :  { %v1060_v42 = vpop.permute.xlu0 %1059  ;;  %v11373_v63 = vpack.c.bf16 %v8271_v4, %v8273_v32  ;;  %v13429_v32 = vld [vmem:[#allocation105_spill] sm:$0xff] }
 0x7ea   :  { %v1113_v20 = vmul.f32 %v13420_v46, %v1060_v42 }
 0x7eb   :  { %7613 = vmatmul.mubr.bf16.gmra.mrb[172].mxu1 %v11373_v63 }
 0x7ec   :  { %1130 = vst.msk [vmem:[#allocation2 + $0x30] sm:$0xff] %vm1123_vm6, %v1113_v20  ;;  %7672 = vmatprep.mubr.msk.f32.mxu1 %vm8547_vm1, %v13421_v33  ;;  %v13431_v20 = vld [vmem:[#allocation9_spill] sm:$0xff]  ;;  %v5155_v33 = vpop.permute.xlu1 %5154  ;;  %vm1762_vm1 = vcmask 130112  }
 0x7ed   :  { %v1070_v50 = vpop.permute.xlu0 %1069 }
 0x7ee   :  { %v1115_v6 = vmul.f32 %v1070_v50, %v13422_v59 }
 0x7f0   :  { %1132 = vst.msk [vmem:[#allocation2 + $0x40] sm:$0xff] %vm1123_vm6, %v1115_v6 }
 0x7f1   :  { %v1080_v61 = vpop.permute.xlu0 %1079 }
 0x7f2   :  { %v1117_v26 = vmul.f32 %v13423_v62, %v1080_v61  ;;  %v13434_v61 = vld [vmem:[#allocation96_spill] sm:$0xff] }
 0x7f4   :  { %1134 = vst.msk [vmem:[#allocation2 + $0x50] sm:$0xff] %vm1123_vm6, %v1117_v26  ;;  %v13436_v26 = vld [vmem:[#allocation172_spill] sm:$0xff] }
 0x7f5   :  { %v1090_v47 = vpop.permute.xlu0 %1089 }
 0x7f6   :  { %v1119_v56 = vmul.f32 %v1090_v47, %v13424_v10  ;;  %v13437_v10 = vld [vmem:[#allocation7_spill] sm:$0xff] }
 0x7f8   :  { %1136 = vst.msk [vmem:[#allocation2 + $0x60] sm:$0xff] %vm1123_vm6, %v1119_v56 }
 0x7f9   :  { %v1100_v55 = vpop.permute.xlu0 %1099 }
 0x7fa   :  { %v1121_v18 = vmul.f32 %v13425_v31, %v1100_v55  ;;  %v13438_v55 = vld [vmem:[#allocation79_spill] sm:$0xff] }
 0x7fc   :  { %1138 = vst.msk [vmem:[#allocation2 + $0x70] sm:$0xff] %vm1123_vm6, %v1121_v18  ;;  %v13439_v18 = vld [vmem:[#allocation136_spill] sm:$0xff] }
 0x7fd   :  { %v4528_v22 = vpop.permute.xlu0 %4527 }
 0x7fe   :  { %7492 = vmatprep.subr.bf16.mxu0 %v4528_v22 }
 0x7ff   :  { %7493 = vmatpush3.bf16.msra.mxu0 %v4528_v22 }
 0x800   :  { %7494 = vmatprep.subr.bf16.mxu0 %v4530_v36 }
 0x801   :  { %v4534_v30 = vpop.permute.xlu0 %4533 }
 0x802   :  { %v11388_v3 = vpop.f32.mrb[52].mxu0 }
 0x803   :  { %v11390_v58 = vpop.f32.mrb[53].mxu0  ;;  %7495 = vmatpush3.bf16.msra.mxu0 %v4530_v36 }
 0x804   :  { %v11392_v15 = vpop.f32.mrb[54].mxu0  ;;  %7496 = vmatprep.subr.bf16.mxu0 %v4532_v16 }
 0x805   :  { %v11394_v7 = vpop.f32.mrb[55].mxu0  ;;  %v4538_v4 = vpop.permute.xlu0 %4537 }
 0x807   :  { %7497 = vmatpush3.bf16.msra.mxu0 %v4532_v16  ;;  %v7602_v28 = vpop.f32.mrb[160].mxu1  ;;  %v13441_v16 = vld [vmem:[#allocation138_spill] sm:$0xff] }
 0x808   :  { %7498 = vmatprep.subr.bf16.mxu0 %v4534_v30  ;;  %v5309_v19 = vpop.f32.mrb[161].mxu1 }
 0x809   :  { %8274 = vrcp.f32 %v5309_v19  ;;  %v7603_v14 = vpop.f32.mrb[162].mxu1  ;;  %v5157_v56 = vpop.permute.xlu0 %5156 }
 0x80a   :  { %v11396_v29 = vpop.f32.mrb[56].mxu0  ;;  %v5312_v24 = vpop.f32.mrb[163].mxu1 }
 0x80b   :  { %13426 = vst [vmem:[#allocation34_spill] sm:$0xff] %v11396_v29  ;;  %8276 = vrcp.f32 %v5312_v24  ;;  %v11398_v41 = vpop.f32.mrb[57].mxu0  ;;  %7499 = vmatpush3.bf16.msra.mxu0 %v4534_v30  ;;  %v5159_v30 = vpop.permute.xlu1 %5158  ;;  %v13444_v24 = vld [vmem:[#allocation3_spill] sm:$0xff] }
 0x80c   :  { %v11400_v1 = vpop.f32.mrb[58].mxu0  ;;  %7500 = vmatprep.subr.bf16.mxu0 %v4536_v48  ;;  %8278 = vrcp.f32 %v7602_v28 }
 0x80d   :  { %13427 = vst [vmem:[#allocation48_spill] sm:$0xff] %v11400_v1  ;;  %v11402_v38 = vpop.f32.mrb[59].mxu0  ;;  %8280 = vrcp.f32 %v7603_v14 }
 0x80e   :  { %13428 = vst [vmem:[#allocation65_spill] sm:$0xff] %v11402_v38  ;;  %8282 = vrcp.f32 %v13429_v32  ;;  %v13446_v32 = vld [vmem:[#allocation137_spill] sm:$0xff] }
 0x80f   :  { %7501 = vmatpush3.bf16.msra.mxu0 %v4536_v48  ;;  %8284 = vrcp.f32 %v13431_v20 }
 0x810   :  { %7502 = vmatprep.subr.bf16.mxu0 %v4538_v4  ;;  %8286 = vrcp.f32 %v13434_v61  ;;  %v13448_v61 = vld [vmem:[#allocation146_spill] sm:$0xff] }
 0x811   :  { %8288 = vrcp.f32 %v13437_v10  ;;  %v13450_v10 = vld [vmem:[#allocation145_spill] sm:$0xff] }
 0x812   :  { %v11405_v42 = vpop.f32.mrb[60].mxu0  ;;  %8290 = vrcp.f32 %v13439_v18 }
 0x813   :  { %13430 = vst [vmem:[#allocation39_spill] sm:$0xff] %v11405_v42  ;;  %v8275_v46 = vpop.eup %8274  ;;  %v11408_v50 = vpop.f32.mrb[61].mxu0  ;;  %7503 = vmatpush3.bf16.msra.mxu0 %v4538_v4  ;;  %8292 = vrcp.f32 %v13441_v16 }
 0x814   :  { %13432 = vst [vmem:[#allocation101_spill] sm:$0xff] %v11408_v50  ;;  %5390 = vperm.xlu0 %7936, %v8275_v46   ;;  %v11410_v59 = vpop.f32.mrb[62].mxu0  ;;  %7552 = vmatprep.subr.bf16.mxu0 %v5155_v33  ;;  %8294 = vrcp.f32 %v13444_v24  ;;  %v5161_v46 = vpop.permute.xlu0 %5160 }
 0x815   :  { %13433 = vst [vmem:[#allocation80_spill] sm:$0xff] %v11410_v59  ;;  %v8277_v6 = vpop.eup %8276  ;;  %v11413_v62 = vpop.f32.mrb[63].mxu0  ;;  %8296 = vrcp.f32 %v13446_v32  ;;  %v13455_v32 = vld [vmem:[#allocation36_spill] sm:$0xff] }
 0x816   :  { %13435 = vst [vmem:[#allocation54_spill] sm:$0xff] %v11413_v62  ;;  %5395 = vperm.xlu1 %7937, %v8277_v6   ;;  %7505 = vmatmul.mubr.bf16.vlgmr.msra.gmra.mrb[84].mxu0 %v13436_v26  ;;  %v8279_v47 = vpop.eup %8278  ;;  %v5163_v26 = vpop.permute.xlu1 %5162 }
 0x817   :  { %7508 = vmatprep.mubr.bf16.mxu0 %v13438_v55  ;;  %7553 = vmatpush3.bf16.msra.mxu0 %v5155_v33  ;;  %v8281_v31 = vpop.eup %8280  ;;  %v13447_v33 = vld [vmem:[#allocation21_spill] sm:$0xff] }
 0x818   :  { %5400 = vperm.xlu0 %7936, %v8279_v47   ;;  %7554 = vmatprep.subr.bf16.mxu0 %v5157_v56  ;;  %v8283_v22 = vpop.eup %8282  ;;  %8298 = vrcp.f32 %v13447_v33  ;;  %v13449_v47 = vld [vmem:[#allocation19_spill] sm:$0xff] }
 0x819   :  { %v8285_v14 = vpop.eup %8284  ;;  %8300 = vrcp.f32 %v13448_v61  ;;  %v13458_v61 = vld [vmem:[#allocation86_spill] sm:$0xff] }
 0x81a   :  { %5405 = vperm.xlu1 %7937, %v8281_v31   ;;  %v11419_v36 = vpop.f32.mrb[64].mxu0  ;;  %v8287_v4 = vpop.eup %8286  ;;  %8302 = vrcp.f32 %v13449_v47  ;;  %v13451_v31 = vld [vmem:[#allocation154_spill] sm:$0xff] }
 0x81b   :  { %13440 = vst [vmem:[#allocation78_spill] sm:$0xff] %v11419_v36  ;;  %v11422_v28 = vpop.f32.mrb[65].mxu0  ;;  %7555 = vmatpush3.bf16.msra.mxu0 %v5157_v56  ;;  %v8289_v20 = vpop.eup %8288  ;;  %8304 = vrcp.f32 %v13450_v10 }
 0x81c   :  { %13442 = vst [vmem:[#allocation103_spill] sm:$0xff] %v11422_v28  ;;  %1624 = vperm.xlu0 %7936, %v8283_v22   ;;  %v11424_v19 = vpop.f32.mrb[66].mxu0  ;;  %7556 = vmatprep.subr.bf16.mxu0 %v5159_v30  ;;  %v8291_v6 = vpop.eup %8290  ;;  %8306 = vrcp.f32 %v13451_v31  ;;  %v13452_v22 = vld [vmem:[#allocation156_spill] sm:$0xff]  ;;  %v13460_v31 = vld [vmem:[#allocation30_spill] sm:$0xff] }
 0x81d   :  { %13443 = vst [vmem:[#allocation122_spill] sm:$0xff] %v11424_v19  ;;  %v11427_v48 = vpop.f32.mrb[67].mxu0  ;;  %v5165_v56 = vpop.permute.xlu0 %5164  ;;  %8308 = vrcp.f32 %v13452_v22  ;;  %v13491_v19 = vld [vmem:[#allocation15_spill] sm:$0xff] }
 0x81e   :  { %13445 = vst [vmem:[#allocation89_spill] sm:$0xff] %v11427_v48  ;;  %1629 = vperm.xlu1 %7937, %v8285_v14   ;;  %7509 = vmatmul.mubr.bf16.gmra.mrb[88].mxu0 %v11029_v35  ;;  %v8293_v35 = vpop.eup %8292  ;;  %v5167_v16 = vpop.permute.xlu1 %5166  ;;  %v13454_v14 = vld [vmem:[#allocation155_spill] sm:$0xff]  ;;  %v13493_v48 = vld [vmem:[#allocation142_spill] sm:$0xff] }
 0x81f   :  { %7512 = vmatprep.mubr.bf16.mxu0 %v11066_v49  ;;  %7557 = vmatpush3.bf16.msra.mxu0 %v5159_v30  ;;  %v8295_v49 = vpop.eup %8294  ;;  %v13453_v30 = vld [vmem:[#allocation6_spill] sm:$0xff] }
 0x820   :  { %1634 = vperm.xlu0 %7936, %v8287_v4   ;;  %7558 = vmatprep.subr.bf16.mxu0 %v5161_v46  ;;  %v8297_v55 = vpop.eup %8296  ;;  %8310 = vrcp.f32 %v13453_v30 }
 0x821   :  { %8312 = vrcp.f32 %v13454_v14  ;;  %v5169_v24 = vpop.permute.xlu0 %5168 }
 0x822   :  { %1639 = vperm.xlu1 %7937, %v8289_v20   ;;  %v8299_v18 = vpop.eup %8298  ;;  %8314 = vrcp.f32 %v13455_v32  ;;  %v13456_v20 = vld [vmem:[#allocation90_spill] sm:$0xff] }
 0x823   :  { %7559 = vmatpush3.bf16.msra.mxu0 %v5161_v46  ;;  %8316 = vrcp.f32 %v13456_v20 }
 0x824   :  { %2255 = vperm.xlu0 %7936, %v8291_v6   ;;  %7560 = vmatprep.subr.bf16.mxu0 %v5163_v26 }
 0x825   :  { %v11466_v22 = vpop.permute.xlu0 %1609 }
 0x826   :  { %2260 = vperm.xlu1 %7937, %v8293_v35   ;;  %7513 = vmatmul.mubr.bf16.gmra.mrb[92].mxu0 %v11073_v25  ;;  %v8301_v25 = vpop.eup %8300 }
 0x827   :  { %7516 = vmatprep.mubr.bf16.mxu0 %v11172_v53  ;;  %7561 = vmatpush3.bf16.msra.mxu0 %v5163_v26  ;;  %v8303_v53 = vpop.eup %8302 }
 0x828   :  { %2265 = vperm.xlu0 %7936, %v8295_v49   ;;  %7562 = vmatprep.subr.bf16.mxu0 %v5165_v56  ;;  %v8305_v4 = vpop.eup %8304 }
 0x829   :  { %v8307_v46 = vpop.eup %8306 }
 0x82a   :  { %2270 = vperm.xlu1 %7937, %v8297_v55   ;;  %v8309_v33 = vpop.eup %8308 }
 0x82b   :  { %7563 = vmatpush3.bf16.msra.mxu0 %v5165_v56  ;;  %v8311_v6 = vpop.eup %8310  ;;  %v13459_v56 = vld [vmem:[#allocation85_spill] sm:$0xff] }
 0x82c   :  { %2886 = vperm.xlu0 %7936, %v8299_v18   ;;  %7564 = vmatprep.subr.bf16.mxu0 %v5167_v16  ;;  %v13461_v18 = vld [vmem:[#allocation10_spill] sm:$0xff] }
 0x82e   :  { %2891 = vperm.xlu1 %7937, %v8301_v25   ;;  %7517 = vmatmul.mubr.bf16.gmra.mrb[96].mxu0 %v11178_v43  ;;  %v13457_v43 = vld [vmem:[#allocation60_spill] sm:$0xff]  ;;  %v13462_v25 = vld [vmem:[#allocation43_spill] sm:$0xff] }
 0x82f   :  { %7565 = vmatpush3.bf16.msra.mxu0 %v5167_v16  ;;  %7568 = vmatprep.mubr.bf16.mxu0 %v11229_v51  ;;  %8318 = vrcp.f32 %v13457_v43  ;;  %v8313_v51 = vpop.eup %8312  ;;  %v13466_v43 = vld [vmem:[#allocation140_spill] sm:$0xff] }
 0x830   :  { %2896 = vperm.xlu0 %7936, %v8303_v53   ;;  %7566 = vmatprep.subr.bf16.mxu0 %v5169_v24  ;;  %8320 = vrcp.f32 %v13458_v61  ;;  %v8315_v26 = vpop.eup %8314  ;;  %v13467_v61 = vld [vmem:[#allocation23_spill] sm:$0xff] }
 0x831   :  { %8322 = vrcp.f32 %v11273_v40  ;;  %v8317_v35 = vpop.eup %8316 }
 0x832   :  { %2901 = vperm.xlu1 %7937, %v8305_v4   ;;  %8324 = vrcp.f32 %v11278_v57  ;;  %v11473_v4 = vpop.permute.xlu0 %2235 }
 0x833   :  { %7567 = vmatpush3.bf16.msra.mxu0 %v5169_v24  ;;  %8326 = vrcp.f32 %v11271_v13  ;;  %v13464_v24 = vld [vmem:[#allocation141_spill] sm:$0xff] }
 0x834   :  { %3517 = vperm.xlu0 %7936, %v8307_v46   ;;  %8328 = vrcp.f32 %v11276_v60  ;;  %v13465_v46 = vld [vmem:[#allocation12_spill] sm:$0xff] }
 0x836   :  { %3522 = vperm.xlu1 %7937, %v8309_v33   ;;  %7569 = vmatmul.mubr.bf16.vlgmr.msra.gmra.mrb[100].mxu0 %v11237_v11 }
 0x837   :  { %7572 = vmatprep.mubr.bf16.mxu0 %v11287_v21 }
 0x838   :  { %3527 = vperm.xlu0 %7936, %v8311_v6  }
 0x839   :  { %v8319_v11 = vpop.eup %8318 }
 0x83a   :  { %3532 = vperm.xlu1 %7937, %v8313_v51   ;;  %v8321_v21 = vpop.eup %8320  ;;  %v11480_v51 = vpop.permute.xlu0 %2245 }
 0x83b   :  { %v8323_v40 = vpop.eup %8322 }
 0x83c   :  { %4148 = vperm.xlu0 %7936, %v8315_v26   ;;  %v8325_v49 = vpop.eup %8324 }
 0x83d   :  { %v8327_v10 = vpop.eup %8326 }
 0x83e   :  { %4153 = vperm.xlu1 %7937, %v8317_v35   ;;  %7573 = vmatmul.mubr.bf16.gmra.mrb[104].mxu0 %v11292_v5  ;;  %v8329_v60 = vpop.eup %8328  ;;  %v13468_v35 = vld [vmem:[#allocation148_spill] sm:$0xff] }
 0x83f   :  { %7576 = vmatprep.mubr.bf16.mxu0 %v11333_v44  ;;  %v11458_v44 = vpop.permute.xlu1 %1604 }
 0x840   :  { %4158 = vperm.xlu0 %7936, %v8319_v11  }
 0x842   :  { %4163 = vperm.xlu1 %7937, %v8321_v21  }
 0x843   :  { %v11462_v55 = vpop.permute.xlu1 %1614 }
 0x844   :  { %4779 = vperm.xlu0 %7936, %v8323_v40   ;;  %v7606_v47 = vpop.f32.mrb[164].mxu1  ;;  %v13469_v40 = vld [vmem:[#allocation24_spill] sm:$0xff] }
 0x845   :  { %v5325_v57 = vpop.f32.mrb[165].mxu1 }
 0x846   :  { %8330 = vrcp.f32 %v5325_v57  ;;  %4784 = vperm.xlu1 %7937, %v8325_v49   ;;  %7577 = vmatmul.mubr.bf16.gmra.mrb[108].mxu0 %v11340_v37  ;;  %v7607_v13 = vpop.f32.mrb[166].mxu1  ;;  %v13470_v49 = vld [vmem:[#allocation147_spill] sm:$0xff]  ;;  %v11487_v57 = vpop.permute.xlu0 %2866 }
 0x847   :  { %7580 = vmatprep.mubr.bf16.mxu0 %v11368_v8  ;;  %v5328_v5 = vpop.f32.mrb[167].mxu1  ;;  %v11469_v30 = vpop.permute.xlu1 %1619 }
 0x848   :  { %8332 = vrcp.f32 %v5328_v5  ;;  %4789 = vperm.xlu0 %7936, %v8327_v10   ;;  %v13471_v10 = vld [vmem:[#allocation98_spill] sm:$0xff] }
 0x849   :  { %8334 = vrcp.f32 %v7606_v47 }
 0x84a   :  { %4794 = vperm.xlu1 %7937, %v8329_v60   ;;  %8336 = vrcp.f32 %v7607_v13 }
 0x84b   :  { %8338 = vrcp.f32 %v13459_v56  ;;  %v11476_v20 = vpop.permute.xlu1 %2240  ;;  %v13472_v56 = vld [vmem:[#allocation61_spill] sm:$0xff] }
 0x84c   :  { %8340 = vrcp.f32 %v13460_v31  ;;  %v13473_v31 = vld [vmem:[#allocation47_spill] sm:$0xff] }
 0x84d   :  { %8342 = vrcp.f32 %v13461_v18 }
 0x84e   :  { %7581 = vmatmul.mubr.bf16.gmra.mrb[112].mxu0 %v11373_v63  ;;  %8344 = vrcp.f32 %v13462_v25  ;;  %v13463_v63 = vld [vmem:[#allocation13_spill] sm:$0xff] }
 0x84f   :  { %8346 = vrcp.f32 %v13463_v63  ;;  %v11483_v11 = vpop.permute.xlu1 %2250  ;;  %v13475_v63 = vld [vmem:[#allocation37_spill] sm:$0xff] }
 0x850   :  { %v8331_v37 = vpop.eup %8330  ;;  %8348 = vrcp.f32 %v13464_v24  ;;  %v13476_v24 = vld [vmem:[#allocation129_spill] sm:$0xff] }
 0x851   :  { %5410 = vperm.xlu0 %7936, %v8331_v37   ;;  %8350 = vrcp.f32 %v13465_v46 }
 0x852   :  { %v8333_v8 = vpop.eup %8332  ;;  %8352 = vrcp.f32 %v13466_v43 }
 0x853   :  { %5415 = vperm.xlu1 %7937, %v8333_v8   ;;  %v8335_v16 = vpop.eup %8334  ;;  %8354 = vrcp.f32 %v13467_v61  ;;  %v11490_v5 = vpop.permute.xlu1 %2871  ;;  %v13478_v61 = vld [vmem:[#allocation70_spill] sm:$0xff] }
 0x854   :  { %v8337_v53 = vpop.eup %8336  ;;  %8356 = vrcp.f32 %v13468_v35  ;;  %v11494_v8 = vpop.permute.xlu0 %2876 }
 0x855   :  { %5420 = vperm.xlu0 %7936, %v8335_v16   ;;  %v8339_v14 = vpop.eup %8338  ;;  %8358 = vrcp.f32 %v13469_v40  ;;  %v13474_v16 = vld [vmem:[#allocation63_spill] sm:$0xff] }
 0x856   :  { %v8341_v32 = vpop.eup %8340  ;;  %8360 = vrcp.f32 %v13470_v49 }
 0x857   :  { %5425 = vperm.xlu1 %7937, %v8337_v53   ;;  %v8343_v33 = vpop.eup %8342  ;;  %8362 = vrcp.f32 %v13471_v10  ;;  %v11497_v25 = vpop.permute.xlu1 %2881 }
 0x858   :  { %v8345_v6 = vpop.eup %8344  ;;  %8364 = vrcp.f32 %v13472_v56 }
 0x859   :  { %1644 = vperm.xlu0 %7936, %v8339_v14   ;;  %v8347_v26 = vpop.eup %8346  ;;  %8366 = vrcp.f32 %v13473_v31 }
 0x85a   :  { %v8349_v21 = vpop.eup %8348  ;;  %8368 = vrcp.f32 %v13474_v16 }
 0x85b   :  { %1649 = vperm.xlu1 %7937, %v8341_v32   ;;  %v8351_v47 = vpop.eup %8350  ;;  %8370 = vrcp.f32 %v13475_v63  ;;  %v11501_v32 = vpop.permute.xlu0 %3497 }
 0x85c   :  { %v8353_v13 = vpop.eup %8352  ;;  %8372 = vrcp.f32 %v13476_v24  ;;  %v11504_v43 = vpop.permute.xlu1 %3502 }
 0x85d   :  { %1654 = vperm.xlu0 %7936, %v8343_v33   ;;  %v8355_v60 = vpop.eup %8354  ;;  %v13477_v33 = vld [vmem:[#allocation88_spill] sm:$0xff] }
 0x85e   :  { %v8357_v37 = vpop.eup %8356  ;;  %8374 = vrcp.f32 %v13477_v33 }
 0x85f   :  { %1659 = vperm.xlu1 %7937, %v8345_v6   ;;  %v8359_v18 = vpop.eup %8358  ;;  %8376 = vrcp.f32 %v13478_v61  ;;  %v11508_v35 = vpop.permute.xlu0 %3507 }
 0x860   :  { %v8361_v53 = vpop.eup %8360  ;;  %8378 = vrcp.f32 %v11315_v54  ;;  %v11511_v40 = vpop.permute.xlu1 %3512 }
 0x861   :  { %2275 = vperm.xlu0 %7936, %v8347_v26   ;;  %v8363_v14 = vpop.eup %8362  ;;  %8380 = vrcp.f32 %v11322_v52 }
 0x862   :  { %v8365_v46 = vpop.eup %8364  ;;  %8382 = vrcp.f32 %v11311_v34 }
 0x863   :  { %2280 = vperm.xlu1 %7937, %v8349_v21   ;;  %v8367_v6 = vpop.eup %8366  ;;  %8384 = vrcp.f32 %v11318_v17  ;;  %v11517_v10 = vpop.permute.xlu0 %4128 }
 0x864   :  { %v8369_v26 = vpop.eup %8368  ;;  %v11523_v52 = vpop.permute.xlu1 %4133 }
 0x865   :  { %2285 = vperm.xlu0 %7936, %v8351_v47   ;;  %v8371_v21 = vpop.eup %8370 }
 0x866   :  { %v8373_v47 = vpop.eup %8372 }
 0x867   :  { %2290 = vperm.xlu1 %7937, %v8353_v13   ;;  %v11527_v16 = vpop.permute.xlu0 %4138 }
 0x868   :  { %v8375_v49 = vpop.eup %8374 }
 0x869   :  { %2906 = vperm.xlu0 %7936, %v8355_v60   ;;  %v8377_v60 = vpop.eup %8376 }
 0x86a   :  { %v8379_v34 = vpop.eup %8378 }
 0x86b   :  { %2911 = vperm.xlu1 %7937, %v8357_v37  }
 0x86d   :  { %2916 = vperm.xlu0 %7936, %v8359_v18   ;;  %v8381_v18 = vpop.eup %8380 }
 0x86e   :  { %v8383_v63 = vpop.eup %8382 }
 0x86f   :  { %2921 = vperm.xlu1 %7937, %v8361_v53  }
 0x871   :  { %3537 = vperm.xlu0 %7936, %v8363_v14  }
 0x873   :  { %3542 = vperm.xlu1 %7937, %v8365_v46   ;;  %v11531_v46 = vpop.permute.xlu1 %4143 }
 0x875   :  { %3547 = vperm.xlu0 %7936, %v8367_v6   ;;  %v8385_v6 = vpop.eup %8384 }
 0x877   :  { %3552 = vperm.xlu1 %7937, %v8369_v26  }
 0x879   :  { %4168 = vperm.xlu0 %7936, %v8371_v21   ;;  %v11539_v21 = vpop.permute.xlu0 %4759 }
 0x87b   :  { %4173 = vperm.xlu1 %7937, %v8373_v47   ;;  %v13483_v47 = vld [vmem:[#allocation128_spill] sm:$0xff] }
 0x87c   :  { %v11515_v13 = vpop.f32.mrb[68].mxu0 }
 0x87d   :  { %v11519_v54 = vpop.f32.mrb[69].mxu0  ;;  %4178 = vperm.xlu0 %7936, %v8375_v49   ;;  %v11542_v49 = vpop.permute.xlu1 %4764 }
 0x87e   :  { %v11521_v56 = vpop.f32.mrb[70].mxu0 }
 0x87f   :  { %4183 = vperm.xlu1 %7937, %v8377_v60   ;;  %v11525_v37 = vpop.f32.mrb[71].mxu0 }
 0x881   :  { %v7610_v31 = vpop.f32.mrb[168].mxu1  ;;  %4799 = vperm.xlu0 %7936, %v8379_v34   ;;  %v11557_v12 = vpop.permute.xlu1 %4774 }
 0x882   :  { %v5341_v17 = vpop.f32.mrb[169].mxu1 }
 0x883   :  { %8386 = vrcp.f32 %v5341_v17  ;;  %4804 = vperm.xlu1 %7937, %v8381_v18   ;;  %v7611_v53 = vpop.f32.mrb[170].mxu1  ;;  %v13485_v18 = vld [vmem:[#allocation131_spill] sm:$0xff] }
 0x884   :  { %v11529_v14 = vpop.f32.mrb[72].mxu0  ;;  %v5344_v24 = vpop.f32.mrb[171].mxu1 }
 0x885   :  { %13479 = vst [vmem:[#allocation123_spill] sm:$0xff] %v11529_v14  ;;  %8388 = vrcp.f32 %v5344_v24  ;;  %v11533_v33 = vpop.f32.mrb[73].mxu0  ;;  %4809 = vperm.xlu0 %7936, %v8383_v63   ;;  %v13488_v24 = vld [vmem:[#allocation127_spill] sm:$0xff] }
 0x886   :  { %13480 = vst [vmem:[#allocation74_spill] sm:$0xff] %v11533_v33  ;;  %v11535_v61 = vpop.f32.mrb[74].mxu0  ;;  %8390 = vrcp.f32 %v7610_v31 }
 0x887   :  { %13481 = vst [vmem:[#allocation8_spill] sm:$0xff] %v11535_v61  ;;  %4814 = vperm.xlu1 %7937, %v8385_v6   ;;  %v11537_v26 = vpop.f32.mrb[75].mxu0  ;;  %8392 = vrcp.f32 %v7611_v53  ;;  %v11552_v6 = vpop.permute.xlu0 %4769 }
 0x888   :  { %13482 = vst [vmem:[#allocation139_spill] sm:$0xff] %v11537_v26  ;;  %8394 = vrcp.f32 %v13483_v47 }
 0x889   :  { %8396 = vrcp.f32 %v13485_v18 }
 0x88a   :  { %8398 = vrcp.f32 %v13488_v24 }
 0x88b   :  { %8400 = vrcp.f32 %v13490_v9 }
 0x88c   :  { %v11544_v60 = vpop.f32.mrb[76].mxu0  ;;  %8402 = vrcp.f32 %v13491_v19 }
 0x88d   :  { %13484 = vst [vmem:[#allocation16_spill] sm:$0xff] %v11544_v60  ;;  %v8387_v34 = vpop.eup %8386  ;;  %v11547_v17 = vpop.f32.mrb[77].mxu0  ;;  %8404 = vrcp.f32 %v13493_v48 }
 0x88e   :  { %13486 = vst [vmem:[#allocation67_spill] sm:$0xff] %v11547_v17  ;;  %v11549_v63 = vpop.f32.mrb[78].mxu0  ;;  %5430 = vperm.xlu0 %7936, %v8387_v34   ;;  %v13499_v17 = vld [vmem:[#allocation149_spill] sm:$0xff] }
 0x88f   :  { %13487 = vst [vmem:[#allocation76_spill] sm:$0xff] %v11549_v63  ;;  %v8389_v31 = vpop.eup %8388  ;;  %v11554_v53 = vpop.f32.mrb[79].mxu0 }
 0x890   :  { %13489 = vst [vmem:[#allocation83_spill] sm:$0xff] %v11554_v53  ;;  %5435 = vperm.xlu1 %7937, %v8389_v31   ;;  %v8391_v47 = vpop.eup %8390 }
 0x891   :  { %v8393_v18 = vpop.eup %8392 }
 0x892   :  { %5440 = vperm.xlu0 %7936, %v8391_v47   ;;  %v8395_v24 = vpop.eup %8394  ;;  %v13496_v47 = vld [vmem:[#allocation50_spill] sm:$0xff] }
 0x893   :  { %v11560_v36 = vpop.permute.xlu0 %5390  ;;  %v8397_v9 = vpop.eup %8396  ;;  %8406 = vrcp.f32 %v13496_v47 }
 0x894   :  { %5445 = vperm.xlu1 %7937, %v8393_v18   ;;  %v11562_v34 = vpop.f32.mrb[80].mxu0  ;;  %v8399_v18 = vpop.eup %8398 }
 0x895   :  { %13492 = vst [vmem:[#allocation28_spill] sm:$0xff] %v11562_v34  ;;  %v11565_v28 = vpop.permute.xlu1 %5395  ;;  %v11567_v31 = vpop.f32.mrb[81].mxu0  ;;  %v13498_v34 = vld [vmem:[#allocation44_spill] sm:$0xff] }
 0x896   :  { %13494 = vst [vmem:[#allocation82_spill] sm:$0xff] %v11567_v31  ;;  %v11569_v63 = vpop.f32.mrb[82].mxu0  ;;  %1664 = vperm.xlu0 %7936, %v8395_v24   ;;  %8408 = vrcp.f32 %v13498_v34  ;;  %v8401_v48 = vpop.eup %8400 }
 0x897   :  { %13495 = vst [vmem:[#allocation42_spill] sm:$0xff] %v11569_v63  ;;  %v11572_v60 = vpop.f32.mrb[83].mxu0  ;;  %v11574_v19 = vpop.permute.xlu0 %5400  ;;  %8410 = vrcp.f32 %v13499_v17  ;;  %v13500_v63 = vld [vmem:[#allocation151_spill] sm:$0xff] }
 0x898   :  { %13497 = vst [vmem:[#allocation111_spill] sm:$0xff] %v11572_v60  ;;  %1669 = vperm.xlu1 %7937, %v8397_v9   ;;  %v8403_v24 = vpop.eup %8402  ;;  %8412 = vrcp.f32 %v13500_v63  ;;  %v13501_v9 = vld [vmem:[#allocation25_spill] sm:$0xff] }
 0x899   :  { %v11577_v53 = vpop.permute.xlu1 %5405  ;;  %v8405_v60 = vpop.eup %8404  ;;  %8414 = vrcp.f32 %v13501_v9 }
 0x89a   :  { %1674 = vperm.xlu0 %7936, %v8399_v18   ;;  %v13502_v18 = vld [vmem:[#allocation150_spill] sm:$0xff] }
 0x89b   :  { %v11580_v31 = vpop.permute.xlu0 %1624  ;;  %8416 = vrcp.f32 %v13502_v18 }
 0x89c   :  { %1679 = vperm.xlu1 %7937, %v8401_v48   ;;  %v13503_v48 = vld [vmem:[#allocation158_spill] sm:$0xff] }
 0x89d   :  { %v11583_v47 = vpop.permute.xlu1 %1629  ;;  %v8407_v34 = vpop.eup %8406  ;;  %8418 = vrcp.f32 %v13503_v48 }
 0x89e   :  { %2295 = vperm.xlu0 %7936, %v8403_v24   ;;  %v13504_v24 = vld [vmem:[#allocation159_spill] sm:$0xff] }
 0x89f   :  { %v11586_v59 = vpop.permute.xlu0 %1634  ;;  %8420 = vrcp.f32 %v13504_v24 }
 0x8a0   :  { %2300 = vperm.xlu1 %7937, %v8405_v60   ;;  %v8409_v17 = vpop.eup %8408  ;;  %v13505_v60 = vld [vmem:[#allocation157_spill] sm:$0xff] }
 0x8a1   :  { %v11589_v42 = vpop.permute.xlu1 %1639  ;;  %v8411_v63 = vpop.eup %8410  ;;  %8422 = vrcp.f32 %v13505_v60 }
 0x8a2   :  { %2305 = vperm.xlu0 %7936, %v8407_v34   ;;  %v8413_v9 = vpop.eup %8412  ;;  %v13506_v34 = vld [vmem:[#allocation11_spill] sm:$0xff] }
 0x8a3   :  { %v11592_v62 = vpop.permute.xlu0 %2255  ;;  %v8415_v18 = vpop.eup %8414  ;;  %8424 = vrcp.f32 %v13506_v34 }
 0x8a4   :  { %2310 = vperm.xlu1 %7937, %v8409_v17   ;;  %8426 = vrcp.f32 %v11049_v0 }
 0x8a5   :  { %v11595_v50 = vpop.permute.xlu1 %2260  ;;  %v8417_v48 = vpop.eup %8416 }
 0x8a6   :  { %2926 = vperm.xlu0 %7936, %v8411_v63   ;;  %v13507_v63 = vld [vmem:[#allocation58_spill] sm:$0xff] }
 0x8a7   :  { %v11598_v61 = vpop.permute.xlu0 %2265  ;;  %v8419_v24 = vpop.eup %8418  ;;  %8428 = vrcp.f32 %v13507_v63 }
 0x8a8   :  { %2931 = vperm.xlu1 %7937, %v8413_v9   ;;  %v13508_v9 = vld [vmem:[#allocation107_spill] sm:$0xff] }
 0x8a9   :  { %v11601_v14 = vpop.permute.xlu1 %2270  ;;  %v8421_v60 = vpop.eup %8420  ;;  %8430 = vrcp.f32 %v13508_v9 }
 0x8aa   :  { %2936 = vperm.xlu0 %7936, %v8415_v18   ;;  %v13509_v18 = vld [vmem:[#allocation117_spill] sm:$0xff] }
 0x8ab   :  { %v11604_v17 = vpop.permute.xlu0 %2886  ;;  %v8423_v34 = vpop.eup %8422  ;;  %8432 = vrcp.f32 %v13509_v18 }
 0x8ac   :  { %2941 = vperm.xlu1 %7937, %v8417_v48   ;;  %8434 = vrcp.f32 %v11354_v23 }
 0x8ad   :  { %v11607_v26 = vpop.permute.xlu1 %2891  ;;  %v8425_v0 = vpop.eup %8424  ;;  %8436 = vrcp.f32 %v11360_v39 }
 0x8ae   :  { %3557 = vperm.xlu0 %7936, %v8419_v24   ;;  %v8427_v63 = vpop.eup %8426  ;;  %8438 = vrcp.f32 %v11352_v45 }
 0x8af   :  { %v11610_v33 = vpop.permute.xlu0 %2896  ;;  %8440 = vrcp.f32 %v11356_v27 }
 0x8b0   :  { %3562 = vperm.xlu1 %7937, %v8421_v60  }
 0x8b1   :  { %v11613_v1 = vpop.permute.xlu1 %2901  ;;  %v8429_v9 = vpop.eup %8428 }
 0x8b2   :  { %3567 = vperm.xlu0 %7936, %v8423_v34  }
 0x8b3   :  { %v11616_v48 = vpop.permute.xlu0 %3517  ;;  %v8431_v18 = vpop.eup %8430 }
 0x8b4   :  { %3572 = vperm.xlu1 %7937, %v8425_v0  }
 0x8b5   :  { %v11619_v24 = vpop.permute.xlu1 %3522  ;;  %v8433_v23 = vpop.eup %8432 }
 0x8b6   :  { %13510 = vst [vmem:[#allocation29_spill] sm:$0xff] %v11619_v24  ;;  %4188 = vperm.xlu0 %7936, %v8427_v63   ;;  %v8435_v39 = vpop.eup %8434 }
 0x8b7   :  { %v11622_v60 = vpop.permute.xlu0 %3527  ;;  %v8437_v24 = vpop.eup %8436 }
 0x8b8   :  { %13511 = vst [vmem:[#allocation133_spill] sm:$0xff] %v11622_v60  ;;  %4193 = vperm.xlu1 %7937, %v8429_v9   ;;  %v8439_v27 = vpop.eup %8438 }
 0x8b9   :  { %v11625_v34 = vpop.permute.xlu1 %3532 }
 0x8ba   :  { %13512 = vst [vmem:[#allocation132_spill] sm:$0xff] %v11625_v34  ;;  %4198 = vperm.xlu0 %7936, %v8431_v18   ;;  %v8441_v18 = vpop.eup %8440 }
 0x8bb   :  { %v11627_v0 = vpop.permute.xlu0 %4148 }
 0x8bc   :  { %13513 = vst [vmem:[#allocation20_spill] sm:$0xff] %v11627_v0  ;;  %4203 = vperm.xlu1 %7937, %v8433_v23  }
 0x8bd   :  { %v11629_v29 = vpop.permute.xlu1 %4153 }
 0x8be   :  { %13514 = vst [vmem:[#allocation17_spill] sm:$0xff] %v11629_v29  ;;  %v7614_v63 = vpop.f32.mrb[172].mxu1  ;;  %4819 = vperm.xlu0 %7936, %v8435_v39  }
 0x8bf   :  { %v5357_v45 = vpop.f32.mrb[173].mxu1  ;;  %v11631_v60 = vpop.permute.xlu0 %4158 }
 0x8c0   :  { %8442 = vrcp.f32 %v5357_v45  ;;  %13515 = vst [vmem:[#allocation153_spill] sm:$0xff] %v11631_v60  ;;  %4824 = vperm.xlu1 %7937, %v8437_v24   ;;  %v7615_v9 = vpop.f32.mrb[174].mxu1 }
 0x8c1   :  { %v5360_v38 = vpop.f32.mrb[175].mxu1  ;;  %v11633_v34 = vpop.permute.xlu1 %4163 }
 0x8c2   :  { %8444 = vrcp.f32 %v5360_v38  ;;  %4829 = vperm.xlu0 %7936, %v8439_v27  }
 0x8c3   :  { %8446 = vrcp.f32 %v7614_v63  ;;  %v11635_v23 = vpop.permute.xlu0 %4779  ;;  %v13519_v63 = vld [vmem:[#allocation113_spill] sm:$0xff] }
 0x8c4   :  { %4834 = vperm.xlu1 %7937, %v8441_v18   ;;  %8448 = vrcp.f32 %v7615_v9  ;;  %v1682_v9 = vmul.f32 %v11458_v44, %v13519_v63  ;;  %v13523_v44 = vld [vmem:[#allocation115_spill] sm:$0xff] }
 0x8c5   :  { %v11637_v39 = vpop.permute.xlu1 %4784 }
 0x8c6   :  { %13516 = vst [vmem:[#allocation152_spill] sm:$0xff] %v11637_v39  ;;  %v13520_v39 = vld [vmem:[#allocation72_spill] sm:$0xff] }
 0x8c7   :  { %v11639_v60 = vpop.permute.xlu0 %4789 }
 0x8c9   :  { %v11641_v0 = vpop.permute.xlu1 %4794 }
 0x8ca   :  { %v8443_v29 = vpop.eup %8442  ;;  %13517 = vst [vmem:[#allocation161_spill] sm:$0xff] %v11641_v0  ;;  %v13522_v0 = vld [vmem:[#allocation118_spill] sm:$0xff] }
 0x8cb   :  { %5450 = vperm.xlu0 %7936, %v8443_v29   ;;  %v1683_v29 = vmul.f32 %v11466_v22, %v13520_v39  ;;  %v13524_v22 = vld [vmem:[#allocation22_spill] sm:$0xff] }
 0x8cc   :  { %v8445_v45 = vpop.eup %8444  ;;  %v2313_v39 = vmul.f32 %v11473_v4, %v13524_v22  ;;  %v13527_v4 = vld [vmem:[#allocation26_spill] sm:$0xff] }
 0x8cd   :  { %5455 = vperm.xlu1 %7937, %v8445_v45   ;;  %v8447_v24 = vpop.eup %8446 }
 0x8ce   :  { %v8449_v38 = vpop.eup %8448 }
 0x8cf   :  { %5460 = vperm.xlu0 %7936, %v8447_v24   ;;  %v1684_v24 = vmul.f32 %v13522_v0, %v11462_v55 }
 0x8d0   :  { %v11643_v27 = vpop.permute.xlu0 %5410 }
 0x8d1   :  { %13518 = vst [vmem:[#allocation160_spill] sm:$0xff] %v11643_v27  ;;  %5465 = vperm.xlu1 %7937, %v8449_v38   ;;  %v1685_v38 = vmul.f32 %v13523_v44, %v11469_v30  ;;  %v13526_v30 = vld [vmem:[#allocation18_spill] sm:$0xff]  ;;  %v2316_v44 = vmul.f32 %v13527_v4, %v11483_v11  ;;  %v13530_v11 = vld [vmem:[#allocation55_spill] sm:$0xff] }
 0x8d2   :  { %v11647_v18 = vpop.permute.xlu1 %5415 }
 0x8d3   :  { %1714 = vrot.lane.b32.xlu0 %v1682_v9, %s8566_s14 }
 0x8d4   :  { %v11652_v45 = vpop.permute.xlu0 %5420 }
 0x8d5   :  { %13521 = vst [vmem:[#allocation94_spill] sm:$0xff] %v11652_v45  ;;  %1716 = vrot.lane.b32.xlu1 %v1683_v29, %s8566_s14  ;;  %v13525_v45 = vld [vmem:[#allocation91_spill] sm:$0xff]  ;;  %v2315_v29 = vmul.f32 %v13526_v30, %v11480_v51  ;;  %v2946_v30 = vmul.f32 %v13530_v11, %v11494_v8 }
 0x8d6   :  { %v11657_v27 = vpop.permute.xlu1 %5425  ;;  %v2314_v55 = vmul.f32 %v11476_v20, %v13525_v45  ;;  %v13528_v20 = vld [vmem:[#allocation64_spill] sm:$0xff] }
 0x8d7   :  { %1718 = vrot.lane.b32.xlu0 %v1684_v24, %s8566_s14  ;;  %v2944_v45 = vmul.f32 %v11487_v57, %v13528_v20  ;;  %v13531_v57 = vld [vmem:[#allocation73_spill] sm:$0xff] }
 0x8d8   :  { %v11662_v63 = vpop.permute.xlu0 %1644  ;;  %v2947_v4 = vmul.f32 %v13531_v57, %v11497_v25 }
 0x8d9   :  { %1720 = vrot.lane.b32.xlu1 %v1685_v38, %s8566_s14 }
 0x8da   :  { %v11667_v9 = vpop.permute.xlu1 %1649 }
 0x8db   :  { %2345 = vrot.lane.b32.xlu0 %v2313_v39, %s8567_s15  ;;  %v13529_v39 = vld [vmem:[#allocation125_spill] sm:$0xff] }
 0x8dc   :  { %v11672_v0 = vpop.permute.xlu0 %1654  ;;  %v2945_v51 = vmul.f32 %v11490_v5, %v13529_v39  ;;  %v3575_v5 = vmul.f32 %v11501_v32, %v11390_v58  ;;  %v3576_v39 = vmul.f32 %v11504_v43, %v11394_v7  ;;  %v3578_v32 = vmul.f32 %v11392_v15, %v11511_v40 }
 0x8dd   :  { %2347 = vrot.lane.b32.xlu1 %v2314_v55, %s8567_s15  ;;  %v4206_v43 = vmul.f32 %v11517_v10, %v11519_v54  ;;  %v4208_v10 = vmul.f32 %v11515_v13, %v11527_v16 }
 0x8de   :  { %v11677_v24 = vpop.permute.xlu1 %1659 }
 0x8df   :  { %2349 = vrot.lane.b32.xlu0 %v2315_v29, %s8567_s15 }
 0x8e0   :  { %v11682_v38 = vpop.permute.xlu0 %2275 }
 0x8e1   :  { %2351 = vrot.lane.b32.xlu1 %v2316_v44, %s8567_s15 }
 0x8e2   :  { %v11687_v22 = vpop.permute.xlu1 %2280 }
 0x8e3   :  { %2976 = vrot.lane.b32.xlu0 %v2944_v45, %s8568_s16 }
 0x8e4   :  { %v11692_v55 = vpop.permute.xlu0 %2285 }
 0x8e5   :  { %2978 = vrot.lane.b32.xlu1 %v2945_v51, %s8568_s16 }
 0x8e6   :  { %v11697_v29 = vpop.permute.xlu1 %2290 }
 0x8e7   :  { %2980 = vrot.lane.b32.xlu0 %v2946_v30, %s8568_s16  ;;  %v3577_v30 = vmul.f32 %v11388_v3, %v11508_v35  ;;  %v4207_v35 = vmul.f32 %v11523_v52, %v11525_v37 }
 0x8e8   :  { %v11702_v44 = vpop.permute.xlu0 %2906 }
 0x8e9   :  { %v7506_v20 = vpop.f32.mrb[84].mxu0  ;;  %2982 = vrot.lane.b32.xlu1 %v2947_v4, %s8568_s16 }
 0x8ea   :  { %v11707_v45 = vpop.permute.xlu1 %2911  ;;  %v4581_v8 = vpop.f32.mrb[85].mxu0 }
 0x8eb   :  { %v7507_v51 = vpop.f32.mrb[86].mxu0  ;;  %3607 = vrot.lane.b32.xlu0 %v3575_v5, %s8569_s17  ;;  %v4837_v37 = vmul.f32 %v11539_v21, %v4581_v8 }
 0x8ec   :  { %v4584_v25 = vpop.f32.mrb[87].mxu0  ;;  %v11712_v11 = vpop.permute.xlu0 %2916  ;;  %v4840_v8 = vmul.f32 %v7507_v51, %v11557_v12 }
 0x8ed   :  { %3609 = vrot.lane.b32.xlu1 %v3576_v39, %s8569_s17  ;;  %v4209_v39 = vmul.f32 %v11521_v56, %v11531_v46  ;;  %v4838_v16 = vmul.f32 %v11542_v49, %v4584_v25  ;;  %v4839_v46 = vmul.f32 %v7506_v20, %v11552_v6 }
 0x8ee   :  { %v11717_v58 = vpop.permute.xlu1 %2921 }
 0x8ef   :  { %3611 = vrot.lane.b32.xlu0 %v3577_v30, %s8569_s17 }
 0x8f0   :  { %v11722_v7 = vpop.permute.xlu0 %3537 }
 0x8f1   :  { %v11726_v57 = vpop.f32.mrb[88].mxu0  ;;  %3613 = vrot.lane.b32.xlu1 %v3578_v32, %s8569_s17 }
 0x8f2   :  { %v11729_v4 = vpop.permute.xlu1 %3542  ;;  %v11731_v3 = vpop.f32.mrb[89].mxu0 }
 0x8f3   :  { %v11735_v5 = vpop.f32.mrb[90].mxu0  ;;  %4238 = vrot.lane.b32.xlu0 %v4206_v43, %s8570_s18 }
 0x8f4   :  { %v11738_v15 = vpop.f32.mrb[91].mxu0  ;;  %v11740_v40 = vpop.permute.xlu0 %3547 }
 0x8f5   :  { %4240 = vrot.lane.b32.xlu1 %v4207_v35, %s8570_s18 }
 0x8f6   :  { %v11745_v54 = vpop.permute.xlu1 %3552 }
 0x8f7   :  { %4242 = vrot.lane.b32.xlu0 %v4208_v10, %s8570_s18 }
 0x8f8   :  { %v11750_v52 = vpop.permute.xlu0 %4168 }
 0x8f9   :  { %v11753_v30 = vpop.f32.mrb[92].mxu0  ;;  %4244 = vrot.lane.b32.xlu1 %v4209_v39, %s8570_s18 }
 0x8fa   :  { %13532 = vst [vmem:[#allocation33_spill] sm:$0xff] %v11753_v30  ;;  %v11756_v32 = vpop.permute.xlu1 %4173  ;;  %v11758_v13 = vpop.f32.mrb[93].mxu0 }
 0x8fb   :  { %v11761_v43 = vpop.f32.mrb[94].mxu0  ;;  %4869 = vrot.lane.b32.xlu0 %v4837_v37, %s8571_s19 }
 0x8fc   :  { %13533 = vst [vmem:[#allocation4_spill] sm:$0xff] %v11761_v43  ;;  %v11764_v56 = vpop.f32.mrb[95].mxu0  ;;  %v11767_v21 = vpop.permute.xlu0 %4178 }
 0x8fd   :  { %4871 = vrot.lane.b32.xlu1 %v4838_v16, %s8571_s19 }
 0x8fe   :  { %v11771_v35 = vpop.permute.xlu1 %4183 }
 0x8ff   :  { %4873 = vrot.lane.b32.xlu0 %v4839_v46, %s8571_s19 }
 0x900   :  { %v11779_v10 = vpop.permute.xlu0 %4799 }
 0x901   :  { %v11774_v49 = vpop.f32.mrb[96].mxu0  ;;  %4875 = vrot.lane.b32.xlu1 %v4840_v8, %s8571_s19 }
 0x902   :  { %13534 = vst [vmem:[#allocation14_spill] sm:$0xff] %v11774_v49  ;;  %v11777_v25 = vpop.f32.mrb[97].mxu0  ;;  %v11785_v20 = vpop.permute.xlu1 %4804 }
 0x903   :  { %13535 = vst [vmem:[#allocation31_spill] sm:$0xff] %v11777_v25  ;;  %v11781_v39 = vpop.f32.mrb[98].mxu0 }
 0x904   :  { %13536 = vst [vmem:[#allocation171_spill] sm:$0xff] %v11781_v39  ;;  %v11783_v6 = vpop.f32.mrb[99].mxu0  ;;  %v11787_v37 = vpop.permute.xlu0 %4809 }
 0x905   :  { %13537 = vst [vmem:[#allocation71_spill] sm:$0xff] %v11783_v6 }
 0x906   :  { %v11789_v16 = vpop.permute.xlu1 %4814 }
 0x907   :  { %13538 = vst [vmem:[#allocation95_spill] sm:$0xff] %v11789_v16 }
 0x909   :  { %v7570_v12 = vpop.f32.mrb[100].mxu0 }
 0x90a   :  { %v5212_v51 = vpop.f32.mrb[101].mxu0  ;;  %v5470_v6 = vmul.f32 %v7570_v12, %v11574_v19  ;;  %v5692_v12 = vld [vmem:[%s12632_s6] sm:$0xff] }
 0x90b   :  { %v5468_v46 = vmul.f32 %v11560_v36, %v5212_v51  ;;  %v7571_v49 = vpop.f32.mrb[102].mxu0  ;;  %v13540_v51 = vld [vmem:[#allocation119_spill] sm:$0xff] }
 0x90c   :  { %v5215_v8 = vpop.f32.mrb[103].mxu0  ;;  %v5471_v30 = vmul.f32 %v7571_v49, %v11577_v53  ;;  %v13542_v53 = vld [vmem:[#allocation112_spill] sm:$0xff] }
 0x90d   :  { %v5469_v25 = vmul.f32 %v11565_v28, %v5215_v8  ;;  %5500 = vrot.lane.b32.xlu0 %v5468_v46, %s8572_s20  ;;  %v11794_v39 = vpop.permute.xlu0 %5430  ;;  %v1686_v46 = vmul.f32 %v11580_v31, %v13540_v51  ;;  %v1687_v49 = vmul.f32 %v11583_v47, %v13542_v53  ;;  %v5693_v31 = vld [vmem:[%s12632_s6 + $0x8] sm:$0xff]  ;;  %v13546_v47 = vld [vmem:[#allocation110_spill] sm:$0xff] }
 0x90e   :  { %v5700_v51 = vpack.c.bf16 %v5693_v31, %v5692_v12  ;;  %v5694_v12 = vld [vmem:[%s12632_s6 + $0x10] sm:$0xff] }
 0x90f   :  { %v11797_v43 = vpop.permute.xlu1 %5435  ;;  %5502 = vrot.lane.b32.xlu1 %v5469_v25, %s8572_s20 }
 0x910   :  { %7616 = vmatprep.subr.bf16.mxu0 %v5700_v51 }
 0x911   :  { %v11801_v16 = vpop.f32.mrb[104].mxu0  ;;  %5504 = vrot.lane.b32.xlu0 %v5470_v6, %s8572_s20  ;;  %v11804_v36 = vpop.permute.xlu0 %5440  ;;  %7617 = vmatpush3.bf16.msra.mxu0 %v5700_v51 }
 0x912   :  { %13539 = vst [vmem:[#allocation38_spill] sm:$0xff] %v11804_v36  ;;  %v11806_v28 = vpop.f32.mrb[105].mxu0 }
 0x913   :  { %v11810_v8 = vpop.permute.xlu1 %5445  ;;  %v11812_v19 = vpop.f32.mrb[106].mxu0  ;;  %5506 = vrot.lane.b32.xlu1 %v5471_v30, %s8572_s20  ;;  %v13544_v30 = vld [vmem:[#allocation108_spill] sm:$0xff] }
 0x914   :  { %13541 = vst [vmem:[#allocation109_spill] sm:$0xff] %v11810_v8  ;;  %v11815_v25 = vpop.f32.mrb[107].mxu0  ;;  %v1688_v8 = vmul.f32 %v13544_v30, %v11586_v59  ;;  %v5695_v59 = vld [vmem:[%s12632_s6 + $0x18] sm:$0xff] }
 0x915   :  { %1722 = vrot.lane.b32.xlu0 %v1686_v46, %s8566_s14  ;;  %v11820_v6 = vpop.permute.xlu0 %1664  ;;  %v1689_v46 = vmul.f32 %v13546_v47, %v11589_v42  ;;  %v5701_v31 = vpack.c.bf16 %v5695_v59, %v5694_v12  ;;  %v13549_v30 = vld [vmem:[#allocation126_spill] sm:$0xff]  ;;  %v5697_v12 = vld [vmem:[%s12632_s6 + $0x28] sm:$0xff] }
 0x916   :  { %13543 = vst [vmem:[#allocation99_spill] sm:$0xff] %v11820_v6  ;;  %v2317_v42 = vmul.f32 %v11592_v62, %v13549_v30  ;;  %v5696_v62 = vld [vmem:[%s12632_s6 + $0x20] sm:$0xff]  ;;  %v13552_v59 = vld [vmem:[#allocation162_spill] sm:$0xff] }
 0x917   :  { %v11830_v36 = vpop.permute.xlu1 %1669  ;;  %1724 = vrot.lane.b32.xlu1 %v1687_v49, %s8566_s14  ;;  %7618 = vmatprep.subr.bf16.mxu0 %v5701_v31  ;;  %v2319_v30 = vmul.f32 %v13552_v59, %v11598_v61  ;;  %v5699_v61 = vld [vmem:[%s12632_s6 + $0x38] sm:$0xff] }
 0x918   :  { %13545 = vst [vmem:[#allocation57_spill] sm:$0xff] %v11830_v36  ;;  %7619 = vmatpush3.bf16.msra.mxu0 %v5701_v31 }
 0x919   :  { %v11835_v53 = vpop.f32.mrb[108].mxu0  ;;  %1726 = vrot.lane.b32.xlu0 %v1688_v8, %s8566_s14  ;;  %v11838_v6 = vpop.permute.xlu0 %1674 }
 0x91a   :  { %13547 = vst [vmem:[#allocation68_spill] sm:$0xff] %v11835_v53  ;;  %13548 = vst [vmem:[#allocation105_spill] sm:$0xff] %v11838_v6  ;;  %v11846_v49 = vpop.f32.mrb[109].mxu0  ;;  %v13551_v6 = vld [vmem:[#allocation164_spill] sm:$0xff] }
 0x91b   :  { %v11850_v47 = vpop.permute.xlu1 %1679  ;;  %v11852_v8 = vpop.f32.mrb[110].mxu0  ;;  %1728 = vrot.lane.b32.xlu1 %v1689_v46, %s8566_s14  ;;  %v2318_v36 = vmul.f32 %v11595_v50, %v13551_v6  ;;  %v5702_v46 = vpack.c.bf16 %v5697_v12, %v5696_v62  ;;  %v13553_v50 = vld [vmem:[#allocation163_spill] sm:$0xff]  ;;  %v5698_v62 = vld [vmem:[%s12632_s6 + $0x30] sm:$0xff] }
 0x91c   :  { %13550 = vst [vmem:[#allocation9_spill] sm:$0xff] %v11850_v47  ;;  %v11855_v51 = vpop.f32.mrb[111].mxu0  ;;  %v2320_v6 = vmul.f32 %v13553_v50, %v11601_v14  ;;  %v5703_v12 = vpack.c.bf16 %v5699_v61, %v5698_v62  ;;  %v2948_v14 = vmul.f32 %v11604_v17, %v11131_v2  ;;  %v13559_v50 = vld [vmem:[#allocation106_spill] sm:$0xff]  ;;  %v13560_v62 = vld [vmem:[#allocation124_spill] sm:$0xff] }
 0x91d   :  { %2353 = vrot.lane.b32.xlu0 %v2317_v42, %s8567_s15  ;;  %v11860_v53 = vpop.permute.xlu0 %2295  ;;  %7620 = vmatprep.subr.bf16.mxu0 %v5702_v46  ;;  %v2950_v2 = vmul.f32 %v13560_v62, %v11610_v33  ;;  %v13563_v33 = vld [vmem:[#allocation29_spill] sm:$0xff] }
 0x91e   :  { %7621 = vmatpush3.bf16.msra.mxu0 %v5702_v46  ;;  %v13565_v62 = vld [vmem:[#allocation133_spill] sm:$0xff] }
 0x91f   :  { %v11870_v47 = vpop.permute.xlu1 %2300  ;;  %2355 = vrot.lane.b32.xlu1 %v2318_v36, %s8567_s15  ;;  %7622 = vmatprep.subr.bf16.mxu0 %v5703_v12 }
 0x921   :  { %v11875_v31 = vpop.f32.mrb[112].mxu0  ;;  %2357 = vrot.lane.b32.xlu0 %v2319_v30, %s8567_s15  ;;  %v11878_v42 = vpop.permute.xlu0 %2305 }
 0x922   :  { %13554 = vst [vmem:[#allocation96_spill] sm:$0xff] %v11875_v31  ;;  %13555 = vst [vmem:[#allocation172_spill] sm:$0xff] %v11878_v42  ;;  %v11886_v36 = vpop.f32.mrb[113].mxu0  ;;  %v2949_v31 = vmul.f32 %v11607_v26, %v13559_v50  ;;  %7623 = vmatpush3.bf16.msra.mxu0 %v5703_v12  ;;  %v3579_v26 = vmul.f32 %v11616_v48, %v11398_v41  ;;  %v13562_v12 = vld [vmem:[#allocation65_spill] sm:$0xff]  ;;  %v13569_v41 = vld [vmem:[#allocation48_spill] sm:$0xff] }
 0x923   :  { %13556 = vst [vmem:[#allocation7_spill] sm:$0xff] %v11886_v36  ;;  %v11890_v59 = vpop.permute.xlu1 %2310  ;;  %v11892_v30 = vpop.f32.mrb[114].mxu0  ;;  %2359 = vrot.lane.b32.xlu1 %v2320_v6, %s8567_s15  ;;  %v13561_v6 = vld [vmem:[#allocation97_spill] sm:$0xff]  ;;  %v3580_v50 = vmul.f32 %v13563_v33, %v13562_v12  ;;  %v13570_v36 = vld [vmem:[#allocation74_spill] sm:$0xff]  ;;  %v13571_v12 = vld [vmem:[#allocation20_spill] sm:$0xff] }
 0x924   :  { %13557 = vst [vmem:[#allocation79_spill] sm:$0xff] %v11892_v30  ;;  %v11895_v46 = vpop.f32.mrb[115].mxu0  ;;  %v2951_v61 = vmul.f32 %v13561_v6, %v11613_v1  ;;  %v13566_v1 = vld [vmem:[#allocation34_spill] sm:$0xff]  ;;  %v4210_v33 = vmul.f32 %v13571_v12, %v13570_v36  ;;  %v13576_v36 = vld [vmem:[#allocation8_spill] sm:$0xff] }
 0x925   :  { %13558 = vst [vmem:[#allocation136_spill] sm:$0xff] %v11895_v46  ;;  %2984 = vrot.lane.b32.xlu0 %v2948_v14, %s8568_s16  ;;  %v11900_v42 = vpop.permute.xlu0 %2926  ;;  %v3581_v6 = vmul.f32 %v13566_v1, %v13565_v62  ;;  %v13568_v46 = vld [vmem:[#allocation132_spill] sm:$0xff]  ;;  %v13573_v62 = vld [vmem:[#allocation17_spill] sm:$0xff]  ;;  %v4213_v12 = vmul.f32 %v13576_v36, %v11633_v34 }
 0x926   :  { %v3582_v48 = vmul.f32 %v13569_v41, %v13568_v46  ;;  %v13575_v46 = vld [vmem:[#allocation123_spill] sm:$0xff] }
 0x927   :  { %v11904_v17 = vpop.permute.xlu1 %2931  ;;  %2986 = vrot.lane.b32.xlu1 %v2949_v31, %s8568_s16 }
 0x929   :  { %2988 = vrot.lane.b32.xlu0 %v2950_v2, %s8568_s16  ;;  %v11910_v30 = vpop.permute.xlu0 %2936 }
 0x92b   :  { %v11914_v14 = vpop.permute.xlu1 %2941  ;;  %2990 = vrot.lane.b32.xlu1 %v2951_v61, %s8568_s16 }
 0x92d   :  { %3615 = vrot.lane.b32.xlu0 %v3579_v26, %s8569_s17  ;;  %v11920_v31 = vpop.permute.xlu0 %3557 }
 0x92e   :  { %13564 = vst [vmem:[#allocation138_spill] sm:$0xff] %v11920_v31  ;;  %v13572_v31 = vld [vmem:[#allocation139_spill] sm:$0xff] }
 0x92f   :  { %v11924_v2 = vpop.permute.xlu1 %3562  ;;  %3617 = vrot.lane.b32.xlu1 %v3580_v50, %s8569_s17  ;;  %v4211_v1 = vmul.f32 %v13573_v62, %v13572_v31  ;;  %v4841_v31 = vmul.f32 %v11635_v23, %v11731_v3  ;;  %v13579_v3 = vld [vmem:[#allocation160_spill] sm:$0xff] }
 0x930   :  { %13567 = vst [vmem:[#allocation3_spill] sm:$0xff] %v11924_v2  ;;  %v13574_v2 = vld [vmem:[#allocation153_spill] sm:$0xff]  ;;  %v5472_v36 = vmul.f32 %v13579_v3, %v11806_v28 }
 0x931   :  { %3619 = vrot.lane.b32.xlu0 %v3581_v6, %s8569_s17  ;;  %v11930_v61 = vpop.permute.xlu0 %3567  ;;  %v4212_v41 = vmul.f32 %v13575_v46, %v13574_v2  ;;  %v13577_v2 = vld [vmem:[#allocation152_spill] sm:$0xff]  ;;  %v13578_v46 = vld [vmem:[#allocation161_spill] sm:$0xff] }
 0x932   :  { %v4842_v62 = vmul.f32 %v13577_v2, %v11738_v15  ;;  %v5473_v15 = vmul.f32 %v11647_v18, %v11815_v25  ;;  %v13581_v2 = vld [vmem:[#allocation121_spill] sm:$0xff] }
 0x933   :  { %v11934_v26 = vpop.permute.xlu1 %3572  ;;  %3621 = vrot.lane.b32.xlu1 %v3582_v48, %s8569_s17  ;;  %v1690_v18 = vmul.f32 %v11662_v63, %v13581_v2  ;;  %v13584_v63 = vld [vmem:[#allocation114_spill] sm:$0xff]  ;;  %v13588_v2 = vld [vmem:[#allocation167_spill] sm:$0xff] }
 0x935   :  { %4246 = vrot.lane.b32.xlu0 %v4210_v33, %s8570_s18  ;;  %v11940_v50 = vpop.permute.xlu0 %4188 }
 0x937   :  { %v11944_v6 = vpop.permute.xlu1 %4193  ;;  %4248 = vrot.lane.b32.xlu1 %v4211_v1, %s8570_s18  ;;  %v4843_v1 = vmul.f32 %v11726_v57, %v11639_v60  ;;  %v13580_v57 = vld [vmem:[#allocation94_spill] sm:$0xff] }
 0x939   :  { %4250 = vrot.lane.b32.xlu0 %v4212_v41, %s8570_s18  ;;  %v11950_v48 = vpop.permute.xlu0 %4198  ;;  %v4844_v41 = vmul.f32 %v11735_v5, %v13578_v46 }
 0x93b   :  { %4252 = vrot.lane.b32.xlu1 %v4213_v12, %s8570_s18  ;;  %v11955_v33 = vpop.permute.xlu1 %4203  ;;  %v5474_v12 = vmul.f32 %v11801_v16, %v13580_v57 }
 0x93d   :  { %4877 = vrot.lane.b32.xlu0 %v4841_v31, %s8571_s19  ;;  %v11963_v34 = vpop.permute.xlu0 %4819  ;;  %v5475_v31 = vmul.f32 %v11812_v19, %v11657_v27  ;;  %v13583_v27 = vld [vmem:[#allocation120_spill] sm:$0xff] }
 0x93e   :  { %v1692_v19 = vmul.f32 %v13583_v27, %v11672_v0  ;;  %v13586_v0 = vld [vmem:[#allocation168_spill] sm:$0xff]  ;;  %v13590_v27 = vld [vmem:[#allocation5_spill] sm:$0xff] }
 0x93f   :  { %4879 = vrot.lane.b32.xlu1 %v4842_v62, %s8571_s19  ;;  %v11968_v23 = vpop.permute.xlu1 %4824  ;;  %v13582_v62 = vld [vmem:[#allocation116_spill] sm:$0xff]  ;;  %v2322_v57 = vmul.f32 %v11687_v22, %v13586_v0  ;;  %v13594_v0 = vld [vmem:[#allocation54_spill] sm:$0xff] }
 0x940   :  { %v1691_v16 = vmul.f32 %v11667_v9, %v13582_v62  ;;  %v13589_v62 = vld [vmem:[#allocation45_spill] sm:$0xff] }
 0x941   :  { %4881 = vrot.lane.b32.xlu0 %v4843_v1, %s8571_s19  ;;  %v11976_v60 = vpop.permute.xlu0 %4829 }
 0x943   :  { %4883 = vrot.lane.b32.xlu1 %v4844_v41, %s8571_s19  ;;  %v11981_v5 = vpop.permute.xlu1 %4834  ;;  %v1693_v41 = vmul.f32 %v13584_v63, %v11677_v24  ;;  %v13587_v24 = vld [vmem:[#allocation165_spill] sm:$0xff]  ;;  %v13591_v63 = vld [vmem:[#allocation92_spill] sm:$0xff] }
 0x945   :  { %5508 = vrot.lane.b32.xlu0 %v5472_v36, %s8572_s20  ;;  %v13585_v36 = vld [vmem:[#allocation166_spill] sm:$0xff] }
 0x946   :  { %v2321_v9 = vmul.f32 %v11682_v38, %v13585_v36 }
 0x947   :  { %5510 = vrot.lane.b32.xlu1 %v5473_v15, %s8572_s20 }
 0x949   :  { %5512 = vrot.lane.b32.xlu0 %v5474_v12, %s8572_s20 }
 0x94a   :  { %v11986_v28 = vpop.permute.xlu0 %5450 }
 0x94b   :  { %5514 = vrot.lane.b32.xlu1 %v5475_v31, %s8572_s20  ;;  %v2323_v31 = vmul.f32 %v13587_v24, %v11692_v55 }
 0x94c   :  { %v11991_v25 = vpop.permute.xlu1 %5455 }
 0x94d   :  { %1730 = vrot.lane.b32.xlu0 %v1690_v18, %s8566_s14  ;;  %v2324_v18 = vmul.f32 %v13588_v2, %v11697_v29  ;;  %v13597_v2 = vld [vmem:[#allocation67_spill] sm:$0xff] }
 0x94e   :  { %v11996_v1 = vpop.permute.xlu0 %5460 }
 0x94f   :  { %1732 = vrot.lane.b32.xlu1 %v1691_v16, %s8566_s14  ;;  %v2952_v16 = vmul.f32 %v11702_v44, %v13589_v62 }
 0x950   :  { %v12001_v46 = vpop.permute.xlu1 %5465 }
 0x951   :  { %1734 = vrot.lane.b32.xlu0 %v1692_v19, %s8566_s14  ;;  %v2953_v19 = vmul.f32 %v11707_v45, %v13590_v27  ;;  %v13600_v27 = vld [vmem:[#allocation76_spill] sm:$0xff] }
 0x952   :  { %v1715_v3 = vpop.permute.xlu0 %1714 }
 0x953   :  { %1763 = vst.msk [vmem:[#allocation2] sm:$0xff] %vm1762_vm1, %v1715_v3  ;;  %1736 = vrot.lane.b32.xlu1 %v1693_v41, %s8566_s14  ;;  %v2954_v41 = vmul.f32 %v13591_v63, %v11712_v11  ;;  %v13592_v3 = vld [vmem:[#allocation40_spill] sm:$0xff]  ;;  %v4846_v63 = vmul.f32 %v11785_v20, %v11764_v56  ;;  %v5476_v20 = vmul.f32 %v11794_v39, %v11846_v49  ;;  %v13606_v49 = vld [vmem:[#allocation109_spill] sm:$0xff] }
 0x954   :  { %v1717_v15 = vpop.permute.xlu1 %1716  ;;  %v2955_v36 = vmul.f32 %v13592_v3, %v11717_v58  ;;  %v13603_v3 = vld [vmem:[#allocation4_spill] sm:$0xff] }
 0x955   :  { %1764 = vst.msk [vmem:[#allocation2 + $0x8] sm:$0xff] %vm1762_vm1, %v1717_v15  ;;  %2361 = vrot.lane.b32.xlu0 %v2321_v9, %s8567_s15  ;;  %v13593_v9 = vld [vmem:[#allocation101_spill] sm:$0xff] }
 0x956   :  { %v1719_v12 = vpop.permute.xlu0 %1718  ;;  %v3583_v15 = vmul.f32 %v11722_v7, %v13593_v9 }
 0x957   :  { %1765 = vst.msk [vmem:[#allocation2 + $0x10] sm:$0xff] %vm1762_vm1, %v1719_v12  ;;  %2363 = vrot.lane.b32.xlu1 %v2322_v57, %s8567_s15  ;;  %v3584_v57 = vmul.f32 %v11729_v4, %v13594_v0  ;;  %v13595_v12 = vld [vmem:[#allocation39_spill] sm:$0xff] }
 0x958   :  { %v1721_v38 = vpop.permute.xlu1 %1720  ;;  %v3585_v24 = vmul.f32 %v13595_v12, %v11740_v40 }
 0x959   :  { %1766 = vst.msk [vmem:[#allocation2 + $0x18] sm:$0xff] %vm1762_vm1, %v1721_v38  ;;  %2365 = vrot.lane.b32.xlu0 %v2323_v31, %s8567_s15  ;;  %v13596_v31 = vld [vmem:[#allocation80_spill] sm:$0xff] }
 0x95a   :  { %v2346_v22 = vpop.permute.xlu0 %2345  ;;  %v3586_v38 = vmul.f32 %v13596_v31, %v11745_v54  ;;  %v13610_v31 = vld [vmem:[#allocation57_spill] sm:$0xff] }
 0x95b   :  { %2394 = vst.msk [vmem:[#allocation2] sm:$0xff] %vm2393_vm7, %v2346_v22  ;;  %2367 = vrot.lane.b32.xlu1 %v2324_v18, %s8567_s15  ;;  %v4214_v18 = vmul.f32 %v11750_v52, %v13597_v2  ;;  %v13598_v22 = vld [vmem:[#allocation83_spill] sm:$0xff]  ;;  %v13612_v2 = vld [vmem:[#allocation41_spill] sm:$0xff] }
 0x95c   :  { %v2348_v55 = vpop.permute.xlu1 %2347  ;;  %v4215_v62 = vmul.f32 %v11756_v32, %v13598_v22  ;;  %v12117_v22 = vld [vmem:[%s12633_s5] ss:$0 sm:$0xff] }
 0x95d   :  { %2395 = vst.msk [vmem:[#allocation2 + $0x8] sm:$0xff] %vm2393_vm7, %v2348_v55  ;;  %2992 = vrot.lane.b32.xlu0 %v2952_v16, %s8568_s16  ;;  %v13599_v16 = vld [vmem:[#allocation16_spill] sm:$0xff] }
 0x95e   :  { %v2350_v29 = vpop.permute.xlu0 %2349  ;;  %v4216_v55 = vmul.f32 %v13599_v16, %v11767_v21 }
 0x95f   :  { %2396 = vst.msk [vmem:[#allocation2 + $0x10] sm:$0xff] %vm2393_vm7, %v2350_v29  ;;  %2994 = vrot.lane.b32.xlu1 %v2953_v19, %s8568_s16  ;;  %v4217_v19 = vmul.f32 %v13600_v27, %v11771_v35  ;;  %v4845_v29 = vmul.f32 %v11779_v10, %v11758_v13  ;;  %v13602_v10 = vld [vmem:[#allocation95_spill] sm:$0xff]  ;;  %v13615_v27 = vld [vmem:[#allocation170_spill] sm:$0xff] }
 0x960   :  { %v2352_v44 = vpop.permute.xlu1 %2351 }
 0x961   :  { %2397 = vst.msk [vmem:[#allocation2 + $0x18] sm:$0xff] %vm2393_vm7, %v2352_v44  ;;  %2996 = vrot.lane.b32.xlu0 %v2954_v41, %s8568_s16  ;;  %v13601_v41 = vld [vmem:[#allocation33_spill] sm:$0xff] }
 0x962   :  { %v2977_v45 = vpop.permute.xlu0 %2976  ;;  %v4847_v44 = vmul.f32 %v13601_v41, %v11787_v37 }
 0x963   :  { %3025 = vst.msk [vmem:[#allocation2] sm:$0xff] %vm3024_vm8, %v2977_v45  ;;  %2998 = vrot.lane.b32.xlu1 %v2955_v36, %s8568_s16  ;;  %v4848_v36 = vmul.f32 %v13603_v3, %v13602_v10  ;;  %v5477_v45 = vmul.f32 %v11797_v43, %v11855_v51  ;;  %v13607_v51 = vld [vmem:[#allocation32_spill] sm:$0xff]  ;;  %v13618_v3 = vld [vmem:[#allocation169_spill] sm:$0xff] }
 0x964   :  { %v2979_v11 = vpop.permute.xlu1 %2978  ;;  %v13617_v10 = vld [vmem:[#allocation172_spill] sm:$0xff] }
 0x965   :  { %3026 = vst.msk [vmem:[#allocation2 + $0x8] sm:$0xff] %vm3024_vm8, %v2979_v11  ;;  %3623 = vrot.lane.b32.xlu0 %v3583_v15, %s8569_s17  ;;  %v13604_v15 = vld [vmem:[#allocation38_spill] sm:$0xff]  ;;  %v13605_v11 = vld [vmem:[#allocation68_spill] sm:$0xff] }
 0x966   :  { %v2981_v58 = vpop.permute.xlu0 %2980  ;;  %v5478_v0 = vmul.f32 %v13605_v11, %v13604_v15 }
 0x967   :  { %3027 = vst.msk [vmem:[#allocation2 + $0x10] sm:$0xff] %vm3024_vm8, %v2981_v58  ;;  %3625 = vrot.lane.b32.xlu1 %v3584_v57, %s8569_s17  ;;  %v5479_v57 = vmul.f32 %v11852_v8, %v13606_v49  ;;  %v13608_v58 = vld [vmem:[#allocation99_spill] sm:$0xff] }
 0x968   :  { %v2983_v7 = vpop.permute.xlu1 %2982  ;;  %v1694_v12 = vmul.f32 %v13608_v58, %v13607_v51 }
 0x969   :  { %3028 = vst.msk [vmem:[#allocation2 + $0x18] sm:$0xff] %vm3024_vm8, %v2983_v7  ;;  %3627 = vrot.lane.b32.xlu0 %v3585_v24, %s8569_s17  ;;  %v13609_v7 = vld [vmem:[#allocation62_spill] sm:$0xff] }
 0x96a   :  { %v3608_v4 = vpop.permute.xlu0 %3607 }
 0x96b   :  { %3656 = vst.msk [vmem:[#allocation2] sm:$0xff] %vm3655_vm9, %v3608_v4  ;;  %3629 = vrot.lane.b32.xlu1 %v3586_v38, %s8569_s17  ;;  %v1695_v38 = vmul.f32 %v13610_v31, %v13609_v7  ;;  %v13611_v4 = vld [vmem:[#allocation105_spill] sm:$0xff]  ;;  %v13623_v31 = vld [vmem:[#allocation144_spill] sm:$0xff] }
 0x96c   :  { %v3610_v40 = vpop.permute.xlu1 %3609 }
 0x96d   :  { %3657 = vst.msk [vmem:[#allocation2 + $0x8] sm:$0xff] %vm3655_vm9, %v3610_v40  ;;  %4254 = vrot.lane.b32.xlu0 %v4214_v18, %s8570_s18  ;;  %v1696_v18 = vmul.f32 %v13612_v2, %v13611_v4  ;;  %v13624_v2 = vld [vmem:[#allocation103_spill] sm:$0xff] }
 0x96e   :  { %v3612_v54 = vpop.permute.xlu0 %3611 }
 0x96f   :  { %3658 = vst.msk [vmem:[#allocation2 + $0x10] sm:$0xff] %vm3655_vm9, %v3612_v54  ;;  %4256 = vrot.lane.b32.xlu1 %v4215_v62, %s8570_s18  ;;  %v13613_v62 = vld [vmem:[#allocation9_spill] sm:$0xff] }
 0x970   :  { %v3614_v52 = vpop.permute.xlu1 %3613  ;;  %v13614_v54 = vld [vmem:[#allocation81_spill] sm:$0xff] }
 0x971   :  { %3659 = vst.msk [vmem:[#allocation2 + $0x18] sm:$0xff] %vm3655_vm9, %v3614_v52  ;;  %4258 = vrot.lane.b32.xlu0 %v4216_v55, %s8570_s18  ;;  %v1697_v16 = vmul.f32 %v13614_v54, %v13613_v62 }
 0x972   :  { %v4239_v32 = vpop.permute.xlu0 %4238 }
 0x973   :  { %4287 = vst.msk [vmem:[#allocation2] sm:$0xff] %vm4286_vm10, %v4239_v32  ;;  %4260 = vrot.lane.b32.xlu1 %v4217_v19, %s8570_s18  ;;  %v2325_v19 = vmul.f32 %v11860_v53, %v13615_v27 }
 0x974   :  { %v4241_v21 = vpop.permute.xlu1 %4240 }
 0x975   :  { %4288 = vst.msk [vmem:[#allocation2 + $0x8] sm:$0xff] %vm4286_vm10, %v4241_v21  ;;  %4885 = vrot.lane.b32.xlu0 %v4845_v29, %s8571_s19 }
 0x976   :  { %v4243_v35 = vpop.permute.xlu0 %4242 }
 0x977   :  { %4289 = vst.msk [vmem:[#allocation2 + $0x10] sm:$0xff] %vm4286_vm10, %v4243_v35  ;;  %4887 = vrot.lane.b32.xlu1 %v4846_v63, %s8571_s19  ;;  %v13616_v63 = vld [vmem:[#allocation53_spill] sm:$0xff] }
 0x978   :  { %v4245_v13 = vpop.permute.xlu1 %4244  ;;  %v2326_v35 = vmul.f32 %v11870_v47, %v13616_v63  ;;  %v13628_v63 = vld [vmem:[#allocation78_spill] sm:$0xff] }
 0x979   :  { %4290 = vst.msk [vmem:[#allocation2 + $0x18] sm:$0xff] %vm4286_vm10, %v4245_v13  ;;  %4889 = vrot.lane.b32.xlu0 %v4847_v44, %s8571_s19 }
 0x97a   :  { %v4870_v56 = vpop.permute.xlu0 %4869 }
 0x97b   :  { %4918 = vst.msk [vmem:[#allocation2] sm:$0xff] %vm4917_vm11, %v4870_v56  ;;  %4891 = vrot.lane.b32.xlu1 %v4848_v36, %s8571_s19  ;;  %v2327_v36 = vmul.f32 %v13618_v3, %v13617_v10  ;;  %v13629_v10 = vld [vmem:[#allocation122_spill] sm:$0xff] }
 0x97c   :  { %v4872_v37 = vpop.permute.xlu1 %4871  ;;  %v3590_v3 = vmul.f32 %v13629_v10, %v11934_v26 }
 0x97d   :  { %4919 = vst.msk [vmem:[#allocation2 + $0x8] sm:$0xff] %vm4917_vm11, %v4872_v37  ;;  %5516 = vrot.lane.b32.xlu0 %v5476_v20, %s8572_s20 }
 0x97e   :  { %v4874_v9 = vpop.permute.xlu0 %4873 }
 0x97f   :  { %4920 = vst.msk [vmem:[#allocation2 + $0x10] sm:$0xff] %vm4917_vm11, %v4874_v9  ;;  %5518 = vrot.lane.b32.xlu1 %v5477_v45, %s8572_s20  ;;  %v13619_v45 = vld [vmem:[#allocation35_spill] sm:$0xff] }
 0x980   :  { %v4876_v39 = vpop.permute.xlu1 %4875  ;;  %v2328_v9 = vmul.f32 %v13619_v45, %v11890_v59  ;;  %v13621_v59 = vld [vmem:[#allocation143_spill] sm:$0xff] }
 0x981   :  { %4921 = vst.msk [vmem:[#allocation2 + $0x18] sm:$0xff] %vm4917_vm11, %v4876_v39  ;;  %5520 = vrot.lane.b32.xlu0 %v5478_v0, %s8572_s20  ;;  %v13620_v39 = vld [vmem:[#allocation134_spill] sm:$0xff]  ;;  %v2957_v51 = vmul.f32 %v11904_v17, %v13621_v59 }
 0x982   :  { %v5501_v43 = vpop.permute.xlu0 %5500  ;;  %v2956_v49 = vmul.f32 %v11900_v42, %v13620_v39  ;;  %v13634_v39 = vld [vmem:[#allocation31_spill] sm:$0xff]  ;;  %v13636_v59 = vld [vmem:[#allocation14_spill] sm:$0xff] }
 0x983   :  { %5549 = vst.msk [vmem:[#allocation2] sm:$0xff] %vm5548_vm12, %v5501_v43  ;;  %5522 = vrot.lane.b32.xlu1 %v5479_v57, %s8572_s20 }
 0x984   :  { %v5503_v24 = vpop.permute.xlu1 %5502 }
 0x985   :  { %5550 = vst.msk [vmem:[#allocation2 + $0x8] sm:$0xff] %vm5548_vm12, %v5503_v24  ;;  %1738 = vrot.lane.b32.xlu0 %v1694_v12, %s8566_s14  ;;  %v13622_v12 = vld [vmem:[#allocation135_spill] sm:$0xff] }
 0x986   :  { %v5505_v8 = vpop.permute.xlu0 %5504  ;;  %v2958_v24 = vmul.f32 %v13622_v12, %v11910_v30 }
 0x987   :  { %5551 = vst.msk [vmem:[#allocation2 + $0x10] sm:$0xff] %vm5548_vm12, %v5505_v8  ;;  %1740 = vrot.lane.b32.xlu1 %v1695_v38, %s8566_s14  ;;  %v2959_v38 = vmul.f32 %v13623_v31, %v11914_v14 }
 0x988   :  { %v5507_v40 = vpop.permute.xlu1 %5506 }
 0x989   :  { %5552 = vst.msk [vmem:[#allocation2 + $0x18] sm:$0xff] %vm5548_vm12, %v5507_v40  ;;  %1742 = vrot.lane.b32.xlu0 %v1696_v18, %s8566_s14  ;;  %v13625_v18 = vld [vmem:[#allocation138_spill] sm:$0xff] }
 0x98a   :  { %v1723_v55 = vpop.permute.xlu0 %1722  ;;  %v5565_v52 = vld [vmem:[#allocation2] sm:$0xff]  ;;  %v3587_v40 = vmul.f32 %v13625_v18, %v13624_v2 }
 0x98b   :  { %1767 = vst.msk [vmem:[#allocation2 + $0x20] sm:$0xff] %vm1762_vm1, %v1723_v55  ;;  %1744 = vrot.lane.b32.xlu1 %v1697_v16, %s8566_s14  ;;  %v5588_v32 = vadd.f32 %v12117_v22, %v5565_v52  ;;  %v13626_v16 = vld [vmem:[#allocation89_spill] sm:$0xff]  ;;  %v13627_v55 = vld [vmem:[#allocation3_spill] sm:$0xff] }
 0x98c   :  { %v1725_v29 = vpop.permute.xlu1 %1724  ;;  %v5566_v21 = vld [vmem:[#allocation2 + $0x8] sm:$0xff]  ;;  %v3588_v14 = vmul.f32 %v13627_v55, %v13626_v16 }
 0x98d   :  { %1768 = vst.msk [vmem:[#allocation2 + $0x28] sm:$0xff] %vm1762_vm1, %v1725_v29  ;;  %2369 = vrot.lane.b32.xlu0 %v2325_v19, %s8567_s15  ;;  %v5589_v41 = vadd.f32 %v12117_v22, %v5566_v21  ;;  %v5620_v44 = vmul.f32 1.442695, %v5588_v32  ;;  %vm5604_vm13 = vcmp.gt.f32.partialorder %v5588_v32, 0.0 }
 0x98e   :  { %v1727_v13 = vpop.permute.xlu0 %1726  ;;  %v5567_v53 = vld [vmem:[#allocation2 + $0x10] sm:$0xff] }
 0x98f   :  { %1769 = vst.msk [vmem:[#allocation2 + $0x30] sm:$0xff] %vm1762_vm1, %v1727_v13  ;;  %2371 = vrot.lane.b32.xlu1 %v2326_v35, %s8567_s15  ;;  %8450 = vpow2.f32 %v5620_v44  ;;  %v5622_v56 = vmul.f32 1.442695, %v5589_v41  ;;  %v5590_v47 = vadd.f32 %v12117_v22, %v5567_v53  ;;  %vm5605_vm14 = vcmp.gt.f32.partialorder %v5589_v41, 0.0 }
 0x990   :  { %v1729_v20 = vpop.permute.xlu1 %1728  ;;  %v5568_v37 = vld [vmem:[#allocation2 + $0x18] sm:$0xff]  ;;  %v3589_v35 = vmul.f32 %v13628_v63, %v11930_v61 }
 0x991   :  { %1770 = vst.msk [vmem:[#allocation2 + $0x38] sm:$0xff] %vm1762_vm1, %v1729_v20  ;;  %2373 = vrot.lane.b32.xlu0 %v2327_v36, %s8567_s15  ;;  %8452 = vpow2.f32 %v5622_v56  ;;  %v5591_v15 = vadd.f32 %v12117_v22, %v5568_v37  ;;  %v5624_v11 = vmul.f32 1.442695, %v5590_v47  ;;  %vm5606_vm15 = vcmp.gt.f32.partialorder %v5590_v47, 0.0  ;;  %v13630_v36 = vld [vmem:[#allocation82_spill] sm:$0xff]  ;;  %v13631_v37 = vld [vmem:[#allocation111_spill] sm:$0xff] }
 0x992   :  { %v2354_v0 = vpop.permute.xlu0 %2353  ;;  %v4218_v56 = vmul.f32 %v11940_v50, %v13630_v36  ;;  %v4219_v45 = vmul.f32 %v11944_v6, %v13631_v37 }
 0x993   :  { %2398 = vst.msk [vmem:[#allocation2 + $0x20] sm:$0xff] %vm2393_vm7, %v2354_v0  ;;  %2375 = vrot.lane.b32.xlu1 %v2328_v9, %s8567_s15  ;;  %8454 = vpow2.f32 %v5624_v11  ;;  %v5626_v57 = vmul.f32 1.442695, %v5591_v15  ;;  %vm5607_vm0 = vcmp.gt.f32.partialorder %v5591_v15, 0.0  ;;  %v13632_v9 = vld [vmem:[#allocation28_spill] sm:$0xff]  ;;  %v13633_v11 = vld [vmem:[#allocation42_spill] sm:$0xff] }
 0x994   :  { %v2356_v43 = vpop.permute.xlu1 %2355  ;;  %v4221_v0 = vmul.f32 %v13633_v11, %v11955_v33 }
 0x995   :  { %2399 = vst.msk [vmem:[#allocation2 + $0x28] sm:$0xff] %vm2393_vm7, %v2356_v43  ;;  %3000 = vrot.lane.b32.xlu0 %v2956_v49, %s8568_s16  ;;  %8456 = vpow2.f32 %v5626_v57  ;;  %v4849_v49 = vmul.f32 %v11963_v34, %v13634_v39  ;;  %v13635_v57 = vld [vmem:[#allocation71_spill] sm:$0xff] }
 0x996   :  { %v2358_v58 = vpop.permute.xlu0 %2357  ;;  %v4850_v43 = vmul.f32 %v11968_v23, %v13635_v57 }
 0x997   :  { %2400 = vst.msk [vmem:[#allocation2 + $0x30] sm:$0xff] %vm2393_vm7, %v2358_v58  ;;  %3002 = vrot.lane.b32.xlu1 %v2957_v51, %s8568_s16  ;;  %v4851_v51 = vmul.f32 %v13636_v59, %v11976_v60  ;;  %v13637_v58 = vld [vmem:[#allocation171_spill] sm:$0xff] }
 0x998   :  { %v2360_v42 = vpop.permute.xlu1 %2359  ;;  %v4852_v12 = vmul.f32 %v13637_v58, %v11981_v5 }
 0x999   :  { %v8451_v7 = vpop.eup %8450  ;;  %2401 = vst.msk [vmem:[#allocation2 + $0x38] sm:$0xff] %vm2393_vm7, %v2360_v42  ;;  %3004 = vrot.lane.b32.xlu0 %v2958_v24, %s8568_s16  ;;  %v13638_v24 = vld [vmem:[#allocation7_spill] sm:$0xff] }
 0x99a   :  { %v2985_v17 = vpop.permute.xlu0 %2984  ;;  %v6582_v8 = vadd.f32 -1.0, %v8451_v7  ;;  %v5480_v42 = vmul.f32 %v11986_v28, %v13638_v24  ;;  %v13639_v7 = vld [vmem:[#allocation136_spill] sm:$0xff] }
 0x99b   :  { %v8453_v4 = vpop.eup %8452  ;;  %3029 = vst.msk [vmem:[#allocation2 + $0x20] sm:$0xff] %vm3024_vm8, %v2985_v17  ;;  %3006 = vrot.lane.b32.xlu1 %v2959_v38, %s8568_s16  ;;  %v5481_v31 = vmul.f32 %v11991_v25, %v13639_v7  ;;  %v13640_v38 = vld [vmem:[#allocation96_spill] sm:$0xff] }
 0x99c   :  { %v2987_v30 = vpop.permute.xlu1 %2986  ;;  %v6583_v62 = vadd.f32 -1.0, %v8453_v4  ;;  %v5668_v27 = vsel %vm5604_vm13, %v5588_v32, %v6582_v8  ;;  %v5482_v17 = vmul.f32 %v13640_v38, %v11996_v1  ;;  %v13641_v8 = vld [vmem:[#allocation79_spill] sm:$0xff] }
 0x99d   :  { %v8455_v54 = vpop.eup %8454  ;;  %3030 = vst.msk [vmem:[#allocation2 + $0x28] sm:$0xff] %vm3024_vm8, %v2987_v30  ;;  %3631 = vrot.lane.b32.xlu0 %v3587_v40, %s8569_s17  ;;  %v5483_v4 = vmul.f32 %v13641_v8, %v12001_v46 }
 0x99e   :  { %v2989_v52 = vpop.permute.xlu0 %2988  ;;  %v5669_v19 = vsel %vm5605_vm14, %v5589_v41, %v6583_v62  ;;  %v6584_v29 = vadd.f32 -1.0, %v8455_v54 }
 0x99f   :  { %v8457_v21 = vpop.eup %8456  ;;  %3031 = vst.msk [vmem:[#allocation2 + $0x30] sm:$0xff] %vm3024_vm8, %v2989_v52  ;;  %3633 = vrot.lane.b32.xlu1 %v3588_v14, %s8569_s17  ;;  %v5684_v44 = vpack.c.bf16 %v5669_v19, %v5668_v27 }
 0x9a0   :  { %v2991_v13 = vpop.permute.xlu1 %2990  ;;  %v6585_v53 = vadd.f32 -1.0, %v8457_v21  ;;  %v5670_v61 = vsel %vm5606_vm15, %v5590_v47, %v6584_v29 }
 0x9a1   :  { %3032 = vst.msk [vmem:[#allocation2 + $0x38] sm:$0xff] %vm3024_vm8, %v2991_v13  ;;  %3635 = vrot.lane.b32.xlu0 %v3589_v35, %s8569_s17  ;;  %7624 = vmatprep.mubr.msk.bf16.mxu0 %vm305_vm2, %v5684_v44 }
 0x9a2   :  { %v3616_v32 = vpop.permute.xlu0 %3615  ;;  %v5671_v41 = vsel %vm5607_vm0, %v5591_v15, %v6585_v53  ;;  %v4220_v15 = vmul.f32 %v13632_v9, %v11950_v48 }
 0x9a3   :  { %3660 = vst.msk [vmem:[#allocation2 + $0x20] sm:$0xff] %vm3655_vm9, %v3616_v32  ;;  %3637 = vrot.lane.b32.xlu1 %v3590_v3, %s8569_s17  ;;  %v5685_v20 = vpack.c.bf16 %v5671_v41, %v5670_v61 }
 0x9a4   :  { %v3618_v26 = vpop.permute.xlu1 %3617 }
 0x9a5   :  { %3661 = vst.msk [vmem:[#allocation2 + $0x28] sm:$0xff] %vm3655_vm9, %v3618_v26  ;;  %4262 = vrot.lane.b32.xlu0 %v4218_v56, %s8570_s18  ;;  %7625 = vmatmul.mubr.msk.bf16.vlgmr.msra.gmra.mrb[116].mxu0 %vm305_vm2, %v5685_v20 }
 0x9a6   :  { %v3620_v47 = vpop.permute.xlu0 %3619 }
 0x9a7   :  { %3662 = vst.msk [vmem:[#allocation2 + $0x30] sm:$0xff] %vm3655_vm9, %v3620_v47  ;;  %4264 = vrot.lane.b32.xlu1 %v4219_v45, %s8570_s18 }
 0x9a8   :  { %v3622_v50 = vpop.permute.xlu1 %3621 }
 0x9a9   :  { %3663 = vst.msk [vmem:[#allocation2 + $0x38] sm:$0xff] %vm3655_vm9, %v3622_v50  ;;  %4266 = vrot.lane.b32.xlu0 %v4220_v15, %s8570_s18 }
 0x9aa   :  { %v4247_v6 = vpop.permute.xlu0 %4246 }
 0x9ab   :  { %4291 = vst.msk [vmem:[#allocation2 + $0x20] sm:$0xff] %vm4286_vm10, %v4247_v6  ;;  %4268 = vrot.lane.b32.xlu1 %v4221_v0, %s8570_s18 }
 0x9ac   :  { %v4249_v48 = vpop.permute.xlu1 %4248 }
 0x9ad   :  { %4292 = vst.msk [vmem:[#allocation2 + $0x28] sm:$0xff] %vm4286_vm10, %v4249_v48  ;;  %4893 = vrot.lane.b32.xlu0 %v4849_v49, %s8571_s19 }
 0x9ae   :  { %v4251_v33 = vpop.permute.xlu0 %4250 }
 0x9af   :  { %4293 = vst.msk [vmem:[#allocation2 + $0x30] sm:$0xff] %vm4286_vm10, %v4251_v33  ;;  %4895 = vrot.lane.b32.xlu1 %v4850_v43, %s8571_s19 }
 0x9b0   :  { %v4253_v34 = vpop.permute.xlu1 %4252 }
 0x9b1   :  { %4294 = vst.msk [vmem:[#allocation2 + $0x38] sm:$0xff] %vm4286_vm10, %v4253_v34  ;;  %4897 = vrot.lane.b32.xlu0 %v4851_v51, %s8571_s19 }
 0x9b2   :  { %v4878_v23 = vpop.permute.xlu0 %4877 }
 0x9b3   :  { %4922 = vst.msk [vmem:[#allocation2 + $0x20] sm:$0xff] %vm4917_vm11, %v4878_v23  ;;  %4899 = vrot.lane.b32.xlu1 %v4852_v12, %s8571_s19 }
 0x9b4   :  { %v4880_v60 = vpop.permute.xlu1 %4879 }
 0x9b5   :  { %4923 = vst.msk [vmem:[#allocation2 + $0x28] sm:$0xff] %vm4917_vm11, %v4880_v60  ;;  %5524 = vrot.lane.b32.xlu0 %v5480_v42, %s8572_s20 }
 0x9b6   :  { %v4882_v5 = vpop.permute.xlu0 %4881 }
 0x9b7   :  { %4924 = vst.msk [vmem:[#allocation2 + $0x30] sm:$0xff] %vm4917_vm11, %v4882_v5  ;;  %5526 = vrot.lane.b32.xlu1 %v5481_v31, %s8572_s20 }
 0x9b8   :  { %v4884_v28 = vpop.permute.xlu1 %4883 }
 0x9b9   :  { %4925 = vst.msk [vmem:[#allocation2 + $0x38] sm:$0xff] %vm4917_vm11, %v4884_v28  ;;  %5528 = vrot.lane.b32.xlu0 %v5482_v17, %s8572_s20 }
 0x9ba   :  { %v5509_v25 = vpop.permute.xlu0 %5508 }
 0x9bb   :  { %5553 = vst.msk [vmem:[#allocation2 + $0x20] sm:$0xff] %vm5548_vm12, %v5509_v25  ;;  %5530 = vrot.lane.b32.xlu1 %v5483_v4, %s8572_s20 }
 0x9bc   :  { %v5511_v2 = vpop.permute.xlu1 %5510 }
 0x9bd   :  { %5554 = vst.msk [vmem:[#allocation2 + $0x28] sm:$0xff] %vm5548_vm12, %v5511_v2 }
 0x9be   :  { %v5513_v1 = vpop.permute.xlu0 %5512 }
 0x9bf   :  { %5555 = vst.msk [vmem:[#allocation2 + $0x30] sm:$0xff] %vm5548_vm12, %v5513_v1 }
 0x9c0   :  { %v5515_v18 = vpop.permute.xlu1 %5514 }
 0x9c1   :  { %5556 = vst.msk [vmem:[#allocation2 + $0x38] sm:$0xff] %vm5548_vm12, %v5515_v18 }
 0x9c2   :  { %v1731_v40 = vpop.permute.xlu0 %1730  ;;  %v5569_v46 = vld [vmem:[#allocation2 + $0x20] sm:$0xff] }
 0x9c3   :  { %1771 = vst.msk [vmem:[#allocation2 + $0x40] sm:$0xff] %vm1762_vm1, %v1731_v40  ;;  %v5592_v30 = vadd.f32 %v12117_v22, %v5569_v46 }
 0x9c4   :  { %v1733_v62 = vpop.permute.xlu1 %1732  ;;  %v5570_v54 = vld [vmem:[#allocation2 + $0x28] sm:$0xff] }
 0x9c5   :  { %1772 = vst.msk [vmem:[#allocation2 + $0x48] sm:$0xff] %vm1762_vm1, %v1733_v62  ;;  %v5593_v16 = vadd.f32 %v12117_v22, %v5570_v54  ;;  %v5628_v55 = vmul.f32 1.442695, %v5592_v30  ;;  %vm5608_vm3 = vcmp.gt.f32.partialorder %v5592_v30, 0.0 }
 0x9c6   :  { %v1735_v14 = vpop.permute.xlu0 %1734  ;;  %v5571_v52 = vld [vmem:[#allocation2 + $0x30] sm:$0xff] }
 0x9c7   :  { %1773 = vst.msk [vmem:[#allocation2 + $0x50] sm:$0xff] %vm1762_vm1, %v1735_v14  ;;  %8458 = vpow2.f32 %v5628_v55  ;;  %v5630_v27 = vmul.f32 1.442695, %v5593_v16  ;;  %v5594_v19 = vadd.f32 %v12117_v22, %v5571_v52  ;;  %vm5609_vm4 = vcmp.gt.f32.partialorder %v5593_v16, 0.0 }
 0x9c8   :  { %v1737_v29 = vpop.permute.xlu1 %1736  ;;  %v5572_v21 = vld [vmem:[#allocation2 + $0x38] sm:$0xff] }
 0x9c9   :  { %1774 = vst.msk [vmem:[#allocation2 + $0x58] sm:$0xff] %vm1762_vm1, %v1737_v29  ;;  %8460 = vpow2.f32 %v5630_v27  ;;  %v5595_v63 = vadd.f32 %v12117_v22, %v5572_v21  ;;  %v5632_v35 = vmul.f32 1.442695, %v5594_v19  ;;  %vm5610_vm5 = vcmp.gt.f32.partialorder %v5594_v19, 0.0 }
 0x9ca   :  { %v2362_v44 = vpop.permute.xlu0 %2361 }
 0x9cb   :  { %2402 = vst.msk [vmem:[#allocation2 + $0x40] sm:$0xff] %vm2393_vm7, %v2362_v44  ;;  %8462 = vpow2.f32 %v5632_v35  ;;  %v5634_v13 = vmul.f32 1.442695, %v5595_v63  ;;  %vm5611_vm6 = vcmp.gt.f32.partialorder %v5595_v63, 0.0 }
 0x9cc   :  { %v2364_v53 = vpop.permute.xlu1 %2363 }
 0x9cd   :  { %2403 = vst.msk [vmem:[#allocation2 + $0x48] sm:$0xff] %vm2393_vm7, %v2364_v53  ;;  %8464 = vpow2.f32 %v5634_v13 }
 0x9ce   :  { %v2366_v10 = vpop.permute.xlu0 %2365 }
 0x9cf   :  { %2404 = vst.msk [vmem:[#allocation2 + $0x50] sm:$0xff] %vm2393_vm7, %v2366_v10 }
 0x9d0   :  { %v2368_v3 = vpop.permute.xlu1 %2367 }
 0x9d1   :  { %v8459_v32 = vpop.eup %8458  ;;  %2405 = vst.msk [vmem:[#allocation2 + $0x58] sm:$0xff] %vm2393_vm7, %v2368_v3 }
 0x9d2   :  { %v2993_v61 = vpop.permute.xlu0 %2992  ;;  %v6586_v41 = vadd.f32 -1.0, %v8459_v32 }
 0x9d3   :  { %v8461_v36 = vpop.eup %8460  ;;  %3033 = vst.msk [vmem:[#allocation2 + $0x40] sm:$0xff] %vm3024_vm8, %v2993_v61 }
 0x9d4   :  { %v2995_v56 = vpop.permute.xlu1 %2994  ;;  %v6587_v20 = vadd.f32 -1.0, %v8461_v36  ;;  %v5672_v45 = vsel %vm5608_vm3, %v5592_v30, %v6586_v41 }
 0x9d5   :  { %v8463_v26 = vpop.eup %8462  ;;  %3034 = vst.msk [vmem:[#allocation2 + $0x48] sm:$0xff] %vm3024_vm8, %v2995_v56 }
 0x9d6   :  { %v2997_v37 = vpop.permute.xlu0 %2996  ;;  %v5673_v47 = vsel %vm5609_vm4, %v5593_v16, %v6587_v20  ;;  %v6588_v9 = vadd.f32 -1.0, %v8463_v26 }
 0x9d7   :  { %v8465_v15 = vpop.eup %8464  ;;  %3035 = vst.msk [vmem:[#allocation2 + $0x50] sm:$0xff] %vm3024_vm8, %v2997_v37  ;;  %v5686_v50 = vpack.c.bf16 %v5673_v47, %v5672_v45 }
 0x9d8   :  { %v2999_v11 = vpop.permute.xlu1 %2998  ;;  %v6589_v0 = vadd.f32 -1.0, %v8465_v15  ;;  %v5674_v39 = vsel %vm5610_vm5, %v5594_v19, %v6588_v9 }
 0x9d9   :  { %3036 = vst.msk [vmem:[#allocation2 + $0x58] sm:$0xff] %vm3024_vm8, %v2999_v11  ;;  %7628 = vmatprep.mubr.msk.bf16.mxu0 %vm305_vm2, %v5686_v50 }
 0x9da   :  { %v3624_v6 = vpop.permute.xlu0 %3623  ;;  %v5675_v49 = vsel %vm5611_vm6, %v5595_v63, %v6589_v0 }
 0x9db   :  { %3664 = vst.msk [vmem:[#allocation2 + $0x40] sm:$0xff] %vm3655_vm9, %v3624_v6  ;;  %v5687_v48 = vpack.c.bf16 %v5675_v49, %v5674_v39 }
 0x9dc   :  { %v3626_v57 = vpop.permute.xlu1 %3625 }
 0x9dd   :  { %3665 = vst.msk [vmem:[#allocation2 + $0x48] sm:$0xff] %vm3655_vm9, %v3626_v57  ;;  %7629 = vmatmul.mubr.msk.bf16.gmra.mrb[120].mxu0 %vm305_vm2, %v5687_v48 }
 0x9de   :  { %v3628_v43 = vpop.permute.xlu0 %3627 }
 0x9df   :  { %3666 = vst.msk [vmem:[#allocation2 + $0x50] sm:$0xff] %vm3655_vm9, %v3628_v43 }
 0x9e0   :  { %v3630_v33 = vpop.permute.xlu1 %3629 }
 0x9e1   :  { %3667 = vst.msk [vmem:[#allocation2 + $0x58] sm:$0xff] %vm3655_vm9, %v3630_v33 }
 0x9e2   :  { %v4255_v59 = vpop.permute.xlu0 %4254 }
 0x9e3   :  { %4295 = vst.msk [vmem:[#allocation2 + $0x40] sm:$0xff] %vm4286_vm10, %v4255_v59 }
 0x9e4   :  { %v4257_v51 = vpop.permute.xlu1 %4256 }
 0x9e5   :  { %4296 = vst.msk [vmem:[#allocation2 + $0x48] sm:$0xff] %vm4286_vm10, %v4257_v51 }
 0x9e6   :  { %v4259_v34 = vpop.permute.xlu0 %4258 }
 0x9e7   :  { %4297 = vst.msk [vmem:[#allocation2 + $0x50] sm:$0xff] %vm4286_vm10, %v4259_v34 }
 0x9e8   :  { %v4261_v58 = vpop.permute.xlu1 %4260 }
 0x9e9   :  { %4298 = vst.msk [vmem:[#allocation2 + $0x58] sm:$0xff] %vm4286_vm10, %v4261_v58 }
 0x9ea   :  { %v4886_v12 = vpop.permute.xlu0 %4885 }
 0x9eb   :  { %4926 = vst.msk [vmem:[#allocation2 + $0x40] sm:$0xff] %vm4917_vm11, %v4886_v12 }
 0x9ec   :  { %v4888_v23 = vpop.permute.xlu1 %4887 }
 0x9ed   :  { %4927 = vst.msk [vmem:[#allocation2 + $0x48] sm:$0xff] %vm4917_vm11, %v4888_v23 }
 0x9ee   :  { %v4890_v24 = vpop.permute.xlu0 %4889 }
 0x9ef   :  { %4928 = vst.msk [vmem:[#allocation2 + $0x50] sm:$0xff] %vm4917_vm11, %v4890_v24 }
 0x9f0   :  { %v4892_v42 = vpop.permute.xlu1 %4891 }
 0x9f1   :  { %4929 = vst.msk [vmem:[#allocation2 + $0x58] sm:$0xff] %vm4917_vm11, %v4892_v42 }
 0x9f2   :  { %v5517_v60 = vpop.permute.xlu0 %5516 }
 0x9f3   :  { %5557 = vst.msk [vmem:[#allocation2 + $0x40] sm:$0xff] %vm5548_vm12, %v5517_v60 }
 0x9f4   :  { %v5519_v7 = vpop.permute.xlu1 %5518 }
 0x9f5   :  { %5558 = vst.msk [vmem:[#allocation2 + $0x48] sm:$0xff] %vm5548_vm12, %v5519_v7 }
 0x9f6   :  { %v5521_v31 = vpop.permute.xlu0 %5520 }
 0x9f7   :  { %5559 = vst.msk [vmem:[#allocation2 + $0x50] sm:$0xff] %vm5548_vm12, %v5521_v31 }
 0x9f8   :  { %v5523_v5 = vpop.permute.xlu1 %5522 }
 0x9f9   :  { %5560 = vst.msk [vmem:[#allocation2 + $0x58] sm:$0xff] %vm5548_vm12, %v5523_v5 }
 0x9fa   :  { %v1739_v38 = vpop.permute.xlu0 %1738  ;;  %v5573_v17 = vld [vmem:[#allocation2 + $0x40] sm:$0xff] }
 0x9fb   :  { %1775 = vst.msk [vmem:[#allocation2 + $0x60] sm:$0xff] %vm1762_vm1, %v1739_v38  ;;  %v5596_v28 = vadd.f32 %v12117_v22, %v5573_v17 }
 0x9fc   :  { %v1741_v8 = vpop.permute.xlu1 %1740  ;;  %v5574_v4 = vld [vmem:[#allocation2 + $0x48] sm:$0xff] }
 0x9fd   :  { %1776 = vst.msk [vmem:[#allocation2 + $0x68] sm:$0xff] %vm1762_vm1, %v1741_v8  ;;  %v5597_v25 = vadd.f32 %v12117_v22, %v5574_v4  ;;  %v5636_v2 = vmul.f32 1.442695, %v5596_v28 }
 0x9fe   :  { %v1743_v1 = vpop.permute.xlu0 %1742  ;;  %v5575_v18 = vld [vmem:[#allocation2 + $0x50] sm:$0xff] }
 0x9ff   :  { %1777 = vst.msk [vmem:[#allocation2 + $0x70] sm:$0xff] %vm1762_vm1, %v1743_v1  ;;  %8466 = vpow2.f32 %v5636_v2  ;;  %v5638_v40 = vmul.f32 1.442695, %v5597_v25  ;;  %v5598_v46 = vadd.f32 %v12117_v22, %v5575_v18  ;;  %vm5613_vm13 = vcmp.gt.f32.partialorder %v5597_v25, 0.0 }
 0xa00   :  { %v1745_v30 = vpop.permute.xlu1 %1744  ;;  %v5576_v62 = vld [vmem:[#allocation2 + $0x58] sm:$0xff] }
 0xa01   :  { %1778 = vst.msk [vmem:[#allocation2 + $0x78] sm:$0xff] %vm1762_vm1, %v1745_v30  ;;  %8468 = vpow2.f32 %v5638_v40  ;;  %v5599_v54 = vadd.f32 %v12117_v22, %v5576_v62  ;;  %v5640_v16 = vmul.f32 1.442695, %v5598_v46  ;;  %vm5612_vm1 = vcmp.gt.f32.partialorder %v5596_v28, 0.0 }
 0xa02   :  { %v2370_v55 = vpop.permute.xlu0 %2369 }
 0xa03   :  { %2406 = vst.msk [vmem:[#allocation2 + $0x60] sm:$0xff] %vm2393_vm7, %v2370_v55  ;;  %8470 = vpow2.f32 %v5640_v16  ;;  %v5642_v14 = vmul.f32 1.442695, %v5599_v54  ;;  %vm5615_vm14 = vcmp.gt.f32.partialorder %v5599_v54, 0.0 }
 0xa04   :  { %v2372_v52 = vpop.permute.xlu1 %2371 }
 0xa05   :  { %2407 = vst.msk [vmem:[#allocation2 + $0x68] sm:$0xff] %vm2393_vm7, %v2372_v52  ;;  %8472 = vpow2.f32 %v5642_v14  ;;  %v12307_v14 = vld [vmem:[%s12634_s8] ss:$0 sm:$0xff] }
 0xa06   :  { %v2374_v27 = vpop.permute.xlu0 %2373 }
 0xa07   :  { %2408 = vst.msk [vmem:[#allocation2 + $0x70] sm:$0xff] %vm2393_vm7, %v2374_v27 }
 0xa08   :  { %v2376_v19 = vpop.permute.xlu1 %2375 }
 0xa09   :  { %v8467_v29 = vpop.eup %8466  ;;  %2409 = vst.msk [vmem:[#allocation2 + $0x78] sm:$0xff] %vm2393_vm7, %v2376_v19  ;;  %vm5614_vm7 = vcmp.gt.f32.partialorder %v5598_v46, 0.0 }
 0xa0a   :  { %v3001_v21 = vpop.permute.xlu0 %3000  ;;  %v6590_v63 = vadd.f32 -1.0, %v8467_v29 }
 0xa0b   :  { %v8469_v35 = vpop.eup %8468  ;;  %3037 = vst.msk [vmem:[#allocation2 + $0x60] sm:$0xff] %vm3024_vm8, %v3001_v21 }
 0xa0c   :  { %v3003_v44 = vpop.permute.xlu1 %3002  ;;  %v6591_v13 = vadd.f32 -1.0, %v8469_v35  ;;  %v5676_v3 = vsel %vm5612_vm1, %v5596_v28, %v6590_v63 }
 0xa0d   :  { %v8471_v53 = vpop.eup %8470  ;;  %3038 = vst.msk [vmem:[#allocation2 + $0x68] sm:$0xff] %vm3024_vm8, %v3003_v44 }
 0xa0e   :  { %v3005_v10 = vpop.permute.xlu0 %3004  ;;  %v5677_v32 = vsel %vm5613_vm13, %v5597_v25, %v6591_v13  ;;  %v6592_v61 = vadd.f32 -1.0, %v8471_v53 }
 0xa0f   :  { %v8473_v41 = vpop.eup %8472  ;;  %3039 = vst.msk [vmem:[#allocation2 + $0x70] sm:$0xff] %vm3024_vm8, %v3005_v10  ;;  %v5688_v36 = vpack.c.bf16 %v5677_v32, %v5676_v3 }
 0xa10   :  { %v3007_v56 = vpop.permute.xlu1 %3006  ;;  %v6593_v20 = vadd.f32 -1.0, %v8473_v41  ;;  %v5678_v37 = vsel %vm5614_vm7, %v5598_v46, %v6592_v61  ;;  %v13644_v41 = vmov 0.0|0.0  }
 0xa11   :  { %3040 = vst.msk [vmem:[#allocation2 + $0x78] sm:$0xff] %vm3024_vm8, %v3007_v56  ;;  %7632 = vmatprep.mubr.msk.bf16.mxu0 %vm305_vm2, %v5688_v36 }
 0xa12   :  { %v3632_v26 = vpop.permute.xlu0 %3631  ;;  %v5679_v45 = vsel %vm5615_vm14, %v5599_v54, %v6593_v20 }
 0xa13   :  { %3668 = vst.msk [vmem:[#allocation2 + $0x60] sm:$0xff] %vm3655_vm9, %v3632_v26  ;;  %v5689_v47 = vpack.c.bf16 %v5679_v45, %v5678_v37 }
 0xa14   :  { %v3634_v9 = vpop.permute.xlu1 %3633 }
 0xa15   :  { %3669 = vst.msk [vmem:[#allocation2 + $0x68] sm:$0xff] %vm3655_vm9, %v3634_v9  ;;  %7633 = vmatmul.mubr.msk.bf16.gmra.mrb[124].mxu0 %vm305_vm2, %v5689_v47 }
 0xa16   :  { %v3636_v15 = vpop.permute.xlu0 %3635 }
 0xa17   :  { %3670 = vst.msk [vmem:[#allocation2 + $0x70] sm:$0xff] %vm3655_vm9, %v3636_v15 }
 0xa18   :  { %v3638_v50 = vpop.permute.xlu1 %3637 }
 0xa19   :  { %3671 = vst.msk [vmem:[#allocation2 + $0x78] sm:$0xff] %vm3655_vm9, %v3638_v50 }
 0xa1a   :  { %v4263_v11 = vpop.permute.xlu0 %4262 }
 0xa1b   :  { %4299 = vst.msk [vmem:[#allocation2 + $0x60] sm:$0xff] %vm4286_vm10, %v4263_v11 }
 0xa1c   :  { %v4265_v0 = vpop.permute.xlu1 %4264 }
 0xa1d   :  { %4300 = vst.msk [vmem:[#allocation2 + $0x68] sm:$0xff] %vm4286_vm10, %v4265_v0 }
 0xa1e   :  { %v4267_v6 = vpop.permute.xlu0 %4266 }
 0xa1f   :  { %4301 = vst.msk [vmem:[#allocation2 + $0x70] sm:$0xff] %vm4286_vm10, %v4267_v6 }
 0xa20   :  { %v4269_v39 = vpop.permute.xlu1 %4268 }
 0xa21   :  { %4302 = vst.msk [vmem:[#allocation2 + $0x78] sm:$0xff] %vm4286_vm10, %v4269_v39 }
 0xa22   :  { %v4894_v49 = vpop.permute.xlu0 %4893 }
 0xa23   :  { %4930 = vst.msk [vmem:[#allocation2 + $0x60] sm:$0xff] %vm4917_vm11, %v4894_v49 }
 0xa24   :  { %v4896_v48 = vpop.permute.xlu1 %4895 }
 0xa25   :  { %4931 = vst.msk [vmem:[#allocation2 + $0x68] sm:$0xff] %vm4917_vm11, %v4896_v48 }
 0xa26   :  { %v4898_v57 = vpop.permute.xlu0 %4897 }
 0xa27   :  { %4932 = vst.msk [vmem:[#allocation2 + $0x70] sm:$0xff] %vm4917_vm11, %v4898_v57 }
 0xa28   :  { %v4900_v43 = vpop.permute.xlu1 %4899 }
 0xa29   :  { %4933 = vst.msk [vmem:[#allocation2 + $0x78] sm:$0xff] %vm4917_vm11, %v4900_v43 }
 0xa2a   :  { %v5525_v33 = vpop.permute.xlu0 %5524 }
 0xa2b   :  { %5561 = vst.msk [vmem:[#allocation2 + $0x60] sm:$0xff] %vm5548_vm12, %v5525_v33 }
 0xa2c   :  { %v5527_v59 = vpop.permute.xlu1 %5526 }
 0xa2d   :  { %5562 = vst.msk [vmem:[#allocation2 + $0x68] sm:$0xff] %vm5548_vm12, %v5527_v59 }
 0xa2e   :  { %v5529_v51 = vpop.permute.xlu0 %5528 }
 0xa2f   :  { %5563 = vst.msk [vmem:[#allocation2 + $0x70] sm:$0xff] %vm5548_vm12, %v5529_v51 }
 0xa30   :  { %v5531_v34 = vpop.permute.xlu1 %5530 }
 0xa31   :  { %5564 = vst.msk [vmem:[#allocation2 + $0x78] sm:$0xff] %vm5548_vm12, %v5531_v34  ;;  %vm5848_vm12 = vcmask 31744  }
 0xa32   :  { %v5577_v58 = vld [vmem:[#allocation2 + $0x60] sm:$0xff]  ;;  %vm12312_vm15 = vmpackc.low %vm5848_vm12, %vm5848_vm12 }
 0xa33   :  { %v5600_v12 = vadd.f32 %v12117_v22, %v5577_v58 }
 0xa34   :  { %v5578_v23 = vld [vmem:[#allocation2 + $0x68] sm:$0xff] }
 0xa35   :  { %v5601_v24 = vadd.f32 %v12117_v22, %v5578_v23  ;;  %v5644_v42 = vmul.f32 1.442695, %v5600_v12  ;;  %vm5616_vm8 = vcmp.gt.f32.partialorder %v5600_v12, 0.0 }
 0xa36   :  { %v5579_v60 = vld [vmem:[#allocation2 + $0x70] sm:$0xff] }
 0xa37   :  { %8474 = vpow2.f32 %v5644_v42  ;;  %v5646_v7 = vmul.f32 1.442695, %v5601_v24  ;;  %v5602_v31 = vadd.f32 %v12117_v22, %v5579_v60  ;;  %vm5617_vm9 = vcmp.gt.f32.partialorder %v5601_v24, 0.0 }
 0xa38   :  { %v5580_v5 = vld [vmem:[#allocation2 + $0x78] sm:$0xff] }
 0xa39   :  { %8476 = vpow2.f32 %v5646_v7  ;;  %v5603_v38 = vadd.f32 %v12117_v22, %v5580_v5  ;;  %v5648_v17 = vmul.f32 1.442695, %v5602_v31  ;;  %vm5618_vm10 = vcmp.gt.f32.partialorder %v5602_v31, 0.0 }
 0xa3b   :  { %8478 = vpow2.f32 %v5648_v17  ;;  %v5650_v28 = vmul.f32 1.442695, %v5603_v38  ;;  %vm5619_vm11 = vcmp.gt.f32.partialorder %v5603_v38, 0.0 }
 0xa3d   :  { %8480 = vpow2.f32 %v5650_v28 }
 0xa41   :  { %v8475_v8 = vpop.eup %8474 }
 0xa42   :  { %v6594_v4 = vadd.f32 -1.0, %v8475_v8 }
 0xa43   :  { %v8477_v25 = vpop.eup %8476 }
 0xa44   :  { %v6595_v2 = vadd.f32 -1.0, %v8477_v25  ;;  %v5680_v18 = vsel %vm5616_vm8, %v5600_v12, %v6594_v4 }
 0xa45   :  { %v8479_v1 = vpop.eup %8478 }
 0xa46   :  { %v5681_v40 = vsel %vm5617_vm9, %v5601_v24, %v6595_v2  ;;  %v6596_v46 = vadd.f32 -1.0, %v8479_v1 }
 0xa47   :  { %v8481_v30 = vpop.eup %8480  ;;  %v5690_v62 = vpack.c.bf16 %v5681_v40, %v5680_v18 }
 0xa48   :  { %v6597_v54 = vadd.f32 -1.0, %v8481_v30  ;;  %v5682_v22 = vsel %vm5618_vm10, %v5602_v31, %v6596_v46 }
 0xa49   :  { %7636 = vmatprep.mubr.msk.bf16.mxu0 %vm305_vm2, %v5690_v62  ;;  %v13645_v62 = vmov 1065369472  }
 0xa4a   :  { %v5683_v16 = vsel %vm5619_vm11, %v5603_v38, %v6597_v54  ;;  %v5897_v54 = vld [vmem:[%s12635_s7] sm:$0x1] }
 0xa4b   :  { %v5691_v55 = vpack.c.bf16 %v5683_v16, %v5682_v22 }
 0xa4d   :  { %7637 = vmatmul.mubr.msk.bf16.gmra.mrb[128].mxu0 %vm305_vm2, %v5691_v55 }
 0xa78   :  { %v7626_v52 = vpop.f32.mrb[116].mxu0 }
 0xa79   :  { %v5762_v27 = vpop.f32.mrb[117].mxu0  ;;  %v5834_v44 = vmul.f32 %v7626_v52, %v12307_v14 }
 0xa7a   :  { %v5832_v19 = vmul.f32 %v12307_v14, %v5762_v27  ;;  %v7627_v29 = vpop.f32.mrb[118].mxu0 }
 0xa7b   :  { %v7796_v21 = vpack.c.bf16 %v7627_v29, %v7626_v52  ;;  %v5765_v63 = vpop.f32.mrb[119].mxu0  ;;  %v5835_v32 = vmul.f32 %v7627_v29, %v12307_v14  ;;  %v5855_v61 = vsel %vm5848_vm12, %v5834_v44, 0.0  ;;  %v13646_v29 = vld [vmem:[#allocation27_spill] sm:$0xff] }
 0xa7c   :  { %v5833_v13 = vmul.f32 %v12307_v14, %v5765_v63  ;;  %v7792_v53 = vpack.c.bf16 %v5765_v63, %v5762_v27  ;;  %v5849_v10 = vsel %vm5848_vm12, %v5832_v19, 0.0 }
 0xa7d   :  { %5850 = vadd.xlane.f32.xlu0 %v5849_v10  ;;  %v5858_v36 = vsel %vm5848_vm12, %v5835_v32, 0.0 }
 0xa7e   :  { %7794 = vmatpush3.bf16.xpose.msk.msra.mxu1 %vm12312_vm15, %v7792_v53  ;;  %7675 = vmatprep.subr.bf16.mxu0 %v7792_v53  ;;  %v5852_v3 = vsel %vm5848_vm12, %v5833_v13, 0.0 }
 0xa7f   :  { %7676 = vmatpush3.bf16.msra.mxu0 %v7792_v53  ;;  %5853 = vadd.xlane.f32.xlu1 %v5852_v3 }
 0xa80   :  { %7677 = vmatprep.subr.bf16.mxu0 %v7796_v21  ;;  %7795 = vmatprep.subr.bf16.mxu1 %v13644_v41 }
 0xa81   :  { %5856 = vadd.xlane.f32.xlu0 %v5855_v61 }
 0xa83   :  { %7678 = vmatpush3.bf16.msra.mxu0 %v7796_v21 }
 0xa85   :  { %5859 = vadd.xlane.f32.xlu0 %v5858_v36 }
 0xa86   :  { %7798 = vmatpush3.bf16.xpose.msk.msra.mxu1 %vm12312_vm15, %v7796_v21  ;;  %v13647_v21 = vsub.s32 0, %v13646_v29 }
 0xa87   :  { %7799 = vmatprep.subr.bf16.mxu1 %v13644_v41 }
 0xab0   :  { %v7630_v56 = vpop.f32.mrb[120].mxu0 }
 0xab1   :  { %v5778_v20 = vpop.f32.mrb[121].mxu0  ;;  %v5838_v9 = vmul.f32 %v7630_v56, %v12307_v14 }
 0xab2   :  { %v5836_v26 = vmul.f32 %v12307_v14, %v5778_v20  ;;  %v7631_v37 = vpop.f32.mrb[122].mxu0 }
 0xab3   :  { %v7804_v45 = vpack.c.bf16 %v7631_v37, %v7630_v56  ;;  %v5781_v47 = vpop.f32.mrb[123].mxu0  ;;  %v5839_v0 = vmul.f32 %v7631_v37, %v12307_v14  ;;  %v5867_v39 = vsel %vm5848_vm12, %v5838_v9, 0.0 }
 0xab4   :  { %v5837_v15 = vmul.f32 %v12307_v14, %v5781_v47  ;;  %v7800_v50 = vpack.c.bf16 %v5781_v47, %v5778_v20  ;;  %v5861_v11 = vsel %vm5848_vm12, %v5836_v26, 0.0 }
 0xab5   :  { %5862 = vadd.xlane.f32.xlu1 %v5861_v11  ;;  %v5870_v49 = vsel %vm5848_vm12, %v5839_v0, 0.0 }
 0xab6   :  { %7802 = vmatpush3.bf16.xpose.msk.msra.mxu1 %vm12312_vm15, %v7800_v50  ;;  %7679 = vmatprep.subr.bf16.mxu0 %v7800_v50  ;;  %v5864_v6 = vsel %vm5848_vm12, %v5837_v15, 0.0 }
 0xab7   :  { %7680 = vmatpush3.bf16.msra.mxu0 %v7800_v50  ;;  %5865 = vadd.xlane.f32.xlu0 %v5864_v6  ;;  %v13648_v6 = vld [vmem:[#allocation46_spill] sm:$0xff] }
 0xab8   :  { %7681 = vmatprep.subr.bf16.mxu0 %v7804_v45  ;;  %7803 = vmatprep.subr.bf16.mxu1 %v13644_v41 }
 0xab9   :  { %5868 = vadd.xlane.f32.xlu1 %v5867_v39 }
 0xabb   :  { %7682 = vmatpush3.bf16.msra.mxu0 %v7804_v45  ;;  %5871 = vadd.xlane.f32.xlu0 %v5870_v49  ;;  %v13649_v49 = vld [vmem:[#allocation49_spill] sm:$0xff] }
 0xabe   :  { %7806 = vmatpush3.bf16.xpose.msk.msra.mxu1 %vm12312_vm15, %v7804_v45 }
 0xabf   :  { %7807 = vmatprep.subr.bf16.mxu1 %v13644_v41 }
 0xae8   :  { %v7634_v48 = vpop.f32.mrb[124].mxu0 }
 0xae9   :  { %v5794_v57 = vpop.f32.mrb[125].mxu0  ;;  %v5842_v34 = vmul.f32 %v7634_v48, %v12307_v14 }
 0xaea   :  { %v5840_v43 = vmul.f32 %v12307_v14, %v5794_v57  ;;  %v7635_v33 = vpop.f32.mrb[126].mxu0 }
 0xaeb   :  { %v7812_v59 = vpack.c.bf16 %v7635_v33, %v7634_v48  ;;  %v5797_v51 = vpop.f32.mrb[127].mxu0  ;;  %v5843_v24 = vmul.f32 %v7635_v33, %v12307_v14  ;;  %v5879_v60 = vsel %vm5848_vm12, %v5842_v34, 0.0 }
 0xaec   :  { %v5841_v58 = vmul.f32 %v12307_v14, %v5797_v51  ;;  %v7808_v12 = vpack.c.bf16 %v5797_v51, %v5794_v57  ;;  %v5873_v23 = vsel %vm5848_vm12, %v5840_v43, 0.0 }
 0xaed   :  { %5874 = vadd.xlane.f32.xlu1 %v5873_v23  ;;  %v5882_v7 = vsel %vm5848_vm12, %v5843_v24, 0.0  ;;  %v13650_v23 = vld [vmem:[#allocation52_spill] sm:$0xff] }
 0xaee   :  { %7810 = vmatpush3.bf16.xpose.msk.msra.mxu1 %vm12312_vm15, %v7808_v12  ;;  %7683 = vmatprep.subr.bf16.mxu0 %v7808_v12  ;;  %v5876_v42 = vsel %vm5848_vm12, %v5841_v58, 0.0 }
 0xaef   :  { %7684 = vmatpush3.bf16.msra.mxu0 %v7808_v12  ;;  %5877 = vadd.xlane.f32.xlu0 %v5876_v42  ;;  %v13651_v42 = vld [vmem:[#allocation51_spill] sm:$0xff] }
 0xaf0   :  { %7685 = vmatprep.subr.bf16.mxu0 %v7812_v59  ;;  %7811 = vmatprep.subr.bf16.mxu1 %v13644_v41 }
 0xaf1   :  { %5880 = vadd.xlane.f32.xlu1 %v5879_v60 }
 0xaf3   :  { %7686 = vmatpush3.bf16.msra.mxu0 %v7812_v59  ;;  %5883 = vadd.xlane.f32.xlu0 %v5882_v7 }
 0xaf6   :  { %7814 = vmatpush3.bf16.xpose.msk.msra.mxu1 %vm12312_vm15, %v7812_v59 }
 0xaf7   :  { %7815 = vmatprep.subr.bf16.mxu1 %v13644_v41 }
 0xb0a   :  { %v5851_v22 = vpop.xlane.xlu0 %5850 }
 0xb0c   :  { %v5854_v55 = vpop.xlane.xlu1 %5853 }
 0xb0e   :  { %v5857_v16 = vpop.xlane.xlu0 %5856 }
 0xb20   :  { %v7638_v31 = vpop.f32.mrb[128].mxu0 }
 0xb21   :  { %v5810_v5 = vpop.f32.mrb[129].mxu0  ;;  %v5846_v4 = vmul.f32 %v7638_v31, %v12307_v14 }
 0xb22   :  { %v5844_v38 = vmul.f32 %v12307_v14, %v5810_v5  ;;  %v7639_v17 = vpop.f32.mrb[130].mxu0 }
 0xb23   :  { %v7820_v28 = vpack.c.bf16 %v7639_v17, %v7638_v31  ;;  %v5813_v8 = vpop.f32.mrb[131].mxu0  ;;  %v5847_v18 = vmul.f32 %v7639_v17, %v12307_v14  ;;  %v5891_v46 = vsel %vm5848_vm12, %v5846_v4, 0.0  ;;  %v13653_v17 = vld [vmem:[#allocation56_spill] sm:$0xff] }
 0xb24   :  { %v5845_v25 = vmul.f32 %v12307_v14, %v5813_v8  ;;  %v7816_v2 = vpack.c.bf16 %v5813_v8, %v5810_v5  ;;  %v5885_v1 = vsel %vm5848_vm12, %v5844_v38, 0.0  ;;  %v5860_v14 = vpop.xlane.xlu0 %5859  ;;  %v13652_v5 = vld [vmem:[#allocation59_spill] sm:$0xff] }
 0xb25   :  { %5886 = vadd.xlane.f32.xlu1 %v5885_v1  ;;  %v5894_v30 = vsel %vm5848_vm12, %v5847_v18, 0.0 }
 0xb26   :  { %7818 = vmatpush3.bf16.xpose.msk.msra.mxu1 %vm12312_vm15, %v7816_v2  ;;  %7687 = vmatprep.subr.bf16.mxu0 %v7816_v2  ;;  %v5888_v40 = vsel %vm5848_vm12, %v5845_v25, 0.0 }
 0xb27   :  { %7688 = vmatpush3.bf16.msra.mxu0 %v7816_v2  ;;  %5889 = vadd.xlane.f32.xlu0 %v5888_v40 }
 0xb28   :  { %7689 = vmatprep.subr.bf16.mxu0 %v7820_v28  ;;  %7819 = vmatprep.subr.bf16.mxu1 %v13644_v41 }
 0xb29   :  { %5892 = vadd.xlane.f32.xlu1 %v5891_v46 }
 0xb2b   :  { %7690 = vmatpush3.bf16.msra.mxu0 %v7820_v28  ;;  %5895 = vadd.xlane.f32.xlu0 %v5894_v30  ;;  %v13654_v30 = vld [vmem:[#allocation69_spill] sm:$0xff] }
 0xb2c   :  { %7707 = vmatprep.subr.bf16.mxu0 %v13645_v62 }
 0xb2e   :  { %7822 = vmatpush3.bf16.xpose.msk.msra.mxu1 %vm12312_vm15, %v7820_v28 }
 0xb35   :  { %7673 = vmatmul.mubr.msk.f32.vlgmr.msra.gmra.mrb[176].mxu1 %vm5848_vm12, %v5897_v54 }
 0xb42   :  { %v5863_v52 = vpop.xlane.xlu1 %5862 }
 0xb44   :  { %v5866_v27 = vpop.xlane.xlu0 %5865 }
 0xb46   :  { %v5869_v35 = vpop.xlane.xlu1 %5868 }
 0xb48   :  { %v5872_v13 = vpop.xlane.xlu0 %5871 }
 0xb7a   :  { %v5875_v37 = vpop.xlane.xlu1 %5874 }
 0xb7c   :  { %v5878_v45 = vpop.xlane.xlu0 %5877 }
 0xb7e   :  { %v5881_v58 = vpop.xlane.xlu1 %5880 }
 0xb80   :  { %v5884_v12 = vpop.xlane.xlu0 %5883 }
 0xbb2   :  { %v5887_v25 = vpop.xlane.xlu1 %5886 }
 0xbb4   :  { %v5890_v2 = vpop.xlane.xlu0 %5889 }
 0xc08   :  { %v6015_v19 = vpop.f32.mrb[176].mxu1 }
 0xc09   :  { %v12377_v63 = vrot.slane %v6015_v19, %v13647_v21  ;;  %v7674_v44 = vpop.f32.mrb[177].mxu1  ;;  %v5893_v21 = vpop.xlane.xlu1 %5892 }
 0xc0a   :  { %v5896_v44 = vpop.xlane.xlu0 %5895 }
 0xc0b   :  { %v6024_v53 = vadd.f32 %v12377_v63, %v5854_v55  ;;  %v6023_v10 = vadd.f32 %v12377_v63, %v5851_v22  ;;  %v6025_v3 = vadd.f32 %v12377_v63, %v5857_v16  ;;  %v6026_v32 = vadd.f32 %v12377_v63, %v5860_v14  ;;  %v13655_v22 = vld [vmem:[#allocation66_spill] sm:$0xff] }
 0xc0c   :  { %v6027_v61 = vadd.f32 %v12377_v63, %v5863_v52  ;;  %v6028_v41 = vadd.f32 %v12377_v63, %v5866_v27  ;;  %v6029_v11 = vadd.f32 %v12377_v63, %v5869_v35  ;;  %v6030_v0 = vadd.f32 %v12377_v63, %v5872_v13 }
 0xc0d   :  { %v6040_v36 = vmul.f32 0.2, %v6024_v53  ;;  %v6039_v56 = vmul.f32 0.2, %v6023_v10  ;;  %v6041_v20 = vmul.f32 0.2, %v6025_v3  ;;  %v6031_v7 = vadd.f32 %v12377_v63, %v5875_v37 }
 0xc0e   :  { %v6042_v26 = vmul.f32 0.2, %v6026_v32  ;;  %v6043_v15 = vmul.f32 0.2, %v6027_v61  ;;  %v6044_v50 = vmul.f32 0.2, %v6028_v41  ;;  %v6032_v31 = vadd.f32 %v12377_v63, %v5878_v45 }
 0xc0f   :  { %v6056_v47 = vmax.f32 %v6024_v53, %v6040_v36  ;;  %v6055_v9 = vmax.f32 %v6023_v10, %v6039_v56  ;;  %v6057_v57 = vmax.f32 %v6025_v3, %v6041_v20  ;;  %v6045_v51 = vmul.f32 0.2, %v6029_v11  ;;  %v13656_v3 = vld [vmem:[#allocation77_spill] sm:$0xff]  ;;  %v13658_v37 = vld [vmem:[#allocation87_spill] sm:$0xff] }
 0xc10   :  { %v6058_v43 = vmax.f32 %v6026_v32, %v6042_v26  ;;  %v6059_v33 = vmax.f32 %v6027_v61, %v6043_v15  ;;  %v6060_v59 = vmax.f32 %v6028_v41, %v6044_v50  ;;  %v6046_v34 = vmul.f32 0.2, %v6030_v0  ;;  %v13657_v61 = vld [vmem:[#allocation75_spill] sm:$0xff]  ;;  %v13660_v50 = vld [vmem:[#allocation100_spill] sm:$0xff] }
 0xc11   :  { %v12388_v39 = vadd.f32 %v6056_v47, %v13648_v6  ;;  %v12391_v48 = vadd.f32 %v6055_v9, %v13649_v49  ;;  %v12396_v24 = vadd.f32 %v6057_v57, %v13650_v23  ;;  %v6061_v8 = vmax.f32 %v6029_v11, %v6045_v51  ;;  %v13659_v47 = vld [vmem:[#allocation84_spill] sm:$0xff] }
 0xc12   :  { %v12399_v60 = vadd.f32 %v6058_v43, %v13651_v42  ;;  %v12406_v38 = vadd.f32 %v6059_v33, %v13652_v5  ;;  %v12409_v28 = vadd.f32 %v6060_v59, %v13653_v17  ;;  %v6062_v4 = vmax.f32 %v6030_v0, %v6046_v34  ;;  %v13661_v0 = vld [vmem:[#allocation93_spill] sm:$0xff]  ;;  %v13662_v43 = vld [vmem:[#allocation104_spill] sm:$0xff]  ;;  %v13663_v59 = vld [vmem:[#allocation102_spill] sm:$0xff] }
 0xc13   :  { %6089 = vmax.xlane.f32.xlu0 %v12388_v39  ;;  %6087 = vmax.xlane.f32.xlu1 %v12391_v48  ;;  %v6047_v1 = vmul.f32 0.2, %v6031_v7  ;;  %v6048_v18 = vmul.f32 0.2, %v6032_v31  ;;  %v6033_v40 = vadd.f32 %v12377_v63, %v5881_v58  ;;  %v6034_v46 = vadd.f32 %v12377_v63, %v5884_v12 }
 0xc14   :  { %v12416_v54 = vadd.f32 %v6061_v8, %v13654_v30  ;;  %v12419_v16 = vadd.f32 %v6062_v4, %v13655_v22  ;;  %v6035_v55 = vadd.f32 %v12377_v63, %v5887_v25  ;;  %v6036_v14 = vadd.f32 %v12377_v63, %v5890_v2 }
 0xc15   :  { %v6063_v52 = vmax.f32 %v6031_v7, %v6047_v1  ;;  %v6064_v27 = vmax.f32 %v6032_v31, %v6048_v18  ;;  %v6049_v19 = vmul.f32 0.2, %v6033_v40  ;;  %v6050_v29 = vmul.f32 0.2, %v6034_v46 }
 0xc16   :  { %v6051_v35 = vmul.f32 0.2, %v6035_v55  ;;  %v6052_v13 = vmul.f32 0.2, %v6036_v14  ;;  %v6037_v53 = vadd.f32 %v12377_v63, %v5893_v21  ;;  %v6038_v10 = vadd.f32 %v12377_v63, %v5896_v44 }
 0xc17   :  { %6091 = vmax.xlane.f32.xlu1 %v12396_v24  ;;  %6093 = vmax.xlane.f32.xlu0 %v12399_v60  ;;  %v12428_v32 = vadd.f32 %v6063_v52, %v13656_v3  ;;  %v12431_v41 = vadd.f32 %v6064_v27, %v13657_v61  ;;  %v6065_v36 = vmax.f32 %v6033_v40, %v6049_v19 }
 0xc18   :  { %v6066_v56 = vmax.f32 %v6034_v46, %v6050_v29  ;;  %v6067_v20 = vmax.f32 %v6035_v55, %v6051_v35  ;;  %v6053_v26 = vmul.f32 0.2, %v6037_v53  ;;  %v6068_v63 = vmax.f32 %v6036_v14, %v6052_v13 }
 0xc19   :  { %v12436_v45 = vadd.f32 %v6065_v36, %v13658_v37  ;;  %v6054_v15 = vmul.f32 0.2, %v6038_v10 }
 0xc1a   :  { %v12439_v9 = vadd.f32 %v6066_v56, %v13659_v47  ;;  %v12444_v11 = vadd.f32 %v6067_v20, %v13660_v50  ;;  %v12447_v6 = vadd.f32 %v6068_v63, %v13661_v0  ;;  %v6069_v49 = vmax.f32 %v6037_v53, %v6053_v26 }
 0xc1b   :  { %6095 = vmax.xlane.f32.xlu1 %v12406_v38  ;;  %6097 = vmax.xlane.f32.xlu0 %v12409_v28  ;;  %v6070_v57 = vmax.f32 %v6038_v10, %v6054_v15 }
 0xc1c   :  { %v12452_v33 = vadd.f32 %v6069_v49, %v13662_v43 }
 0xc1d   :  { %v12455_v51 = vadd.f32 %v6070_v57, %v13663_v59 }
 0xc1f   :  { %6099 = vmax.xlane.f32.xlu1 %v12416_v54  ;;  %6101 = vmax.xlane.f32.xlu0 %v12419_v16 }
 0xc23   :  { %6103 = vmax.xlane.f32.xlu1 %v12428_v32  ;;  %6105 = vmax.xlane.f32.xlu0 %v12431_v41 }
 0xc27   :  { %6107 = vmax.xlane.f32.xlu1 %v12436_v45  ;;  %6109 = vmax.xlane.f32.xlu0 %v12439_v9 }
 0xc2b   :  { %6111 = vmax.xlane.f32.xlu1 %v12444_v11  ;;  %6113 = vmax.xlane.f32.xlu0 %v12447_v6 }
 0xc2f   :  { %6115 = vmax.xlane.f32.xlu1 %v12452_v33  ;;  %6117 = vmax.xlane.f32.xlu0 %v12455_v51 }
 0xca0   :  { %v6088_v34 = vpop.xlane.xlu1 %6087  ;;  %v6090_v58 = vpop.xlane.xlu0 %6089 }
 0xca1   :  { %v6119_v12 = vsub.f32 %v12391_v48, %v6088_v34  ;;  %v6120_v23 = vsub.f32 %v12388_v39, %v6090_v58 }
 0xca3   :  { %v6135_v42 = vmul.f32 1.442695, %v6119_v12  ;;  %v6137_v7 = vmul.f32 1.442695, %v6120_v23 }
 0xca4   :  { %v6092_v31 = vpop.xlane.xlu1 %6091  ;;  %v6094_v5 = vpop.xlane.xlu0 %6093 }
 0xca5   :  { %8482 = vpow2.f32 %v6135_v42  ;;  %v6121_v17 = vsub.f32 %v12396_v24, %v6092_v31  ;;  %v6122_v8 = vsub.f32 %v12399_v60, %v6094_v5 }
 0xca6   :  { %8484 = vpow2.f32 %v6137_v7 }
 0xca7   :  { %v6139_v4 = vmul.f32 1.442695, %v6121_v17  ;;  %v6141_v25 = vmul.f32 1.442695, %v6122_v8 }
 0xca8   :  { %v6096_v2 = vpop.xlane.xlu1 %6095  ;;  %v6098_v1 = vpop.xlane.xlu0 %6097 }
 0xca9   :  { %8486 = vpow2.f32 %v6139_v4  ;;  %v6123_v18 = vsub.f32 %v12406_v38, %v6096_v2  ;;  %v6124_v48 = vsub.f32 %v12409_v28, %v6098_v1 }
 0xcaa   :  { %8488 = vpow2.f32 %v6141_v25 }
 0xcab   :  { %v6143_v39 = vmul.f32 1.442695, %v6123_v18  ;;  %v6145_v40 = vmul.f32 1.442695, %v6124_v48 }
 0xcac   :  { %v6100_v46 = vpop.xlane.xlu1 %6099  ;;  %v6102_v30 = vpop.xlane.xlu0 %6101 }
 0xcad   :  { %8490 = vpow2.f32 %v6143_v39  ;;  %v6125_v24 = vsub.f32 %v12416_v54, %v6100_v46  ;;  %v6126_v60 = vsub.f32 %v12419_v16, %v6102_v30 }
 0xcae   :  { %8492 = vpow2.f32 %v6145_v40 }
 0xcaf   :  { %v8483_v22 = vpop.eup %8482  ;;  %v6147_v55 = vmul.f32 1.442695, %v6125_v24  ;;  %v6149_v14 = vmul.f32 1.442695, %v6126_v60 }
 0xcb0   :  { %v8485_v52 = vpop.eup %8484  ;;  %v6104_v27 = vpop.xlane.xlu1 %6103 }
 0xcb1   :  { %v6106_v19 = vpop.xlane.xlu0 %6105  ;;  %8494 = vpow2.f32 %v6147_v55  ;;  %v6127_v38 = vsub.f32 %v12428_v32, %v6104_v27  ;;  %v12469_v29 = vpack.c.bf16 %v8485_v52, %v8483_v22 }
 0xcb2   :  { %v6128_v28 = vsub.f32 %v12431_v41, %v6106_v19  ;;  %8496 = vpow2.f32 %v6149_v14 }
 0xcb3   :  { %v8487_v21 = vpop.eup %8486  ;;  %v6151_v44 = vmul.f32 1.442695, %v6127_v38  ;;  %7691 = vmatprep.mubr.bf16.mxu0 %v12469_v29 }
 0xcb4   :  { %v6153_v54 = vmul.f32 1.442695, %v6128_v28  ;;  %v8489_v16 = vpop.eup %8488  ;;  %v6108_v35 = vpop.xlane.xlu1 %6107 }
 0xcb5   :  { %v6110_v13 = vpop.xlane.xlu0 %6109  ;;  %8498 = vpow2.f32 %v6151_v44  ;;  %v6129_v53 = vsub.f32 %v12436_v45, %v6108_v35  ;;  %v6168_v3 = vpack.c.bf16 %v8489_v16, %v8487_v21 }
 0xcb6   :  { %v6130_v10 = vsub.f32 %v12439_v9, %v6110_v13  ;;  %8500 = vpow2.f32 %v6153_v54 }
 0xcb7   :  { %v8491_v32 = vpop.eup %8490  ;;  %v6155_v61 = vmul.f32 1.442695, %v6129_v53  ;;  %7692 = vmatmul.mubr.bf16.vlgmr.msra.gmra.mrb[132].mxu0 %v6168_v3 }
 0xcb8   :  { %v6157_v41 = vmul.f32 1.442695, %v6130_v10  ;;  %v8493_v36 = vpop.eup %8492  ;;  %7708 = vmatpush3.bf16.msra.mxu0 %v13645_v62  ;;  %v6112_v56 = vpop.xlane.xlu1 %6111 }
 0xcb9   :  { %v6114_v20 = vpop.xlane.xlu0 %6113  ;;  %8502 = vpow2.f32 %v6155_v61  ;;  %v6131_v26 = vsub.f32 %v12444_v11, %v6112_v56  ;;  %7709 = vmatprep.subr.bf16.mxu0 %v13645_v62  ;;  %v6169_v45 = vpack.c.bf16 %v8493_v36, %v8491_v32 }
 0xcba   :  { %v6132_v37 = vsub.f32 %v12447_v6, %v6114_v20  ;;  %8504 = vpow2.f32 %v6157_v41 }
 0xcbb   :  { %v8495_v47 = vpop.eup %8494  ;;  %v6159_v9 = vmul.f32 1.442695, %v6131_v26  ;;  %7695 = vmatprep.mubr.bf16.mxu0 %v6169_v45 }
 0xcbc   :  { %v6161_v63 = vmul.f32 1.442695, %v6132_v37  ;;  %v8497_v15 = vpop.eup %8496  ;;  %7710 = vmatpush3.bf16.msra.mxu0 %v13645_v62  ;;  %v6116_v50 = vpop.xlane.xlu1 %6115 }
 0xcbd   :  { %v6118_v0 = vpop.xlane.xlu0 %6117  ;;  %8506 = vpow2.f32 %v6159_v9  ;;  %v6133_v49 = vsub.f32 %v12452_v33, %v6116_v50  ;;  %7711 = vmatprep.subr.bf16.mxu0 %v13645_v62  ;;  %v6170_v6 = vpack.c.bf16 %v8497_v15, %v8495_v47 }
 0xcbe   :  { %v6134_v11 = vsub.f32 %v12455_v51, %v6118_v0  ;;  %8508 = vpow2.f32 %v6161_v63 }
 0xcbf   :  { %v8499_v57 = vpop.eup %8498  ;;  %v6163_v43 = vmul.f32 1.442695, %v6133_v49  ;;  %7696 = vmatmul.mubr.bf16.gmra.mrb[136].mxu0 %v6170_v6 }
 0xcc0   :  { %v6165_v59 = vmul.f32 1.442695, %v6134_v11  ;;  %v8501_v34 = vpop.eup %8500  ;;  %7712 = vmatpush3.bf16.msra.mxu0 %v13645_v62  ;;  %v12529_v11 = vld [vmem:[%s12636_s9] ss:$0 sm:$0xff] }
 0xcc1   :  { %8510 = vpow2.f32 %v6163_v43  ;;  %7713 = vmatprep.subr.bf16.mxu0 %v13645_v62  ;;  %v6171_v58 = vpack.c.bf16 %v8501_v34, %v8499_v57 }
 0xcc2   :  { %8512 = vpow2.f32 %v6165_v59 }
 0xcc3   :  { %v8503_v12 = vpop.eup %8502  ;;  %7699 = vmatprep.mubr.bf16.mxu0 %v6171_v58 }
 0xcc4   :  { %v8505_v33 = vpop.eup %8504  ;;  %7714 = vmatpush3.bf16.msra.mxu0 %v13645_v62 }
 0xcc5   :  { %7715 = vmatprep.subr.bf16.mxu0 %v13645_v62  ;;  %v6172_v51 = vpack.c.bf16 %v8505_v33, %v8503_v12 }
 0xcc7   :  { %v8507_v23 = vpop.eup %8506  ;;  %7700 = vmatmul.mubr.bf16.gmra.mrb[140].mxu0 %v6172_v51 }
 0xcc8   :  { %v8509_v42 = vpop.eup %8508  ;;  %7716 = vmatpush3.bf16.msra.mxu0 %v13645_v62 }
 0xcc9   :  { %7717 = vmatprep.subr.bf16.mxu0 %v13645_v62  ;;  %v6173_v7 = vpack.c.bf16 %v8509_v42, %v8507_v23 }
 0xccb   :  { %v8511_v31 = vpop.eup %8510  ;;  %7703 = vmatprep.mubr.bf16.mxu0 %v6173_v7 }
 0xccc   :  { %v8513_v5 = vpop.eup %8512  ;;  %7718 = vmatpush3.bf16.msra.mxu0 %v13645_v62 }
 0xccd   :  { %7719 = vmatprep.subr.bf16.mxu0 %v13645_v62  ;;  %v6174_v17 = vpack.c.bf16 %v8513_v5, %v8511_v31 }
 0xccf   :  { %7704 = vmatmul.mubr.bf16.gmra.mrb[144].mxu0 %v6174_v17 }
 0xcd0   :  { %7720 = vmatpush3.bf16.msra.mxu0 %v13645_v62  ;;  %7723 = vmatprep.mubr.bf16.mxu0 %v12469_v29 }
 0xcd1   :  { %7721 = vmatprep.subr.bf16.mxu0 %v13645_v62 }
 0xcd4   :  { %7722 = vmatpush3.bf16.msra.mxu0 %v13645_v62 }
 0xcd7   :  { %7724 = vmatmul.mubr.bf16.vlgmr.msra.gmra.mrb[148].mxu0 %v6168_v3 }
 0xcd8   :  { %7727 = vmatprep.mubr.bf16.mxu0 %v6169_v45 }
 0xcdf   :  { %7728 = vmatmul.mubr.bf16.gmra.mrb[152].mxu0 %v6170_v6 }
 0xce0   :  { %7731 = vmatprep.mubr.bf16.mxu0 %v6171_v58 }
 0xce7   :  { %7732 = vmatmul.mubr.bf16.gmra.mrb[156].mxu0 %v6172_v51 }
 0xce8   :  { %7735 = vmatprep.mubr.bf16.mxu0 %v6173_v7 }
 0xcef   :  { %7736 = vmatmul.mubr.bf16.gmra.mrb[160].mxu0 %v6174_v17 }
 0xd8a   :  { %v12494_v8 = vpop.f32.mrb[132].mxu0 }
 0xd8b   :  { %v12496_v4 = vpop.f32.mrb[133].mxu0 }
 0xd8c   :  { %v12498_v25 = vpop.f32.mrb[134].mxu0 }
 0xd8d   :  { %v12500_v2 = vpop.f32.mrb[135].mxu0 }
 0xd92   :  { %v12502_v1 = vpop.f32.mrb[136].mxu0 }
 0xd93   :  { %v12504_v18 = vpop.f32.mrb[137].mxu0 }
 0xd94   :  { %v12506_v62 = vpop.f32.mrb[138].mxu0 }
 0xd95   :  { %v12508_v48 = vpop.f32.mrb[139].mxu0 }
 0xd9a   :  { %v12510_v39 = vpop.f32.mrb[140].mxu0 }
 0xd9b   :  { %v12512_v40 = vpop.f32.mrb[141].mxu0 }
 0xd9c   :  { %v12514_v46 = vpop.f32.mrb[142].mxu0 }
 0xd9d   :  { %v12516_v30 = vpop.f32.mrb[143].mxu0 }
 0xda2   :  { %v12518_v24 = vpop.f32.mrb[144].mxu0 }
 0xda3   :  { %v12520_v60 = vpop.f32.mrb[145].mxu0 }
 0xda4   :  { %v12522_v22 = vpop.f32.mrb[146].mxu0 }
 0xda5   :  { %v12524_v55 = vpop.f32.mrb[147].mxu0 }
 0xdaa   :  { %v7725_v14 = vpop.f32.mrb[148].mxu0 }
 0xdab   :  { %v6314_v52 = vpop.f32.mrb[149].mxu0 }
 0xdac   :  { %8514 = vrcp.f32 %v6314_v52  ;;  %v7726_v27 = vpop.f32.mrb[150].mxu0 }
 0xdad   :  { %v6317_v19 = vpop.f32.mrb[151].mxu0 }
 0xdae   :  { %8516 = vrcp.f32 %v6317_v19 }
 0xdaf   :  { %8518 = vrcp.f32 %v7725_v14 }
 0xdb0   :  { %8520 = vrcp.f32 %v7726_v27 }
 0xdb2   :  { %v7729_v38 = vpop.f32.mrb[152].mxu0 }
 0xdb3   :  { %v6330_v28 = vpop.f32.mrb[153].mxu0 }
 0xdb4   :  { %8522 = vrcp.f32 %v6330_v28  ;;  %v7730_v29 = vpop.f32.mrb[154].mxu0 }
 0xdb5   :  { %v6333_v21 = vpop.f32.mrb[155].mxu0  ;;  %8524 = vrcp.f32 %v7729_v38 }
 0xdb6   :  { %v8515_v44 = vpop.eup %8514  ;;  %8526 = vrcp.f32 %v6333_v21 }
 0xdb7   :  { %6395 = vperm.xlu1 %7937, %v8515_v44   ;;  %8528 = vrcp.f32 %v7730_v29 }
 0xdb8   :  { %v8517_v54 = vpop.eup %8516 }
 0xdb9   :  { %6400 = vperm.xlu0 %7936, %v8517_v54   ;;  %v8519_v16 = vpop.eup %8518 }
 0xdba   :  { %v7733_v35 = vpop.f32.mrb[156].mxu0  ;;  %v8521_v10 = vpop.eup %8520 }
 0xdbb   :  { %6405 = vperm.xlu1 %7937, %v8519_v16   ;;  %v6346_v13 = vpop.f32.mrb[157].mxu0 }
 0xdbc   :  { %8530 = vrcp.f32 %v6346_v13  ;;  %v7734_v53 = vpop.f32.mrb[158].mxu0 }
 0xdbd   :  { %v6349_v3 = vpop.f32.mrb[159].mxu0  ;;  %8532 = vrcp.f32 %v7733_v35 }
 0xdbe   :  { %v8523_v32 = vpop.eup %8522  ;;  %8534 = vrcp.f32 %v6349_v3 }
 0xdbf   :  { %6410 = vperm.xlu1 %7937, %v8521_v10   ;;  %6415 = vperm.xlu0 %7936, %v8523_v32   ;;  %v8525_v61 = vpop.eup %8524  ;;  %8536 = vrcp.f32 %v7734_v53 }
 0xdc0   :  { %v8527_v41 = vpop.eup %8526 }
 0xdc1   :  { %v8529_v26 = vpop.eup %8528 }
 0xdc2   :  { %v7737_v36 = vpop.f32.mrb[160].mxu0 }
 0xdc3   :  { %6425 = vperm.xlu0 %7936, %v8525_v61   ;;  %6420 = vperm.xlu1 %7937, %v8527_v41   ;;  %v6362_v56 = vpop.f32.mrb[161].mxu0 }
 0xdc4   :  { %8538 = vrcp.f32 %v6362_v56  ;;  %v7738_v20 = vpop.f32.mrb[162].mxu0 }
 0xdc5   :  { %v6365_v37 = vpop.f32.mrb[163].mxu0  ;;  %8540 = vrcp.f32 %v7737_v36 }
 0xdc6   :  { %v8531_v45 = vpop.eup %8530  ;;  %8542 = vrcp.f32 %v6365_v37 }
 0xdc7   :  { %6430 = vperm.xlu1 %7937, %v8529_v26   ;;  %6435 = vperm.xlu0 %7936, %v8531_v45   ;;  %v8533_v47 = vpop.eup %8532  ;;  %8544 = vrcp.f32 %v7738_v20 }
 0xdc8   :  { %v8535_v9 = vpop.eup %8534 }
 0xdc9   :  { %v8537_v63 = vpop.eup %8536 }
 0xdcb   :  { %6445 = vperm.xlu0 %7936, %v8533_v47   ;;  %6440 = vperm.xlu1 %7937, %v8535_v9  }
 0xdce   :  { %v8539_v15 = vpop.eup %8538 }
 0xdcf   :  { %6450 = vperm.xlu1 %7937, %v8537_v63   ;;  %6455 = vperm.xlu0 %7936, %v8539_v15   ;;  %v8541_v50 = vpop.eup %8540 }
 0xdd0   :  { %v8543_v0 = vpop.eup %8542 }
 0xdd1   :  { %v8545_v49 = vpop.eup %8544 }
 0xdd3   :  { %6465 = vperm.xlu0 %7936, %v8541_v50   ;;  %6460 = vperm.xlu1 %7937, %v8543_v0  }
 0xdd7   :  { %6470 = vperm.xlu1 %7937, %v8545_v49  }
 0xe36   :  { %v6396_v6 = vpop.permute.xlu1 %6395 }
 0xe37   :  { %v6473_v57 = vmul.f32 %v6396_v6, %v12496_v4 }
 0xe38   :  { %v6401_v43 = vpop.permute.xlu0 %6400 }
 0xe39   :  { %v6496_v59 = vadd.f32 %v12529_v11, %v6473_v57  ;;  %v6474_v34 = vmul.f32 %v6401_v43, %v12500_v2 }
 0xe3a   :  { %v6406_v58 = vpop.permute.xlu1 %6405 }
 0xe3b   :  { %6512 = vst.msk [vmem:[%s12637_s10] sm:$0xff] %vm5848_vm12, %v6496_v59  ;;  %v6497_v12 = vadd.f32 %v12529_v11, %v6474_v34  ;;  %v6475_v33 = vmul.f32 %v12494_v8, %v6406_v58 }
 0xe3d   :  { %6513 = vst.msk [vmem:[%s12637_s10 + $0x8] sm:$0xff] %vm5848_vm12, %v6497_v12  ;;  %v6498_v51 = vadd.f32 %v12529_v11, %v6475_v33 }
 0xe3e   :  { %v6411_v23 = vpop.permute.xlu1 %6410  ;;  %v6416_v42 = vpop.permute.xlu0 %6415 }
 0xe3f   :  { %6514 = vst.msk [vmem:[%s12637_s10 + $0x10] sm:$0xff] %vm5848_vm12, %v6498_v51  ;;  %v6476_v7 = vmul.f32 %v12498_v25, %v6411_v23  ;;  %v6477_v31 = vmul.f32 %v6416_v42, %v12504_v18 }
 0xe41   :  { %v6499_v5 = vadd.f32 %v12529_v11, %v6476_v7  ;;  %v6500_v17 = vadd.f32 %v12529_v11, %v6477_v31 }
 0xe42   :  { %v6426_v8 = vpop.permute.xlu0 %6425  ;;  %v6421_v4 = vpop.permute.xlu1 %6420 }
 0xe43   :  { %6515 = vst.msk [vmem:[%s12637_s10 + $0x18] sm:$0xff] %vm5848_vm12, %v6499_v5  ;;  %6516 = vst.msk [vmem:[%s12637_s10 + $0x20] sm:$0xff] %vm5848_vm12, %v6500_v17  ;;  %v6479_v25 = vmul.f32 %v12502_v1, %v6426_v8  ;;  %v6478_v2 = vmul.f32 %v6421_v4, %v12508_v48 }
 0xe45   :  { %v6502_v18 = vadd.f32 %v12529_v11, %v6479_v25  ;;  %v6501_v14 = vadd.f32 %v12529_v11, %v6478_v2 }
 0xe46   :  { %v6431_v52 = vpop.permute.xlu1 %6430  ;;  %v6436_v27 = vpop.permute.xlu0 %6435 }
 0xe47   :  { %6518 = vst.msk [vmem:[%s12637_s10 + $0x30] sm:$0xff] %vm5848_vm12, %v6502_v18  ;;  %6517 = vst.msk [vmem:[%s12637_s10 + $0x28] sm:$0xff] %vm5848_vm12, %v6501_v14  ;;  %v6480_v1 = vmul.f32 %v12506_v62, %v6431_v52  ;;  %v6481_v48 = vmul.f32 %v6436_v27, %v12512_v40 }
 0xe49   :  { %v6503_v19 = vadd.f32 %v12529_v11, %v6480_v1  ;;  %v6504_v38 = vadd.f32 %v12529_v11, %v6481_v48 }
 0xe4a   :  { %v6446_v28 = vpop.permute.xlu0 %6445  ;;  %v6441_v29 = vpop.permute.xlu1 %6440 }
 0xe4b   :  { %6519 = vst.msk [vmem:[%s12637_s10 + $0x38] sm:$0xff] %vm5848_vm12, %v6503_v19  ;;  %6520 = vst.msk [vmem:[%s12637_s10 + $0x40] sm:$0xff] %vm5848_vm12, %v6504_v38  ;;  %v6483_v62 = vmul.f32 %v12510_v39, %v6446_v28  ;;  %v6482_v40 = vmul.f32 %v6441_v29, %v12516_v30 }
 0xe4d   :  { %v6506_v21 = vadd.f32 %v12529_v11, %v6483_v62  ;;  %v6505_v44 = vadd.f32 %v12529_v11, %v6482_v40 }
 0xe4e   :  { %v6451_v54 = vpop.permute.xlu1 %6450  ;;  %v6456_v16 = vpop.permute.xlu0 %6455 }
 0xe4f   :  { %6522 = vst.msk [vmem:[%s12637_s10 + $0x50] sm:$0xff] %vm5848_vm12, %v6506_v21  ;;  %6521 = vst.msk [vmem:[%s12637_s10 + $0x48] sm:$0xff] %vm5848_vm12, %v6505_v44  ;;  %v6484_v39 = vmul.f32 %v12514_v46, %v6451_v54  ;;  %v6485_v30 = vmul.f32 %v6456_v16, %v12520_v60 }
 0xe51   :  { %v6507_v35 = vadd.f32 %v12529_v11, %v6484_v39  ;;  %v6508_v13 = vadd.f32 %v12529_v11, %v6485_v30 }
 0xe52   :  { %v6466_v53 = vpop.permute.xlu0 %6465  ;;  %v6461_v10 = vpop.permute.xlu1 %6460 }
 0xe53   :  { %6523 = vst.msk [vmem:[%s12637_s10 + $0x58] sm:$0xff] %vm5848_vm12, %v6507_v35  ;;  %6524 = vst.msk [vmem:[%s12637_s10 + $0x60] sm:$0xff] %vm5848_vm12, %v6508_v13  ;;  %v6487_v46 = vmul.f32 %v12518_v24, %v6466_v53  ;;  %v6486_v60 = vmul.f32 %v6461_v10, %v12524_v55 }
 0xe55   :  { %v6510_v3 = vadd.f32 %v12529_v11, %v6487_v46  ;;  %v6509_v32 = vadd.f32 %v12529_v11, %v6486_v60 }
 0xe56   :  { %v6471_v61 = vpop.permute.xlu1 %6470 }
 0xe57   :  { %6526 = vst.msk [vmem:[%s12637_s10 + $0x70] sm:$0xff] %vm5848_vm12, %v6510_v3  ;;  %6525 = vst.msk [vmem:[%s12637_s10 + $0x68] sm:$0xff] %vm5848_vm12, %v6509_v32  ;;  %v6488_v41 = vmul.f32 %v12522_v22, %v6471_v61 }
 0xe59   :  { %v6511_v24 = vadd.f32 %v12529_v11, %v6488_v41 }
 0xe5b   :  { %6527 = vst.msk [vmem:[%s12637_s10 + $0x78] sm:$0xff] %vm5848_vm12, %v6511_v24 }

</bundles_post_ra>
